<compile_context>
chip_gen: v5e
topology: v5e:2x2
jax: 0.10.0
libtpu: 0.0.40
codegen_flags: <defaults>
</compile_context>

<pallas_src>
import functools

import jax
import jax.numpy as jnp
from jax.experimental import pallas as pl
from jax.experimental.pallas import tpu as pltpu


H_IN, W_IN, C_IN = 15, 15, 3
C1, C2, C3, C4 = 28, 48, 64, 128
H1, W1 = 13, 13        # after conv1 (3x3, valid, stride 1)
H2, W2 = 6, 6          # after pool1 (3x3, stride 2, floor)
H3, W3 = 2, 2          # after pool2 (3x3, stride 2, floor)
K1 = 9 * C_IN          # 27 im2col features for conv1 (tap-major, channel-minor)
N_HEAD = 8             # merged head lanes: [det(1) | box(4) | zero pad(3)]


# ----------------------------------------------------------------------------- #
# In-kernel helpers (pure jnp, leading-dim ops only)
# ----------------------------------------------------------------------------- #
def _prelu(y, a):
    return jnp.where(y > 0.0, y, a * y)


def _pool3x3s2_axis0(y, out_len):
    """Max-pool (k=3, s=2, floor) along leading axis 0 of (L, ...)."""
    return jnp.stack(
        [jnp.maximum(jnp.maximum(y[2 * i], y[2 * i + 1]), y[2 * i + 2])
         for i in range(out_len)], axis=0)


def _pool3x3s2_axis1(y, out_len):
    """Max-pool (k=3, s=2, floor) along leading axis 1 of (A, L, ...)."""
    return jnp.stack(
        [jnp.maximum(jnp.maximum(y[:, 2 * j], y[:, 2 * j + 1]), y[:, 2 * j + 2])
         for j in range(out_len)], axis=1)


# ----------------------------------------------------------------------------- #
# Fused RNet kernel
# ----------------------------------------------------------------------------- #
def _rnet_kernel(x_ref, w1_ref, b1_ref, a1_ref, w2_ref, b2_ref, a2_ref,
                 w3_ref, b3_ref, a3_ref, w4_ref, b4_ref, a4_ref,
                 w5_ref, b5_ref, out_ref):
    f32 = jnp.float32
    bf16 = jnp.bfloat16
    t = x_ref.shape[1]                       # batch tile (multiple of 16)

    # ---- conv1: single im2col GEMM, M = 169*t, K = 27, N = 28 ----
    xc = x_ref[...].reshape(H1 * W1 * t, K1)            # leading-dim merge: layout no-op
    y = jnp.dot(xc, w1_ref[...], preferred_element_type=f32)
    y = _prelu(y + b1_ref[...], a1_ref[...]).astype(bf16)   # f32 epilogue, bf16 carry
    y = y.reshape(H1, W1, t, C1)                         # (13, 13, t, 28)

    # ---- maxpool 3x3 stride 2 (floor): 13x13 -> 6x6 (separable max, bf16) ----
    y = _pool3x3s2_axis1(_pool3x3s2_axis0(y, H2), W2)    # (6, 6, t, 28)

    # ---- conv2: 1x1, 28 -> 48 ----
    y = jnp.dot(y.reshape(H2 * W2 * t, C1), w2_ref[...], preferred_element_type=f32)
    y = _prelu(y + b2_ref[...], a2_ref[...]).astype(bf16)
    y = y.reshape(H2, W2, t, C2)                         # (6, 6, t, 48)

    # ---- maxpool 3x3 stride 2 (floor): 6x6 -> 2x2 ----
    y = _pool3x3s2_axis1(_pool3x3s2_axis0(y, H3), W3)    # (2, 2, t, 48)

    # ---- conv3 (1x1, 48 -> 64) fused across the 4 spatial positions ----
    y = jnp.dot(y.reshape(H3 * W3 * t, C2), w3_ref[...], preferred_element_type=f32)
    y = _prelu(y + b3_ref[...], a3_ref[...]).astype(bf16)
    z3 = y.reshape(H3 * W3, t, C3)                       # (4, t, 64)

    # ---- fc4 (256 -> 128): per-position GEMMs, tree-reduced sum ----
    d = [jnp.dot(z3[p], w4_ref[p], preferred_element_type=f32)
         for p in range(H3 * W3)]                        # 4 x (t, 128)
    acc4 = (d[0] + d[1]) + (d[2] + d[3])
    h = _prelu(acc4 + b4_ref[...], a4_ref[...])          # (t, 128) f32

    # ---- merged heads: det = sigmoid(lane 0), box = lanes 1..4 ----
    z = jnp.dot(h.astype(bf16), w5_ref[...], preferred_element_type=f32) + b5_ref[...]
    sig = pl.reciprocal(1.0 + jnp.exp(-z), approx=False)     # EUP exp + exact recip
    lane = jax.lax.broadcasted_iota(jnp.int32, z.shape, 1)
    out_ref[...] = jnp.where(lane == 0, sig, z).astype(out_ref.dtype)


# ----------------------------------------------------------------------------- #
# Wrapper: layout plumbing + pallas_call
# ----------------------------------------------------------------------------- #
def _round_up(x, m):
    return (x + m - 1) // m * m


def _const_spec(shape):
    nd = len(shape)
    return pl.BlockSpec(tuple(shape), lambda i: (0,) * nd)


_WEIGHT_ORDER = ("w1", "b1", "a1", "w2", "b2", "a2", "w3", "b3", "a3",
                 "w4", "b4", "a4", "w5", "b5")


@functools.partial(jax.jit, static_argnames=("tile_n",))
def rnet_forward(x_nchw, params, tile_n=128):
    # NCHW (PyTorch) -> NHWC, streamed in bf16 (MXU operands are bf16 anyway).
    x = jnp.transpose(x_nchw, (0, 2, 3, 1)).astype(jnp.bfloat16)   # (N, 15, 15, 3)
    n, h, w, c = x.shape
    assert (h, w, c) == (H_IN, W_IN, C_IN), "RNet expects (N, 3, 15, 15) input"

    # Batch tile: multiple of 16 (bf16 sublane packing); prefer >= 2 grid steps
    # when the batch allows it so v7x's two TensorCores both get work.
    t = _round_up(min(tile_n, _round_up(n, 16)), 16)
    if n > 16 and _round_up(n, t) // t < 2:
        t = _round_up(-(-n // 2), 16)
    n_pad = _round_up(n, t)
    if n_pad != n:
        x = jnp.pad(x, ((0, n_pad - n), (0, 0), (0, 0), (0, 0)))

    # Wrapper-side im2col for conv1: k = (dy*3+dx)*3 + cin, laid out
    # (positions=169, batch, 27) so the kernel block is (169, t, 27) with the
    # 16-aligned batch tile on sublanes (in-kernel merge is a layout no-op).
    cols = jnp.concatenate([x[:, dy:dy + H1, dx:dx + W1, :]
                            for dy in range(3) for dx in range(3)], axis=-1)
    x_col = jnp.transpose(cols.reshape(n_pad, H1 * W1, K1), (1, 0, 2))

    weights = [params[k] for k in _WEIGHT_ORDER]
    in_specs = [pl.BlockSpec((H1 * W1, t, K1), lambda i: (0, i, 0))]
    in_specs += [_const_spec(wt.shape) for wt in weights]          # weights VMEM-resident

    out = pl.pallas_call(
        _rnet_kernel,
        out_shape=jax.ShapeDtypeStruct((n_pad, N_HEAD), jnp.float32),
        grid_spec=pltpu.PrefetchScalarGridSpec(
            num_scalar_prefetch=0,
            grid=(n_pad // t,),
            in_specs=in_specs,
            out_specs=pl.BlockSpec((t, N_HEAD), lambda i: (i, 0)),
        ),
        compiler_params=pltpu.CompilerParams(
            dimension_semantics=("parallel",),
            vmem_limit_bytes=48 * 1024 * 1024,   # headroom for v7x's 64 MiB VMEM
        ),
    )(x_col, *weights)

    det = out[:n, 0:1]
    box = out[:n, 1:5]
    return det, box


# ----------------------------------------------------------------------------- #
# Deterministic synthetic parameters
# ----------------------------------------------------------------------------- #
def init_params(key):
    ks = jax.random.split(key, 12)
    f32, bf16 = jnp.float32, jnp.bfloat16

    def w(k, shape, scale=0.1):
        return (scale * jax.random.normal(k, shape, f32)).astype(bf16)

    def b(k, n, scale=0.01):
        return (scale * jax.random.normal(k, (1, n), f32)).astype(f32)

    # merged heads: conv5_1 (128->1, sigmoid) | conv5_2 (128->4) | zero pad to 8 lanes
    w5 = jnp.concatenate([w(ks[8], (C4, 1)), w(ks[10], (C4, 4)),
                          jnp.zeros((C4, N_HEAD - 5), bf16)], axis=1)
    b5 = jnp.concatenate([b(ks[9], 1), b(ks[11], 4),
                          jnp.zeros((1, N_HEAD - 5), f32)], axis=1)

    return dict(
        # conv1: 3x3, 3->28, stored as (k = (ky*3+kx)*3 + cin, cout) im2col weight
        w1=w(ks[0], (K1, C1)), b1=b(ks[1], C1), a1=jnp.full((1, C1), 0.25, f32),
        # conv2: 1x1, 28->48
        w2=w(ks[2], (C1, C2)), b2=b(ks[3], C2), a2=jnp.full((1, C2), 0.25, f32),
        # conv3: 1x1, 48->64
        w3=w(ks[4], (C2, C3)), b3=b(ks[5], C3), a3=jnp.full((1, C3), 0.25, f32),
        # conv4: Linear 256->128, rows grouped by spatial position p = h*2+w ((h,w,c) flatten)
        w4=w(ks[6], (H3 * W3, C3, C4)), b4=b(ks[7], C4),
        a4=jnp.full((1, C4), 0.25, f32),   # prelu4: default PReLU alpha = 0.25
        w5=w5, b5=b5,
        # TODO(synk): conv5_3 (Linear 128->10) exists in __init__ but is unused in forward().
    )


# ----------------------------------------------------------------------------- #
# Pure-JAX f32 reference (validation only)
# ----------------------------------------------------------------------------- #
def rnet_reference(x_nchw, p):
    x = jnp.transpose(x_nchw, (0, 2, 3, 1)).astype(jnp.bfloat16).astype(jnp.float32)
    n = x.shape[0]

    def prelu4d(v, a):
        return jnp.where(v > 0.0, v, a.reshape(1, 1, 1, -1) * v)

    def pool(v):
        return jax.lax.reduce_window(v, -jnp.inf, jax.lax.max,
                                     (1, 3, 3, 1), (1, 2, 2, 1), "VALID")

    w1 = p["w1"].astype(jnp.float32)                              # (27, 28)
    cols = jnp.concatenate([x[:, dy:dy + H1, dx:dx + W1, :]
                            for dy in range(3) for dx in range(3)], axis=-1)
    y = jnp.einsum("nhwc,cf->nhwf", cols, w1) + p["b1"].reshape(-1)
    y = pool(prelu4d(y, p["a1"]))
    y = jnp.einsum("nhwc,cf->nhwf", y, p["w2"].astype(jnp.float32)) + p["b2"].reshape(-1)
    y = pool(prelu4d(y, p["a2"]))
    y = jnp.einsum("nhwc,cf->nhwf", y, p["w3"].astype(jnp.float32)) + p["b3"].reshape(-1)
    y = prelu4d(y, p["a3"])                                       # (N, 2, 2, 64)
    feat = y.reshape(n, H3 * W3 * C3)                             # (h, w, c) flatten
    h = feat @ p["w4"].astype(jnp.float32).reshape(H3 * W3 * C3, C4) + p["b4"].reshape(-1)
    h = jnp.where(h > 0.0, h, p["a4"].reshape(-1) * h)
    z = h @ p["w5"].astype(jnp.float32) + p["b5"].reshape(-1)
    return jax.nn.sigmoid(z[:, 0:1]), z[:, 1:5]


# ----------------------------------------------------------------------------- #
if __name__ == "__main__":
    x = jax.random.normal(jax.random.PRNGKey(0), (2, 3, 15, 15), jnp.float32)
    params = init_params(jax.random.PRNGKey(1))

    det, box = rnet_forward(x, params)
    jax.block_until_ready((det, box))

    det_ref, box_ref = rnet_reference(x, params)

    assert det.shape == (2, 1) and box.shape == (2, 4)
    assert bool(jnp.all(jnp.isfinite(det))) and bool(jnp.all(jnp.isfinite(box)))
    assert bool(jnp.all((det > -1e-3) & (det < 1.0 + 1e-3)))
    assert bool(jnp.allclose(det, det_ref, atol=5e-2, rtol=5e-2))
    assert bool(jnp.allclose(box, box_ref, atol=5e-2, rtol=5e-2))
    print("KERNEL_OK")
</pallas_src>

<mosaic_0001>
module attributes {stable_mosaic.version = 11 : i64} {
  func.func @_rnet_kernel(%arg0: i32, %arg1: memref<169x16x27xbf16, #tpu.memory_space<vmem>>, %arg2: memref<27x28xbf16, #tpu.memory_space<vmem>>, %arg3: memref<1x28xf32, #tpu.memory_space<vmem>>, %arg4: memref<1x28xf32, #tpu.memory_space<vmem>>, %arg5: memref<28x48xbf16, #tpu.memory_space<vmem>>, %arg6: memref<1x48xf32, #tpu.memory_space<vmem>>, %arg7: memref<1x48xf32, #tpu.memory_space<vmem>>, %arg8: memref<48x64xbf16, #tpu.memory_space<vmem>>, %arg9: memref<1x64xf32, #tpu.memory_space<vmem>>, %arg10: memref<1x64xf32, #tpu.memory_space<vmem>>, %arg11: memref<4x64x128xbf16, #tpu.memory_space<vmem>>, %arg12: memref<1x128xf32, #tpu.memory_space<vmem>>, %arg13: memref<1x128xf32, #tpu.memory_space<vmem>>, %arg14: memref<128x8xbf16, #tpu.memory_space<vmem>>, %arg15: memref<1x8xf32, #tpu.memory_space<vmem>>, %arg16: memref<16x8xf32, #tpu.memory_space<vmem>>) attributes {dimension_semantics = [#tpu.dimension_semantics<parallel>], iteration_bounds = array<i64: 1>, scalar_prefetch = 0 : i64, scratch_operands = 0 : i64, tpu.core_type = #tpu.core_type<tc>, window_params = [{transform_indices = @transform_0, window_bounds = array<i64: 169, 16, 27>}, {pipeline_mode = #tpu.pipeline_mode<synchronous>, transform_indices = @transform_1, window_bounds = array<i64: 27, 28>}, {pipeline_mode = #tpu.pipeline_mode<synchronous>, transform_indices = @transform_2, window_bounds = array<i64: 1, 28>}, {pipeline_mode = #tpu.pipeline_mode<synchronous>, transform_indices = @transform_3, window_bounds = array<i64: 1, 28>}, {pipeline_mode = #tpu.pipeline_mode<synchronous>, transform_indices = @transform_4, window_bounds = array<i64: 28, 48>}, {pipeline_mode = #tpu.pipeline_mode<synchronous>, transform_indices = @transform_5, window_bounds = array<i64: 1, 48>}, {pipeline_mode = #tpu.pipeline_mode<synchronous>, transform_indices = @transform_6, window_bounds = array<i64: 1, 48>}, {pipeline_mode = #tpu.pipeline_mode<synchronous>, transform_indices = @transform_7, window_bounds = array<i64: 48, 64>}, {pipeline_mode = #tpu.pipeline_mode<synchronous>, transform_indices = @transform_8, window_bounds = array<i64: 1, 64>}, {pipeline_mode = #tpu.pipeline_mode<synchronous>, transform_indices = @transform_9, window_bounds = array<i64: 1, 64>}, {pipeline_mode = #tpu.pipeline_mode<synchronous>, transform_indices = @transform_10, window_bounds = array<i64: 4, 64, 128>}, {pipeline_mode = #tpu.pipeline_mode<synchronous>, transform_indices = @transform_11, window_bounds = array<i64: 1, 128>}, {pipeline_mode = #tpu.pipeline_mode<synchronous>, transform_indices = @transform_12, window_bounds = array<i64: 1, 128>}, {pipeline_mode = #tpu.pipeline_mode<synchronous>, transform_indices = @transform_13, window_bounds = array<i64: 128, 8>}, {pipeline_mode = #tpu.pipeline_mode<synchronous>, transform_indices = @transform_14, window_bounds = array<i64: 1, 8>}, {transform_indices = @transform_15, window_bounds = array<i64: 16, 8>}]} {
    %c0 = arith.constant 0 : index
    %c0_0 = arith.constant 0 : index
    %c0_1 = arith.constant 0 : index
    %0 = vector.load %arg1[%c0, %c0_0, %c0_1] : memref<169x16x27xbf16, #tpu.memory_space<vmem>>, vector<169x16x27xbf16>
    %1 = vector.shape_cast %0 : vector<169x16x27xbf16> to vector<2704x27xbf16>
    %c0_2 = arith.constant 0 : index
    %c0_3 = arith.constant 0 : index
    %2 = vector.load %arg2[%c0_2, %c0_3] : memref<27x28xbf16, #tpu.memory_space<vmem>>, vector<27x28xbf16>
    %cst = arith.constant dense<0.000000e+00> : vector<2704x28xf32>
    %3 = tpu.matmul %1, %2, %cst {dimension_numbers = #tpu.dot_dimension_numbers<[1], [0], [0], [1], [0, 0, 1, 1], [], []>} : vector<2704x27xbf16>, vector<27x28xbf16>, vector<2704x28xf32> -> vector<2704x28xf32>
    %c0_4 = arith.constant 0 : index
    %c0_5 = arith.constant 0 : index
    %4 = vector.load %arg3[%c0_4, %c0_5] : memref<1x28xf32, #tpu.memory_space<vmem>>, vector<1x28xf32>
    %5 = vector.broadcast %4 : vector<1x28xf32> to vector<2704x28xf32>
    %6 = arith.addf %3, %5 : vector<2704x28xf32>
    %c0_6 = arith.constant 0 : index
    %c0_7 = arith.constant 0 : index
    %7 = vector.load %arg4[%c0_6, %c0_7] : memref<1x28xf32, #tpu.memory_space<vmem>>, vector<1x28xf32>
    %cst_8 = arith.constant 0.000000e+00 : f32
    %8 = vector.broadcast %cst_8 : f32 to vector<2704x28xf32>
    %9 = arith.cmpf ogt, %6, %8 : vector<2704x28xf32>
    %10 = vector.broadcast %7 : vector<1x28xf32> to vector<2704x28xf32>
    %11 = arith.mulf %10, %6 : vector<2704x28xf32>
    %12 = arith.select %9, %6, %11 : vector<2704x28xi1>, vector<2704x28xf32>
    %13 = arith.truncf %12 : vector<2704x28xf32> to vector<2704x28xbf16>
    %14 = vector.shape_cast %13 : vector<2704x28xbf16> to vector<13x13x16x28xbf16>
    %15 = vector.extract_strided_slice %14 {offsets = [0, 0, 0, 0], sizes = [1, 13, 16, 28], strides = [1, 1, 1, 1]} : vector<13x13x16x28xbf16> to vector<1x13x16x28xbf16>
    %16 = vector.shape_cast %15 : vector<1x13x16x28xbf16> to vector<13x16x28xbf16>
    %17 = vector.extract_strided_slice %14 {offsets = [1, 0, 0, 0], sizes = [1, 13, 16, 28], strides = [1, 1, 1, 1]} : vector<13x13x16x28xbf16> to vector<1x13x16x28xbf16>
    %18 = vector.shape_cast %17 : vector<1x13x16x28xbf16> to vector<13x16x28xbf16>
    %19 = arith.maximumf %16, %18 : vector<13x16x28xbf16>
    %20 = vector.extract_strided_slice %14 {offsets = [2, 0, 0, 0], sizes = [1, 13, 16, 28], strides = [1, 1, 1, 1]} : vector<13x13x16x28xbf16> to vector<1x13x16x28xbf16>
    %21 = vector.shape_cast %20 : vector<1x13x16x28xbf16> to vector<13x16x28xbf16>
    %22 = arith.maximumf %19, %21 : vector<13x16x28xbf16>
    %23 = vector.extract_strided_slice %14 {offsets = [2, 0, 0, 0], sizes = [1, 13, 16, 28], strides = [1, 1, 1, 1]} : vector<13x13x16x28xbf16> to vector<1x13x16x28xbf16>
    %24 = vector.shape_cast %23 : vector<1x13x16x28xbf16> to vector<13x16x28xbf16>
    %25 = vector.extract_strided_slice %14 {offsets = [3, 0, 0, 0], sizes = [1, 13, 16, 28], strides = [1, 1, 1, 1]} : vector<13x13x16x28xbf16> to vector<1x13x16x28xbf16>
    %26 = vector.shape_cast %25 : vector<1x13x16x28xbf16> to vector<13x16x28xbf16>
    %27 = arith.maximumf %24, %26 : vector<13x16x28xbf16>
    %28 = vector.extract_strided_slice %14 {offsets = [4, 0, 0, 0], sizes = [1, 13, 16, 28], strides = [1, 1, 1, 1]} : vector<13x13x16x28xbf16> to vector<1x13x16x28xbf16>
    %29 = vector.shape_cast %28 : vector<1x13x16x28xbf16> to vector<13x16x28xbf16>
    %30 = arith.maximumf %27, %29 : vector<13x16x28xbf16>
    %31 = vector.extract_strided_slice %14 {offsets = [4, 0, 0, 0], sizes = [1, 13, 16, 28], strides = [1, 1, 1, 1]} : vector<13x13x16x28xbf16> to vector<1x13x16x28xbf16>
    %32 = vector.shape_cast %31 : vector<1x13x16x28xbf16> to vector<13x16x28xbf16>
    %33 = vector.extract_strided_slice %14 {offsets = [5, 0, 0, 0], sizes = [1, 13, 16, 28], strides = [1, 1, 1, 1]} : vector<13x13x16x28xbf16> to vector<1x13x16x28xbf16>
    %34 = vector.shape_cast %33 : vector<1x13x16x28xbf16> to vector<13x16x28xbf16>
    %35 = arith.maximumf %32, %34 : vector<13x16x28xbf16>
    %36 = vector.extract_strided_slice %14 {offsets = [6, 0, 0, 0], sizes = [1, 13, 16, 28], strides = [1, 1, 1, 1]} : vector<13x13x16x28xbf16> to vector<1x13x16x28xbf16>
    %37 = vector.shape_cast %36 : vector<1x13x16x28xbf16> to vector<13x16x28xbf16>
    %38 = arith.maximumf %35, %37 : vector<13x16x28xbf16>
    %39 = vector.extract_strided_slice %14 {offsets = [6, 0, 0, 0], sizes = [1, 13, 16, 28], strides = [1, 1, 1, 1]} : vector<13x13x16x28xbf16> to vector<1x13x16x28xbf16>
    %40 = vector.shape_cast %39 : vector<1x13x16x28xbf16> to vector<13x16x28xbf16>
    %41 = vector.extract_strided_slice %14 {offsets = [7, 0, 0, 0], sizes = [1, 13, 16, 28], strides = [1, 1, 1, 1]} : vector<13x13x16x28xbf16> to vector<1x13x16x28xbf16>
    %42 = vector.shape_cast %41 : vector<1x13x16x28xbf16> to vector<13x16x28xbf16>
    %43 = arith.maximumf %40, %42 : vector<13x16x28xbf16>
    %44 = vector.extract_strided_slice %14 {offsets = [8, 0, 0, 0], sizes = [1, 13, 16, 28], strides = [1, 1, 1, 1]} : vector<13x13x16x28xbf16> to vector<1x13x16x28xbf16>
    %45 = vector.shape_cast %44 : vector<1x13x16x28xbf16> to vector<13x16x28xbf16>
    %46 = arith.maximumf %43, %45 : vector<13x16x28xbf16>
    %47 = vector.extract_strided_slice %14 {offsets = [8, 0, 0, 0], sizes = [1, 13, 16, 28], strides = [1, 1, 1, 1]} : vector<13x13x16x28xbf16> to vector<1x13x16x28xbf16>
    %48 = vector.shape_cast %47 : vector<1x13x16x28xbf16> to vector<13x16x28xbf16>
    %49 = vector.extract_strided_slice %14 {offsets = [9, 0, 0, 0], sizes = [1, 13, 16, 28], strides = [1, 1, 1, 1]} : vector<13x13x16x28xbf16> to vector<1x13x16x28xbf16>
    %50 = vector.shape_cast %49 : vector<1x13x16x28xbf16> to vector<13x16x28xbf16>
    %51 = arith.maximumf %48, %50 : vector<13x16x28xbf16>
    %52 = vector.extract_strided_slice %14 {offsets = [10, 0, 0, 0], sizes = [1, 13, 16, 28], strides = [1, 1, 1, 1]} : vector<13x13x16x28xbf16> to vector<1x13x16x28xbf16>
    %53 = vector.shape_cast %52 : vector<1x13x16x28xbf16> to vector<13x16x28xbf16>
    %54 = arith.maximumf %51, %53 : vector<13x16x28xbf16>
    %55 = vector.extract_strided_slice %14 {offsets = [10, 0, 0, 0], sizes = [1, 13, 16, 28], strides = [1, 1, 1, 1]} : vector<13x13x16x28xbf16> to vector<1x13x16x28xbf16>
    %56 = vector.shape_cast %55 : vector<1x13x16x28xbf16> to vector<13x16x28xbf16>
    %57 = vector.extract_strided_slice %14 {offsets = [11, 0, 0, 0], sizes = [1, 13, 16, 28], strides = [1, 1, 1, 1]} : vector<13x13x16x28xbf16> to vector<1x13x16x28xbf16>
    %58 = vector.shape_cast %57 : vector<1x13x16x28xbf16> to vector<13x16x28xbf16>
    %59 = arith.maximumf %56, %58 : vector<13x16x28xbf16>
    %60 = vector.extract_strided_slice %14 {offsets = [12, 0, 0, 0], sizes = [1, 13, 16, 28], strides = [1, 1, 1, 1]} : vector<13x13x16x28xbf16> to vector<1x13x16x28xbf16>
    %61 = vector.shape_cast %60 : vector<1x13x16x28xbf16> to vector<13x16x28xbf16>
    %62 = arith.maximumf %59, %61 : vector<13x16x28xbf16>
    %63 = vector.shape_cast %22 : vector<13x16x28xbf16> to vector<1x13x16x28xbf16>
    %64 = vector.shape_cast %30 : vector<13x16x28xbf16> to vector<1x13x16x28xbf16>
    %65 = vector.shape_cast %38 : vector<13x16x28xbf16> to vector<1x13x16x28xbf16>
    %66 = vector.shape_cast %46 : vector<13x16x28xbf16> to vector<1x13x16x28xbf16>
    %67 = vector.shape_cast %54 : vector<13x16x28xbf16> to vector<1x13x16x28xbf16>
    %68 = vector.shape_cast %62 : vector<13x16x28xbf16> to vector<1x13x16x28xbf16>
    %69 = tpu.concatenate %63, %64, %65, %66, %67, %68 in 0 : vector<1x13x16x28xbf16>, vector<1x13x16x28xbf16>, vector<1x13x16x28xbf16>, vector<1x13x16x28xbf16>, vector<1x13x16x28xbf16>, vector<1x13x16x28xbf16> -> vector<6x13x16x28xbf16>
    %70 = vector.extract_strided_slice %69 {offsets = [0, 0, 0, 0], sizes = [6, 1, 16, 28], strides = [1, 1, 1, 1]} : vector<6x13x16x28xbf16> to vector<6x1x16x28xbf16>
    %71 = vector.shape_cast %70 : vector<6x1x16x28xbf16> to vector<6x16x28xbf16>
    %72 = vector.extract_strided_slice %69 {offsets = [0, 1, 0, 0], sizes = [6, 1, 16, 28], strides = [1, 1, 1, 1]} : vector<6x13x16x28xbf16> to vector<6x1x16x28xbf16>
    %73 = vector.shape_cast %72 : vector<6x1x16x28xbf16> to vector<6x16x28xbf16>
    %74 = arith.maximumf %71, %73 : vector<6x16x28xbf16>
    %75 = vector.extract_strided_slice %69 {offsets = [0, 2, 0, 0], sizes = [6, 1, 16, 28], strides = [1, 1, 1, 1]} : vector<6x13x16x28xbf16> to vector<6x1x16x28xbf16>
    %76 = vector.shape_cast %75 : vector<6x1x16x28xbf16> to vector<6x16x28xbf16>
    %77 = arith.maximumf %74, %76 : vector<6x16x28xbf16>
    %78 = vector.extract_strided_slice %69 {offsets = [0, 2, 0, 0], sizes = [6, 1, 16, 28], strides = [1, 1, 1, 1]} : vector<6x13x16x28xbf16> to vector<6x1x16x28xbf16>
    %79 = vector.shape_cast %78 : vector<6x1x16x28xbf16> to vector<6x16x28xbf16>
    %80 = vector.extract_strided_slice %69 {offsets = [0, 3, 0, 0], sizes = [6, 1, 16, 28], strides = [1, 1, 1, 1]} : vector<6x13x16x28xbf16> to vector<6x1x16x28xbf16>
    %81 = vector.shape_cast %80 : vector<6x1x16x28xbf16> to vector<6x16x28xbf16>
    %82 = arith.maximumf %79, %81 : vector<6x16x28xbf16>
    %83 = vector.extract_strided_slice %69 {offsets = [0, 4, 0, 0], sizes = [6, 1, 16, 28], strides = [1, 1, 1, 1]} : vector<6x13x16x28xbf16> to vector<6x1x16x28xbf16>
    %84 = vector.shape_cast %83 : vector<6x1x16x28xbf16> to vector<6x16x28xbf16>
    %85 = arith.maximumf %82, %84 : vector<6x16x28xbf16>
    %86 = vector.extract_strided_slice %69 {offsets = [0, 4, 0, 0], sizes = [6, 1, 16, 28], strides = [1, 1, 1, 1]} : vector<6x13x16x28xbf16> to vector<6x1x16x28xbf16>
    %87 = vector.shape_cast %86 : vector<6x1x16x28xbf16> to vector<6x16x28xbf16>
    %88 = vector.extract_strided_slice %69 {offsets = [0, 5, 0, 0], sizes = [6, 1, 16, 28], strides = [1, 1, 1, 1]} : vector<6x13x16x28xbf16> to vector<6x1x16x28xbf16>
    %89 = vector.shape_cast %88 : vector<6x1x16x28xbf16> to vector<6x16x28xbf16>
    %90 = arith.maximumf %87, %89 : vector<6x16x28xbf16>
    %91 = vector.extract_strided_slice %69 {offsets = [0, 6, 0, 0], sizes = [6, 1, 16, 28], strides = [1, 1, 1, 1]} : vector<6x13x16x28xbf16> to vector<6x1x16x28xbf16>
    %92 = vector.shape_cast %91 : vector<6x1x16x28xbf16> to vector<6x16x28xbf16>
    %93 = arith.maximumf %90, %92 : vector<6x16x28xbf16>
    %94 = vector.extract_strided_slice %69 {offsets = [0, 6, 0, 0], sizes = [6, 1, 16, 28], strides = [1, 1, 1, 1]} : vector<6x13x16x28xbf16> to vector<6x1x16x28xbf16>
    %95 = vector.shape_cast %94 : vector<6x1x16x28xbf16> to vector<6x16x28xbf16>
    %96 = vector.extract_strided_slice %69 {offsets = [0, 7, 0, 0], sizes = [6, 1, 16, 28], strides = [1, 1, 1, 1]} : vector<6x13x16x28xbf16> to vector<6x1x16x28xbf16>
    %97 = vector.shape_cast %96 : vector<6x1x16x28xbf16> to vector<6x16x28xbf16>
    %98 = arith.maximumf %95, %97 : vector<6x16x28xbf16>
    %99 = vector.extract_strided_slice %69 {offsets = [0, 8, 0, 0], sizes = [6, 1, 16, 28], strides = [1, 1, 1, 1]} : vector<6x13x16x28xbf16> to vector<6x1x16x28xbf16>
    %100 = vector.shape_cast %99 : vector<6x1x16x28xbf16> to vector<6x16x28xbf16>
    %101 = arith.maximumf %98, %100 : vector<6x16x28xbf16>
    %102 = vector.extract_strided_slice %69 {offsets = [0, 8, 0, 0], sizes = [6, 1, 16, 28], strides = [1, 1, 1, 1]} : vector<6x13x16x28xbf16> to vector<6x1x16x28xbf16>
    %103 = vector.shape_cast %102 : vector<6x1x16x28xbf16> to vector<6x16x28xbf16>
    %104 = vector.extract_strided_slice %69 {offsets = [0, 9, 0, 0], sizes = [6, 1, 16, 28], strides = [1, 1, 1, 1]} : vector<6x13x16x28xbf16> to vector<6x1x16x28xbf16>
    %105 = vector.shape_cast %104 : vector<6x1x16x28xbf16> to vector<6x16x28xbf16>
    %106 = arith.maximumf %103, %105 : vector<6x16x28xbf16>
    %107 = vector.extract_strided_slice %69 {offsets = [0, 10, 0, 0], sizes = [6, 1, 16, 28], strides = [1, 1, 1, 1]} : vector<6x13x16x28xbf16> to vector<6x1x16x28xbf16>
    %108 = vector.shape_cast %107 : vector<6x1x16x28xbf16> to vector<6x16x28xbf16>
    %109 = arith.maximumf %106, %108 : vector<6x16x28xbf16>
    %110 = vector.extract_strided_slice %69 {offsets = [0, 10, 0, 0], sizes = [6, 1, 16, 28], strides = [1, 1, 1, 1]} : vector<6x13x16x28xbf16> to vector<6x1x16x28xbf16>
    %111 = vector.shape_cast %110 : vector<6x1x16x28xbf16> to vector<6x16x28xbf16>
    %112 = vector.extract_strided_slice %69 {offsets = [0, 11, 0, 0], sizes = [6, 1, 16, 28], strides = [1, 1, 1, 1]} : vector<6x13x16x28xbf16> to vector<6x1x16x28xbf16>
    %113 = vector.shape_cast %112 : vector<6x1x16x28xbf16> to vector<6x16x28xbf16>
    %114 = arith.maximumf %111, %113 : vector<6x16x28xbf16>
    %115 = vector.extract_strided_slice %69 {offsets = [0, 12, 0, 0], sizes = [6, 1, 16, 28], strides = [1, 1, 1, 1]} : vector<6x13x16x28xbf16> to vector<6x1x16x28xbf16>
    %116 = vector.shape_cast %115 : vector<6x1x16x28xbf16> to vector<6x16x28xbf16>
    %117 = arith.maximumf %114, %116 : vector<6x16x28xbf16>
    %118 = vector.shape_cast %77 : vector<6x16x28xbf16> to vector<6x1x16x28xbf16>
    %119 = vector.shape_cast %85 : vector<6x16x28xbf16> to vector<6x1x16x28xbf16>
    %120 = vector.shape_cast %93 : vector<6x16x28xbf16> to vector<6x1x16x28xbf16>
    %121 = vector.shape_cast %101 : vector<6x16x28xbf16> to vector<6x1x16x28xbf16>
    %122 = vector.shape_cast %109 : vector<6x16x28xbf16> to vector<6x1x16x28xbf16>
    %123 = vector.shape_cast %117 : vector<6x16x28xbf16> to vector<6x1x16x28xbf16>
    %124 = tpu.concatenate %118, %119, %120, %121, %122, %123 in 1 : vector<6x1x16x28xbf16>, vector<6x1x16x28xbf16>, vector<6x1x16x28xbf16>, vector<6x1x16x28xbf16>, vector<6x1x16x28xbf16>, vector<6x1x16x28xbf16> -> vector<6x6x16x28xbf16>
    %125 = vector.shape_cast %124 : vector<6x6x16x28xbf16> to vector<576x28xbf16>
    %c0_9 = arith.constant 0 : index
    %c0_10 = arith.constant 0 : index
    %126 = vector.load %arg5[%c0_9, %c0_10] : memref<28x48xbf16, #tpu.memory_space<vmem>>, vector<28x48xbf16>
    %cst_11 = arith.constant dense<0.000000e+00> : vector<576x48xf32>
    %127 = tpu.matmul %125, %126, %cst_11 {dimension_numbers = #tpu.dot_dimension_numbers<[1], [0], [0], [1], [0, 0, 1, 1], [], []>} : vector<576x28xbf16>, vector<28x48xbf16>, vector<576x48xf32> -> vector<576x48xf32>
    %c0_12 = arith.constant 0 : index
    %c0_13 = arith.constant 0 : index
    %128 = vector.load %arg6[%c0_12, %c0_13] : memref<1x48xf32, #tpu.memory_space<vmem>>, vector<1x48xf32>
    %129 = vector.broadcast %128 : vector<1x48xf32> to vector<576x48xf32>
    %130 = arith.addf %127, %129 : vector<576x48xf32>
    %c0_14 = arith.constant 0 : index
    %c0_15 = arith.constant 0 : index
    %131 = vector.load %arg7[%c0_14, %c0_15] : memref<1x48xf32, #tpu.memory_space<vmem>>, vector<1x48xf32>
    %cst_16 = arith.constant 0.000000e+00 : f32
    %132 = vector.broadcast %cst_16 : f32 to vector<576x48xf32>
    %133 = arith.cmpf ogt, %130, %132 : vector<576x48xf32>
    %134 = vector.broadcast %131 : vector<1x48xf32> to vector<576x48xf32>
    %135 = arith.mulf %134, %130 : vector<576x48xf32>
    %136 = arith.select %133, %130, %135 : vector<576x48xi1>, vector<576x48xf32>
    %137 = arith.truncf %136 : vector<576x48xf32> to vector<576x48xbf16>
    %138 = vector.shape_cast %137 : vector<576x48xbf16> to vector<6x6x16x48xbf16>
    %139 = vector.extract_strided_slice %138 {offsets = [0, 0, 0, 0], sizes = [1, 6, 16, 48], strides = [1, 1, 1, 1]} : vector<6x6x16x48xbf16> to vector<1x6x16x48xbf16>
    %140 = vector.shape_cast %139 : vector<1x6x16x48xbf16> to vector<6x16x48xbf16>
    %141 = vector.extract_strided_slice %138 {offsets = [1, 0, 0, 0], sizes = [1, 6, 16, 48], strides = [1, 1, 1, 1]} : vector<6x6x16x48xbf16> to vector<1x6x16x48xbf16>
    %142 = vector.shape_cast %141 : vector<1x6x16x48xbf16> to vector<6x16x48xbf16>
    %143 = arith.maximumf %140, %142 : vector<6x16x48xbf16>
    %144 = vector.extract_strided_slice %138 {offsets = [2, 0, 0, 0], sizes = [1, 6, 16, 48], strides = [1, 1, 1, 1]} : vector<6x6x16x48xbf16> to vector<1x6x16x48xbf16>
    %145 = vector.shape_cast %144 : vector<1x6x16x48xbf16> to vector<6x16x48xbf16>
    %146 = arith.maximumf %143, %145 : vector<6x16x48xbf16>
    %147 = vector.extract_strided_slice %138 {offsets = [2, 0, 0, 0], sizes = [1, 6, 16, 48], strides = [1, 1, 1, 1]} : vector<6x6x16x48xbf16> to vector<1x6x16x48xbf16>
    %148 = vector.shape_cast %147 : vector<1x6x16x48xbf16> to vector<6x16x48xbf16>
    %149 = vector.extract_strided_slice %138 {offsets = [3, 0, 0, 0], sizes = [1, 6, 16, 48], strides = [1, 1, 1, 1]} : vector<6x6x16x48xbf16> to vector<1x6x16x48xbf16>
    %150 = vector.shape_cast %149 : vector<1x6x16x48xbf16> to vector<6x16x48xbf16>
    %151 = arith.maximumf %148, %150 : vector<6x16x48xbf16>
    %152 = vector.extract_strided_slice %138 {offsets = [4, 0, 0, 0], sizes = [1, 6, 16, 48], strides = [1, 1, 1, 1]} : vector<6x6x16x48xbf16> to vector<1x6x16x48xbf16>
    %153 = vector.shape_cast %152 : vector<1x6x16x48xbf16> to vector<6x16x48xbf16>
    %154 = arith.maximumf %151, %153 : vector<6x16x48xbf16>
    %155 = vector.shape_cast %146 : vector<6x16x48xbf16> to vector<1x6x16x48xbf16>
    %156 = vector.shape_cast %154 : vector<6x16x48xbf16> to vector<1x6x16x48xbf16>
    %157 = tpu.concatenate %155, %156 in 0 : vector<1x6x16x48xbf16>, vector<1x6x16x48xbf16> -> vector<2x6x16x48xbf16>
    %158 = vector.extract_strided_slice %157 {offsets = [0, 0, 0, 0], sizes = [2, 1, 16, 48], strides = [1, 1, 1, 1]} : vector<2x6x16x48xbf16> to vector<2x1x16x48xbf16>
    %159 = vector.shape_cast %158 : vector<2x1x16x48xbf16> to vector<2x16x48xbf16>
    %160 = vector.extract_strided_slice %157 {offsets = [0, 1, 0, 0], sizes = [2, 1, 16, 48], strides = [1, 1, 1, 1]} : vector<2x6x16x48xbf16> to vector<2x1x16x48xbf16>
    %161 = vector.shape_cast %160 : vector<2x1x16x48xbf16> to vector<2x16x48xbf16>
    %162 = arith.maximumf %159, %161 : vector<2x16x48xbf16>
    %163 = vector.extract_strided_slice %157 {offsets = [0, 2, 0, 0], sizes = [2, 1, 16, 48], strides = [1, 1, 1, 1]} : vector<2x6x16x48xbf16> to vector<2x1x16x48xbf16>
    %164 = vector.shape_cast %163 : vector<2x1x16x48xbf16> to vector<2x16x48xbf16>
    %165 = arith.maximumf %162, %164 : vector<2x16x48xbf16>
    %166 = vector.extract_strided_slice %157 {offsets = [0, 2, 0, 0], sizes = [2, 1, 16, 48], strides = [1, 1, 1, 1]} : vector<2x6x16x48xbf16> to vector<2x1x16x48xbf16>
    %167 = vector.shape_cast %166 : vector<2x1x16x48xbf16> to vector<2x16x48xbf16>
    %168 = vector.extract_strided_slice %157 {offsets = [0, 3, 0, 0], sizes = [2, 1, 16, 48], strides = [1, 1, 1, 1]} : vector<2x6x16x48xbf16> to vector<2x1x16x48xbf16>
    %169 = vector.shape_cast %168 : vector<2x1x16x48xbf16> to vector<2x16x48xbf16>
    %170 = arith.maximumf %167, %169 : vector<2x16x48xbf16>
    %171 = vector.extract_strided_slice %157 {offsets = [0, 4, 0, 0], sizes = [2, 1, 16, 48], strides = [1, 1, 1, 1]} : vector<2x6x16x48xbf16> to vector<2x1x16x48xbf16>
    %172 = vector.shape_cast %171 : vector<2x1x16x48xbf16> to vector<2x16x48xbf16>
    %173 = arith.maximumf %170, %172 : vector<2x16x48xbf16>
    %174 = vector.shape_cast %165 : vector<2x16x48xbf16> to vector<2x1x16x48xbf16>
    %175 = vector.shape_cast %173 : vector<2x16x48xbf16> to vector<2x1x16x48xbf16>
    %176 = tpu.concatenate %174, %175 in 1 : vector<2x1x16x48xbf16>, vector<2x1x16x48xbf16> -> vector<2x2x16x48xbf16>
    %177 = vector.shape_cast %176 : vector<2x2x16x48xbf16> to vector<64x48xbf16>
    %c0_17 = arith.constant 0 : index
    %c0_18 = arith.constant 0 : index
    %178 = vector.load %arg8[%c0_17, %c0_18] : memref<48x64xbf16, #tpu.memory_space<vmem>>, vector<48x64xbf16>
    %cst_19 = arith.constant dense<0.000000e+00> : vector<64x64xf32>
    %179 = tpu.matmul %177, %178, %cst_19 {dimension_numbers = #tpu.dot_dimension_numbers<[1], [0], [0], [1], [0, 0, 1, 1], [], []>} : vector<64x48xbf16>, vector<48x64xbf16>, vector<64x64xf32> -> vector<64x64xf32>
    %c0_20 = arith.constant 0 : index
    %c0_21 = arith.constant 0 : index
    %180 = vector.load %arg9[%c0_20, %c0_21] : memref<1x64xf32, #tpu.memory_space<vmem>>, vector<1x64xf32>
    %181 = vector.broadcast %180 : vector<1x64xf32> to vector<64x64xf32>
    %182 = arith.addf %179, %181 : vector<64x64xf32>
    %c0_22 = arith.constant 0 : index
    %c0_23 = arith.constant 0 : index
    %183 = vector.load %arg10[%c0_22, %c0_23] : memref<1x64xf32, #tpu.memory_space<vmem>>, vector<1x64xf32>
    %cst_24 = arith.constant 0.000000e+00 : f32
    %184 = vector.broadcast %cst_24 : f32 to vector<64x64xf32>
    %185 = arith.cmpf ogt, %182, %184 : vector<64x64xf32>
    %186 = vector.broadcast %183 : vector<1x64xf32> to vector<64x64xf32>
    %187 = arith.mulf %186, %182 : vector<64x64xf32>
    %188 = arith.select %185, %182, %187 : vector<64x64xi1>, vector<64x64xf32>
    %189 = arith.truncf %188 : vector<64x64xf32> to vector<64x64xbf16>
    %190 = vector.shape_cast %189 : vector<64x64xbf16> to vector<4x16x64xbf16>
    %191 = vector.extract_strided_slice %190 {offsets = [0, 0, 0], sizes = [1, 16, 64], strides = [1, 1, 1]} : vector<4x16x64xbf16> to vector<1x16x64xbf16>
    %192 = vector.shape_cast %191 : vector<1x16x64xbf16> to vector<16x64xbf16>
    %c0_25 = arith.constant 0 : index
    %c0_26 = arith.constant 0 : index
    %c0_27 = arith.constant 0 : index
    %193 = vector.load %arg11[%c0_25, %c0_26, %c0_27] : memref<4x64x128xbf16, #tpu.memory_space<vmem>>, vector<1x64x128xbf16>
    %194 = vector.shape_cast %193 : vector<1x64x128xbf16> to vector<64x128xbf16>
    %cst_28 = arith.constant dense<0.000000e+00> : vector<16x128xf32>
    %195 = tpu.matmul %192, %194, %cst_28 {dimension_numbers = #tpu.dot_dimension_numbers<[1], [0], [0], [1], [0, 0, 1, 1], [], []>} : vector<16x64xbf16>, vector<64x128xbf16>, vector<16x128xf32> -> vector<16x128xf32>
    %196 = vector.extract_strided_slice %190 {offsets = [1, 0, 0], sizes = [1, 16, 64], strides = [1, 1, 1]} : vector<4x16x64xbf16> to vector<1x16x64xbf16>
    %197 = vector.shape_cast %196 : vector<1x16x64xbf16> to vector<16x64xbf16>
    %c1 = arith.constant 1 : index
    %c0_29 = arith.constant 0 : index
    %c0_30 = arith.constant 0 : index
    %198 = vector.load %arg11[%c1, %c0_29, %c0_30] : memref<4x64x128xbf16, #tpu.memory_space<vmem>>, vector<1x64x128xbf16>
    %199 = vector.shape_cast %198 : vector<1x64x128xbf16> to vector<64x128xbf16>
    %cst_31 = arith.constant dense<0.000000e+00> : vector<16x128xf32>
    %200 = tpu.matmul %197, %199, %cst_31 {dimension_numbers = #tpu.dot_dimension_numbers<[1], [0], [0], [1], [0, 0, 1, 1], [], []>} : vector<16x64xbf16>, vector<64x128xbf16>, vector<16x128xf32> -> vector<16x128xf32>
    %201 = vector.extract_strided_slice %190 {offsets = [2, 0, 0], sizes = [1, 16, 64], strides = [1, 1, 1]} : vector<4x16x64xbf16> to vector<1x16x64xbf16>
    %202 = vector.shape_cast %201 : vector<1x16x64xbf16> to vector<16x64xbf16>
    %c2 = arith.constant 2 : index
    %c0_32 = arith.constant 0 : index
    %c0_33 = arith.constant 0 : index
    %203 = vector.load %arg11[%c2, %c0_32, %c0_33] : memref<4x64x128xbf16, #tpu.memory_space<vmem>>, vector<1x64x128xbf16>
    %204 = vector.shape_cast %203 : vector<1x64x128xbf16> to vector<64x128xbf16>
    %cst_34 = arith.constant dense<0.000000e+00> : vector<16x128xf32>
    %205 = tpu.matmul %202, %204, %cst_34 {dimension_numbers = #tpu.dot_dimension_numbers<[1], [0], [0], [1], [0, 0, 1, 1], [], []>} : vector<16x64xbf16>, vector<64x128xbf16>, vector<16x128xf32> -> vector<16x128xf32>
    %206 = vector.extract_strided_slice %190 {offsets = [3, 0, 0], sizes = [1, 16, 64], strides = [1, 1, 1]} : vector<4x16x64xbf16> to vector<1x16x64xbf16>
    %207 = vector.shape_cast %206 : vector<1x16x64xbf16> to vector<16x64xbf16>
    %c3 = arith.constant 3 : index
    %c0_35 = arith.constant 0 : index
    %c0_36 = arith.constant 0 : index
    %208 = vector.load %arg11[%c3, %c0_35, %c0_36] : memref<4x64x128xbf16, #tpu.memory_space<vmem>>, vector<1x64x128xbf16>
    %209 = vector.shape_cast %208 : vector<1x64x128xbf16> to vector<64x128xbf16>
    %cst_37 = arith.constant dense<0.000000e+00> : vector<16x128xf32>
    %210 = tpu.matmul %207, %209, %cst_37 {dimension_numbers = #tpu.dot_dimension_numbers<[1], [0], [0], [1], [0, 0, 1, 1], [], []>} : vector<16x64xbf16>, vector<64x128xbf16>, vector<16x128xf32> -> vector<16x128xf32>
    %211 = arith.addf %195, %200 : vector<16x128xf32>
    %212 = arith.addf %205, %210 : vector<16x128xf32>
    %213 = arith.addf %211, %212 : vector<16x128xf32>
    %c0_38 = arith.constant 0 : index
    %c0_39 = arith.constant 0 : index
    %214 = vector.load %arg12[%c0_38, %c0_39] : memref<1x128xf32, #tpu.memory_space<vmem>>, vector<1x128xf32>
    %215 = vector.broadcast %214 : vector<1x128xf32> to vector<16x128xf32>
    %216 = arith.addf %213, %215 : vector<16x128xf32>
    %c0_40 = arith.constant 0 : index
    %c0_41 = arith.constant 0 : index
    %217 = vector.load %arg13[%c0_40, %c0_41] : memref<1x128xf32, #tpu.memory_space<vmem>>, vector<1x128xf32>
    %cst_42 = arith.constant 0.000000e+00 : f32
    %218 = vector.broadcast %cst_42 : f32 to vector<16x128xf32>
    %219 = arith.cmpf ogt, %216, %218 : vector<16x128xf32>
    %220 = vector.broadcast %217 : vector<1x128xf32> to vector<16x128xf32>
    %221 = arith.mulf %220, %216 : vector<16x128xf32>
    %222 = arith.select %219, %216, %221 : vector<16x128xi1>, vector<16x128xf32>
    %223 = arith.truncf %222 : vector<16x128xf32> to vector<16x128xbf16>
    %c0_43 = arith.constant 0 : index
    %c0_44 = arith.constant 0 : index
    %224 = vector.load %arg14[%c0_43, %c0_44] : memref<128x8xbf16, #tpu.memory_space<vmem>>, vector<128x8xbf16>
    %cst_45 = arith.constant dense<0.000000e+00> : vector<16x8xf32>
    %225 = tpu.matmul %223, %224, %cst_45 {dimension_numbers = #tpu.dot_dimension_numbers<[1], [0], [0], [1], [0, 0, 1, 1], [], []>} : vector<16x128xbf16>, vector<128x8xbf16>, vector<16x8xf32> -> vector<16x8xf32>
    %c0_46 = arith.constant 0 : index
    %c0_47 = arith.constant 0 : index
    %226 = vector.load %arg15[%c0_46, %c0_47] : memref<1x8xf32, #tpu.memory_space<vmem>>, vector<1x8xf32>
    %227 = vector.broadcast %226 : vector<1x8xf32> to vector<16x8xf32>
    %228 = arith.addf %225, %227 : vector<16x8xf32>
    %cst_48 = arith.constant 0.000000e+00 : f32
    %229 = vector.broadcast %cst_48 : f32 to vector<16x8xf32>
    %230 = arith.subf %229, %228 : vector<16x8xf32>
    %231 = math.exp %230 : vector<16x8xf32>
    %cst_49 = arith.constant 1.000000e+00 : f32
    %232 = vector.broadcast %cst_49 : f32 to vector<16x8xf32>
    %233 = arith.addf %232, %231 : vector<16x8xf32>
    %234 = tpu.reciprocal %233 : vector<16x8xf32> -> vector<16x8xf32>
    %235 = tpu.iota {dimensions = array<i32: 1>} : vector<16x8xi32>
    %c0_i32 = arith.constant 0 : i32
    %236 = vector.broadcast %c0_i32 : i32 to vector<16x8xi32>
    %237 = arith.cmpi eq, %235, %236 : vector<16x8xi32>
    %238 = arith.select %237, %234, %228 : vector<16x8xi1>, vector<16x8xf32>
    %c0_50 = arith.constant 0 : index
    %c0_51 = arith.constant 0 : index
    %239 = vector.load %arg16[%c0_50, %c0_51] : memref<16x8xf32, #tpu.memory_space<vmem>>, vector<16x8xf32>
    tpu.vector_store %arg16[%c0_50, %c0_51], %238 {strides = array<i32>} : memref<16x8xf32, #tpu.memory_space<vmem>>, vector<16x8xf32>,
    return
  }
  func.func @transform_0(%arg0: i32) -> (i32, i32, i32) {
    %c0_i32 = arith.constant 0 : i32
    %c0_i32_0 = arith.constant 0 : i32
    %c0_i32_1 = arith.constant 0 : i32
    return %c0_i32, %arg0, %c0_i32_0 : i32, i32, i32
  }
  func.func @transform_1(%arg0: i32) -> (i32, i32) {
    %c0_i32 = arith.constant 0 : i32
    %c0_i32_0 = arith.constant 0 : i32
    %c0_i32_1 = arith.constant 0 : i32
    return %c0_i32, %c0_i32_0 : i32, i32
  }
  func.func @transform_2(%arg0: i32) -> (i32, i32) {
    %c0_i32 = arith.constant 0 : i32
    %c0_i32_0 = arith.constant 0 : i32
    %c0_i32_1 = arith.constant 0 : i32
    return %c0_i32, %c0_i32_0 : i32, i32
  }
  func.func @transform_3(%arg0: i32) -> (i32, i32) {
    %c0_i32 = arith.constant 0 : i32
    %c0_i32_0 = arith.constant 0 : i32
    %c0_i32_1 = arith.constant 0 : i32
    return %c0_i32, %c0_i32_0 : i32, i32
  }
  func.func @transform_4(%arg0: i32) -> (i32, i32) {
    %c0_i32 = arith.constant 0 : i32
    %c0_i32_0 = arith.constant 0 : i32
    %c0_i32_1 = arith.constant 0 : i32
    return %c0_i32, %c0_i32_0 : i32, i32
  }
  func.func @transform_5(%arg0: i32) -> (i32, i32) {
    %c0_i32 = arith.constant 0 : i32
    %c0_i32_0 = arith.constant 0 : i32
    %c0_i32_1 = arith.constant 0 : i32
    return %c0_i32, %c0_i32_0 : i32, i32
  }
  func.func @transform_6(%arg0: i32) -> (i32, i32) {
    %c0_i32 = arith.constant 0 : i32
    %c0_i32_0 = arith.constant 0 : i32
    %c0_i32_1 = arith.constant 0 : i32
    return %c0_i32, %c0_i32_0 : i32, i32
  }
  func.func @transform_7(%arg0: i32) -> (i32, i32) {
    %c0_i32 = arith.constant 0 : i32
    %c0_i32_0 = arith.constant 0 : i32
    %c0_i32_1 = arith.constant 0 : i32
    return %c0_i32, %c0_i32_0 : i32, i32
  }
  func.func @transform_8(%arg0: i32) -> (i32, i32) {
    %c0_i32 = arith.constant 0 : i32
    %c0_i32_0 = arith.constant 0 : i32
    %c0_i32_1 = arith.constant 0 : i32
    return %c0_i32, %c0_i32_0 : i32, i32
  }
  func.func @transform_9(%arg0: i32) -> (i32, i32) {
    %c0_i32 = arith.constant 0 : i32
    %c0_i32_0 = arith.constant 0 : i32
    %c0_i32_1 = arith.constant 0 : i32
    return %c0_i32, %c0_i32_0 : i32, i32
  }
  func.func @transform_10(%arg0: i32) -> (i32, i32, i32) {
    %c0_i32 = arith.constant 0 : i32
    %c0_i32_0 = arith.constant 0 : i32
    %c0_i32_1 = arith.constant 0 : i32
    %c0_i32_2 = arith.constant 0 : i32
    return %c0_i32, %c0_i32_0, %c0_i32_1 : i32, i32, i32
  }
  func.func @transform_11(%arg0: i32) -> (i32, i32) {
    %c0_i32 = arith.constant 0 : i32
    %c0_i32_0 = arith.constant 0 : i32
    %c0_i32_1 = arith.constant 0 : i32
    return %c0_i32, %c0_i32_0 : i32, i32
  }
  func.func @transform_12(%arg0: i32) -> (i32, i32) {
    %c0_i32 = arith.constant 0 : i32
    %c0_i32_0 = arith.constant 0 : i32
    %c0_i32_1 = arith.constant 0 : i32
    return %c0_i32, %c0_i32_0 : i32, i32
  }
  func.func @transform_13(%arg0: i32) -> (i32, i32) {
    %c0_i32 = arith.constant 0 : i32
    %c0_i32_0 = arith.constant 0 : i32
    %c0_i32_1 = arith.constant 0 : i32
    return %c0_i32, %c0_i32_0 : i32, i32
  }
  func.func @transform_14(%arg0: i32) -> (i32, i32) {
    %c0_i32 = arith.constant 0 : i32
    %c0_i32_0 = arith.constant 0 : i32
    %c0_i32_1 = arith.constant 0 : i32
    return %c0_i32, %c0_i32_0 : i32, i32
  }
  func.func @transform_15(%arg0: i32) -> (i32, i32) {
    %c0_i32 = arith.constant 0 : i32
    %c0_i32_0 = arith.constant 0 : i32
    return %arg0, %c0_i32 : i32, i32
  }
}

</mosaic_0001>

<bundles_post_ra>
// kernel: rnet_forward.1
= control target key start
LH: loop header
LB: loop body
LE: loop exit
PB: predicated region body
PF: predicated region fallthrough
CT: control target
= control target key end

     0   :  { %vm1761_vm0 = vcmask 1044480   ;;  %vm1762_vm1 = vcmask 1045504   ;;  %v8272_v2 = vmov 65535   ;;  %vm1253_vm2 = vcmask 220160   ;;  %s12477_s1 = inlined_call_operand.vmem [shape: bf16[27,28], index: 1, kind: input, shape index: {}]   ;;  %s12478_s2 = inlined_call_operand.vmem [shape: f32[1,28], index: 2, kind: input, shape index: {}]   ;;  %s12479_s3 = inlined_call_operand.vmem [shape: f32[1,28], index: 3, kind: input, shape index: {}]   ;;  %s12480_s0 = inlined_call_operand.vmem [shape: bf16[169,16,27], index: 0, kind: input, shape index: {}]   ;;  %s12481_s4 = inlined_call_operand.vmem [shape: bf16[28,48], index: 4, kind: input, shape index: {}]   ;;  %s12482_s5 = inlined_call_operand.vmem [shape: f32[1,48], index: 5, kind: input, shape index: {}]   ;;  %s12483_s6 = inlined_call_operand.vmem [shape: f32[1,48], index: 6, kind: input, shape index: {}]   ;;  %s12484_s7 = inlined_call_operand.vmem [shape: bf16[48,64], index: 7, kind: input, shape index: {}]   ;;  %s12485_s10 = inlined_call_operand.vmem [shape: bf16[4,64,128], index: 10, kind: input, shape index: {}]   ;;  %s12486_s8 = inlined_call_operand.vmem [shape: f32[1,64], index: 8, kind: input, shape index: {}]   ;;  %s12487_s9 = inlined_call_operand.vmem [shape: f32[1,64], index: 9, kind: input, shape index: {}]   ;;  %s12488_s13 = inlined_call_operand.vmem [shape: bf16[128,8], index: 13, kind: input, shape index: {}]   ;;  %s12489_s11 = inlined_call_operand.vmem [shape: f32[1,128], index: 11, kind: input, shape index: {}]   ;;  %s12490_s12 = inlined_call_operand.vmem [shape: f32[1,128], index: 12, kind: input, shape index: {}]   ;;  %s12491_s14 = inlined_call_operand.vmem [shape: f32[1,8], index: 14, kind: input, shape index: {}]   ;;  %s12492_s15 = inlined_call_operand.vmem [shape: f32[16,8], index: 15, kind: output, shape index: {}]  }
   0x1   :  { %v7681_v0 = vld [vmem:[%s12477_s1 + $0x8] sm:$0xf]  ;;  %v8206_v1 = vld [vmem:[%s12477_s1 + $0x8] sm:$0x30]  ;;  %v1763_v3 = vsel %vm1761_vm0, 4294967295, %v8272_v2  ;;  %v8205_v7 = vld [vmem:[%s12477_s1] sm:$0xff] }
   0x2   :  { %v7682_v4 = vor.u32 %v8206_v1, %v7681_v0  ;;  %v1764_v5 = vsel %vm1762_vm1, %v1763_v3, 0  ;;  %v8036_v8 = vld [vmem:[%s12480_s0] sm:$0xff]  ;;  %v8106_v9 = vld [vmem:[%s12480_s0 + $0x230] sm:$0xff]  ;;  %v8037_v10 = vld [vmem:[%s12480_s0 + $0x8] sm:$0xff] }
   0x3   :  { %v8107_v11 = vld [vmem:[%s12480_s0 + $0x238] sm:$0xff]  ;;  %v8038_v12 = vld [vmem:[%s12480_s0 + $0x10] sm:$0xff]  ;;  %v8108_v13 = vld [vmem:[%s12480_s0 + $0x240] sm:$0xff] }
   0x4   :  { %v1766_v6 = vand.u32 %v7682_v4, %v1764_v5  ;;  %v8039_v14 = vld [vmem:[%s12480_s0 + $0x18] sm:$0xff]  ;;  %v8109_v15 = vld [vmem:[%s12480_s0 + $0x248] sm:$0xff]  ;;  %v8040_v16 = vld [vmem:[%s12480_s0 + $0x20] sm:$0xff] }
   0x5   :  { %v8110_v17 = vld [vmem:[%s12480_s0 + $0x250] sm:$0xff]  ;;  %v8041_v18 = vld [vmem:[%s12480_s0 + $0x28] sm:$0xff]  ;;  %v8111_v19 = vld [vmem:[%s12480_s0 + $0x258] sm:$0xff] }
   0x6   :  { %1774 = vmatpush.bf16.msra.mxu0 %v1766_v6  ;;  %8237 = vmatpush.bf16.msra.mxu2 %v1766_v6  ;;  %v8090_v20 = vld [vmem:[%s12480_s0 + $0x1b0] sm:$0xff]  ;;  %v8112_v22 = vld [vmem:[%s12480_s0 + $0x260] sm:$0xff]  ;;  %v8091_v23 = vld [vmem:[%s12480_s0 + $0x1b8] sm:$0xff] }
   0x7   :  { %8236 = vmatpush.bf16.msra.mxu1 %v1766_v6  ;;  %8238 = vmatpush.bf16.msra.mxu3 %v1766_v6  ;;  %v8042_v21 = vld [vmem:[%s12480_s0 + $0x30] sm:$0xff]  ;;  %v8043_v24 = vld [vmem:[%s12480_s0 + $0x38] sm:$0xff]  ;;  %v8113_v25 = vld [vmem:[%s12480_s0 + $0x268] sm:$0xff] }
   0x8   :  { %v8092_v26 = vld [vmem:[%s12480_s0 + $0x1c0] sm:$0xff]  ;;  %v8114_v28 = vld [vmem:[%s12480_s0 + $0x270] sm:$0xff]  ;;  %v8093_v30 = vld [vmem:[%s12480_s0 + $0x1c8] sm:$0xff] }
   0x9   :  { %v8044_v27 = vld [vmem:[%s12480_s0 + $0x40] sm:$0xff]  ;;  %v8045_v34 = vld [vmem:[%s12480_s0 + $0x48] sm:$0xff]  ;;  %v8115_v35 = vld [vmem:[%s12480_s0 + $0x278] sm:$0xff] }
   0xa   :  { %1775 = vmatpush.bf16.msra.mxu0 %v8205_v7  ;;  %8240 = vmatpush.bf16.msra.mxu2 %v8205_v7  ;;  %v8094_v37 = vld [vmem:[%s12480_s0 + $0x1d0] sm:$0xff]  ;;  %v8116_v42 = vld [vmem:[%s12480_s0 + $0x280] sm:$0xff]  ;;  %v8095_v44 = vld [vmem:[%s12480_s0 + $0x1d8] sm:$0xff] }
   0xb   :  { %8239 = vmatpush.bf16.msra.mxu1 %v8205_v7  ;;  %8241 = vmatpush.bf16.msra.mxu3 %v8205_v7  ;;  %v8046_v41 = vld [vmem:[%s12480_s0 + $0x50] sm:$0xff]  ;;  %v8047_v48 = vld [vmem:[%s12480_s0 + $0x58] sm:$0xff]  ;;  %v8117_v49 = vld [vmem:[%s12480_s0 + $0x288] sm:$0xff] }
   0xc   :  { %v8096_v51 = vld [vmem:[%s12480_s0 + $0x1e0] sm:$0xff]  ;;  %v8118_v56 = vld [vmem:[%s12480_s0 + $0x290] sm:$0xff]  ;;  %v8097_v58 = vld [vmem:[%s12480_s0 + $0x1e8] sm:$0xff] }
   0xd   :  { %7683 = vmatmul.msk.bf16.vlgmr.msra.gmra.mxu0 %vm1253_vm2, %v8036_v8  ;;  %7753 = vmatmul.msk.bf16.vlgmr.msra.gmra.mxu2 %vm1253_vm2, %v8106_v9  ;;  %v8048_v55 = vld [vmem:[%s12480_s0 + $0x60] sm:$0xff]  ;;  %v8049_v62 = vld [vmem:[%s12480_s0 + $0x68] sm:$0xff]  ;;  %v8119_v63 = vld [vmem:[%s12480_s0 + $0x298] sm:$0xff] }
   0xe   :  { %7737 = vmatmul.msk.bf16.vlgmr.msra.gmra.mxu1 %vm1253_vm2, %v8090_v20  ;;  %v8098_v2 = vld [vmem:[%s12480_s0 + $0x1f0] sm:$0xff]  ;;  %v8120_v8 = vld [vmem:[%s12480_s0 + $0x2a0] sm:$0xff] }
   0xf   :  { %v8050_v7 = vld [vmem:[%s12480_s0 + $0x70] sm:$0xff]  ;;  %v8100_v20 = vld [vmem:[%s12480_s0 + $0x200] sm:$0xff] }
  0x1d   :  { %7684 = vmatmul.msk.bf16.gmra.mxu0 %vm1253_vm2, %v8037_v10  ;;  %7754 = vmatmul.msk.bf16.gmra.mxu2 %vm1253_vm2, %v8107_v11  ;;  %v8099_v11 = vld [vmem:[%s12480_s0 + $0x1f8] sm:$0xff] }
  0x1e   :  { %7738 = vmatmul.msk.bf16.gmra.mxu1 %vm1253_vm2, %v8091_v23 }
  0x2d   :  { %7685 = vmatmul.msk.bf16.gmra.mxu0 %vm1253_vm2, %v8038_v12  ;;  %7755 = vmatmul.msk.bf16.gmra.mxu2 %vm1253_vm2, %v8108_v13 }
  0x2e   :  { %7739 = vmatmul.msk.bf16.gmra.mxu1 %vm1253_vm2, %v8092_v26  ;;  %v8122_v26 = vld [vmem:[%s12480_s0 + $0x2b0] sm:$0xff] }
  0x3d   :  { %7686 = vmatmul.msk.bf16.gmra.mxu0 %vm1253_vm2, %v8039_v14  ;;  %7756 = vmatmul.msk.bf16.gmra.mxu2 %vm1253_vm2, %v8109_v15 }
  0x3e   :  { %7740 = vmatmul.msk.bf16.gmra.mxu1 %vm1253_vm2, %v8093_v30  ;;  %v8101_v30 = vld [vmem:[%s12480_s0 + $0x208] sm:$0xff] }
  0x4d   :  { %7687 = vmatmul.msk.bf16.gmra.mxu0 %vm1253_vm2, %v8040_v16  ;;  %7757 = vmatmul.msk.bf16.gmra.mxu2 %vm1253_vm2, %v8110_v17  ;;  %v8051_v16 = vld [vmem:[%s12480_s0 + $0x78] sm:$0xff]  ;;  %v8121_v17 = vld [vmem:[%s12480_s0 + $0x2a8] sm:$0xff] }
  0x4e   :  { %7741 = vmatmul.msk.bf16.gmra.mxu1 %vm1253_vm2, %v8094_v37 }
  0x5d   :  { %7688 = vmatmul.msk.bf16.gmra.mxu0 %vm1253_vm2, %v8041_v18  ;;  %7758 = vmatmul.msk.bf16.gmra.mxu2 %vm1253_vm2, %v8111_v19 }
  0x5e   :  { %7742 = vmatmul.msk.bf16.gmra.mxu1 %vm1253_vm2, %v8095_v44  ;;  %v8123_v44 = vld [vmem:[%s12480_s0 + $0x2b8] sm:$0xff] }
  0x6d   :  { %7689 = vmatmul.msk.bf16.gmra.mxu0 %vm1253_vm2, %v8042_v21  ;;  %7759 = vmatmul.msk.bf16.gmra.mxu2 %vm1253_vm2, %v8112_v22 }
  0x6e   :  { %7743 = vmatmul.msk.bf16.gmra.mxu1 %vm1253_vm2, %v8096_v51  ;;  %v8102_v51 = vld [vmem:[%s12480_s0 + $0x210] sm:$0xff] }
  0x7d   :  { %7690 = vmatmul.msk.bf16.gmra.mxu0 %vm1253_vm2, %v8043_v24  ;;  %7760 = vmatmul.msk.bf16.gmra.mxu2 %vm1253_vm2, %v8113_v25  ;;  %v8052_v25 = vld [vmem:[%s12480_s0 + $0x80] sm:$0xff] }
  0x7e   :  { %7744 = vmatmul.msk.bf16.gmra.mxu1 %vm1253_vm2, %v8097_v58 }
  0x8a   :  { %v8445_v29 = vpop.f32.mrf.mxu0 }
  0x8b   :  { %v8549_v1 = vpop.f32.mrf.mxu1 }
  0x8d   :  { %7691 = vmatmul.msk.bf16.gmra.mxu0 %vm1253_vm2, %v8044_v27  ;;  %7761 = vmatmul.msk.bf16.gmra.mxu2 %vm1253_vm2, %v8114_v28 }
  0x8e   :  { %7745 = vmatmul.msk.bf16.gmra.mxu1 %vm1253_vm2, %v8098_v2  ;;  %v8124_v2 = vld [vmem:[%s12480_s0 + $0x2c0] sm:$0xff] }
  0x90   :  { %v8452_v31 = vpop.f32.mrf.mxu2 }
  0x92   :  { %v8455_v32 = vpop.f32.mrf.mxu0 }
  0x93   :  { %v8559_v5 = vpop.f32.mrf.mxu1 }
  0x94   :  { %12628 = vst [vmem:[#allocation2_spill] sm:$0xff] %v8559_v5 }
  0x98   :  { %v8457_v33 = vpop.f32.mrf.mxu2 }
  0x9a   :  { %v8465_v36 = vpop.f32.mrf.mxu0 }
  0x9b   :  { %v8573_v10 = vpop.f32.mrf.mxu1 }
  0x9d   :  { %7692 = vmatmul.msk.bf16.gmra.mxu0 %vm1253_vm2, %v8045_v34  ;;  %7762 = vmatmul.msk.bf16.gmra.mxu2 %vm1253_vm2, %v8115_v35 }
  0x9e   :  { %7746 = vmatmul.msk.bf16.gmra.mxu1 %vm1253_vm2, %v8099_v11  ;;  %v8103_v11 = vld [vmem:[%s12480_s0 + $0x218] sm:$0xff] }
  0xa0   :  { %v8472_v38 = vpop.f32.mrf.mxu2 }
  0xa2   :  { %v8475_v39 = vpop.f32.mrf.mxu0 }
  0xa3   :  { %v8583_v14 = vpop.f32.mrf.mxu1 }
  0xa4   :  { %12629 = vst [vmem:[#allocation3_spill] sm:$0xff] %v8583_v14 }
  0xa8   :  { %v8477_v40 = vpop.f32.mrf.mxu2 }
  0xaa   :  { %v8485_v43 = vpop.f32.mrf.mxu0 }
  0xab   :  { %v8597_v19 = vpop.f32.mrf.mxu1 }
  0xad   :  { %7693 = vmatmul.msk.bf16.gmra.mxu0 %vm1253_vm2, %v8046_v41  ;;  %7763 = vmatmul.msk.bf16.gmra.mxu2 %vm1253_vm2, %v8116_v42  ;;  %v8053_v42 = vld [vmem:[%s12480_s0 + $0x88] sm:$0xff] }
  0xae   :  { %7747 = vmatmul.msk.bf16.gmra.mxu1 %vm1253_vm2, %v8100_v20 }
  0xb0   :  { %v8492_v45 = vpop.f32.mrf.mxu2 }
  0xb2   :  { %v8495_v46 = vpop.f32.mrf.mxu0 }
  0xb3   :  { %v8607_v23 = vpop.f32.mrf.mxu1 }
  0xb4   :  { %12630 = vst [vmem:[#allocation4_spill] sm:$0xff] %v8607_v23 }
  0xb8   :  { %v8497_v47 = vpop.f32.mrf.mxu2 }
  0xba   :  { %v8505_v50 = vpop.f32.mrf.mxu0 }
  0xbb   :  { %v8621_v28 = vpop.f32.mrf.mxu1 }
  0xbd   :  { %7694 = vmatmul.msk.bf16.gmra.mxu0 %vm1253_vm2, %v8047_v48  ;;  %7764 = vmatmul.msk.bf16.gmra.mxu2 %vm1253_vm2, %v8117_v49 }
  0xbe   :  { %7748 = vmatmul.msk.bf16.gmra.mxu1 %vm1253_vm2, %v8101_v30  ;;  %v8125_v30 = vld [vmem:[%s12480_s0 + $0x2c8] sm:$0xff] }
  0xc0   :  { %v8512_v52 = vpop.f32.mrf.mxu2 }
  0xc2   :  { %v8515_v53 = vpop.f32.mrf.mxu0 }
  0xc3   :  { %v8631_v37 = vpop.f32.mrf.mxu1 }
  0xc4   :  { %12635 = vst [vmem:[#allocation9_spill] sm:$0xff] %v8631_v37 }
  0xc8   :  { %v8517_v54 = vpop.f32.mrf.mxu2 }
  0xca   :  { %v8525_v57 = vpop.f32.mrf.mxu0 }
  0xcb   :  { %v8645_v49 = vpop.f32.mrf.mxu1 }
  0xcd   :  { %7695 = vmatmul.msk.bf16.gmra.mxu0 %vm1253_vm2, %v8048_v55  ;;  %7765 = vmatmul.msk.bf16.gmra.mxu2 %vm1253_vm2, %v8118_v56 }
  0xce   :  { %7749 = vmatmul.msk.bf16.gmra.mxu1 %vm1253_vm2, %v8102_v51  ;;  %v8104_v51 = vld [vmem:[%s12480_s0 + $0x220] sm:$0xff] }
  0xd0   :  { %v8532_v59 = vpop.f32.mrf.mxu2 }
  0xd2   :  { %v8535_v60 = vpop.f32.mrf.mxu0 }
  0xd3   :  { %v8655_v58 = vpop.f32.mrf.mxu1 }
  0xd8   :  { %v8537_v61 = vpop.f32.mrf.mxu2 }
  0xda   :  { %v8545_v0 = vpop.f32.mrf.mxu0 }
  0xdd   :  { %7696 = vmatmul.msk.bf16.gmra.mxu0 %vm1253_vm2, %v8049_v62  ;;  %7766 = vmatmul.msk.bf16.gmra.mxu2 %vm1253_vm2, %v8119_v63  ;;  %v8054_v63 = vld [vmem:[%s12480_s0 + $0x90] sm:$0xff] }
  0xde   :  { %7750 = vmatmul.msk.bf16.gmra.mxu1 %vm1253_vm2, %v8103_v11 }
  0xe0   :  { %v8554_v3 = vpop.f32.mrf.mxu2 }
  0xe2   :  { %v8557_v4 = vpop.f32.mrf.mxu0 }
  0xe8   :  { %v8561_v6 = vpop.f32.mrf.mxu2 }
  0xea   :  { %v8569_v9 = vpop.f32.mrf.mxu0 }
  0xed   :  { %7697 = vmatmul.msk.bf16.gmra.mxu0 %vm1253_vm2, %v8050_v7  ;;  %7767 = vmatmul.msk.bf16.gmra.mxu2 %vm1253_vm2, %v8120_v8  ;;  %v8669_v8 = vpop.f32.mrf.mxu1 }
  0xee   :  { %7751 = vmatmul.msk.bf16.gmra.mxu1 %vm1253_vm2, %v8104_v51 }
  0xf0   :  { %v8578_v12 = vpop.f32.mrf.mxu2 }
  0xf2   :  { %v8581_v13 = vpop.f32.mrf.mxu0 }
  0xf5   :  { %v8679_v20 = vpop.f32.mrf.mxu1 }
  0xf8   :  { %v8585_v15 = vpop.f32.mrf.mxu2 }
  0xfa   :  { %v8593_v18 = vpop.f32.mrf.mxu0 }
  0xfd   :  { %7698 = vmatmul.msk.bf16.gmra.mxu0 %vm1253_vm2, %v8051_v16  ;;  %7768 = vmatmul.msk.bf16.gmra.mxu2 %vm1253_vm2, %v8121_v17 }
 0x100   :  { %v8602_v21 = vpop.f32.mrf.mxu2 }
 0x102   :  { %v8605_v22 = vpop.f32.mrf.mxu0 }
 0x108   :  { %v8609_v24 = vpop.f32.mrf.mxu2 }
 0x109   :  { %12631 = vst [vmem:[#allocation5_spill] sm:$0xff] %v8609_v24 }
 0x10a   :  { %v8617_v27 = vpop.f32.mrf.mxu0 }
 0x10b   :  { %12632 = vst [vmem:[#allocation6_spill] sm:$0xff] %v8617_v27 }
 0x10d   :  { %7699 = vmatmul.msk.bf16.gmra.mxu0 %vm1253_vm2, %v8052_v25  ;;  %7769 = vmatmul.msk.bf16.gmra.mxu2 %vm1253_vm2, %v8122_v26  ;;  %v8055_v26 = vld [vmem:[%s12480_s0 + $0x98] sm:$0xff] }
 0x110   :  { %v8626_v34 = vpop.f32.mrf.mxu2 }
 0x111   :  { %12633 = vst [vmem:[#allocation7_spill] sm:$0xff] %v8626_v34 }
 0x112   :  { %v8629_v35 = vpop.f32.mrf.mxu0 }
 0x113   :  { %12634 = vst [vmem:[#allocation8_spill] sm:$0xff] %v8629_v35 }
 0x118   :  { %v8633_v41 = vpop.f32.mrf.mxu2 }
 0x119   :  { %12636 = vst [vmem:[#allocation10_spill] sm:$0xff] %v8633_v41  ;;  %v8730_v41 = vld [vmem:[%s12478_s2] ss:$0 sm:$0xff] }
 0x11a   :  { %v8641_v48 = vpop.f32.mrf.mxu0  ;;  %v2070_v24 = vadd.f32 %v8730_v41, %v8655_v58 }
 0x11b   :  { %12637 = vst [vmem:[#allocation11_spill] sm:$0xff] %v8641_v48 }
 0x11d   :  { %7700 = vmatmul.msk.bf16.gmra.mxu0 %vm1253_vm2, %v8053_v42  ;;  %7770 = vmatmul.msk.bf16.gmra.mxu2 %vm1253_vm2, %v8123_v44  ;;  %v8693_v44 = vpop.f32.mrf.mxu1 }
 0x120   :  { %v8650_v55 = vpop.f32.mrf.mxu2 }
 0x121   :  { %12638 = vst [vmem:[#allocation12_spill] sm:$0xff] %v8650_v55  ;;  %v8739_v55 = vld [vmem:[%s12479_s3] ss:$0 sm:$0xff] }
 0x122   :  { %v8653_v56 = vpop.f32.mrf.mxu0 }
 0x123   :  { %12639 = vst [vmem:[#allocation13_spill] sm:$0xff] %v8653_v56  ;;  %v1780_v56 = vadd.f32 %v8730_v41, %v8455_v32  ;;  %v1783_v32 = vadd.f32 %v8730_v41, %v8465_v36 }
 0x125   :  { %v8703_v11 = vpop.f32.mrf.mxu1  ;;  %v2965_v27 = vmul.f32 %v8739_v55, %v1780_v56  ;;  %vm2624_vm5 = vcmp.gt.f32.partialorder %v1780_v56, 0.0  ;;  %vm2625_vm7 = vcmp.gt.f32.partialorder %v1783_v32, 0.0 }
 0x128   :  { %v8657_v62 = vpop.f32.mrf.mxu2 }
 0x129   :  { %12640 = vst [vmem:[#allocation14_spill] sm:$0xff] %v8657_v62 }
 0x12a   :  { %v8665_v7 = vpop.f32.mrf.mxu0 }
 0x12b   :  { %12641 = vst [vmem:[#allocation15_spill] sm:$0xff] %v8665_v7 }
 0x12d   :  { %7701 = vmatmul.msk.bf16.gmra.mxu0 %vm1253_vm2, %v8054_v63  ;;  %7771 = vmatmul.msk.bf16.gmra.mxu2 %vm1253_vm2, %v8124_v2  ;;  %v8717_v51 = vpop.f32.mrf.mxu1 }
 0x130   :  { %v8674_v16 = vpop.f32.mrf.mxu2 }
 0x132   :  { %v8677_v17 = vpop.f32.mrf.mxu0 }
 0x133   :  { %12642 = vst [vmem:[#allocation16_spill] sm:$0xff] %v8677_v17 }
 0x138   :  { %v8681_v25 = vpop.f32.mrf.mxu2 }
 0x139   :  { %12643 = vst [vmem:[#allocation17_spill] sm:$0xff] %v8681_v25 }
 0x13a   :  { %v8689_v42 = vpop.f32.mrf.mxu0 }
 0x13b   :  { %12644 = vst [vmem:[#allocation18_spill] sm:$0xff] %v8689_v42 }
 0x13d   :  { %7702 = vmatmul.msk.bf16.gmra.mxu0 %vm1253_vm2, %v8055_v26  ;;  %7772 = vmatmul.msk.bf16.gmra.mxu2 %vm1253_vm2, %v8125_v30  ;;  %v8056_v26 = vld [vmem:[%s12480_s0 + $0xa0] sm:$0xff]  ;;  %v8126_v30 = vld [vmem:[%s12480_s0 + $0x2d0] sm:$0xff] }
 0x140   :  { %v8698_v63 = vpop.f32.mrf.mxu2 }
 0x142   :  { %v8701_v2 = vpop.f32.mrf.mxu0 }
 0x143   :  { %12645 = vst [vmem:[#allocation19_spill] sm:$0xff] %v8701_v2 }
 0x148   :  { %v8705_v14 = vpop.f32.mrf.mxu2 }
 0x149   :  { %12646 = vst [vmem:[#allocation20_spill] sm:$0xff] %v8705_v14  ;;  %v8105_v14 = vld [vmem:[%s12480_s0 + $0x228] sm:$0xff] }
 0x14a   :  { %v8713_v5 = vpop.f32.mrf.mxu0  ;;  %7752 = vmatmul.msk.bf16.gmra.mxu1 %vm1253_vm2, %v8105_v14  ;;  %v8057_v14 = vld [vmem:[%s12480_s0 + $0xa8] sm:$0xff] }
 0x14b   :  { %12647 = vst [vmem:[#allocation21_spill] sm:$0xff] %v8713_v5 }
 0x14d   :  { %7703 = vmatmul.msk.bf16.gmra.mxu0 %vm1253_vm2, %v8056_v26  ;;  %7773 = vmatmul.msk.bf16.gmra.mxu2 %vm1253_vm2, %v8126_v30  ;;  %v8732_v26 = vpop.f32.mrf.mxu1  ;;  %v1778_v30 = vadd.f32 %v8730_v41, %v8445_v29 }
 0x14f   :  { %v2964_v2 = vmul.f32 %v8739_v55, %v1778_v30  ;;  %vm2623_vm3 = vcmp.gt.f32.partialorder %v1778_v30, 0.0 }
 0x150   :  { %v8722_v25 = vpop.f32.mrf.mxu2 }
 0x151   :  { %12648 = vst [vmem:[#allocation22_spill] sm:$0xff] %v8722_v25  ;;  %v8756_v7 = vsel %vm2623_vm3, %v1778_v30, %v2964_v2  ;;  %v8771_v30 = vsel %vm2624_vm5, %v1780_v56, %v2965_v27  ;;  %v8128_v27 = vld [vmem:[%s12480_s0 + $0x2e0] sm:$0xff]  ;;  %v2966_v56 = vmul.f32 %v8739_v55, %v1783_v32 }
 0x152   :  { %v8725_v62 = vpop.f32.mrf.mxu0  ;;  %12651 = vst [vmem:[#allocation25_spill] sm:$0xff] %v8756_v7 }
 0x153   :  { %12649 = vst [vmem:[#allocation23_spill] sm:$0xff] %v8725_v62  ;;  %v8127_v62 = vld [vmem:[%s12480_s0 + $0x2d8] sm:$0xff] }
 0x154   :  { %12654 = vst [vmem:[#allocation28_spill] sm:$0xff] %v8771_v30  ;;  %v1785_v30 = vadd.f32 %v8730_v41, %v8475_v39  ;;  %v1788_v39 = vadd.f32 %v8730_v41, %v8485_v43  ;;  %v2073_v43 = vadd.f32 %v8730_v41, %v8669_v8  ;;  %v8129_v8 = vld [vmem:[%s12480_s0 + $0x2e8] sm:$0xff] }
 0x155   :  { %v8754_v17 = vpop.f32.mrf.mxu1 }
 0x156   :  { %vm2626_vm9 = vcmp.gt.f32.partialorder %v1785_v30, 0.0  ;;  %vm2627_vm13 = vcmp.gt.f32.partialorder %v1788_v39, 0.0  ;;  %vm2741_vm0 = vcmp.gt.f32.partialorder %v2073_v43, 0.0 }
 0x158   :  { %v8741_v34 = vpop.f32.mrf.mxu2 }
 0x159   :  { %12650 = vst [vmem:[#allocation24_spill] sm:$0xff] %v8741_v34 }
 0x15a   :  { %v1842_v5 = vpop.f32.mrf.mxu0 }
 0x15b   :  { %v1843_v29 = vadd.f32 %v8730_v41, %v1842_v5 }
 0x15d   :  { %vm2649_vm4 = vcmp.gt.f32.partialorder %v1843_v29, 0.0  ;;  %v2990_v42 = vmul.f32 %v8739_v55, %v1843_v29  ;;  %7704 = vmatmul.msk.bf16.gmra.mxu0 %vm1253_vm2, %v8057_v14  ;;  %7774 = vmatmul.msk.bf16.gmra.mxu2 %vm1253_vm2, %v8127_v62  ;;  %v8769_v2 = vpop.f32.mrf.mxu1 }
 0x15f   :  { %v8760_v48 = vsel %vm2649_vm4, %v1843_v29, %v2990_v42 }
 0x160   :  { %12652 = vst [vmem:[#allocation26_spill] sm:$0xff] %v8760_v48  ;;  %v8764_v35 = vpop.f32.mrf.mxu2  ;;  %v8058_v48 = vld [vmem:[%s12480_s0 + $0xb0] sm:$0xff] }
 0x161   :  { %12653 = vst [vmem:[#allocation27_spill] sm:$0xff] %v8764_v35 }
 0x162   :  { %v1844_v34 = vpop.f32.mrf.mxu0 }
 0x163   :  { %v1845_v14 = vadd.f32 %v8730_v41, %v1844_v34  ;;  %v8155_v34 = vld [vmem:[%s12480_s0 + $0x3b8] sm:$0xff] }
 0x164   :  { %7802 = vmatmul.msk.bf16.vlgmr.msra.gmra.mxu3 %vm1253_vm2, %v8155_v34 }
 0x165   :  { %vm2650_vm6 = vcmp.gt.f32.partialorder %v1845_v14, 0.0  ;;  %v2991_v62 = vmul.f32 %v8739_v55, %v1845_v14  ;;  %v8796_v29 = vpop.f32.mrf.mxu1 }
 0x167   :  { %v8775_v42 = vsel %vm2650_vm6, %v1845_v14, %v2991_v62 }
 0x168   :  { %12655 = vst [vmem:[#allocation29_spill] sm:$0xff] %v8775_v42  ;;  %v8779_v5 = vpop.f32.mrf.mxu2  ;;  %v8798_v42 = vsel %vm2625_vm7, %v1783_v32, %v2966_v56 }
 0x169   :  { %12656 = vst [vmem:[#allocation30_spill] sm:$0xff] %v8779_v5  ;;  %v2133_v5 = vadd.f32 %v8730_v41, %v8472_v38  ;;  %v2068_v38 = vadd.f32 %v8730_v41, %v8645_v49 }
 0x16a   :  { %v1847_v36 = vpop.f32.mrf.mxu0  ;;  %12657 = vst [vmem:[#allocation31_spill] sm:$0xff] %v8798_v42 }
 0x16b   :  { %v1848_v14 = vadd.f32 %v8730_v41, %v1847_v36  ;;  %v3106_v32 = vmul.f32 %v8739_v55, %v2133_v5  ;;  %vm2765_vm11 = vcmp.gt.f32.partialorder %v2133_v5, 0.0  ;;  %vm2739_vm14 = vcmp.gt.f32.partialorder %v2068_v38, 0.0 }
 0x16d   :  { %vm2651_vm8 = vcmp.gt.f32.partialorder %v1848_v14, 0.0  ;;  %v2992_v62 = vmul.f32 %v8739_v55, %v1848_v14  ;;  %7705 = vmatmul.msk.bf16.gmra.mxu0 %vm1253_vm2, %v8058_v48  ;;  %7775 = vmatmul.msk.bf16.gmra.mxu2 %vm1253_vm2, %v8128_v27  ;;  %v2967_v48 = vmul.f32 %v8739_v55, %v1785_v30  ;;  %v3444_v49 = vsel %vm2765_vm11, %v2133_v5, %v3106_v32 }
 0x16e   :  { %v3082_v32 = vmul.f32 %v8739_v55, %v2073_v43 }
 0x16f   :  { %v8802_v34 = vsel %vm2651_vm8, %v1848_v14, %v2992_v62  ;;  %v2135_v14 = vadd.f32 %v8730_v41, %v8477_v40  ;;  %v8818_v62 = vpop.f32.mrf.mxu1  ;;  %v8820_v36 = vsel %vm2626_vm9, %v1785_v30, %v2967_v48  ;;  %v8156_v40 = vld [vmem:[%s12480_s0 + $0x3c0] sm:$0xff]  ;;  %v2968_v30 = vmul.f32 %v8739_v55, %v1788_v39 }
 0x170   :  { %12658 = vst [vmem:[#allocation32_spill] sm:$0xff] %v8802_v34  ;;  %v2197_v7 = vpop.f32.mrf.mxu2  ;;  %v3080_v48 = vmul.f32 %v8739_v55, %v2068_v38  ;;  %vm2740_vm8 = vcmp.gt.f32.partialorder %v2070_v24, 0.0 }
 0x171   :  { %12659 = vst [vmem:[#allocation33_spill] sm:$0xff] %v8818_v62  ;;  %vm2766_vm12 = vcmp.gt.f32.partialorder %v2135_v14, 0.0  ;;  %v8849_v35 = vsel %vm2627_vm13, %v1788_v39, %v2968_v30  ;;  %v8865_v62 = vsel %vm2741_vm0, %v2073_v43, %v3082_v32 }
 0x172   :  { %v1849_v25 = vpop.f32.mrf.mxu0  ;;  %12660 = vst [vmem:[#allocation34_spill] sm:$0xff] %v8820_v36  ;;  %v1790_v36 = vadd.f32 %v8730_v41, %v8495_v46  ;;  %v2075_v46 = vadd.f32 %v8730_v41, %v8679_v20 }
 0x173   :  { %v1850_v27 = vadd.f32 %v8730_v41, %v1849_v25  ;;  %v2138_v25 = vadd.f32 %v8730_v41, %v8492_v45  ;;  %v8059_v45 = vld [vmem:[%s12480_s0 + $0xb8] sm:$0xff]  ;;  %12663 = vst [vmem:[#allocation37_spill] sm:$0xff] %v8865_v62 }
 0x174   :  { %7803 = vmatmul.msk.bf16.gmra.mxu3 %vm1253_vm2, %v8156_v40  ;;  %vm2628_vm5 = vcmp.gt.f32.partialorder %v1790_v36, 0.0  ;;  %vm2742_vm9 = vcmp.gt.f32.partialorder %v2075_v46, 0.0 }
 0x175   :  { %vm2652_vm10 = vcmp.gt.f32.partialorder %v1850_v27, 0.0  ;;  %v2993_v56 = vmul.f32 %v8739_v55, %v1850_v27  ;;  %v3108_v5 = vmul.f32 %v8739_v55, %v2138_v25  ;;  %vm2767_vm15 = vcmp.gt.f32.partialorder %v2138_v25, 0.0 }
 0x177   :  { %v8826_v34 = vsel %vm2652_vm10, %v1850_v27, %v2993_v56  ;;  %v2198_v27 = vadd.f32 %v8730_v41, %v2197_v7  ;;  %v2140_v7 = vadd.f32 %v8730_v41, %v8497_v47  ;;  %v8863_v30 = vpop.f32.mrf.mxu1  ;;  %v3446_v47 = vsel %vm2767_vm15, %v2138_v25, %v3108_v5 }
 0x178   :  { %12661 = vst [vmem:[#allocation35_spill] sm:$0xff] %v8826_v34  ;;  %v2199_v37 = vpop.f32.mrf.mxu2  ;;  %v3107_v34 = vmul.f32 %v8739_v55, %v2135_v14 }
 0x179   :  { %v3132_v39 = vmul.f32 %v8739_v55, %v2198_v27  ;;  %vm2791_vm4 = vcmp.gt.f32.partialorder %v2198_v27, 0.0  ;;  %vm2768_vm6 = vcmp.gt.f32.partialorder %v2140_v7, 0.0  ;;  %v2200_v32 = vadd.f32 %v8730_v41, %v2199_v37 }
 0x17a   :  { %v1852_v56 = vpop.f32.mrf.mxu0 }
 0x17b   :  { %v1853_v42 = vadd.f32 %v8730_v41, %v1852_v56  ;;  %v8856_v56 = vsel %vm2739_vm14, %v2068_v38, %v3080_v48  ;;  %v2969_v38 = vmul.f32 %v8739_v55, %v1790_v36  ;;  %v4408_v48 = vmax.f32 %v8865_v62, %v3446_v47 }
 0x17c   :  { %12662 = vst [vmem:[#allocation36_spill] sm:$0xff] %v8856_v56  ;;  %v4406_v25 = vmax.f32 %v8856_v56, %v3444_v49  ;;  %vm2792_vm11 = vcmp.gt.f32.partialorder %v2200_v32, 0.0 }
 0x17d   :  { %vm2653_vm3 = vcmp.gt.f32.partialorder %v1853_v42, 0.0  ;;  %v2994_v40 = vmul.f32 %v8739_v55, %v1853_v42  ;;  %7706 = vmatmul.msk.bf16.gmra.mxu0 %vm1253_vm2, %v8059_v45  ;;  %7776 = vmatmul.msk.bf16.gmra.mxu2 %vm1253_vm2, %v8129_v8  ;;  %v8870_v45 = vsel %vm2766_vm12, %v2135_v14, %v3107_v34  ;;  %v3109_v8 = vmul.f32 %v8739_v55, %v2140_v7 }
 0x17e   :  { %v3083_v34 = vmul.f32 %v8739_v55, %v2075_v46  ;;  %v8881_v14 = vsel %vm2791_vm4, %v2198_v27, %v3132_v39  ;;  %v8887_v49 = vsel %vm2628_vm5, %v1790_v36, %v2969_v38  ;;  %v2143_v39 = vadd.f32 %v8730_v41, %v8512_v52 }
 0x17f   :  { %v8867_v23 = vsel %vm2653_vm3, %v1853_v42, %v2994_v40  ;;  %v3081_v42 = vmul.f32 %v8739_v55, %v2070_v24  ;;  %12664 = vst [vmem:[#allocation38_spill] sm:$0xff] %v8881_v14  ;;  %v3447_v47 = vsel %vm2768_vm6, %v2140_v7, %v3109_v8  ;;  %v8900_v36 = vmax.f32 %v4406_v25, %v8881_v14  ;;  %v8905_v38 = vpop.f32.mrf.mxu1 }
 0x180   :  { %v2202_v20 = vpop.f32.mrf.mxu2  ;;  %v8909_v8 = vsel %vm2742_vm9, %v2075_v46, %v3083_v34  ;;  %v3110_v34 = vmul.f32 %v8739_v55, %v2143_v39  ;;  %v2128_v14 = vadd.f32 %v8730_v41, %v8452_v31  ;;  %vm2769_vm14 = vcmp.gt.f32.partialorder %v2143_v39, 0.0 }
 0x181   :  { %v2203_v43 = vadd.f32 %v8730_v41, %v2202_v20  ;;  %v1793_v20 = vadd.f32 %v8730_v41, %v8505_v50  ;;  %v8907_v7 = vsel %vm2740_vm8, %v2070_v24, %v3081_v42  ;;  %12667 = vst [vmem:[#allocation41_spill] sm:$0xff] %v8909_v8  ;;  %v8130_v42 = vld [vmem:[%s12480_s0 + $0x2f0] sm:$0xff]  ;;  %v2145_v31 = vadd.f32 %v8730_v41, %v8517_v54 }
 0x182   :  { %v1854_v5 = vpop.f32.mrf.mxu0  ;;  %12666 = vst [vmem:[#allocation40_spill] sm:$0xff] %v8907_v7  ;;  %vm2763_vm3 = vcmp.gt.f32.partialorder %v2128_v14, 0.0 }
 0x183   :  { %vm2793_vm7 = vcmp.gt.f32.partialorder %v2203_v43, 0.0  ;;  %v3134_v40 = vmul.f32 %v8739_v55, %v2203_v43  ;;  %v1855_v58 = vadd.f32 %v8730_v41, %v1854_v5  ;;  %v2078_v5 = vadd.f32 %v8730_v41, %v8693_v44 }
 0x184   :  { %vm2629_vm12 = vcmp.gt.f32.partialorder %v1793_v20, 0.0  ;;  %v2970_v24 = vmul.f32 %v8739_v55, %v1793_v20  ;;  %v4409_v44 = vmax.f32 %v8909_v8, %v3447_v47  ;;  %vm2770_vm5 = vcmp.gt.f32.partialorder %v2145_v31, 0.0 }
 0x185   :  { %v8892_v27 = vsel %vm2793_vm7, %v2203_v43, %v3134_v40  ;;  %vm2654_vm10 = vcmp.gt.f32.partialorder %v1855_v58, 0.0  ;;  %v2995_v37 = vmul.f32 %v8739_v55, %v1855_v58  ;;  %v3133_v43 = vmul.f32 %v8739_v55, %v2200_v32 }
 0x186   :  { %12665 = vst [vmem:[#allocation39_spill] sm:$0xff] %v8892_v27  ;;  %v8903_v50 = vmax.f32 %v4408_v48, %v8892_v27  ;;  %v8157_v48 = vld [vmem:[%s12480_s0 + $0x3c8] sm:$0xff]  ;;  %v3084_v52 = vmul.f32 %v8739_v55, %v2078_v5  ;;  %vm2743_vm15 = vcmp.gt.f32.partialorder %v2078_v5, 0.0 }
 0x187   :  { %v8912_v40 = vsel %vm2654_vm10, %v1855_v58, %v2995_v37  ;;  %v8060_v58 = vld [vmem:[%s12480_s0 + $0xc0] sm:$0xff]  ;;  %v4407_v37 = vmax.f32 %v8907_v7, %v8870_v45  ;;  %7804 = vmatmul.msk.bf16.gmra.mxu3 %vm1253_vm2, %v8157_v48  ;;  %v1795_v45 = vadd.f32 %v8730_v41, %v8515_v53 }
 0x188   :  { %v2204_v25 = vpop.f32.mrf.mxu2 }
 0x189   :  { %v2205_v46 = vadd.f32 %v8730_v41, %v2204_v25  ;;  %v8936_v25 = vsel %vm2792_vm11, %v2200_v32, %v3133_v43  ;;  %v8950_v32 = vsel %vm2629_vm12, %v1793_v20, %v2970_v24  ;;  %v3448_v43 = vsel %vm2769_vm14, %v2143_v39, %v3110_v34 }
 0x18a   :  { %v1857_v62 = vpop.f32.mrf.mxu0  ;;  %12668 = vst [vmem:[#allocation42_spill] sm:$0xff] %v8936_v25  ;;  %v3104_v20 = vmul.f32 %v8739_v55, %v2128_v14  ;;  %vm2630_vm4 = vcmp.gt.f32.partialorder %v1795_v45, 0.0  ;;  %v2971_v39 = vmul.f32 %v8739_v55, %v1795_v45 }
 0x18b   :  { %vm2794_vm13 = vcmp.gt.f32.partialorder %v2205_v46, 0.0  ;;  %v3135_v56 = vmul.f32 %v8739_v55, %v2205_v46  ;;  %v1858_v27 = vadd.f32 %v8730_v41, %v1857_v62  ;;  %v8955_v62 = vmax.f32 %v4407_v37, %v8936_v25 }
 0x18c   :  { %v8982_v54 = vsel %vm2763_vm3, %v2128_v14, %v3104_v20 }
 0x18d   :  { %v8944_v47 = vsel %vm2794_vm13, %v2205_v46, %v3135_v56  ;;  %vm2655_vm0 = vcmp.gt.f32.partialorder %v1858_v27, 0.0  ;;  %v2996_v48 = vmul.f32 %v8739_v55, %v1858_v27  ;;  %7707 = vmatmul.msk.bf16.gmra.mxu0 %vm1253_vm2, %v8060_v58  ;;  %7777 = vmatmul.msk.bf16.gmra.mxu2 %vm1253_vm2, %v8130_v42  ;;  %v8960_v56 = vpop.f32.mrf.mxu1  ;;  %v8962_v46 = vsel %vm2743_vm15, %v2078_v5, %v3084_v52 }
 0x18e   :  { %12669 = vst [vmem:[#allocation43_spill] sm:$0xff] %v8944_v47  ;;  %v8958_v53 = vmax.f32 %v4409_v44, %v8944_v47  ;;  %v2080_v58 = vadd.f32 %v8730_v41, %v8703_v11  ;;  %v3111_v11 = vmul.f32 %v8739_v55, %v2145_v31  ;;  %v4410_v52 = vmax.f32 %v8962_v46, %v3448_v43 }
 0x18f   :  { %12670 = vst [vmem:[#allocation44_spill] sm:$0xff] %v8960_v56  ;;  %v8966_v42 = vsel %vm2655_vm0, %v1858_v27, %v2996_v48  ;;  %v1798_v27 = vadd.f32 %v8730_v41, %v8525_v57  ;;  %v2130_v56 = vadd.f32 %v8730_v41, %v8457_v33  ;;  %v2083_v33 = vadd.f32 %v8730_v41, %v8717_v51  ;;  %v8158_v51 = vld [vmem:[%s12480_s0 + $0x3d0] sm:$0xff] }
 0x190   :  { %12671 = vst [vmem:[#allocation45_spill] sm:$0xff] %v8962_v46  ;;  %v2207_v44 = vpop.f32.mrf.mxu2  ;;  %v3085_v37 = vmul.f32 %v8739_v55, %v2080_v58  ;;  %vm2744_vm7 = vcmp.gt.f32.partialorder %v2080_v58, 0.0  ;;  %v8992_v46 = vsel %vm2630_vm4, %v1795_v45, %v2971_v39  ;;  %v3449_v8 = vsel %vm2770_vm5, %v2145_v31, %v3111_v11 }
 0x191   :  { %v2208_v5 = vadd.f32 %v8730_v41, %v2207_v44  ;;  %v2148_v44 = vadd.f32 %v8730_v41, %v8532_v59  ;;  %v2972_v14 = vmul.f32 %v8739_v55, %v1798_v27  ;;  %vm2631_vm9 = vcmp.gt.f32.partialorder %v1798_v27, 0.0 }
 0x192   :  { %v1859_v34 = vpop.f32.mrf.mxu0  ;;  %v1800_v31 = vadd.f32 %v8730_v41, %v8535_v60  ;;  %v12675_v39 = vmax.f32 %v8900_v36, %v8903_v50  ;;  %vm2764_vm10 = vcmp.gt.f32.partialorder %v2130_v56, 0.0  ;;  %v8061_v50 = vld [vmem:[%s12480_s0 + $0xc8] sm:$0xff]  ;;  %vm2745_vm14 = vcmp.gt.f32.partialorder %v2083_v33, 0.0 }
 0x193   :  { %vm2795_vm6 = vcmp.gt.f32.partialorder %v2208_v5, 0.0  ;;  %v3136_v48 = vmul.f32 %v8739_v55, %v2208_v5  ;;  %v1860_v24 = vadd.f32 %v8730_v41, %v1859_v34  ;;  %v9001_v34 = vsel %vm2744_vm7, %v2080_v58, %v3085_v37  ;;  %v8131_v37 = vld [vmem:[%s12480_s0 + $0x2f8] sm:$0xff] }
 0x194   :  { %12674 = vst [vmem:[#allocation48_spill] sm:$0xff] %v9001_v34  ;;  %v3112_v45 = vmul.f32 %v8739_v55, %v2148_v44  ;;  %vm2771_vm11 = vcmp.gt.f32.partialorder %v2148_v44, 0.0  ;;  %vm2632_vm13 = vcmp.gt.f32.partialorder %v1800_v31, 0.0 }
 0x195   :  { %v8988_v57 = vsel %vm2795_vm6, %v2208_v5, %v3136_v48  ;;  %vm2656_vm8 = vcmp.gt.f32.partialorder %v1860_v24, 0.0  ;;  %v2997_v43 = vmul.f32 %v8739_v55, %v1860_v24  ;;  %v8999_v59 = vpop.f32.mrf.mxu1  ;;  %v3105_v48 = vmul.f32 %v8739_v55, %v2130_v56 }
 0x196   :  { %12672 = vst [vmem:[#allocation46_spill] sm:$0xff] %v8988_v57  ;;  %v8997_v20 = vmax.f32 %v4410_v52, %v8988_v57  ;;  %v3450_v57 = vsel %vm2771_vm11, %v2148_v44, %v3112_v45  ;;  %v2048_v44 = vadd.f32 %v8730_v41, %v8549_v1  ;;  %v12679_v1 = vmax.f32 %v8955_v62, %v8958_v53 }
 0x197   :  { %12673 = vst [vmem:[#allocation47_spill] sm:$0xff] %v8999_v59  ;;  %v9005_v5 = vsel %vm2656_vm8, %v1860_v24, %v2997_v43  ;;  %v2150_v24 = vadd.f32 %v8730_v41, %v8537_v61  ;;  %v9032_v43 = vsel %vm2631_vm9, %v1798_v27, %v2972_v14  ;;  %v4411_v61 = vmax.f32 %v9001_v34, %v3449_v8 }
 0x198   :  { %v9014_v11 = vmax.f32 %v12675_v39, %v8997_v20  ;;  %v2209_v52 = vpop.f32.mrf.mxu2  ;;  %v1803_v39 = vadd.f32 %v8730_v41, %v8545_v0  ;;  %7805 = vmatmul.msk.bf16.gmra.mxu3 %vm1253_vm2, %v8158_v51  ;;  %v2973_v27 = vmul.f32 %v8739_v55, %v1800_v31  ;;  %v2153_v34 = vadd.f32 %v8730_v41, %v8554_v3 }
 0x199   :  { %v2210_v60 = vadd.f32 %v8730_v41, %v2209_v52  ;;  %v3086_v52 = vmul.f32 %v8739_v55, %v2083_v33  ;;  %v3113_v14 = vmul.f32 %v8739_v55, %v2150_v24  ;;  %vm2772_vm0 = vcmp.gt.f32.partialorder %v2150_v24, 0.0 }
 0x19a   :  { %v1862_v58 = vpop.f32.mrf.mxu0  ;;  %v2974_v51 = vmul.f32 %v8739_v55, %v1803_v39  ;;  %vm2633_vm3 = vcmp.gt.f32.partialorder %v1803_v39, 0.0  ;;  %vm2731_vm4 = vcmp.gt.f32.partialorder %v2048_v44, 0.0  ;;  %v3072_v53 = vmul.f32 %v8739_v55, %v2048_v44 }
 0x19b   :  { %vm2796_vm12 = vcmp.gt.f32.partialorder %v2210_v60, 0.0  ;;  %v3137_v59 = vmul.f32 %v8739_v55, %v2210_v60  ;;  %v1863_v7 = vadd.f32 %v8730_v41, %v1862_v58  ;;  %vm2773_vm6 = vcmp.gt.f32.partialorder %v2153_v34, 0.0 }
 0x19d   :  { %v9043_v0 = vsel %vm2796_vm12, %v2210_v60, %v3137_v59  ;;  %vm2657_vm15 = vcmp.gt.f32.partialorder %v1863_v7, 0.0  ;;  %v2998_v8 = vmul.f32 %v8739_v55, %v1863_v7  ;;  %7708 = vmatmul.msk.bf16.gmra.mxu0 %vm1253_vm2, %v8061_v50  ;;  %7778 = vmatmul.msk.bf16.gmra.mxu2 %vm1253_vm2, %v8131_v37  ;;  %v9054_v58 = vpop.f32.mrf.mxu1  ;;  %v9056_v59 = vsel %vm2745_vm14, %v2083_v33, %v3086_v52 }
 0x19e   :  { %12676 = vst [vmem:[#allocation49_spill] sm:$0xff] %v9043_v0  ;;  %v9052_v45 = vmax.f32 %v4411_v61, %v9043_v0  ;;  %v2085_v60 = vadd.f32 %v8730_v41, %v8732_v26  ;;  %v9063_v37 = vsel %vm2764_vm10, %v2130_v56, %v3105_v48  ;;  %v9076_v26 = vsel %vm2632_vm13, %v1800_v31, %v2973_v27 }
 0x19f   :  { %12677 = vst [vmem:[#allocation50_spill] sm:$0xff] %v9054_v58  ;;  %v9060_v50 = vsel %vm2657_vm15, %v1863_v7, %v2998_v8  ;;  %v9078_v7 = vsel %vm2772_vm0, %v2150_v24, %v3113_v14  ;;  %v1805_v56 = vadd.f32 %v8730_v41, %v8557_v4  ;;  %v9083_v48 = vsel %vm2633_vm3, %v1803_v39, %v2974_v51 }
 0x1a0   :  { %12678 = vst [vmem:[#allocation51_spill] sm:$0xff] %v9056_v59  ;;  %v9071_v61 = vmax.f32 %v12679_v1, %v9052_v45  ;;  %v2212_v52 = vpop.f32.mrf.mxu2  ;;  %v4412_v8 = vmax.f32 %v9056_v59, %v3450_v57  ;;  %v3087_v33 = vmul.f32 %v8739_v55, %v2085_v60  ;;  %v3114_v4 = vmul.f32 %v8739_v55, %v2153_v34 }
 0x1a1   :  { %v2213_v3 = vadd.f32 %v8730_v41, %v2212_v52  ;;  %v2155_v39 = vadd.f32 %v8730_v41, %v8561_v6  ;;  %vm2746_vm7 = vcmp.gt.f32.partialorder %v2085_v60, 0.0  ;;  %v2975_v27 = vmul.f32 %v8739_v55, %v1805_v56 }
 0x1a2   :  { %v1864_v1 = vpop.f32.mrf.mxu0  ;;  %vm2634_vm9 = vcmp.gt.f32.partialorder %v1805_v56, 0.0  ;;  %v1808_v51 = vadd.f32 %v8730_v41, %v8569_v9  ;;  %v2053_v52 = vadd.f32 %v8730_v41, %v8573_v10  ;;  %v9107_v6 = vsel %vm2731_vm4, %v2048_v44, %v3072_v53  ;;  %v8062_v53 = vld [vmem:[%s12480_s0 + $0xd0] sm:$0xff] }
 0x1a3   :  { %vm2797_vm5 = vcmp.gt.f32.partialorder %v2213_v3, 0.0  ;;  %v3138_v31 = vmul.f32 %v8739_v55, %v2213_v3  ;;  %v1865_v24 = vadd.f32 %v8730_v41, %v1864_v1  ;;  %12682 = vst [vmem:[#allocation54_spill] sm:$0xff] %v9107_v6  ;;  %v3115_v9 = vmul.f32 %v8739_v55, %v2155_v39 }
 0x1a4   :  { %v2158_v10 = vadd.f32 %v8730_v41, %v8578_v12  ;;  %vm2774_vm10 = vcmp.gt.f32.partialorder %v2155_v39, 0.0  ;;  %vm2635_vm11 = vcmp.gt.f32.partialorder %v1808_v51, 0.0  ;;  %vm2733_vm13 = vcmp.gt.f32.partialorder %v2053_v52, 0.0 }
 0x1a5   :  { %v9094_v14 = vsel %vm2797_vm5, %v2213_v3, %v3138_v31  ;;  %vm2658_vm8 = vcmp.gt.f32.partialorder %v1865_v24, 0.0  ;;  %v2999_v57 = vmul.f32 %v8739_v55, %v1865_v24  ;;  %v9104_v58 = vpop.f32.mrf.mxu1  ;;  %v9109_v3 = vsel %vm2746_vm7, %v2085_v60, %v3087_v33  ;;  %v8159_v60 = vld [vmem:[%s12480_s0 + $0x3d8] sm:$0xff] }
 0x1a6   :  { %12680 = vst [vmem:[#allocation52_spill] sm:$0xff] %v9094_v14  ;;  %v9102_v1 = vmax.f32 %v4412_v8, %v9094_v14  ;;  %v2088_v31 = vadd.f32 %v8730_v41, %v8754_v17  ;;  %v9126_v17 = vsel %vm2773_vm6, %v2153_v34, %v3114_v4  ;;  %v9129_v33 = vsel %vm2634_vm9, %v1805_v56, %v2975_v27 }
 0x1a7   :  { %12681 = vst [vmem:[#allocation53_spill] sm:$0xff] %v9104_v58  ;;  %v9113_v59 = vsel %vm2658_vm8, %v1865_v24, %v2999_v57  ;;  %v8132_v24 = vld [vmem:[%s12480_s0 + $0x300] sm:$0xff]  ;;  %v2976_v57 = vmul.f32 %v8739_v55, %v1808_v51  ;;  %v3074_v34 = vmul.f32 %v8739_v55, %v2053_v52  ;;  %v4413_v56 = vmax.f32 %v9109_v3, %v9078_v7 }
 0x1a8   :  { %12683 = vst [vmem:[#allocation55_spill] sm:$0xff] %v9109_v3  ;;  %v2214_v44 = vpop.f32.mrf.mxu2  ;;  %7806 = vmatmul.msk.bf16.gmra.mxu3 %vm1253_vm2, %v8159_v60  ;;  %v3088_v27 = vmul.f32 %v8739_v55, %v2088_v31  ;;  %v9146_v8 = vsel %vm2774_vm10, %v2155_v39, %v3115_v9  ;;  %v3116_v14 = vmul.f32 %v8739_v55, %v2158_v10  ;;  %vm2747_vm14 = vcmp.gt.f32.partialorder %v2088_v31, 0.0 }
 0x1a9   :  { %v2215_v12 = vadd.f32 %v8730_v41, %v2214_v44  ;;  %v1810_v0 = vadd.f32 %v8730_v41, %v8581_v13  ;;  %vm2775_vm0 = vcmp.gt.f32.partialorder %v2158_v10, 0.0  ;;  %v2160_v39 = vadd.f32 %v8730_v41, %v8585_v15 }
 0x1aa   :  { %v1867_v4 = vpop.f32.mrf.mxu0  ;;  %v1815_v15 = vadd.f32 %v8730_v41, %v8605_v22  ;;  %v12690_v22 = vmax.f32 %v8997_v20, %v9102_v1  ;;  %v8063_v1 = vld [vmem:[%s12480_s0 + $0xd8] sm:$0xff] }
 0x1ab   :  { %vm2798_vm12 = vcmp.gt.f32.partialorder %v2215_v12, 0.0  ;;  %v3139_v44 = vmul.f32 %v8739_v55, %v2215_v12  ;;  %v1868_v58 = vadd.f32 %v8730_v41, %v1867_v4  ;;  %v9157_v4 = vsel %vm2635_vm11, %v1808_v51, %v2976_v57 }
 0x1ac   :  { %v1813_v51 = vadd.f32 %v8730_v41, %v8593_v18  ;;  %vm2636_vm3 = vcmp.gt.f32.partialorder %v1810_v0, 0.0  ;;  %v2977_v18 = vmul.f32 %v8739_v55, %v1810_v0  ;;  %vm2776_vm4 = vcmp.gt.f32.partialorder %v2160_v39, 0.0 }
 0x1ad   :  { %v9151_v7 = vsel %vm2798_vm12, %v2215_v12, %v3139_v44  ;;  %vm2659_vm15 = vcmp.gt.f32.partialorder %v1868_v58, 0.0  ;;  %v3000_v60 = vmul.f32 %v8739_v55, %v1868_v58  ;;  %7709 = vmatmul.msk.bf16.gmra.mxu0 %vm1253_vm2, %v8062_v53  ;;  %7779 = vmatmul.msk.bf16.gmra.mxu2 %vm1253_vm2, %v8132_v24  ;;  %v2112_v13 = vpop.f32.mrf.mxu1  ;;  %v9164_v12 = vsel %vm2733_vm13, %v2053_v52, %v3074_v34 }
 0x1ae   :  { %12684 = vst [vmem:[#allocation56_spill] sm:$0xff] %v9151_v7  ;;  %v9162_v9 = vmax.f32 %v4413_v56, %v9151_v7  ;;  %v9166_v44 = vsel %vm2747_vm14, %v2088_v31, %v3088_v27  ;;  %v2090_v53 = vadd.f32 %v8730_v41, %v8769_v2  ;;  %v2058_v24 = vadd.f32 %v8730_v41, %v8597_v19 }
 0x1af   :  { %12685 = vst [vmem:[#allocation57_spill] sm:$0xff] %v9164_v12  ;;  %v9170_v3 = vsel %vm2659_vm15, %v1868_v58, %v3000_v60  ;;  %v9180_v31 = vsel %vm2775_vm0, %v2158_v10, %v3116_v14  ;;  %v2163_v2 = vadd.f32 %v8730_v41, %v8602_v21  ;;  %v3117_v19 = vmul.f32 %v8739_v55, %v2160_v39 }
 0x1b0   :  { %12686 = vst [vmem:[#allocation58_spill] sm:$0xff] %v9166_v44  ;;  %v2217_v57 = vpop.f32.mrf.mxu2  ;;  %v4414_v34 = vmax.f32 %v9166_v44, %v9126_v17  ;;  %v3089_v27 = vmul.f32 %v8739_v55, %v2090_v53  ;;  %vm2637_vm6 = vcmp.gt.f32.partialorder %v1813_v51, 0.0  ;;  %v2978_v21 = vmul.f32 %v8739_v55, %v1813_v51 }
 0x1b1   :  { %v2218_v58 = vadd.f32 %v8730_v41, %v2217_v57  ;;  %v3076_v60 = vmul.f32 %v8739_v55, %v2058_v24  ;;  %vm2748_vm7 = vcmp.gt.f32.partialorder %v2090_v53, 0.0  ;;  %v3118_v57 = vmul.f32 %v8739_v55, %v2163_v2 }
 0x1b2   :  { %v1869_v56 = vpop.f32.mrf.mxu0  ;;  %vm2777_vm9 = vcmp.gt.f32.partialorder %v2163_v2, 0.0  ;;  %vm2735_vm10 = vcmp.gt.f32.partialorder %v2058_v24, 0.0  ;;  %v9206_v7 = vsel %vm2636_vm3, %v1810_v0, %v2977_v18  ;;  %v9208_v47 = vsel %vm2748_vm7, %v2090_v53, %v3089_v27 }
 0x1b3   :  { %vm2799_vm5 = vcmp.gt.f32.partialorder %v2218_v58, 0.0  ;;  %v3140_v14 = vmul.f32 %v8739_v55, %v2218_v58  ;;  %v1870_v10 = vadd.f32 %v8730_v41, %v1869_v56  ;;  %12689 = vst [vmem:[#allocation61_spill] sm:$0xff] %v9208_v47  ;;  %v9215_v25 = vsel %vm2776_vm4, %v2160_v39, %v3117_v19 }
 0x1b4   :  { %v2113_v53 = vadd.f32 %v8730_v41, %v2112_v13  ;;  %v9230_v27 = vsel %vm2637_vm6, %v1813_v51, %v2978_v21  ;;  %v9233_v39 = vsel %vm2777_vm9, %v2163_v2, %v3118_v57  ;;  %v9235_v19 = vsel %vm2735_vm10, %v2058_v24, %v3076_v60  ;;  %v8133_v13 = vld [vmem:[%s12480_s0 + $0x308] sm:$0xff] }
 0x1b5   :  { %v9195_v52 = vsel %vm2799_vm5, %v2218_v58, %v3140_v14  ;;  %vm2660_vm8 = vcmp.gt.f32.partialorder %v1870_v10, 0.0  ;;  %v3001_v17 = vmul.f32 %v8739_v55, %v1870_v10  ;;  %v9203_v44 = vpop.f32.mrf.mxu1  ;;  %v2093_v58 = vadd.f32 %v8730_v41, %v8796_v29  ;;  %v8160_v29 = vld [vmem:[%s12480_s0 + $0x3e0] sm:$0xff]  ;;  %12691 = vst [vmem:[#allocation62_spill] sm:$0xff] %v9235_v19 }
 0x1b6   :  { %12687 = vst [vmem:[#allocation59_spill] sm:$0xff] %v9195_v52  ;;  %v9201_v56 = vmax.f32 %v4414_v34, %v9195_v52  ;;  %vm2638_vm11 = vcmp.gt.f32.partialorder %v1815_v15, 0.0  ;;  %v9247_v51 = vadd.f32 %v8730_v41, %v8621_v28  ;;  %v4415_v24 = vmax.f32 %v9208_v47, %v9146_v8 }
 0x1b7   :  { %12688 = vst [vmem:[#allocation60_spill] sm:$0xff] %v9203_v44  ;;  %v9212_v14 = vsel %vm2660_vm8, %v1870_v10, %v3001_v17  ;;  %v2979_v10 = vmul.f32 %v8739_v55, %v1815_v15  ;;  %v3090_v21 = vmul.f32 %v8739_v55, %v2093_v58  ;;  %v2178_v17 = vadd.f32 %v8730_v41, %v8674_v16  ;;  %v12693_v16 = vld [vmem:[#allocation4_spill] sm:$0xff]  ;;  %v12695_v44 = vld [vmem:[#allocation5_spill] sm:$0xff] }
 0x1b8   :  { %v9221_v34 = vmax.f32 %v12690_v22, %v9201_v56  ;;  %v2219_v18 = vpop.f32.mrf.mxu2  ;;  %7807 = vmatmul.msk.bf16.gmra.mxu3 %vm1253_vm2, %v8160_v29  ;;  %v2183_v28 = vadd.f32 %v8730_v41, %v8698_v63  ;;  %vm2749_vm13 = vcmp.gt.f32.partialorder %v2093_v58, 0.0  ;;  %v3098_v22 = vmul.f32 %v8739_v55, %v2113_v53  ;;  %v12694_v63 = vld [vmem:[#allocation33_spill] sm:$0xff] }
 0x1b9   :  { %v2220_v20 = vadd.f32 %v8730_v41, %v2219_v18  ;;  %vm2757_vm15 = vcmp.gt.f32.partialorder %v2113_v53, 0.0  ;;  %v9266_v29 = vsel %vm2638_vm11, %v1815_v15, %v2979_v10  ;;  %v2095_v0 = vadd.f32 %v8730_v41, %v12694_v63 }
 0x1ba   :  { %v1872_v2 = vpop.f32.mrf.mxu0  ;;  %vm2737_vm0 = vcmp.gt.f32.partialorder %v9247_v51, 0.0  ;;  %v3124_v10 = vmul.f32 %v8739_v55, %v2178_v17  ;;  %vm2783_vm3 = vcmp.gt.f32.partialorder %v2178_v17, 0.0  ;;  %vm2785_vm4 = vcmp.gt.f32.partialorder %v2183_v28, 0.0 }
 0x1bb   :  { %vm2800_vm12 = vcmp.gt.f32.partialorder %v2220_v20, 0.0  ;;  %v3141_v60 = vmul.f32 %v8739_v55, %v2220_v20  ;;  %v1873_v57 = vadd.f32 %v8730_v41, %v1872_v2  ;;  %v9270_v2 = vadd.f32 %v8730_v41, %v12693_v16 }
 0x1bc   :  { %v12698_v16 = vmax.f32 %v9052_v45, %v9162_v9  ;;  %v3091_v45 = vmul.f32 %v8739_v55, %v2095_v0  ;;  %vm2750_vm6 = vcmp.gt.f32.partialorder %v2095_v0, 0.0 }
 0x1bd   :  { %v9260_v8 = vsel %vm2800_vm12, %v2220_v20, %v3141_v60  ;;  %vm2661_vm14 = vcmp.gt.f32.partialorder %v1873_v57, 0.0  ;;  %v3002_v18 = vmul.f32 %v8739_v55, %v1873_v57  ;;  %7710 = vmatmul.msk.bf16.gmra.mxu0 %vm1253_vm2, %v8063_v1  ;;  %7780 = vmatmul.msk.bf16.gmra.mxu2 %vm1253_vm2, %v8133_v13  ;;  %v2117_v60 = vpop.f32.mrf.mxu1  ;;  %v9279_v1 = vadd.f32 %v8730_v41, %v12695_v44 }
 0x1be   :  { %12692 = vst [vmem:[#allocation63_spill] sm:$0xff] %v9260_v8  ;;  %v9275_v20 = vmax.f32 %v4415_v24, %v9260_v8  ;;  %v9282_v13 = vsel %vm2749_vm13, %v2093_v58, %v3090_v21  ;;  %v3436_v44 = vsel %vm2757_vm15, %v2113_v53, %v3098_v22  ;;  %v3078_v8 = vmul.f32 %v8739_v55, %v9247_v51 }
 0x1bf   :  { %12696 = vst [vmem:[#allocation4_spill] sm:$0xff] %v9282_v13  ;;  %v9284_v15 = vsel %vm2661_vm14, %v1873_v57, %v3002_v18  ;;  %v3126_v58 = vmul.f32 %v8739_v55, %v2183_v28  ;;  %v4416_v57 = vmax.f32 %v9282_v13, %v9180_v31  ;;  %v2118_v18 = vadd.f32 %v8730_v41, %v2117_v60  ;;  %v12702_v13 = vld [vmem:[#allocation27_spill] sm:$0xff] }
 0x1c0   :  { %12697 = vst [vmem:[#allocation33_spill] sm:$0xff] %v9284_v15  ;;  %v9291_v63 = vmax.f32 %v12698_v16, %v9275_v20  ;;  %v2222_v47 = vpop.f32.mrf.mxu2  ;;  %v4398_v16 = vmax.f32 %v9107_v6, %v3436_v44  ;;  %v9306_v24 = vsel %vm2783_vm3, %v2178_v17, %v3124_v10  ;;  %v2193_v15 = vadd.f32 %v8730_v41, %v12702_v13 }
 0x1c1   :  { %v2223_v21 = vadd.f32 %v8730_v41, %v2222_v47  ;;  %12699 = vst [vmem:[#allocation5_spill] sm:$0xff] %v9306_v24  ;;  %vm2759_vm7 = vcmp.gt.f32.partialorder %v2118_v18, 0.0  ;;  %v3100_v47 = vmul.f32 %v8739_v55, %v2118_v18  ;;  %v9309_v52 = vsel %vm2785_vm4, %v2183_v28, %v3126_v58 }
 0x1c2   :  { %v1874_v9 = vpop.f32.mrf.mxu0  ;;  %12700 = vst [vmem:[#allocation64_spill] sm:$0xff] %v9309_v52  ;;  %v9323_v6 = vsel %vm2750_vm6, %v2095_v0, %v3091_v45  ;;  %v9328_v58 = vmax.f32 %v4398_v16, %v9306_v24  ;;  %v9333_v13 = vmul.f32 %v8739_v55, %v9270_v2  ;;  %v12708_v16 = vld [vmem:[#allocation22_spill] sm:$0xff]  ;;  %vm2778_vm9 = vcmp.gt.f32.partialorder %v9279_v1, 0.0 }
 0x1c3   :  { %vm2801_vm5 = vcmp.gt.f32.partialorder %v2223_v21, 0.0  ;;  %v3142_v53 = vmul.f32 %v8739_v55, %v2223_v21  ;;  %v1875_v22 = vadd.f32 %v8730_v41, %v1874_v9  ;;  %v2098_v9 = vadd.f32 %v8730_v41, %v8863_v30  ;;  %12704 = vst [vmem:[#allocation66_spill] sm:$0xff] %v9323_v6  ;;  %v12707_v30 = vld [vmem:[#allocation9_spill] sm:$0xff] }
 0x1c4   :  { %v3438_v10 = vsel %vm2759_vm7, %v2118_v18, %v3100_v47  ;;  %12706 = vst [vmem:[#allocation68_spill] sm:$0xff] %v9328_v58  ;;  %v2188_v47 = vadd.f32 %v8730_v41, %v12708_v16  ;;  %v9363_v18 = vsel %vm2737_vm0, %v9247_v51, %v3078_v8  ;;  %v3130_v16 = vmul.f32 %v8739_v55, %v2193_v15  ;;  %v12710_v8 = vld [vmem:[#allocation6_spill] sm:$0xff] }
 0x1c5   :  { %v9311_v31 = vsel %vm2801_vm5, %v2223_v21, %v3142_v53  ;;  %vm2662_vm8 = vcmp.gt.f32.partialorder %v1875_v22, 0.0  ;;  %v3003_v60 = vmul.f32 %v8739_v55, %v1875_v22  ;;  %v9321_v44 = vpop.f32.mrf.mxu1  ;;  %v4400_v21 = vmax.f32 %v9164_v12, %v3438_v10  ;;  %v8161_v53 = vld [vmem:[%s12480_s0 + $0x3e8] sm:$0xff]  ;;  %v8064_v10 = vld [vmem:[%s12480_s0 + $0xe0] sm:$0xff]  ;;  %12709 = vst [vmem:[#allocation9_spill] sm:$0xff] %v9363_v18 }
 0x1c6   :  { %12701 = vst [vmem:[#allocation65_spill] sm:$0xff] %v9311_v31  ;;  %v9319_v17 = vmax.f32 %v4416_v57, %v9311_v31  ;;  %v2065_v57 = vadd.f32 %v8730_v41, %v12707_v30  ;;  %v8134_v30 = vld [vmem:[%s12480_s0 + $0x310] sm:$0xff]  ;;  %vm2789_vm11 = vcmp.gt.f32.partialorder %v2193_v15, 0.0  ;;  %vm2751_vm12 = vcmp.gt.f32.partialorder %v2098_v9, 0.0 }
 0x1c7   :  { %12703 = vst [vmem:[#allocation27_spill] sm:$0xff] %v9321_v44  ;;  %v9325_v28 = vsel %vm2662_vm8, %v1875_v22, %v3003_v60  ;;  %v9346_v22 = vmul.f32 %v8739_v55, %v9279_v1  ;;  %v9358_v0 = vmax.f32 %v4400_v21, %v9309_v52  ;;  %v3092_v44 = vmul.f32 %v8739_v55, %v2098_v9 }
 0x1c8   :  { %12705 = vst [vmem:[#allocation67_spill] sm:$0xff] %v9325_v28  ;;  %v2224_v45 = vpop.f32.mrf.mxu2  ;;  %7808 = vmatmul.msk.bf16.gmra.mxu3 %vm1253_vm2, %v8161_v53  ;;  %v9377_v52 = vadd.f32 %v8730_v41, %v12710_v8  ;;  %v3128_v53 = vmul.f32 %v8739_v55, %v2188_v47  ;;  %vm2738_vm14 = vcmp.gt.f32.partialorder %v2065_v57, 0.0  ;;  %vm2787_vm15 = vcmp.gt.f32.partialorder %v2188_v47, 0.0 }
 0x1c9   :  { %v2225_v60 = vadd.f32 %v8730_v41, %v2224_v45  ;;  %v4417_v45 = vmax.f32 %v9323_v6, %v9215_v25  ;;  %v3079_v25 = vmul.f32 %v8739_v55, %v2065_v57  ;;  %vm2736_vm0 = vcmp.gt.f32.partialorder %v9270_v2, 0.0 }
 0x1ca   :  { %v1877_v31 = vpop.f32.mrf.mxu0 }
 0x1cb   :  { %vm2802_vm10 = vcmp.gt.f32.partialorder %v2225_v60, 0.0  ;;  %v3143_v21 = vmul.f32 %v8739_v55, %v2225_v60  ;;  %v1878_v12 = vadd.f32 %v8730_v41, %v1877_v31  ;;  %v4404_v31 = vmax.f32 %v9363_v18, %v8982_v54 }
 0x1cd   :  { %v9381_v6 = vsel %vm2802_vm10, %v2225_v60, %v3143_v21  ;;  %vm2663_vm13 = vcmp.gt.f32.partialorder %v1878_v12, 0.0  ;;  %v3004_v24 = vmul.f32 %v8739_v55, %v1878_v12  ;;  %7711 = vmatmul.msk.bf16.gmra.mxu0 %vm1253_vm2, %v8064_v10  ;;  %7781 = vmatmul.msk.bf16.gmra.mxu2 %vm1253_vm2, %v8134_v30  ;;  %v2122_v51 = vpop.f32.mrf.mxu1  ;;  %v9392_v60 = vsel %vm2789_vm11, %v2193_v15, %v3130_v16  ;;  %v12714_v30 = vld [vmem:[#allocation30_spill] sm:$0xff] }
 0x1ce   :  { %12711 = vst [vmem:[#allocation22_spill] sm:$0xff] %v9381_v6  ;;  %v9389_v8 = vmax.f32 %v4417_v45, %v9381_v6  ;;  %v9394_v21 = vsel %vm2751_vm12, %v2098_v9, %v3092_v44  ;;  %v2100_v10 = vadd.f32 %v8730_v41, %v8905_v38  ;;  %v2195_v54 = vadd.f32 %v8730_v41, %v12714_v30  ;;  %v12717_v44 = vld [vmem:[#allocation24_spill] sm:$0xff] }
 0x1cf   :  { %12712 = vst [vmem:[#allocation6_spill] sm:$0xff] %v9392_v60  ;;  %v9398_v28 = vsel %vm2663_vm13, %v1878_v12, %v3004_v24  ;;  %v2123_v15 = vadd.f32 %v8730_v41, %v2122_v51  ;;  %v9407_v16 = vsel %vm2738_vm14, %v2065_v57, %v3079_v25  ;;  %v9409_v9 = vsel %vm2787_vm15, %v2188_v47, %v3128_v53 }
 0x1d0   :  { %12713 = vst [vmem:[#allocation69_spill] sm:$0xff] %v9394_v21  ;;  %v2227_v6 = vpop.f32.mrf.mxu2  ;;  %v2190_v38 = vadd.f32 %v8730_v41, %v12717_v44  ;;  %v9415_v24 = vmax.f32 %v4404_v31, %v9392_v60  ;;  %v4418_v30 = vmax.f32 %v9394_v21, %v9233_v39  ;;  %v3093_v57 = vmul.f32 %v8739_v55, %v2100_v10 }
 0x1d1   :  { %12715 = vst [vmem:[#allocation30_spill] sm:$0xff] %v9407_v16  ;;  %v2228_v12 = vadd.f32 %v8730_v41, %v2227_v6  ;;  %vm2761_vm3 = vcmp.gt.f32.partialorder %v2123_v15, 0.0  ;;  %v3102_v45 = vmul.f32 %v8739_v55, %v2123_v15  ;;  %vm2790_vm5 = vcmp.gt.f32.partialorder %v2195_v54, 0.0 }
 0x1d2   :  { %12716 = vst [vmem:[#allocation70_spill] sm:$0xff] %v9409_v9  ;;  %v1879_v18 = vpop.f32.mrf.mxu0  ;;  %v3131_v6 = vmul.f32 %v8739_v55, %v2195_v54  ;;  %vm2752_vm6 = vcmp.gt.f32.partialorder %v2100_v10, 0.0  ;;  %v3457_v44 = vsel %vm2778_vm9, %v9279_v1, %v9346_v22  ;;  %vm2788_vm8 = vcmp.gt.f32.partialorder %v2190_v38, 0.0 }
 0x1d3   :  { %vm2803_vm4 = vcmp.gt.f32.partialorder %v2228_v12, 0.0  ;;  %v3144_v47 = vmul.f32 %v8739_v55, %v2228_v12  ;;  %v1880_v51 = vadd.f32 %v8730_v41, %v1879_v18  ;;  %v3440_v25 = vsel %vm2761_vm3, %v2123_v15, %v3102_v45 }
 0x1d4   :  { %v4402_v31 = vmax.f32 %v9235_v19, %v3440_v25  ;;  %v4405_v41 = vmax.f32 %v9407_v16, %v9063_v37  ;;  %v9435_v45 = vsel %vm2752_vm6, %v2100_v10, %v3093_v57  ;;  %v9449_v37 = vld [vmem:[%s12479_s3] ss:$0 sm:$0xff]  ;;  %v9453_v10 = vsel %vm2790_vm5, %v2195_v54, %v3131_v6  ;;  %v8065_v54 = vld [vmem:[%s12480_s0 + $0xe8] sm:$0xff] }
 0x1d5   :  { %v9424_v53 = vsel %vm2803_vm4, %v2228_v12, %v3144_v47  ;;  %vm2664_vm7 = vcmp.gt.f32.partialorder %v1880_v51, 0.0  ;;  %v3005_v39 = vmul.f32 %v8739_v55, %v1880_v51  ;;  %v2124_v21 = vpop.f32.mrf.mxu1  ;;  %12719 = vst [vmem:[#allocation71_spill] sm:$0xff] %v9435_v45  ;;  %v9443_v12 = vld [vmem:[%s12478_s2] ss:$0 sm:$0xff]  ;;  %v3129_v22 = vmul.f32 %v9449_v37, %v2190_v38 }
 0x1d6   :  { %12718 = vst [vmem:[#allocation24_spill] sm:$0xff] %v9424_v53  ;;  %v4522_v18 = vmax.f32 %v4418_v30, %v9424_v53  ;;  %v4506_v55 = vmax.f32 %v4402_v31, %v9409_v9  ;;  %v2125_v1 = vadd.f32 %v9443_v12, %v2124_v21  ;;  %v12721_v30 = vmax.f32 %v9201_v56, %v9319_v17  ;;  %v8162_v21 = vld [vmem:[%s12480_s0 + $0x3f0] sm:$0xff]  ;;  %v8135_v56 = vld [vmem:[%s12480_s0 + $0x318] sm:$0xff] }
 0x1d7   :  { %v9437_v15 = vsel %vm2664_vm7, %v1880_v51, %v3005_v39  ;;  %12720 = vst [vmem:[#allocation72_spill] sm:$0xff] %v9453_v10  ;;  %v12722_v17 = vmax.f32 %v9328_v58, %v9358_v0  ;;  %v9482_v31 = vsel %vm2736_vm0, %v9270_v2, %v9333_v13  ;;  %v2980_v0 = vmul.f32 %v9449_v37, %v9377_v52 }
 0x1d8   :  { %v9458_v57 = vmax.f32 %v12721_v30, %v4522_v18  ;;  %v2229_v51 = vpop.f32.mrf.mxu2  ;;  %v5292_v39 = vmax.f32 %v4506_v55, %v9415_v24  ;;  %vm2762_vm9 = vcmp.gt.f32.partialorder %v2125_v1, 0.0  ;;  %12724 = vst [vmem:[#allocation74_spill] sm:$0xff] %v9482_v31  ;;  %v4419_v18 = vmax.f32 %v9435_v45, %v3457_v44  ;;  %7809 = vmatmul.msk.bf16.gmra.mxu3 %vm1253_vm2, %v8162_v21 }
 0x1d9   :  { %v2230_v25 = vadd.f32 %v9443_v12, %v2229_v51  ;;  %v9475_v6 = vmax.f32 %v12722_v17, %v4506_v55  ;;  %v3103_v51 = vmul.f32 %v9449_v37, %v2125_v1  ;;  %vm2639_vm11 = vcmp.gt.f32.partialorder %v9377_v52, 0.0 }
 0x1da   :  { %v1882_v30 = vpop.f32.mrf.mxu0  ;;  %v9493_v2 = vsel %vm2788_vm8, %v2190_v38, %v3129_v22  ;;  %v4509_v13 = vmax.f32 %v4405_v41, %v9453_v10  ;;  %v12727_v38 = vld [vmem:[#allocation8_spill] sm:$0xff]  ;;  %v12742_v10 = vld [vmem:[#allocation19_spill] sm:$0xff]  ;;  %v5520_v9 = vpack.c.bf16 %v9221_v34, %v9221_v34 }
 0x1db   :  { %12723 = vst [vmem:[#allocation73_spill] sm:$0xff] %v9475_v6  ;;  %vm2804_vm10 = vcmp.gt.f32.partialorder %v2230_v25, 0.0  ;;  %v3145_v24 = vmul.f32 %v9449_v37, %v2230_v25  ;;  %v1883_v55 = vadd.f32 %v9443_v12, %v1882_v30  ;;  %v3441_v44 = vsel %vm2762_vm9, %v2125_v1, %v3103_v51 }
 0x1dc   :  { %12725 = vst [vmem:[#allocation75_spill] sm:$0xff] %v9493_v2  ;;  %v4403_v47 = vmax.f32 %v9482_v31, %v3441_v44  ;;  %v9504_v6 = vsel %vm2639_vm11, %v9377_v52, %v2980_v0  ;;  %v1820_v41 = vadd.f32 %v9443_v12, %v12727_v38  ;;  %v8068_v31 = vld [vmem:[%s12480_s0 + $0x100] sm:$0xff]  ;;  %v1835_v60 = vadd.f32 %v9443_v12, %v12742_v10 }
 0x1dd   :  { %v9496_v17 = vsel %vm2804_vm10, %v2230_v25, %v3145_v24  ;;  %vm2665_vm12 = vcmp.gt.f32.partialorder %v1883_v55, 0.0  ;;  %v3006_v21 = vmul.f32 %v9449_v37, %v1883_v55  ;;  %7712 = vmatmul.msk.bf16.gmra.mxu0 %vm1253_vm2, %v8065_v54  ;;  %7782 = vmatmul.msk.bf16.gmra.mxu2 %vm1253_vm2, %v8135_v56  ;;  %v12729_v25 = vmax.f32 %v9275_v20, %v9389_v8 }
 0x1de   :  { %12726 = vst [vmem:[#allocation76_spill] sm:$0xff] %v9496_v17  ;;  %v4523_v30 = vmax.f32 %v4419_v18, %v9496_v17  ;;  %v9511_v22 = vmax.f32 %v4403_v47, %v9493_v2  ;;  %v2981_v0 = vmul.f32 %v9449_v37, %v1820_v41  ;;  %v5340_v47 = vmax.f32 %v5292_v39, %v8900_v36 }
 0x1df   :  { %v9508_v1 = vsel %vm2665_vm12, %v1883_v55, %v3006_v21  ;;  %vm2640_vm13 = vcmp.gt.f32.partialorder %v1820_v41, 0.0  ;;  %v5436_v56 = vpack.c.bf16 %v9014_v11, %v9014_v11  ;;  %vm2646_vm11 = vcmp.gt.f32.partialorder %v1835_v60, 0.0 }
 0x1e0   :  { %12728 = vst [vmem:[#allocation8_spill] sm:$0xff] %v9511_v22  ;;  %v9516_v54 = vmax.f32 %v12729_v25, %v4523_v30  ;;  %v9520_v18 = vpop.f32.mrf.mxu2  ;;  %v5293_v52 = vmax.f32 %v9511_v22, %v4509_v13  ;;  %v5352_v8 = vpack.c.bf16 %v5340_v47, %v5340_v47  ;;  %v9528_v21 = vsel %vm2640_vm13, %v1820_v41, %v2981_v0  ;;  %v12730_v30 = vld [vmem:[#allocation11_spill] sm:$0xff]  ;;  %v8066_v41 = vld [vmem:[%s12480_s0 + $0xf0] sm:$0xff] }
 0x1e1   :  { %v1823_v13 = vadd.f32 %v9443_v12, %v12730_v30  ;;  %v12733_v30 = vld [vmem:[#allocation13_spill] sm:$0xff]  ;;  %v9671_v10 = vunpack.c.l.b16 %v5520_v9  ;;  %v8166_v9 = vld [vmem:[%s12480_s0 + $0x410] sm:$0xff] }
 0x1e2   :  { %v1884_v51 = vpop.f32.mrf.mxu0  ;;  %v5341_v55 = vmax.f32 %v5293_v52, %v8955_v62  ;;  %v9534_v25 = vunpack.c.l.b16 %v5352_v8  ;;  %v8163_v62 = vld [vmem:[%s12480_s0 + $0x3f8] sm:$0xff] }
 0x1e3   :  { %v1885_v24 = vadd.f32 %v9443_v12, %v1884_v51  ;;  %v8136_v51 = vld [vmem:[%s12480_s0 + $0x320] sm:$0xff]  ;;  %v2982_v47 = vmul.f32 %v9449_v37, %v1823_v13  ;;  %vm2641_vm15 = vcmp.gt.f32.partialorder %v1823_v13, 0.0  ;;  %12744 = vst [vmem:[#allocation79_spill] sm:$0xff] %v9671_v10 }
 0x1e4   :  { %v5353_v44 = vpack.c.bf16 %v5341_v55, %v5341_v55  ;;  %12731 = vst [vmem:[#allocation11_spill] sm:$0xff] %v9534_v25  ;;  %v12735_v25 = vld [vmem:[#allocation15_spill] sm:$0xff] }
 0x1e5   :  { %vm2666_vm14 = vcmp.gt.f32.partialorder %v1885_v24, 0.0  ;;  %v3007_v20 = vmul.f32 %v9449_v37, %v1885_v24  ;;  %v1828_v11 = vadd.f32 %v9443_v12, %v12735_v25  ;;  %v8137_v25 = vld [vmem:[%s12480_s0 + $0x328] sm:$0xff] }
 0x1e6   :  { %v9543_v52 = vunpack.c.l.b16 %v5353_v44  ;;  %v9561_v44 = vsel %vm2641_vm15, %v1823_v13, %v2982_v47  ;;  %v5437_v13 = vpack.c.bf16 %v9071_v61, %v9071_v61 }
 0x1e7   :  { %v9532_v38 = vsel %vm2666_vm14, %v1885_v24, %v3007_v20  ;;  %v9559_v8 = vpop.f32.mrf.mxu3  ;;  %vm2643_vm5 = vcmp.gt.f32.partialorder %v1828_v11, 0.0 }
 0x1e8   :  { %v9538_v39 = vpop.f32.mrf.mxu2  ;;  %12732 = vst [vmem:[#allocation77_spill] sm:$0xff] %v9543_v52  ;;  %7810 = vmatmul.msk.bf16.gmra.mxu3 %vm1253_vm2, %v8163_v62  ;;  %v1825_v62 = vadd.f32 %v9443_v12, %v12733_v30  ;;  %v9577_v30 = vunpack.c.l.b16 %v5436_v56  ;;  %v9588_v22 = vunpack.c.l.b16 %v5437_v13  ;;  %v8164_v56 = vld [vmem:[%s12480_s0 + $0x400] sm:$0xff] }
 0x1ea   :  { %v1887_v0 = vpop.f32.mrf.mxu0  ;;  %vm2642_vm3 = vcmp.gt.f32.partialorder %v1825_v62, 0.0  ;;  %12734 = vst [vmem:[#allocation13_spill] sm:$0xff] %v9577_v30 }
 0x1eb   :  { %v1888_v55 = vadd.f32 %v9443_v12, %v1887_v0  ;;  %12736 = vst [vmem:[#allocation15_spill] sm:$0xff] %v9588_v22 }
 0x1ed   :  { %vm2667_vm0 = vcmp.gt.f32.partialorder %v1888_v55, 0.0  ;;  %v3008_v20 = vmul.f32 %v9449_v37, %v1888_v55  ;;  %7713 = vmatmul.msk.bf16.gmra.mxu0 %vm1253_vm2, %v8066_v41  ;;  %7783 = vmatmul.msk.bf16.gmra.mxu2 %vm1253_vm2, %v8136_v51  ;;  %v2983_v51 = vmul.f32 %v9449_v37, %v1825_v62 }
 0x1ef   :  { %v9565_v24 = vsel %vm2667_vm0, %v1888_v55, %v3008_v20  ;;  %v9580_v20 = vpop.f32.mrf.mxu3  ;;  %v9582_v0 = vsel %vm2642_vm3, %v1825_v62, %v2983_v51  ;;  %v8067_v62 = vld [vmem:[%s12480_s0 + $0xf8] sm:$0xff]  ;;  %v12737_v51 = vld [vmem:[#allocation16_spill] sm:$0xff] }
 0x1f0   :  { %v9569_v36 = vpop.f32.mrf.mxu2  ;;  %v1830_v30 = vadd.f32 %v9443_v12, %v12737_v51 }
 0x1f2   :  { %v1889_v41 = vpop.f32.mrf.mxu0  ;;  %v2985_v53 = vmul.f32 %v9449_v37, %v1830_v30  ;;  %vm2644_vm7 = vcmp.gt.f32.partialorder %v1830_v30, 0.0 }
 0x1f3   :  { %v1890_v47 = vadd.f32 %v9443_v12, %v1889_v41 }
 0x1f5   :  { %vm2668_vm4 = vcmp.gt.f32.partialorder %v1890_v47, 0.0  ;;  %v3009_v55 = vmul.f32 %v9449_v37, %v1890_v47 }
 0x1f7   :  { %v9586_v52 = vsel %vm2668_vm4, %v1890_v47, %v3009_v55  ;;  %v2984_v47 = vmul.f32 %v9449_v37, %v1828_v11  ;;  %v9611_v58 = vpop.f32.mrf.mxu3 }
 0x1f8   :  { %v9592_v41 = vpop.f32.mrf.mxu2  ;;  %7811 = vmatmul.msk.bf16.gmra.mxu3 %vm1253_vm2, %v8164_v56 }
 0x1f9   :  { %v9613_v45 = vsel %vm2643_vm5, %v1828_v11, %v2984_v47  ;;  %v9628_v47 = vsel %vm2644_vm7, %v1830_v30, %v2985_v53  ;;  %v8138_v53 = vld [vmem:[%s12480_s0 + $0x330] sm:$0xff] }
 0x1fa   :  { %v1892_v13 = vpop.f32.mrf.mxu0 }
 0x1fb   :  { %v1893_v55 = vadd.f32 %v9443_v12, %v1892_v13 }
 0x1fd   :  { %vm2669_vm6 = vcmp.gt.f32.partialorder %v1893_v55, 0.0  ;;  %v3010_v61 = vmul.f32 %v9449_v37, %v1893_v55  ;;  %7714 = vmatmul.msk.bf16.gmra.mxu0 %vm1253_vm2, %v8067_v62  ;;  %7784 = vmatmul.msk.bf16.gmra.mxu2 %vm1253_vm2, %v8137_v25 }
 0x1ff   :  { %v9617_v56 = vsel %vm2669_vm6, %v1893_v55, %v3010_v61  ;;  %v9626_v25 = vpop.f32.mrf.mxu3  ;;  %v12739_v61 = vld [vmem:[#allocation18_spill] sm:$0xff] }
 0x200   :  { %v9621_v22 = vpop.f32.mrf.mxu2  ;;  %12738 = vst [vmem:[#allocation16_spill] sm:$0xff] %v9626_v25  ;;  %v1833_v51 = vadd.f32 %v9443_v12, %v12739_v61 }
 0x202   :  { %v1894_v17 = vpop.f32.mrf.mxu0  ;;  %vm2645_vm9 = vcmp.gt.f32.partialorder %v1833_v51, 0.0 }
 0x203   :  { %v1895_v62 = vadd.f32 %v9443_v12, %v1894_v17  ;;  %v8165_v17 = vld [vmem:[%s12480_s0 + $0x408] sm:$0xff] }
 0x205   :  { %vm2670_vm8 = vcmp.gt.f32.partialorder %v1895_v62, 0.0  ;;  %v3011_v11 = vmul.f32 %v9449_v37, %v1895_v62 }
 0x207   :  { %v9632_v55 = vsel %vm2670_vm8, %v1895_v62, %v3011_v11  ;;  %v2986_v62 = vmul.f32 %v9449_v37, %v1833_v51 }
 0x208   :  { %v9636_v16 = vpop.f32.mrf.mxu2  ;;  %7812 = vmatmul.msk.bf16.gmra.mxu3 %vm1253_vm2, %v8165_v17 }
 0x209   :  { %v9655_v19 = vsel %vm2645_vm9, %v1833_v51, %v2986_v62  ;;  %v5521_v51 = vpack.c.bf16 %v9291_v63, %v9291_v63  ;;  %vm5811_vm9 = vcmask 228352  }
 0x20a   :  { %v1897_v30 = vpop.f32.mrf.mxu0  ;;  %v9653_v13 = vpop.f32.mrf.mxu3  ;;  %12741 = vst [vmem:[#allocation78_spill] sm:$0xff] %v9655_v19 }
 0x20b   :  { %v1898_v11 = vadd.f32 %v9443_v12, %v1897_v30  ;;  %12740 = vst [vmem:[#allocation18_spill] sm:$0xff] %v9653_v13  ;;  %v12747_v13 = vld [vmem:[#allocation21_spill] sm:$0xff]  ;;  %v9682_v19 = vunpack.c.l.b16 %v5521_v51 }
 0x20c   :  { %v1838_v34 = vadd.f32 %v9443_v12, %v12747_v13  ;;  %v8139_v13 = vld [vmem:[%s12480_s0 + $0x338] sm:$0xff] }
 0x20d   :  { %vm2671_vm10 = vcmp.gt.f32.partialorder %v1898_v11, 0.0  ;;  %v3012_v61 = vmul.f32 %v9449_v37, %v1898_v11  ;;  %7715 = vmatmul.msk.bf16.gmra.mxu0 %vm1253_vm2, %v8068_v31  ;;  %7785 = vmatmul.msk.bf16.gmra.mxu2 %vm1253_vm2, %v8138_v53  ;;  %v2987_v53 = vmul.f32 %v9449_v37, %v1835_v60  ;;  %12749 = vst [vmem:[#allocation82_spill] sm:$0xff] %v9682_v19 }
 0x20e   :  { %vm2647_vm13 = vcmp.gt.f32.partialorder %v1838_v34, 0.0 }
 0x20f   :  { %v9659_v17 = vsel %vm2671_vm10, %v1898_v11, %v3012_v61  ;;  %v9676_v30 = vsel %vm2646_vm11, %v1835_v60, %v2987_v53  ;;  %v8069_v60 = vld [vmem:[%s12480_s0 + $0x108] sm:$0xff] }
 0x210   :  { %12743 = vst [vmem:[#allocation19_spill] sm:$0xff] %v9659_v17  ;;  %v9663_v2 = vpop.f32.mrf.mxu2  ;;  %v12753_v53 = vld [vmem:[#allocation23_spill] sm:$0xff] }
 0x211   :  { %12746 = vst [vmem:[#allocation81_spill] sm:$0xff] %v9676_v30  ;;  %v1840_v10 = vadd.f32 %v9443_v12, %v12753_v53  ;;  %v5604_v53 = vpack.c.bf16 %v9458_v57, %v9458_v57 }
 0x212   :  { %v1899_v31 = vpop.f32.mrf.mxu0  ;;  %v9674_v61 = vpop.f32.mrf.mxu3 }
 0x213   :  { %v1900_v62 = vadd.f32 %v9443_v12, %v1899_v31  ;;  %12745 = vst [vmem:[#allocation80_spill] sm:$0xff] %v9674_v61  ;;  %vm2648_vm15 = vcmp.gt.f32.partialorder %v1840_v10, 0.0 }
 0x215   :  { %vm2672_vm12 = vcmp.gt.f32.partialorder %v1900_v62, 0.0  ;;  %v3013_v11 = vmul.f32 %v9449_v37, %v1900_v62 }
 0x217   :  { %v9680_v17 = vsel %vm2672_vm12, %v1900_v62, %v3013_v11  ;;  %v2988_v62 = vmul.f32 %v9449_v37, %v1838_v34 }
 0x218   :  { %12748 = vst [vmem:[#allocation21_spill] sm:$0xff] %v9680_v17  ;;  %v9686_v31 = vpop.f32.mrf.mxu2  ;;  %7813 = vmatmul.msk.bf16.gmra.mxu3 %vm1253_vm2, %v8166_v9 }
 0x219   :  { %12750 = vst [vmem:[#allocation83_spill] sm:$0xff] %v9686_v31  ;;  %v9707_v17 = vsel %vm2647_vm13, %v1838_v34, %v2988_v62  ;;  %v2989_v31 = vmul.f32 %v9449_v37, %v1840_v10 }
 0x21a   :  { %v1902_v51 = vpop.f32.mrf.mxu0  ;;  %12752 = vst [vmem:[#allocation85_spill] sm:$0xff] %v9707_v17 }
 0x21b   :  { %v1903_v11 = vadd.f32 %v9443_v12, %v1902_v51  ;;  %v9705_v61 = vpop.f32.mrf.mxu3  ;;  %v9722_v62 = vsel %vm2648_vm15, %v1840_v10, %v2989_v31  ;;  %v8167_v51 = vld [vmem:[%s12480_s0 + $0x418] sm:$0xff]  ;;  %v8140_v10 = vld [vmem:[%s12480_s0 + $0x340] sm:$0xff] }
 0x21c   :  { %12751 = vst [vmem:[#allocation84_spill] sm:$0xff] %v9705_v61 }
 0x21d   :  { %vm2673_vm14 = vcmp.gt.f32.partialorder %v1903_v11, 0.0  ;;  %v3014_v63 = vmul.f32 %v9449_v37, %v1903_v11  ;;  %7716 = vmatmul.msk.bf16.gmra.mxu0 %vm1253_vm2, %v8069_v60  ;;  %7786 = vmatmul.msk.bf16.gmra.mxu2 %vm1253_vm2, %v8139_v13  ;;  %12757 = vst [vmem:[#allocation88_spill] sm:$0xff] %v9722_v62  ;;  %v9750_v62 = vunpack.c.l.b16 %v5604_v53 }
 0x21f   :  { %v9711_v9 = vsel %vm2673_vm14, %v1903_v11, %v3014_v63  ;;  %12762 = vst [vmem:[#allocation93_spill] sm:$0xff] %v9750_v62  ;;  %v12773_v62 = vld [vmem:[#allocation32_spill] sm:$0xff] }
 0x220   :  { %12754 = vst [vmem:[#allocation23_spill] sm:$0xff] %v9711_v9  ;;  %v9715_v19 = vpop.f32.mrf.mxu2 }
 0x221   :  { %12755 = vst [vmem:[#allocation86_spill] sm:$0xff] %v9715_v19 }
 0x222   :  { %v1904_v30 = vpop.f32.mrf.mxu0 }
 0x223   :  { %v1905_v60 = vadd.f32 %v9443_v12, %v1904_v30  ;;  %v9720_v13 = vpop.f32.mrf.mxu3  ;;  %v8070_v30 = vld [vmem:[%s12480_s0 + $0x110] sm:$0xff] }
 0x224   :  { %12756 = vst [vmem:[#allocation87_spill] sm:$0xff] %v9720_v13 }
 0x225   :  { %vm2674_vm0 = vcmp.gt.f32.partialorder %v1905_v60, 0.0  ;;  %v3015_v34 = vmul.f32 %v9449_v37, %v1905_v60 }
 0x227   :  { %v9724_v63 = vsel %vm2674_vm0, %v1905_v60, %v3015_v34 }
 0x228   :  { %12758 = vst [vmem:[#allocation89_spill] sm:$0xff] %v9724_v63  ;;  %v9728_v11 = vpop.f32.mrf.mxu2  ;;  %7814 = vmatmul.msk.bf16.gmra.mxu3 %vm1253_vm2, %v8167_v51  ;;  %v5605_v63 = vpack.c.bf16 %v9516_v54, %v9516_v54  ;;  %v8168_v54 = vld [vmem:[%s12480_s0 + $0x420] sm:$0xff] }
 0x229   :  { %12759 = vst [vmem:[#allocation90_spill] sm:$0xff] %v9728_v11 }
 0x22a   :  { %v1907_v31 = vpop.f32.mrf.mxu0 }
 0x22b   :  { %v9742_v60 = vpop.f32.mrf.mxu3  ;;  %v1908_v61 = vadd.f32 %v9443_v12, %v1907_v31 }
 0x22c   :  { %12760 = vst [vmem:[#allocation91_spill] sm:$0xff] %v9742_v60  ;;  %v9761_v60 = vunpack.c.l.b16 %v5605_v63 }
 0x22d   :  { %7717 = vmatmul.msk.bf16.gmra.mxu0 %vm1253_vm2, %v8070_v30  ;;  %7787 = vmatmul.msk.bf16.gmra.mxu2 %vm1253_vm2, %v8140_v10  ;;  %v7858_v30 = vld [vmem:[%s12481_s4 + $0x8] sm:$0xf]  ;;  %v8208_v10 = vld [vmem:[%s12481_s4 + $0x8] sm:$0x30]  ;;  %v3016_v31 = vmul.f32 %v9449_v37, %v1908_v61  ;;  %vm2675_vm3 = vcmp.gt.f32.partialorder %v1908_v61, 0.0 }
 0x22e   :  { %12764 = vst [vmem:[#allocation95_spill] sm:$0xff] %v9761_v60  ;;  %v7859_v53 = vor.u32 %v8208_v10, %v7858_v30 }
 0x22f   :  { %v9780_v10 = vsel %vm2675_vm3, %v1908_v61, %v3016_v31  ;;  %v12769_v61 = vld [vmem:[#allocation25_spill] sm:$0xff]  ;;  %v12772_v31 = vld [vmem:[#allocation31_spill] sm:$0xff] }
 0x230   :  { %v9744_v34 = vpop.f32.mrf.mxu2  ;;  %v5921_v9 = vsel %vm1762_vm1, %v7859_v53, 0  ;;  %12766 = vst [vmem:[#allocation97_spill] sm:$0xff] %v9780_v10 }
 0x231   :  { %12761 = vst [vmem:[#allocation92_spill] sm:$0xff] %v9744_v34  ;;  %v8141_v34 = vld [vmem:[%s12480_s0 + $0x348] sm:$0xff]  ;;  %5929 = vmatpush.bf16.msrb.mxu1 %v5921_v9  ;;  %v12770_v9 = vld [vmem:[#allocation26_spill] sm:$0xff] }
 0x232   :  { %v1909_v13 = vpop.f32.mrf.mxu0 }
 0x233   :  { %v9753_v51 = vpop.f32.mrf.mxu3  ;;  %v1910_v17 = vadd.f32 %v9443_v12, %v1909_v13  ;;  %v12771_v13 = vmax.f32 %v12769_v61, %v12770_v9 }
 0x234   :  { %12763 = vst [vmem:[#allocation94_spill] sm:$0xff] %v9753_v51  ;;  %v8071_v51 = vld [vmem:[%s12480_s0 + $0x118] sm:$0xff] }
 0x235   :  { %vm2676_vm1 = vcmp.gt.f32.partialorder %v1910_v17, 0.0 }
 0x238   :  { %v9763_v57 = vpop.f32.mrf.mxu2  ;;  %7815 = vmatmul.msk.bf16.gmra.mxu3 %vm1253_vm2, %v8168_v54  ;;  %v8207_v54 = vld [vmem:[%s12481_s4] sm:$0xff] }
 0x239   :  { %12765 = vst [vmem:[#allocation96_spill] sm:$0xff] %v9763_v57  ;;  %5930 = vmatpush.bf16.msrb.mxu1 %v8207_v54 }
 0x23a   :  { %v1912_v57 = vpop.f32.mrf.mxu0 }
 0x23b   :  { %v1913_v30 = vadd.f32 %v9443_v12, %v1912_v57  ;;  %v9786_v63 = vpop.f32.mrf.mxu3  ;;  %v4134_v57 = vmax.f32 %v12771_v13, %v9780_v10  ;;  %v12778_v13 = vld [vmem:[#allocation29_spill] sm:$0xff] }
 0x23c   :  { %12767 = vst [vmem:[#allocation98_spill] sm:$0xff] %v9786_v63  ;;  %v3017_v63 = vmul.f32 %v9449_v37, %v1910_v17 }
 0x23d   :  { %vm2677_vm4 = vcmp.gt.f32.partialorder %v1913_v30, 0.0  ;;  %v3018_v11 = vmul.f32 %v9449_v37, %v1913_v30  ;;  %7718 = vmatmul.msk.bf16.gmra.mxu0 %vm1253_vm2, %v8071_v51  ;;  %7788 = vmatmul.msk.bf16.gmra.mxu2 %vm1253_vm2, %v8141_v34  ;;  %v12774_v51 = vmax.f32 %v12772_v31, %v12773_v62  ;;  %v12777_v62 = vld [vmem:[#allocation28_spill] sm:$0xff] }
 0x23e   :  { %v12779_v31 = vmax.f32 %v12777_v62, %v12778_v13 }
 0x23f   :  { %v9791_v53 = vsel %vm2677_vm4, %v1913_v30, %v3018_v11  ;;  %v9805_v30 = vsel %vm2676_vm1, %v1910_v17, %v3017_v63  ;;  %v8169_v17 = vld [vmem:[%s12480_s0 + $0x428] sm:$0xff]  ;;  %v8072_v63 = vld [vmem:[%s12480_s0 + $0x120] sm:$0xff] }
 0x240   :  { %12768 = vst [vmem:[#allocation99_spill] sm:$0xff] %v9791_v53  ;;  %v4136_v60 = vmax.f32 %v12774_v51, %v9791_v53  ;;  %v9801_v34 = vpop.f32.mrf.mxu2  ;;  %v4135_v51 = vmax.f32 %v12779_v31, %v9805_v30  ;;  %v12780_v53 = vld [vmem:[#allocation34_spill] sm:$0xff] }
 0x241   :  { %12775 = vst [vmem:[#allocation25_spill] sm:$0xff] %v9805_v30 }
 0x242   :  { %v5120_v19 = vmax.f32 %v4134_v57, %v4136_v60  ;;  %v1914_v25 = vpop.f32.mrf.mxu0  ;;  %v12781_v60 = vld [vmem:[#allocation35_spill] sm:$0xff] }
 0x243   :  { %v1915_v11 = vadd.f32 %v9443_v12, %v1914_v25  ;;  %v9808_v61 = vpop.f32.mrf.mxu3  ;;  %v12782_v57 = vmax.f32 %v12780_v53, %v12781_v60 }
 0x245   :  { %vm2678_vm5 = vcmp.gt.f32.partialorder %v1915_v11, 0.0  ;;  %v3019_v54 = vmul.f32 %v9449_v37, %v1915_v11 }
 0x247   :  { %v9810_v9 = vsel %vm2678_vm5, %v1915_v11, %v3019_v54  ;;  %v8142_v11 = vld [vmem:[%s12480_s0 + $0x350] sm:$0xff] }
 0x248   :  { %12776 = vst [vmem:[#allocation26_spill] sm:$0xff] %v9810_v9  ;;  %v4137_v10 = vmax.f32 %v12782_v57, %v9810_v9  ;;  %v9820_v25 = vpop.f32.mrf.mxu2  ;;  %7816 = vmatmul.msk.bf16.gmra.mxu3 %vm1253_vm2, %v8169_v17 }
 0x24a   :  { %v5121_v54 = vmax.f32 %v4135_v51, %v4137_v10  ;;  %v1917_v62 = vpop.f32.mrf.mxu0  ;;  %v12785_v10 = vmax.f32 %v8849_v35, %v8867_v23  ;;  %v8170_v35 = vld [vmem:[%s12480_s0 + $0x430] sm:$0xff] }
 0x24b   :  { %v1918_v53 = vadd.f32 %v9443_v12, %v1917_v62  ;;  %v9836_v31 = vpop.f32.mrf.mxu3 }
 0x24c   :  { %12783 = vst [vmem:[#allocation31_spill] sm:$0xff] %v9836_v31 }
 0x24d   :  { %vm2679_vm6 = vcmp.gt.f32.partialorder %v1918_v53, 0.0  ;;  %v3020_v13 = vmul.f32 %v9449_v37, %v1918_v53  ;;  %7719 = vmatmul.msk.bf16.gmra.mxu0 %vm1253_vm2, %v8072_v63  ;;  %7789 = vmatmul.msk.bf16.gmra.mxu2 %vm1253_vm2, %v8142_v11 }
 0x24f   :  { %v9838_v60 = vsel %vm2679_vm6, %v1918_v53, %v3020_v13  ;;  %v12788_v53 = vmax.f32 %v8887_v49, %v8912_v40 }
 0x250   :  { %12784 = vst [vmem:[#allocation32_spill] sm:$0xff] %v9838_v60  ;;  %v4138_v51 = vmax.f32 %v12785_v10, %v9838_v60  ;;  %v9844_v57 = vpop.f32.mrf.mxu2 }
 0x252   :  { %v5168_v17 = vmax.f32 %v5120_v19, %v4138_v51  ;;  %v1919_v62 = vpop.f32.mrf.mxu0  ;;  %v8073_v19 = vld [vmem:[%s12480_s0 + $0x128] sm:$0xff] }
 0x253   :  { %v1920_v9 = vadd.f32 %v9443_v12, %v1919_v62  ;;  %v9848_v30 = vpop.f32.mrf.mxu3 }
 0x254   :  { %12786 = vst [vmem:[#allocation28_spill] sm:$0xff] %v9848_v30  ;;  %v5180_v10 = vpack.c.bf16 %v5168_v17, %v5168_v17 }
 0x255   :  { %vm2680_vm7 = vcmp.gt.f32.partialorder %v1920_v9, 0.0  ;;  %v3021_v63 = vmul.f32 %v9449_v37, %v1920_v9 }
 0x256   :  { %v5692_v60 = vunpack.c.l.b16 %v5180_v10 }
 0x257   :  { %v9850_v11 = vsel %vm2680_vm7, %v1920_v9, %v3021_v63  ;;  %v8143_v9 = vld [vmem:[%s12480_s0 + $0x358] sm:$0xff] }
 0x258   :  { %12787 = vst [vmem:[#allocation29_spill] sm:$0xff] %v9850_v11  ;;  %v9856_v13 = vmax.f32 %v12788_v53, %v9850_v11  ;;  %v9858_v23 = vpop.f32.mrf.mxu2  ;;  %7817 = vmatmul.msk.bf16.gmra.mxu3 %vm1253_vm2, %v8170_v35 }
 0x259   :  { %12789 = vst [vmem:[#allocation34_spill] sm:$0xff] %v9858_v23 }
 0x25a   :  { %v5169_v62 = vmax.f32 %v5121_v54, %v9856_v13  ;;  %v1922_v49 = vpop.f32.mrf.mxu0  ;;  %v12790_v54 = vmax.f32 %v8950_v32, %v8966_v42  ;;  %v12791_v32 = vmax.f32 %v8992_v46, %v9005_v5 }
 0x25b   :  { %v1923_v40 = vadd.f32 %v9443_v12, %v1922_v49  ;;  %v9875_v11 = vpop.f32.mrf.mxu3 }
 0x25c   :  { %v5181_v63 = vpack.c.bf16 %v5169_v62, %v5169_v62 }
 0x25d   :  { %vm2681_vm8 = vcmp.gt.f32.partialorder %v1923_v40, 0.0  ;;  %v3022_v53 = vmul.f32 %v9449_v37, %v1923_v40  ;;  %7720 = vmatmul.msk.bf16.gmra.mxu0 %vm1253_vm2, %v8073_v19  ;;  %7790 = vmatmul.msk.bf16.gmra.mxu2 %vm1253_vm2, %v8143_v9 }
 0x25e   :  { %v5693_v30 = vunpack.c.l.b16 %v5181_v63 }
 0x25f   :  { %v9877_v17 = vsel %vm2681_vm8, %v1923_v40, %v3022_v53 }
 0x260   :  { %v4140_v35 = vmax.f32 %v12790_v54, %v9877_v17  ;;  %v9883_v62 = vpop.f32.mrf.mxu2  ;;  %v5764_v49 = vpack.c.b16 %v5693_v30, %v5692_v60  ;;  %v8171_v30 = vld [vmem:[%s12480_s0 + $0x438] sm:$0xff]  ;;  %v8074_v60 = vld [vmem:[%s12480_s0 + $0x130] sm:$0xff] }
 0x262   :  { %v5204_v31 = vmax.f32 %v4138_v51, %v4140_v35  ;;  %v1924_v23 = vpop.f32.mrf.mxu0  ;;  %7860 = vmatmul.msk.bf16.vlgmr.msrb.gmra.mxu1 %vm5811_vm9, %v5764_v49  ;;  %v8144_v51 = vld [vmem:[%s12480_s0 + $0x360] sm:$0xff] }
 0x263   :  { %v1925_v19 = vadd.f32 %v9443_v12, %v1924_v23  ;;  %v9888_v10 = vpop.f32.mrf.mxu3 }
 0x265   :  { %vm2682_vm10 = vcmp.gt.f32.partialorder %v1925_v19, 0.0  ;;  %v3023_v9 = vmul.f32 %v9449_v37, %v1925_v19 }
 0x267   :  { %v9890_v40 = vsel %vm2682_vm10, %v1925_v19, %v3023_v9 }
 0x268   :  { %v4141_v42 = vmax.f32 %v12791_v32, %v9890_v40  ;;  %v9896_v63 = vpop.f32.mrf.mxu2  ;;  %7818 = vmatmul.msk.bf16.gmra.mxu3 %vm1253_vm2, %v8171_v30 }
 0x26a   :  { %v5205_v23 = vmax.f32 %v9856_v13, %v4141_v42  ;;  %v1927_v53 = vpop.f32.mrf.mxu0  ;;  %v12793_v13 = vmax.f32 %v9032_v43, %v9060_v50  ;;  %v8172_v50 = vld [vmem:[%s12480_s0 + $0x440] sm:$0xff] }
 0x26b   :  { %v1928_v46 = vadd.f32 %v9443_v12, %v1927_v53  ;;  %v9913_v54 = vpop.f32.mrf.mxu3  ;;  %v12796_v53 = vmax.f32 %v9076_v26, %v9113_v59 }
 0x26d   :  { %vm2683_vm11 = vcmp.gt.f32.partialorder %v1928_v46, 0.0  ;;  %v3024_v5 = vmul.f32 %v9449_v37, %v1928_v46  ;;  %7721 = vmatmul.msk.bf16.gmra.mxu0 %vm1253_vm2, %v8074_v60  ;;  %7791 = vmatmul.msk.bf16.gmra.mxu2 %vm1253_vm2, %v8144_v51 }
 0x26f   :  { %v9915_v35 = vsel %vm2683_vm11, %v1928_v46, %v3024_v5  ;;  %v8145_v5 = vld [vmem:[%s12480_s0 + $0x368] sm:$0xff] }
 0x270   :  { %12792 = vst [vmem:[#allocation35_spill] sm:$0xff] %v9915_v35  ;;  %v4142_v49 = vmax.f32 %v12793_v13, %v9915_v35  ;;  %v9921_v19 = vpop.f32.mrf.mxu2 }
 0x272   :  { %v5252_v9 = vmax.f32 %v5204_v31, %v4142_v49  ;;  %v1929_v32 = vpop.f32.mrf.mxu0  ;;  %v8075_v31 = vld [vmem:[%s12480_s0 + $0x138] sm:$0xff] }
 0x273   :  { %v1930_v42 = vadd.f32 %v9443_v12, %v1929_v32  ;;  %v9925_v60 = vpop.f32.mrf.mxu3 }
 0x274   :  { %12794 = vst [vmem:[#allocation100_spill] sm:$0xff] %v9925_v60  ;;  %v5264_v13 = vpack.c.bf16 %v5252_v9, %v5252_v9 }
 0x275   :  { %vm2684_vm12 = vcmp.gt.f32.partialorder %v1930_v42, 0.0  ;;  %v3025_v30 = vmul.f32 %v9449_v37, %v1930_v42 }
 0x277   :  { %v9927_v51 = vsel %vm2684_vm12, %v1930_v42, %v3025_v30 }
 0x278   :  { %12795 = vst [vmem:[#allocation101_spill] sm:$0xff] %v9927_v51  ;;  %v9933_v46 = vmax.f32 %v12796_v53, %v9927_v51  ;;  %v9935_v43 = vpop.f32.mrf.mxu2  ;;  %7819 = vmatmul.msk.bf16.gmra.mxu3 %vm1253_vm2, %v8172_v50  ;;  %v5694_v51 = vunpack.c.l.b16 %v5264_v13 }
 0x279   :  { %12797 = vst [vmem:[#allocation102_spill] sm:$0xff] %v9935_v43 }
 0x27a   :  { %v5253_v32 = vmax.f32 %v5205_v23, %v9933_v46  ;;  %v1932_v59 = vpop.f32.mrf.mxu0  ;;  %v12798_v23 = vmax.f32 %v9083_v48, %v9170_v3  ;;  %v12800_v48 = vmax.f32 %v9129_v33, %v9212_v14 }
 0x27b   :  { %v1933_v26 = vadd.f32 %v9443_v12, %v1932_v59  ;;  %v9952_v53 = vpop.f32.mrf.mxu3 }
 0x27c   :  { %v5265_v42 = vpack.c.bf16 %v5253_v32, %v5253_v32 }
 0x27d   :  { %vm2685_vm13 = vcmp.gt.f32.partialorder %v1933_v26, 0.0  ;;  %v3026_v30 = vmul.f32 %v9449_v37, %v1933_v26  ;;  %7722 = vmatmul.msk.bf16.gmra.mxu0 %vm1253_vm2, %v8075_v31  ;;  %7792 = vmatmul.msk.bf16.gmra.mxu2 %vm1253_vm2, %v8145_v5 }
 0x27e   :  { %v5695_v60 = vunpack.c.l.b16 %v5265_v42 }
 0x27f   :  { %v9954_v9 = vsel %vm2685_vm13, %v1933_v26, %v3026_v30 }
 0x280   :  { %v4144_v50 = vmax.f32 %v12798_v23, %v9954_v9  ;;  %v9960_v59 = vpop.f32.mrf.mxu2  ;;  %v5765_v32 = vpack.c.b16 %v5695_v60, %v5694_v51  ;;  %v8076_v60 = vld [vmem:[%s12480_s0 + $0x140] sm:$0xff]  ;;  %v8146_v51 = vld [vmem:[%s12480_s0 + $0x370] sm:$0xff] }
 0x282   :  { %v5288_v35 = vmax.f32 %v4142_v49, %v4144_v50  ;;  %v1934_v43 = vpop.f32.mrf.mxu0  ;;  %7861 = vmatmul.msk.bf16.gmra.mxu1 %vm5811_vm9, %v5765_v32  ;;  %v8173_v49 = vld [vmem:[%s12480_s0 + $0x448] sm:$0xff]  ;;  %v8211_v50 = vld [vmem:[%s12484_s7 + $0x10] sm:$0xff] }
 0x283   :  { %v1935_v31 = vadd.f32 %v9443_v12, %v1934_v43  ;;  %v9965_v13 = vpop.f32.mrf.mxu3  ;;  %6570 = vmatpush.bf16.msrb.mxu2 %v8211_v50  ;;  %v8077_v50 = vld [vmem:[%s12480_s0 + $0x148] sm:$0xff] }
 0x284   :  { %12799 = vst [vmem:[#allocation103_spill] sm:$0xff] %v9965_v13 }
 0x285   :  { %vm2686_vm14 = vcmp.gt.f32.partialorder %v1935_v31, 0.0  ;;  %v3027_v5 = vmul.f32 %v9449_v37, %v1935_v31 }
 0x287   :  { %v9967_v26 = vsel %vm2686_vm14, %v1935_v31, %v3027_v5 }
 0x288   :  { %v4145_v3 = vmax.f32 %v12800_v48, %v9967_v26  ;;  %v9973_v42 = vpop.f32.mrf.mxu2  ;;  %7820 = vmatmul.msk.bf16.gmra.mxu3 %vm1253_vm2, %v8173_v49 }
 0x28a   :  { %v5289_v43 = vmax.f32 %v9933_v46, %v4145_v3  ;;  %v1937_v30 = vpop.f32.mrf.mxu0  ;;  %v12803_v46 = vld [vmem:[#allocation33_spill] sm:$0xff] }
 0x28b   :  { %v1938_v33 = vadd.f32 %v9443_v12, %v1937_v30  ;;  %v9990_v23 = vpop.f32.mrf.mxu3  ;;  %v12804_v31 = vmax.f32 %v9157_v4, %v12803_v46 }
 0x28c   :  { %12801 = vst [vmem:[#allocation104_spill] sm:$0xff] %v9990_v23 }
 0x28d   :  { %vm2687_vm15 = vcmp.gt.f32.partialorder %v1938_v33, 0.0  ;;  %v3028_v14 = vmul.f32 %v9449_v37, %v1938_v33  ;;  %7723 = vmatmul.msk.bf16.gmra.mxu0 %vm1253_vm2, %v8076_v60  ;;  %7793 = vmatmul.msk.bf16.gmra.mxu2 %vm1253_vm2, %v8146_v51 }
 0x28f   :  { %v9995_v32 = vsel %vm2687_vm15, %v1938_v33, %v3028_v14  ;;  %v12807_v33 = vld [vmem:[#allocation67_spill] sm:$0xff] }
 0x290   :  { %12802 = vst [vmem:[#allocation105_spill] sm:$0xff] %v9995_v32  ;;  %v4146_v5 = vmax.f32 %v12804_v31, %v9995_v32  ;;  %v10001_v48 = vpop.f32.mrf.mxu2  ;;  %v12808_v14 = vmax.f32 %v9206_v7, %v12807_v33  ;;  %v8147_v31 = vld [vmem:[%s12480_s0 + $0x378] sm:$0xff] }
 0x292   :  { %v5336_v3 = vmax.f32 %v5288_v35, %v4146_v5  ;;  %v1939_v49 = vpop.f32.mrf.mxu0  ;;  %v8174_v35 = vld [vmem:[%s12480_s0 + $0x450] sm:$0xff] }
 0x293   :  { %v1940_v60 = vadd.f32 %v9443_v12, %v1939_v49  ;;  %v10005_v30 = vpop.f32.mrf.mxu3 }
 0x294   :  { %12805 = vst [vmem:[#allocation33_spill] sm:$0xff] %v10005_v30  ;;  %v5348_v49 = vpack.c.bf16 %v5336_v3, %v5336_v3 }
 0x295   :  { %vm2688_vm0 = vcmp.gt.f32.partialorder %v1940_v60, 0.0  ;;  %v3029_v51 = vmul.f32 %v9449_v37, %v1940_v60 }
 0x297   :  { %v10007_v23 = vsel %vm2688_vm0, %v1940_v60, %v3029_v51 }
 0x298   :  { %12806 = vst [vmem:[#allocation106_spill] sm:$0xff] %v10007_v23  ;;  %v10013_v4 = vmax.f32 %v12808_v14, %v10007_v23  ;;  %v10015_v46 = vpop.f32.mrf.mxu2  ;;  %7821 = vmatmul.msk.bf16.gmra.mxu3 %vm1253_vm2, %v8174_v35  ;;  %v5696_v23 = vunpack.c.l.b16 %v5348_v49 }
 0x299   :  { %12809 = vst [vmem:[#allocation67_spill] sm:$0xff] %v10015_v46 }
 0x29a   :  { %v5337_v60 = vmax.f32 %v5289_v43, %v10013_v4  ;;  %v1942_v7 = vpop.f32.mrf.mxu0  ;;  %v12812_v43 = vmax.f32 %v9230_v27, %v9398_v28  ;;  %v12816_v27 = vmax.f32 %v9266_v29, %v9437_v15 }
 0x29b   :  { %v1943_v51 = vadd.f32 %v9443_v12, %v1942_v7  ;;  %v10032_v30 = vpop.f32.mrf.mxu3 }
 0x29c   :  { %v5349_v33 = vpack.c.bf16 %v5337_v60, %v5337_v60  ;;  %12810 = vst [vmem:[#allocation107_spill] sm:$0xff] %v10032_v30 }
 0x29d   :  { %vm2689_vm3 = vcmp.gt.f32.partialorder %v1943_v51, 0.0  ;;  %v3030_v14 = vmul.f32 %v9449_v37, %v1943_v51  ;;  %7724 = vmatmul.msk.bf16.gmra.mxu0 %vm1253_vm2, %v8077_v50  ;;  %7794 = vmatmul.msk.bf16.gmra.mxu2 %vm1253_vm2, %v8147_v31 }
 0x29e   :  { %v5697_v32 = vunpack.c.l.b16 %v5349_v33 }
 0x29f   :  { %v10034_v3 = vsel %vm2689_vm3, %v1943_v51, %v3030_v14 }
 0x2a0   :  { %12811 = vst [vmem:[#allocation108_spill] sm:$0xff] %v10034_v3  ;;  %v4148_v35 = vmax.f32 %v12812_v43, %v10034_v3  ;;  %v10040_v7 = vpop.f32.mrf.mxu2  ;;  %v5766_v60 = vpack.c.b16 %v5697_v32, %v5696_v23  ;;  %v8175_v23 = vld [vmem:[%s12480_s0 + $0x458] sm:$0xff]  ;;  %v8148_v32 = vld [vmem:[%s12480_s0 + $0x380] sm:$0xff] }
 0x2a1   :  { %12813 = vst [vmem:[#allocation109_spill] sm:$0xff] %v10040_v7 }
 0x2a2   :  { %v5372_v46 = vmax.f32 %v4146_v5, %v4148_v35  ;;  %v1944_v13 = vpop.f32.mrf.mxu0  ;;  %7862 = vmatmul.msk.bf16.gmra.mxu1 %vm5811_vm9, %v5766_v60 }
 0x2a3   :  { %v1945_v50 = vadd.f32 %v9443_v12, %v1944_v13  ;;  %v10045_v49 = vpop.f32.mrf.mxu3  ;;  %v8078_v13 = vld [vmem:[%s12480_s0 + $0x150] sm:$0xff] }
 0x2a4   :  { %12814 = vst [vmem:[#allocation110_spill] sm:$0xff] %v10045_v49 }
 0x2a5   :  { %vm2690_vm4 = vcmp.gt.f32.partialorder %v1945_v50, 0.0  ;;  %v3031_v31 = vmul.f32 %v9449_v37, %v1945_v50 }
 0x2a7   :  { %v10047_v51 = vsel %vm2690_vm4, %v1945_v50, %v3031_v31 }
 0x2a8   :  { %12815 = vst [vmem:[#allocation111_spill] sm:$0xff] %v10047_v51  ;;  %v4149_v28 = vmax.f32 %v12816_v27, %v10047_v51  ;;  %v10053_v33 = vpop.f32.mrf.mxu2  ;;  %7822 = vmatmul.msk.bf16.gmra.mxu3 %vm1253_vm2, %v8175_v23  ;;  %v12827_v51 = vld [vmem:[#allocation14_spill] sm:$0xff] }
 0x2a9   :  { %12817 = vst [vmem:[#allocation112_spill] sm:$0xff] %v10053_v33 }
 0x2aa   :  { %v5373_v5 = vmax.f32 %v10013_v4, %v4149_v28  ;;  %v1947_v14 = vpop.f32.mrf.mxu0  ;;  %v12820_v4 = vmax.f32 %v9504_v6, %v9508_v1  ;;  %v2233_v1 = vadd.f32 %v9443_v12, %v9520_v18  ;;  %v8149_v18 = vld [vmem:[%s12480_s0 + $0x388] sm:$0xff] }
 0x2ab   :  { %v1948_v29 = vadd.f32 %v9443_v12, %v1947_v14  ;;  %v10070_v43 = vpop.f32.mrf.mxu3 }
 0x2ac   :  { %12818 = vst [vmem:[#allocation113_spill] sm:$0xff] %v10070_v43  ;;  %vm2805_vm8 = vcmp.gt.f32.partialorder %v2233_v1, 0.0 }
 0x2ad   :  { %vm2691_vm1 = vcmp.gt.f32.partialorder %v1948_v29, 0.0  ;;  %v3032_v15 = vmul.f32 %v9449_v37, %v1948_v29  ;;  %7725 = vmatmul.msk.bf16.gmra.mxu0 %vm1253_vm2, %v8078_v13  ;;  %7795 = vmatmul.msk.bf16.gmra.mxu2 %vm1253_vm2, %v8148_v32  ;;  %v12822_v32 = vld [vmem:[#allocation7_spill] sm:$0xff] }
 0x2ae   :  { %v2168_v14 = vadd.f32 %v9443_v12, %v12822_v32  ;;  %v2238_v32 = vadd.f32 %v9443_v12, %v9569_v36  ;;  %v12826_v36 = vld [vmem:[#allocation10_spill] sm:$0xff] }
 0x2af   :  { %v10072_v35 = vsel %vm2691_vm1, %v1948_v29, %v3032_v15  ;;  %v12823_v29 = vld [vmem:[#allocation12_spill] sm:$0xff] }
 0x2b0   :  { %12819 = vst [vmem:[#allocation114_spill] sm:$0xff] %v10072_v35  ;;  %v10078_v60 = vmax.f32 %v12820_v4, %v10072_v35  ;;  %v2297_v50 = vpop.f32.mrf.mxu2  ;;  %v2173_v15 = vadd.f32 %v9443_v12, %v12823_v29  ;;  %vm2779_vm6 = vcmp.gt.f32.partialorder %v2168_v14, 0.0  ;;  %v3148_v49 = vmul.f32 %v9449_v37, %v2238_v32 }
 0x2b1   :  { %vm2807_vm11 = vcmp.gt.f32.partialorder %v2238_v32, 0.0 }
 0x2b2   :  { %v5420_v31 = vmax.f32 %v5372_v46, %v10078_v60  ;;  %v1949_v27 = vpop.f32.mrf.mxu0  ;;  %v12825_v46 = vmax.f32 %v9528_v21, %v9532_v38  ;;  %v2298_v38 = vadd.f32 %v9443_v12, %v2297_v50  ;;  %vm2781_vm7 = vcmp.gt.f32.partialorder %v2173_v15, 0.0 }
 0x2b3   :  { %v1950_v28 = vadd.f32 %v9443_v12, %v1949_v27  ;;  %v10083_v13 = vpop.f32.mrf.mxu3  ;;  %v3122_v43 = vmul.f32 %v9449_v37, %v2173_v15 }
 0x2b4   :  { %12821 = vst [vmem:[#allocation115_spill] sm:$0xff] %v10083_v13  ;;  %v8176_v13 = vld [vmem:[%s12480_s0 + $0x460] sm:$0xff]  ;;  %v5432_v21 = vpack.c.bf16 %v5420_v31, %v5420_v31  ;;  %v2175_v31 = vadd.f32 %v9443_v12, %v12827_v51  ;;  %v3172_v3 = vmul.f32 %v9449_v37, %v2298_v38  ;;  %vm2831_vm13 = vcmp.gt.f32.partialorder %v2298_v38, 0.0 }
 0x2b5   :  { %vm2692_vm5 = vcmp.gt.f32.partialorder %v1950_v28, 0.0  ;;  %v3033_v23 = vmul.f32 %v9449_v37, %v1950_v28  ;;  %v10134_v30 = vsel %vm2781_vm7, %v2173_v15, %v3122_v43 }
 0x2b6   :  { %12829 = vst [vmem:[#allocation10_spill] sm:$0xff] %v10134_v30  ;;  %vm2782_vm14 = vcmp.gt.f32.partialorder %v2175_v31, 0.0 }
 0x2b7   :  { %v10089_v6 = vsel %vm2692_vm5, %v1950_v28, %v3033_v23  ;;  %v8079_v28 = vld [vmem:[%s12480_s0 + $0x158] sm:$0xff] }
 0x2b8   :  { %12824 = vst [vmem:[#allocation7_spill] sm:$0xff] %v10089_v6  ;;  %v10097_v4 = vmax.f32 %v12825_v46, %v10089_v6  ;;  %v2299_v27 = vpop.f32.mrf.mxu2  ;;  %7823 = vmatmul.msk.bf16.gmra.mxu3 %vm1253_vm2, %v8176_v13  ;;  %v3120_v46 = vmul.f32 %v9449_v37, %v2168_v14  ;;  %v2170_v6 = vadd.f32 %v9443_v12, %v12826_v36 }
 0x2ba   :  { %v5421_v23 = vmax.f32 %v5373_v5, %v10097_v4  ;;  %v1952_v29 = vpop.f32.mrf.mxu0  ;;  %v3146_v5 = vmul.f32 %v9449_v37, %v2233_v1  ;;  %vm2780_vm12 = vcmp.gt.f32.partialorder %v2170_v6, 0.0  ;;  %v3121_v15 = vmul.f32 %v9449_v37, %v2170_v6 }
 0x2bb   :  { %v1953_v35 = vadd.f32 %v9443_v12, %v1952_v29  ;;  %v10125_v36 = vpop.f32.mrf.mxu3  ;;  %v5698_v29 = vunpack.c.l.b16 %v5432_v21 }
 0x2bc   :  { %v5433_v50 = vpack.c.bf16 %v5421_v23, %v5421_v23  ;;  %v10129_v23 = vsel %vm2779_vm6, %v2168_v14, %v3120_v46  ;;  %v3484_v14 = vsel %vm2805_vm8, %v2233_v1, %v3146_v5  ;;  %v3486_v46 = vsel %vm2807_vm11, %v2238_v32, %v3148_v49 }
 0x2bd   :  { %vm2693_vm10 = vcmp.gt.f32.partialorder %v1953_v35, 0.0  ;;  %v3034_v13 = vmul.f32 %v9449_v37, %v1953_v35  ;;  %7726 = vmatmul.msk.bf16.gmra.mxu0 %vm1253_vm2, %v8079_v28  ;;  %7796 = vmatmul.msk.bf16.gmra.mxu2 %vm1253_vm2, %v8149_v18  ;;  %12828 = vst [vmem:[#allocation12_spill] sm:$0xff] %v10129_v23  ;;  %v2235_v28 = vadd.f32 %v9443_v12, %v9538_v39 }
 0x2be   :  { %v5699_v51 = vunpack.c.l.b16 %v5433_v50  ;;  %v12830_v18 = vmax.f32 %v9561_v44, %v9565_v24  ;;  %v10149_v39 = vsel %vm2831_vm13, %v2298_v38, %v3172_v3  ;;  %v3123_v1 = vmul.f32 %v9449_v37, %v2175_v31 }
 0x2bf   :  { %v10131_v33 = vsel %vm2693_vm10, %v1953_v35, %v3034_v13  ;;  %v2240_v35 = vadd.f32 %v9443_v12, %v9592_v41  ;;  %12831 = vst [vmem:[#allocation14_spill] sm:$0xff] %v10149_v39  ;;  %v2300_v13 = vadd.f32 %v9443_v12, %v2299_v27  ;;  %v4576_v32 = vmax.f32 %v10129_v23, %v3484_v14 }
 0x2c0   :  { %v10142_v21 = vmax.f32 %v12830_v18, %v10131_v33  ;;  %v2302_v50 = vpop.f32.mrf.mxu2  ;;  %v5767_v7 = vpack.c.b16 %v5699_v51, %v5698_v29  ;;  %v3147_v3 = vmul.f32 %v9449_v37, %v2235_v28  ;;  %v4578_v38 = vmax.f32 %v10134_v30, %v3486_v46 }
 0x2c1   :  { %v2303_v43 = vadd.f32 %v9443_v12, %v2302_v50  ;;  %v3149_v5 = vmul.f32 %v9449_v37, %v2240_v35  ;;  %vm2806_vm3 = vcmp.gt.f32.partialorder %v2235_v28, 0.0  ;;  %vm2808_vm4 = vcmp.gt.f32.partialorder %v2240_v35, 0.0 }
 0x2c2   :  { %v1954_v44 = vpop.f32.mrf.mxu0  ;;  %7863 = vmatmul.msk.bf16.gmra.mxu1 %vm5811_vm9, %v5767_v7  ;;  %v10174_v18 = vsel %vm2780_vm12, %v2170_v6, %v3121_v15  ;;  %v3173_v50 = vmul.f32 %v9449_v37, %v2300_v13  ;;  %v10180_v46 = vsel %vm2782_vm14, %v2175_v31, %v3123_v1  ;;  %vm2832_vm1 = vcmp.gt.f32.partialorder %v2300_v13, 0.0  ;;  %v10196_v31 = vld [vmem:[%s12478_s2] ss:$0 sm:$0xff] }
 0x2c3   :  { %vm2833_vm15 = vcmp.gt.f32.partialorder %v2303_v43, 0.0  ;;  %v3174_v49 = vmul.f32 %v9449_v37, %v2303_v43  ;;  %v1955_v41 = vadd.f32 %v9443_v12, %v1954_v44  ;;  %v10165_v27 = vpop.f32.mrf.mxu3  ;;  %v10168_v12 = vmax.f32 %v4576_v32, %v10149_v39  ;;  %12833 = vst [vmem:[#allocation117_spill] sm:$0xff] %v10174_v18 }
 0x2c4   :  { %12834 = vst [vmem:[#allocation118_spill] sm:$0xff] %v10180_v46  ;;  %v12835_v44 = vmax.f32 %v9582_v0, %v9586_v52  ;;  %v3485_v6 = vsel %vm2806_vm3, %v2235_v28, %v3147_v3  ;;  %v3487_v15 = vsel %vm2808_vm4, %v2240_v35, %v3149_v5  ;;  %v8080_v52 = vld [vmem:[%s12480_s0 + $0x160] sm:$0xff]  ;;  %v8150_v0 = vld [vmem:[%s12480_s0 + $0x390] sm:$0xff]  ;;  %v2373_v28 = vadd.f32 %v10196_v31, %v9559_v8  ;;  %v12837_v8 = vld [vmem:[#allocation17_spill] sm:$0xff] }
 0x2c5   :  { %v10162_v29 = vsel %vm2833_vm15, %v2303_v43, %v3174_v49  ;;  %vm2694_vm0 = vcmp.gt.f32.partialorder %v1955_v41, 0.0  ;;  %v3035_v7 = vmul.f32 %v9449_v37, %v1955_v41  ;;  %v8177_v37 = vld [vmem:[%s12480_s0 + $0x468] sm:$0xff] }
 0x2c6   :  { %12832 = vst [vmem:[#allocation116_spill] sm:$0xff] %v10162_v29  ;;  %v10171_v51 = vmax.f32 %v4578_v38, %v10162_v29  ;;  %v10218_v38 = vld [vmem:[%s12479_s3] ss:$0 sm:$0xff]  ;;  %vm2861_vm8 = vcmp.gt.f32.partialorder %v2373_v28, 0.0 }
 0x2c7   :  { %v10177_v14 = vsel %vm2694_vm0, %v1955_v41, %v3035_v7  ;;  %v2243_v41 = vadd.f32 %v10196_v31, %v9621_v22  ;;  %v10213_v22 = vsel %vm2832_vm1, %v2300_v13, %v3173_v50 }
 0x2c8   :  { %v10188_v49 = vmax.f32 %v12835_v44, %v10177_v14  ;;  %v2304_v32 = vpop.f32.mrf.mxu2  ;;  %7824 = vmatmul.msk.bf16.gmra.mxu3 %vm1253_vm2, %v8177_v37  ;;  %12836 = vst [vmem:[#allocation119_spill] sm:$0xff] %v10213_v22  ;;  %v2180_v44 = vadd.f32 %v10196_v31, %v12837_v8  ;;  %v4579_v37 = vmax.f32 %v10180_v46, %v3487_v15 }
 0x2c9   :  { %v2305_v1 = vadd.f32 %v10196_v31, %v2304_v32  ;;  %v4577_v32 = vmax.f32 %v10174_v18, %v3485_v6  ;;  %v3150_v13 = vmul.f32 %v10218_v38, %v2243_v41  ;;  %vm2809_vm7 = vcmp.gt.f32.partialorder %v2243_v41, 0.0 }
 0x2ca   :  { %v1957_v3 = vpop.f32.mrf.mxu0  ;;  %v3202_v15 = vmul.f32 %v10218_v38, %v2373_v28  ;;  %vm2784_vm10 = vcmp.gt.f32.partialorder %v2180_v44, 0.0  ;;  %v3125_v24 = vmul.f32 %v10218_v38, %v2180_v44 }
 0x2cb   :  { %vm2834_vm5 = vcmp.gt.f32.partialorder %v2305_v1, 0.0  ;;  %v3175_v5 = vmul.f32 %v10218_v38, %v2305_v1  ;;  %v1958_v7 = vadd.f32 %v10196_v31, %v1957_v3  ;;  %v2442_v43 = vpop.f32.mrf.mxu3  ;;  %v10233_v3 = vmax.f32 %v4577_v32, %v10213_v22 }
 0x2cd   :  { %v10227_v50 = vsel %vm2834_vm5, %v2305_v1, %v3175_v5  ;;  %vm2695_vm6 = vcmp.gt.f32.partialorder %v1958_v7, 0.0  ;;  %v3036_v35 = vmul.f32 %v10218_v38, %v1958_v7  ;;  %7727 = vmatmul.msk.bf16.gmra.mxu0 %vm1253_vm2, %v8080_v52  ;;  %7797 = vmatmul.msk.bf16.gmra.mxu2 %vm1253_vm2, %v8150_v0  ;;  %v2375_v1 = vadd.f32 %v10196_v31, %v9580_v20  ;;  %v12840_v20 = vld [vmem:[#allocation20_spill] sm:$0xff] }
 0x2ce   :  { %12838 = vst [vmem:[#allocation17_spill] sm:$0xff] %v10227_v50  ;;  %v10236_v6 = vmax.f32 %v4579_v37, %v10227_v50  ;;  %v12839_v0 = vmax.f32 %v9613_v45, %v9617_v56  ;;  %v3488_v37 = vsel %vm2809_vm7, %v2243_v41, %v3150_v13  ;;  %v10257_v46 = vadd.f32 %v10196_v31, %v12840_v20 }
 0x2cf   :  { %v10239_v8 = vsel %vm2695_vm6, %v1958_v7, %v3036_v35  ;;  %v2245_v35 = vadd.f32 %v10196_v31, %v9636_v16  ;;  %v2378_v52 = vadd.f32 %v10196_v31, %v9611_v58  ;;  %v12841_v45 = vmax.f32 %v10078_v60, %v10142_v21 }
 0x2d0   :  { %v10249_v5 = vmax.f32 %v12839_v0, %v10239_v8  ;;  %v2307_v32 = vpop.f32.mrf.mxu2  ;;  %v10265_v13 = vsel %vm2861_vm8, %v2373_v28, %v3202_v15  ;;  %v2248_v20 = vadd.f32 %v10196_v31, %v9663_v2  ;;  %vm2862_vm12 = vcmp.gt.f32.partialorder %v2375_v1, 0.0 }
 0x2d1   :  { %v2308_v7 = vadd.f32 %v10196_v31, %v2307_v32  ;;  %v12842_v32 = vld [vmem:[#allocation5_spill] sm:$0xff]  ;;  %v3203_v58 = vmul.f32 %v10218_v38, %v2375_v1  ;;  %v3151_v30 = vmul.f32 %v10218_v38, %v2245_v35  ;;  %vm2810_vm14 = vcmp.gt.f32.partialorder %v2245_v35, 0.0 }
 0x2d2   :  { %v5504_v56 = vmax.f32 %v12841_v45, %v10249_v5  ;;  %v1959_v41 = vpop.f32.mrf.mxu0  ;;  %v4580_v18 = vmax.f32 %v12842_v32, %v3488_v37  ;;  %v3204_v15 = vmul.f32 %v10218_v38, %v2378_v52  ;;  %v10286_v45 = vsel %vm2784_vm10, %v2180_v44, %v3125_v24 }
 0x2d3   :  { %vm2835_vm11 = vcmp.gt.f32.partialorder %v2308_v7, 0.0  ;;  %v3176_v16 = vmul.f32 %v10218_v38, %v2308_v7  ;;  %v1960_v0 = vadd.f32 %v10196_v31, %v1959_v41  ;;  %v10277_v28 = vpop.f32.mrf.mxu3  ;;  %12843 = vst [vmem:[#allocation20_spill] sm:$0xff] %v10286_v45  ;;  %vm2863_vm15 = vcmp.gt.f32.partialorder %v2378_v52, 0.0 }
 0x2d4   :  { %v10296_v32 = vsel %vm2862_vm12, %v2375_v1, %v3203_v58  ;;  %v12845_v24 = vmax.f32 %v9628_v47, %v9632_v55  ;;  %vm2811_vm0 = vcmp.gt.f32.partialorder %v2248_v20, 0.0  ;;  %v2438_v47 = vadd.f32 %v10196_v31, %v10125_v36  ;;  %v12846_v58 = vld [vmem:[#allocation16_spill] sm:$0xff] }
 0x2d5   :  { %v10274_v60 = vsel %vm2835_vm11, %v2308_v7, %v3176_v16  ;;  %vm2696_vm13 = vcmp.gt.f32.partialorder %v1960_v0, 0.0  ;;  %v3037_v21 = vmul.f32 %v10218_v38, %v1960_v0  ;;  %v10290_v7 = vmul.f32 %v10218_v38, %v10257_v46 }
 0x2d6   :  { %v10281_v37 = vmax.f32 %v4580_v18, %v10274_v60  ;;  %v3152_v16 = vmul.f32 %v10218_v38, %v2248_v20  ;;  %v12844_v18 = vmax.f32 %v10168_v12, %v10171_v51  ;;  %v8081_v12 = vld [vmem:[%s12480_s0 + $0x168] sm:$0xff]  ;;  %v8151_v51 = vld [vmem:[%s12480_s0 + $0x398] sm:$0xff]  ;;  %v10320_v55 = vsel %vm2863_vm15, %v2378_v52, %v3204_v15 }
 0x2d7   :  { %v10292_v41 = vsel %vm2696_vm13, %v1960_v0, %v3037_v21  ;;  %v8178_v0 = vld [vmem:[%s12480_s0 + $0x470] sm:$0xff]  ;;  %v3489_v21 = vsel %vm2810_vm14, %v2245_v35, %v3151_v30  ;;  %v5516_v30 = vpack.c.bf16 %v5504_v56, %v5504_v56  ;;  %v2443_v52 = vadd.f32 %v10196_v31, %v2442_v43  ;;  %v12848_v56 = vld [vmem:[#allocation83_spill] sm:$0xff] }
 0x2d8   :  { %v5174_v2 = vmax.f32 %v12844_v18, %v10281_v37  ;;  %v10306_v44 = vmax.f32 %v12845_v24, %v10292_v41  ;;  %v2309_v23 = vpop.f32.mrf.mxu2  ;;  %v10324_v18 = vadd.f32 %v10196_v31, %v12846_v58  ;;  %7825 = vmatmul.msk.bf16.gmra.mxu3 %vm1253_vm2, %v8178_v0  ;;  %v4581_v15 = vmax.f32 %v10286_v45, %v3489_v21  ;;  %v12853_v45 = vld [vmem:[#allocation64_spill] sm:$0xff] }
 0x2d9   :  { %v2310_v1 = vadd.f32 %v10196_v31, %v2309_v23  ;;  %v12847_v23 = vmax.f32 %v10097_v4, %v10188_v49  ;;  %v3490_v58 = vsel %vm2811_vm0, %v2248_v20, %v3152_v16  ;;  %v2250_v29 = vadd.f32 %v10196_v31, %v12848_v56 }
 0x2da   :  { %v1962_v24 = vpop.f32.mrf.mxu0  ;;  %v3228_v0 = vmul.f32 %v10218_v38, %v2438_v47  ;;  %vm2786_vm1 = vcmp.gt.f32.partialorder %v10257_v46, 0.0  ;;  %v5700_v20 = vunpack.c.l.b16 %v5516_v30  ;;  %vm2864_vm5 = vcmp.gt.f32.partialorder %v10324_v18, 0.0 }
 0x2db   :  { %v5505_v35 = vmax.f32 %v12847_v23, %v10306_v44  ;;  %vm2836_vm3 = vcmp.gt.f32.partialorder %v2310_v1, 0.0  ;;  %v3177_v50 = vmul.f32 %v10218_v38, %v2310_v1  ;;  %v1963_v36 = vadd.f32 %v10196_v31, %v1962_v24  ;;  %v10344_v43 = vpop.f32.mrf.mxu3  ;;  %v12851_v24 = vld [vmem:[#allocation19_spill] sm:$0xff] }
 0x2dc   :  { %vm2887_vm6 = vcmp.gt.f32.partialorder %v2438_v47, 0.0  ;;  %v12849_v23 = vmax.f32 %v10233_v3, %v10236_v6  ;;  %vm2889_vm7 = vcmp.gt.f32.partialorder %v2443_v52, 0.0  ;;  %vm2812_vm8 = vcmp.gt.f32.partialorder %v2250_v29, 0.0 }
 0x2dd   :  { %v5517_v22 = vpack.c.bf16 %v5505_v35, %v5505_v35  ;;  %v10338_v4 = vsel %vm2836_vm3, %v2310_v1, %v3177_v50  ;;  %vm2697_vm4 = vcmp.gt.f32.partialorder %v1963_v36, 0.0  ;;  %v3038_v49 = vmul.f32 %v10218_v38, %v1963_v36  ;;  %7728 = vmatmul.msk.bf16.gmra.mxu0 %vm1253_vm2, %v8081_v12  ;;  %7798 = vmatmul.msk.bf16.gmra.mxu2 %vm1253_vm2, %v8151_v51  ;;  %v12850_v35 = vld [vmem:[#allocation78_spill] sm:$0xff] }
 0x2de   :  { %v10348_v16 = vmax.f32 %v4581_v15, %v10338_v4  ;;  %v3230_v12 = vmul.f32 %v10218_v38, %v2443_v52  ;;  %v5186_v51 = vpack.c.bf16 %v5174_v2, %v5174_v2  ;;  %v12852_v15 = vmax.f32 %v12850_v35, %v12851_v24 }
 0x2df   :  { %v5701_v21 = vunpack.c.l.b16 %v5517_v22  ;;  %v10353_v1 = vsel %vm2697_vm4, %v1963_v36, %v3038_v49  ;;  %v4582_v36 = vmax.f32 %v12853_v45, %v3490_v58  ;;  %v3205_v49 = vmul.f32 %v10218_v38, %v10324_v18 }
 0x2e0   :  { %v5175_v30 = vmax.f32 %v12849_v23, %v10348_v16  ;;  %v10364_v56 = vmax.f32 %v12852_v15, %v10353_v1  ;;  %v2312_v22 = vpop.f32.mrf.mxu2  ;;  %v10372_v6 = vsel %vm2887_vm6, %v2438_v47, %v3228_v0  ;;  %v2440_v58 = vadd.f32 %v10196_v31, %v10165_v27 }
 0x2e1   :  { %v5768_v50 = vpack.c.b16 %v5701_v21, %v5700_v20  ;;  %v2313_v2 = vadd.f32 %v10196_v31, %v2312_v22  ;;  %12854 = vst [vmem:[#allocation5_spill] sm:$0xff] %v10372_v6  ;;  %v3153_v21 = vmul.f32 %v10218_v38, %v2250_v29  ;;  %v10380_v35 = vunpack.c.l.b16 %v5186_v51 }
 0x2e2   :  { %v5187_v39 = vpack.c.bf16 %v5175_v30, %v5175_v30  ;;  %v1964_v23 = vpop.f32.mrf.mxu0  ;;  %v10382_v30 = vsel %vm2889_vm7, %v2443_v52, %v3230_v12  ;;  %v12858_v27 = vmax.f32 %v10274_v60, %v10265_v13  ;;  %v12859_v12 = vld [vmem:[#allocation86_spill] sm:$0xff]  ;;  %v3229_v3 = vmul.f32 %v10218_v38, %v2440_v58  ;;  %v12861_v60 = vld [vmem:[#allocation81_spill] sm:$0xff] }
 0x2e3   :  { %7864 = vmatmul.msk.bf16.gmra.mxu1 %vm5811_vm9, %v5768_v50  ;;  %vm2837_vm10 = vcmp.gt.f32.partialorder %v2313_v2, 0.0  ;;  %v3178_v20 = vmul.f32 %v10218_v38, %v2313_v2  ;;  %v1965_v45 = vadd.f32 %v10196_v31, %v1964_v23  ;;  %12855 = vst [vmem:[#allocation16_spill] sm:$0xff] %v10380_v35  ;;  %v2445_v50 = vadd.f32 %v10196_v31, %v10277_v28  ;;  %v10389_v15 = vpop.f32.mrf.mxu3  ;;  %v12860_v23 = vld [vmem:[#allocation18_spill] sm:$0xff] }
 0x2e4   :  { %12856 = vst [vmem:[#allocation83_spill] sm:$0xff] %v10382_v30  ;;  %v10384_v24 = vunpack.c.l.b16 %v5187_v39  ;;  %v10395_v22 = vmax.f32 %v12858_v27, %v10372_v6  ;;  %v2383_v28 = vadd.f32 %v10196_v31, %v12860_v23  ;;  %vm2888_vm12 = vcmp.gt.f32.partialorder %v2440_v58, 0.0 }
 0x2e5   :  { %v3516_v47 = vsel %vm2837_vm10, %v2313_v2, %v3178_v20  ;;  %vm2698_vm11 = vcmp.gt.f32.partialorder %v1965_v45, 0.0  ;;  %v3039_v0 = vmul.f32 %v10218_v38, %v1965_v45  ;;  %v2253_v2 = vadd.f32 %v10196_v31, %v12859_v12 }
 0x2e6   :  { %12857 = vst [vmem:[#allocation78_spill] sm:$0xff] %v10384_v24  ;;  %v10397_v51 = vmax.f32 %v4582_v36, %v3516_v47  ;;  %v4764_v39 = vmax.f32 %v3516_v47, %v10320_v55  ;;  %v12862_v36 = vld [vmem:[#allocation21_spill] sm:$0xff]  ;;  %v3491_v23 = vsel %vm2812_vm8, %v2250_v29, %v3153_v21  ;;  %v3543_v52 = vsel %vm2864_vm5, %v10324_v18, %v3205_v49 }
 0x2e7   :  { %v10406_v20 = vsel %vm2698_vm11, %v1965_v45, %v3039_v0  ;;  %v12863_v55 = vmax.f32 %v12861_v60, %v12862_v36  ;;  %v8179_v45 = vld [vmem:[%s12480_s0 + $0x478] sm:$0xff]  ;;  %v10427_v0 = vsel %vm2786_vm1, %v10257_v46, %v10290_v7  ;;  %v8082_v36 = vld [vmem:[%s12480_s0 + $0x170] sm:$0xff]  ;;  %vm2890_vm13 = vcmp.gt.f32.partialorder %v2445_v50, 0.0 }
 0x2e8   :  { %v2314_v27 = vpop.f32.mrf.mxu2  ;;  %v10418_v12 = vmax.f32 %v4764_v39, %v10382_v30  ;;  %12864 = vst [vmem:[#allocation19_spill] sm:$0xff] %v10427_v0  ;;  %v8152_v39 = vld [vmem:[%s12480_s0 + $0x3a0] sm:$0xff]  ;;  %7826 = vmatmul.msk.bf16.gmra.mxu3 %vm1253_vm2, %v8179_v45  ;;  %v10447_v21 = vsel %vm2888_vm12, %v2440_v58, %v3229_v3  ;;  %v4583_v18 = vmax.f32 %v10427_v0, %v3491_v23  ;;  %vm2813_vm0 = vcmp.gt.f32.partialorder %v2253_v2, 0.0 }
 0x2e9   :  { %v10415_v47 = vmax.f32 %v12863_v55, %v10406_v20  ;;  %v2315_v60 = vadd.f32 %v10196_v31, %v2314_v27  ;;  %v3231_v55 = vmul.f32 %v10218_v38, %v2445_v50  ;;  %12865 = vst [vmem:[#allocation64_spill] sm:$0xff] %v10447_v21  ;;  %v3154_v49 = vmul.f32 %v10218_v38, %v2253_v2 }
 0x2ea   :  { %v1967_v29 = vpop.f32.mrf.mxu0  ;;  %v3206_v46 = vmul.f32 %v10218_v38, %v2383_v28  ;;  %v2448_v7 = vadd.f32 %v10196_v31, %v10344_v43  ;;  %v12867_v23 = vmax.f32 %v10338_v4, %v10296_v32  ;;  %vm2865_vm3 = vcmp.gt.f32.partialorder %v2383_v28, 0.0 }
 0x2eb   :  { %vm2838_vm14 = vcmp.gt.f32.partialorder %v2315_v60, 0.0  ;;  %v3179_v27 = vmul.f32 %v10218_v38, %v2315_v60  ;;  %v1968_v13 = vadd.f32 %v10196_v31, %v1967_v29  ;;  %v10459_v3 = vsel %vm2890_vm13, %v2445_v50, %v3231_v55  ;;  %v10461_v58 = vpop.f32.mrf.mxu3  ;;  %v12870_v55 = vld [vmem:[#allocation23_spill] sm:$0xff]  ;;  %v12880_v50 = vld [vmem:[#allocation89_spill] sm:$0xff] }
 0x2ec   :  { %12866 = vst [vmem:[#allocation86_spill] sm:$0xff] %v10459_v3  ;;  %v10467_v29 = vmax.f32 %v12867_v23, %v10447_v21  ;;  %vm2891_vm4 = vcmp.gt.f32.partialorder %v2448_v7, 0.0 }
 0x2ed   :  { %v3517_v35 = vsel %vm2838_vm14, %v2315_v60, %v3179_v27  ;;  %vm2699_vm15 = vcmp.gt.f32.partialorder %v1968_v13, 0.0  ;;  %v3040_v45 = vmul.f32 %v10218_v38, %v1968_v13  ;;  %7729 = vmatmul.msk.bf16.gmra.mxu0 %vm1253_vm2, %v8082_v36  ;;  %7799 = vmatmul.msk.bf16.gmra.mxu2 %vm1253_vm2, %v8152_v39  ;;  %v12868_v27 = vld [vmem:[#allocation90_spill] sm:$0xff]  ;;  %v12869_v39 = vld [vmem:[#allocation85_spill] sm:$0xff] }
 0x2ee   :  { %v10469_v43 = vmax.f32 %v4583_v18, %v3517_v35  ;;  %v4765_v60 = vmax.f32 %v3517_v35, %v3543_v52  ;;  %v2255_v24 = vadd.f32 %v10196_v31, %v12868_v27  ;;  %v12871_v30 = vmax.f32 %v12869_v39, %v12870_v55 }
 0x2ef   :  { %v10473_v36 = vsel %vm2699_vm15, %v1968_v13, %v3040_v45  ;;  %v3232_v35 = vmul.f32 %v10218_v38, %v2448_v7  ;;  %v3492_v52 = vsel %vm2813_vm0, %v2253_v2, %v3154_v49  ;;  %v3544_v13 = vsel %vm2865_vm3, %v2383_v28, %v3206_v46  ;;  %v12874_v49 = vld [vmem:[#allocation70_spill] sm:$0xff] }
 0x2f0   :  { %v4158_v6 = vmax.f32 %v12871_v30, %v10473_v36  ;;  %v2317_v32 = vpop.f32.mrf.mxu2  ;;  %v10482_v4 = vmax.f32 %v4765_v60, %v10459_v3  ;;  %v12872_v45 = vmax.f32 %v10249_v5, %v10364_v56  ;;  %v12873_v30 = vld [vmem:[#allocation80_spill] sm:$0xff]  ;;  %v3155_v28 = vmul.f32 %v10218_v38, %v2255_v24 }
 0x2f1   :  { %v2318_v18 = vadd.f32 %v10196_v31, %v2317_v32  ;;  %v2385_v55 = vadd.f32 %v10196_v31, %v12873_v30  ;;  %v4584_v32 = vmax.f32 %v12874_v49, %v3492_v52  ;;  %v10497_v46 = vsel %vm2891_vm4, %v2448_v7, %v3232_v35 }
 0x2f2   :  { %v5588_v23 = vmax.f32 %v12872_v45, %v4158_v6  ;;  %v1969_v27 = vpop.f32.mrf.mxu0  ;;  %12875 = vst [vmem:[#allocation18_spill] sm:$0xff] %v10497_v46  ;;  %v2450_v6 = vadd.f32 %v10196_v31, %v10389_v15  ;;  %vm2814_vm6 = vcmp.gt.f32.partialorder %v2255_v24, 0.0  ;;  %v12878_v15 = vmax.f32 %v10281_v37, %v10397_v51  ;;  %v8083_v37 = vld [vmem:[%s12480_s0 + $0x178] sm:$0xff] }
 0x2f3   :  { %vm2839_vm1 = vcmp.gt.f32.partialorder %v2318_v18, 0.0  ;;  %v3180_v60 = vmul.f32 %v10218_v38, %v2318_v18  ;;  %v1970_v2 = vadd.f32 %v10196_v31, %v1969_v27  ;;  %v10502_v45 = vpop.f32.mrf.mxu3  ;;  %vm2866_vm7 = vcmp.gt.f32.partialorder %v2385_v55, 0.0  ;;  %v12876_v27 = vld [vmem:[#allocation84_spill] sm:$0xff] }
 0x2f4   :  { %v3207_v52 = vmul.f32 %v10218_v38, %v2385_v55  ;;  %v2388_v7 = vadd.f32 %v10196_v31, %v12876_v27  ;;  %v3233_v51 = vmul.f32 %v10218_v38, %v2450_v6  ;;  %vm2892_vm8 = vcmp.gt.f32.partialorder %v2450_v6, 0.0 }
 0x2f5   :  { %v3518_v5 = vsel %vm2839_vm1, %v2318_v18, %v3180_v60  ;;  %vm2700_vm5 = vcmp.gt.f32.partialorder %v1970_v2, 0.0  ;;  %v3041_v56 = vmul.f32 %v10218_v38, %v1970_v2  ;;  %v12877_v18 = vld [vmem:[#allocation92_spill] sm:$0xff] }
 0x2f6   :  { %v10504_v30 = vmax.f32 %v4584_v32, %v3518_v5  ;;  %v4766_v39 = vmax.f32 %v3518_v5, %v3544_v13  ;;  %v2258_v60 = vadd.f32 %v10196_v31, %v12877_v18  ;;  %v12879_v32 = vld [vmem:[#allocation88_spill] sm:$0xff]  ;;  %v5600_v18 = vpack.c.bf16 %v5588_v23, %v5588_v23 }
 0x2f7   :  { %v10509_v35 = vsel %vm2700_vm5, %v1970_v2, %v3041_v56  ;;  %v12881_v13 = vmax.f32 %v12879_v32, %v12880_v50  ;;  %v8180_v2 = vld [vmem:[%s12480_s0 + $0x480] sm:$0xff]  ;;  %v3493_v56 = vsel %vm2814_vm6, %v2255_v24, %v3155_v28  ;;  %v12882_v50 = vmax.f32 %v10306_v44, %v10415_v47  ;;  %v12885_v28 = vld [vmem:[#allocation75_spill] sm:$0xff] }
 0x2f8   :  { %v5258_v49 = vmax.f32 %v12878_v15, %v10504_v30  ;;  %v2319_v3 = vpop.f32.mrf.mxu2  ;;  %v10522_v21 = vmax.f32 %v4766_v39, %v10497_v46  ;;  %v12884_v32 = vmax.f32 %v10395_v22, %v10418_v12  ;;  %7827 = vmatmul.msk.bf16.gmra.mxu3 %vm1253_vm2, %v8180_v2  ;;  %v3156_v44 = vmul.f32 %v10218_v38, %v2258_v60 }
 0x2f9   :  { %v4159_v5 = vmax.f32 %v12881_v13, %v10509_v35  ;;  %v2320_v27 = vadd.f32 %v10196_v31, %v2319_v3  ;;  %v3545_v3 = vsel %vm2866_vm7, %v2385_v55, %v3207_v52  ;;  %v4585_v13 = vmax.f32 %v12885_v28, %v3493_v56 }
 0x2fa   :  { %v10535_v39 = vpop.f32.mrf.mxu0  ;;  %v10541_v24 = vmax.f32 %v12884_v32, %v10522_v21  ;;  %v3208_v47 = vmul.f32 %v10218_v38, %v2388_v7  ;;  %vm2815_vm11 = vcmp.gt.f32.partialorder %v2258_v60, 0.0  ;;  %v10550_v12 = vsel %vm2892_vm8, %v2450_v6, %v3233_v51  ;;  %v12888_v51 = vld [vmem:[#allocation96_spill] sm:$0xff] }
 0x2fb   :  { %v5589_v15 = vmax.f32 %v12882_v50, %v4159_v5  ;;  %12883 = vst [vmem:[#allocation81_spill] sm:$0xff] %v10535_v39  ;;  %vm2840_vm10 = vcmp.gt.f32.partialorder %v2320_v27, 0.0  ;;  %v3181_v23 = vmul.f32 %v10218_v38, %v2320_v27  ;;  %v2453_v2 = vadd.f32 %v10196_v31, %v10461_v58  ;;  %v2457_v55 = vpop.f32.mrf.mxu3 }
 0x2fc   :  { %12886 = vst [vmem:[#allocation21_spill] sm:$0xff] %v10550_v12  ;;  %v5702_v52 = vunpack.c.l.b16 %v5600_v18  ;;  %vm2867_vm12 = vcmp.gt.f32.partialorder %v2388_v7, 0.0  ;;  %v3494_v28 = vsel %vm2815_vm11, %v2258_v60, %v3156_v44  ;;  %v5270_v0 = vpack.c.bf16 %v5258_v49, %v5258_v49 }
 0x2fd   :  { %v5601_v5 = vpack.c.bf16 %v5589_v15, %v5589_v15  ;;  %v3519_v50 = vsel %vm2840_vm10, %v2320_v27, %v3181_v23  ;;  %7730 = vmatmul.msk.bf16.gmra.mxu0 %vm1253_vm2, %v8083_v37  ;;  %v12887_v27 = vmax.f32 %v10348_v16, %v10469_v43  ;;  %v2260_v23 = vadd.f32 %v10196_v31, %v12888_v51  ;;  %v12890_v16 = vld [vmem:[#allocation87_spill] sm:$0xff] }
 0x2fe   :  { %v10554_v32 = vmax.f32 %v4585_v13, %v3519_v50  ;;  %v4767_v46 = vmax.f32 %v3519_v50, %v3545_v3  ;;  %v3234_v3 = vmul.f32 %v10218_v38, %v2453_v2  ;;  %v3546_v13 = vsel %vm2867_vm12, %v2388_v7, %v3208_v47  ;;  %v12892_v50 = vld [vmem:[#allocation6_spill] sm:$0xff] }
 0x2ff   :  { %v5703_v56 = vunpack.c.l.b16 %v5601_v5  ;;  %vm2893_vm13 = vcmp.gt.f32.partialorder %v2453_v2, 0.0  ;;  %v2390_v43 = vadd.f32 %v10196_v31, %v12890_v16  ;;  %v4586_v7 = vmax.f32 %v12892_v50, %v3494_v28 }
 0x300   :  { %v5259_v15 = vmax.f32 %v12887_v27, %v10554_v32  ;;  %v2322_v37 = vpop.f32.mrf.mxu2  ;;  %v10564_v18 = vmax.f32 %v4767_v46, %v10550_v12  ;;  %v12891_v46 = vmax.f32 %v10467_v29, %v10482_v4  ;;  %v10580_v47 = vunpack.c.l.b16 %v5270_v0 }
 0x301   :  { %v5769_v6 = vpack.c.b16 %v5703_v56, %v5702_v52  ;;  %v2323_v58 = vadd.f32 %v10196_v31, %v2322_v37  ;;  %v3157_v56 = vmul.f32 %v10218_v38, %v2260_v23  ;;  %v2455_v37 = vadd.f32 %v10196_v31, %v10502_v45  ;;  %v8181_v45 = vld [vmem:[%s12480_s0 + $0x488] sm:$0xff] }
 0x302   :  { %v5271_v60 = vpack.c.bf16 %v5259_v15, %v5259_v15  ;;  %v10567_v49 = vpop.f32.mrf.mxu0  ;;  %v10577_v5 = vmax.f32 %v12891_v46, %v10564_v18  ;;  %12893 = vst [vmem:[#allocation85_spill] sm:$0xff] %v10580_v47  ;;  %v10585_v15 = vsel %vm2893_vm13, %v2453_v2, %v3234_v3  ;;  %vm2816_vm15 = vcmp.gt.f32.partialorder %v2260_v23, 0.0 }
 0x303   :  { %12889 = vst [vmem:[#allocation90_spill] sm:$0xff] %v10567_v49  ;;  %7865 = vmatmul.msk.bf16.gmra.mxu1 %vm5811_vm9, %v5769_v6  ;;  %vm2841_vm14 = vcmp.gt.f32.partialorder %v2323_v58, 0.0  ;;  %v3182_v44 = vmul.f32 %v10218_v38, %v2323_v58  ;;  %v2459_v6 = vpop.f32.mrf.mxu3  ;;  %v3209_v0 = vmul.f32 %v10218_v38, %v2390_v43  ;;  %vm2868_vm0 = vcmp.gt.f32.partialorder %v2390_v43, 0.0  ;;  %v12909_v49 = vld [vmem:[#allocation42_spill] sm:$0xff] }
 0x304   :  { %v10582_v52 = vunpack.c.l.b16 %v5271_v60  ;;  %12895 = vst [vmem:[#allocation80_spill] sm:$0xff] %v10585_v15  ;;  %v3495_v3 = vsel %vm2816_vm15, %v2260_v23, %v3157_v56  ;;  %vm2894_vm3 = vcmp.gt.f32.partialorder %v2455_v37, 0.0  ;;  %v2458_v50 = vadd.f32 %v10196_v31, %v2457_v55 }
 0x305   :  { %v3520_v27 = vsel %vm2841_vm14, %v2323_v58, %v3182_v44  ;;  %v8084_v44 = vld [vmem:[%s12480_s0 + $0x180] sm:$0xff]  ;;  %v3547_v23 = vsel %vm2868_vm0, %v2390_v43, %v3209_v0  ;;  %v2265_v55 = vadd.f32 %v10196_v31, %v9820_v25 }
 0x306   :  { %12894 = vst [vmem:[#allocation23_spill] sm:$0xff] %v10582_v52  ;;  %v10589_v51 = vmax.f32 %v4586_v7, %v3520_v27  ;;  %v4768_v4 = vmax.f32 %v3520_v27, %v3546_v13  ;;  %v2263_v13 = vadd.f32 %v10196_v31, %v9801_v34  ;;  %v12897_v7 = vld [vmem:[#allocation91_spill] sm:$0xff]  ;;  %v12898_v27 = vld [vmem:[#allocation72_spill] sm:$0xff]  ;;  %vm2895_vm6 = vcmp.gt.f32.partialorder %v2458_v50, 0.0 }
 0x307   :  { %v2393_v34 = vadd.f32 %v10196_v31, %v12897_v7  ;;  %vm2818_vm8 = vcmp.gt.f32.partialorder %v2265_v55, 0.0 }
 0x308   :  { %v5294_v60 = vmax.f32 %v10504_v30, %v10589_v51  ;;  %v2324_v58 = vpop.f32.mrf.mxu2  ;;  %v10597_v2 = vmax.f32 %v4768_v4, %v10585_v15  ;;  %v3235_v30 = vmul.f32 %v10218_v38, %v2455_v37  ;;  %7828 = vmatmul.msk.bf16.gmra.mxu3 %vm1253_vm2, %v8181_v45  ;;  %v4587_v51 = vmax.f32 %v12898_v27, %v3495_v3  ;;  %v12904_v3 = vld [vmem:[#allocation38_spill] sm:$0xff] }
 0x309   :  { %v2325_v16 = vadd.f32 %v10196_v31, %v2324_v58  ;;  %v3158_v4 = vmul.f32 %v10218_v38, %v2263_v13  ;;  %vm2817_vm1 = vcmp.gt.f32.partialorder %v2263_v13, 0.0  ;;  %v3210_v45 = vmul.f32 %v10218_v38, %v2393_v34 }
 0x30a   :  { %v10609_v46 = vpop.f32.mrf.mxu0  ;;  %v10620_v28 = vsel %vm2894_vm3, %v2455_v37, %v3235_v30  ;;  %vm2869_vm5 = vcmp.gt.f32.partialorder %v2393_v34, 0.0  ;;  %v3236_v30 = vmul.f32 %v10218_v38, %v2458_v50 }
 0x30b   :  { %12896 = vst [vmem:[#allocation70_spill] sm:$0xff] %v10609_v46  ;;  %vm2842_vm4 = vcmp.gt.f32.partialorder %v2325_v16, 0.0  ;;  %v3183_v56 = vmul.f32 %v10218_v38, %v2325_v16  ;;  %v10623_v47 = vpop.f32.mrf.mxu3  ;;  %v3496_v37 = vsel %vm2817_vm1, %v2263_v13, %v3158_v4  ;;  %v8153_v13 = vld [vmem:[%s12480_s0 + $0x3a8] sm:$0xff]  ;;  %v3548_v4 = vsel %vm2869_vm5, %v2393_v34, %v3210_v45 }
 0x30c   :  { %12899 = vst [vmem:[#allocation84_spill] sm:$0xff] %v10620_v28  ;;  %v4588_v52 = vmax.f32 %v12904_v3, %v3496_v37  ;;  %7800 = vmatmul.msk.bf16.gmra.mxu2 %vm1253_vm2, %v8153_v13  ;;  %v10654_v15 = vsel %vm2895_vm6, %v2458_v50, %v3236_v30  ;;  %v2460_v34 = vadd.f32 %v10196_v31, %v2459_v6  ;;  %v12906_v37 = vld [vmem:[#allocation98_spill] sm:$0xff] }
 0x30d   :  { %v3521_v58 = vsel %vm2842_vm4, %v2325_v16, %v3183_v56  ;;  %7731 = vmatmul.msk.bf16.gmra.mxu0 %vm1253_vm2, %v8084_v44  ;;  %v12900_v56 = vld [vmem:[#allocation94_spill] sm:$0xff]  ;;  %12905 = vst [vmem:[#allocation88_spill] sm:$0xff] %v10654_v15  ;;  %v2268_v3 = vadd.f32 %v10196_v31, %v9844_v57  ;;  %v2398_v13 = vadd.f32 %v10196_v31, %v12906_v37 }
 0x30e   :  { %v10625_v43 = vmax.f32 %v4587_v51, %v3521_v58  ;;  %v4769_v0 = vmax.f32 %v3521_v58, %v3547_v23  ;;  %v2395_v23 = vadd.f32 %v10196_v31, %v12900_v56  ;;  %v12902_v58 = vld [vmem:[#allocation2_spill] sm:$0xff]  ;;  %v3159_v51 = vmul.f32 %v10218_v38, %v2265_v55 }
 0x30f   :  { %v12907_v37 = vmax.f32 %v10522_v21, %v10597_v2  ;;  %vm2896_vm12 = vcmp.gt.f32.partialorder %v2460_v34, 0.0  ;;  %vm2819_vm15 = vcmp.gt.f32.partialorder %v2268_v3, 0.0  ;;  %vm2871_vm0 = vcmp.gt.f32.partialorder %v2398_v13, 0.0 }
 0x310   :  { %v2327_v7 = vpop.f32.mrf.mxu2  ;;  %v10631_v16 = vmax.f32 %v4769_v0, %v10620_v28  ;;  %v2050_v0 = vadd.f32 %v10196_v31, %v12902_v58  ;;  %v3211_v12 = vmul.f32 %v10218_v38, %v2395_v23  ;;  %vm2870_vm10 = vcmp.gt.f32.partialorder %v2395_v23, 0.0 }
 0x311   :  { %v2328_v44 = vadd.f32 %v10196_v31, %v2327_v7  ;;  %v12903_v7 = vld [vmem:[#allocation3_spill] sm:$0xff]  ;;  %v3497_v30 = vsel %vm2818_vm8, %v2265_v55, %v3159_v51  ;;  %v3160_v55 = vmul.f32 %v10218_v38, %v2268_v3  ;;  %v3212_v51 = vmul.f32 %v10218_v38, %v2398_v13 }
 0x312   :  { %v10639_v27 = vpop.f32.mrf.mxu0  ;;  %v2055_v56 = vadd.f32 %v10196_v31, %v12903_v7  ;;  %vm2732_vm11 = vcmp.gt.f32.partialorder %v2050_v0, 0.0  ;;  %v3549_v7 = vsel %vm2870_vm10, %v2395_v23, %v3211_v12  ;;  %v4589_v12 = vmax.f32 %v12909_v49, %v3497_v30 }
 0x313   :  { %12901 = vst [vmem:[#allocation92_spill] sm:$0xff] %v10639_v27  ;;  %vm2843_vm7 = vcmp.gt.f32.partialorder %v2328_v44, 0.0  ;;  %v3184_v25 = vmul.f32 %v10218_v38, %v2328_v44  ;;  %v10657_v45 = vpop.f32.mrf.mxu3  ;;  %v2400_v21 = vadd.f32 %v10196_v31, %v9808_v61  ;;  %v3498_v39 = vsel %vm2819_vm15, %v2268_v3, %v3160_v55 }
 0x314   :  { %vm2734_vm14 = vcmp.gt.f32.partialorder %v2055_v56, 0.0  ;;  %v3550_v61 = vsel %vm2871_vm0, %v2398_v13, %v3212_v51  ;;  %v12916_v51 = vmax.f32 %v10564_v18, %v10631_v16  ;;  %v2465_v18 = vadd.f32 %v10196_v31, %v10657_v45 }
 0x315   :  { %v3522_v28 = vsel %vm2843_vm7, %v2328_v44, %v3184_v25  ;;  %v3237_v25 = vmul.f32 %v10218_v38, %v2460_v34  ;;  %vm2872_vm3 = vcmp.gt.f32.partialorder %v2400_v21, 0.0  ;;  %v3213_v13 = vmul.f32 %v10218_v38, %v2400_v21 }
 0x316   :  { %v10660_v58 = vmax.f32 %v4588_v52, %v3522_v28  ;;  %v4770_v27 = vmax.f32 %v3522_v28, %v3548_v4  ;;  %v8182_v52 = vld [vmem:[%s12480_s0 + $0x490] sm:$0xff]  ;;  %v3073_v28 = vmul.f32 %v10218_v38, %v2050_v0  ;;  %v8085_v4 = vld [vmem:[%s12480_s0 + $0x188] sm:$0xff]  ;;  %vm2898_vm10 = vcmp.gt.f32.partialorder %v2465_v18, 0.0 }
 0x317   :  { %v10694_v23 = vsel %vm2896_vm12, %v2460_v34, %v3237_v25  ;;  %v12913_v34 = vld [vmem:[#allocation31_spill] sm:$0xff] }
 0x318   :  { %v5342_v50 = vmax.f32 %v5294_v60, %v10660_v58  ;;  %v2329_v44 = vpop.f32.mrf.mxu2  ;;  %v10668_v6 = vmax.f32 %v4770_v27, %v10654_v15  ;;  %v3075_v60 = vmul.f32 %v10218_v38, %v2055_v56  ;;  %7829 = vmatmul.msk.bf16.gmra.mxu3 %vm1253_vm2, %v8182_v52  ;;  %12910 = vst [vmem:[#allocation75_spill] sm:$0xff] %v10694_v23 }
 0x319   :  { %v2330_v57 = vadd.f32 %v10196_v31, %v2329_v44  ;;  %v2463_v52 = vadd.f32 %v10196_v31, %v10623_v47  ;;  %v10703_v49 = vsel %vm2732_vm11, %v2050_v0, %v3073_v28  ;;  %v2403_v25 = vadd.f32 %v10196_v31, %v12913_v34 }
 0x31a   :  { %v1982_v27 = vpop.f32.mrf.mxu0  ;;  %v10684_v15 = vmax.f32 %v12907_v37, %v10668_v6  ;;  %v10705_v30 = vsel %vm2734_vm14, %v2055_v56, %v3075_v60  ;;  %v12914_v47 = vmax.f32 %v10554_v32, %v10625_v43  ;;  %v5354_v0 = vpack.c.bf16 %v5342_v50, %v5342_v50  ;;  %v8154_v32 = vld [vmem:[%s12480_s0 + $0x3b0] sm:$0xff]  ;;  %v12915_v43 = vld [vmem:[#allocation39_spill] sm:$0xff] }
 0x31b   :  { %vm2844_vm13 = vcmp.gt.f32.partialorder %v2330_v57, 0.0  ;;  %v3185_v44 = vmul.f32 %v10218_v38, %v2330_v57  ;;  %v10698_v37 = vpop.f32.mrf.mxu3  ;;  %12911 = vst [vmem:[#allocation96_spill] sm:$0xff] %v10705_v30  ;;  %v3238_v3 = vmul.f32 %v10218_v38, %v2463_v52  ;;  %v1983_v60 = vadd.f32 %v10196_v31, %v1982_v27 }
 0x31c   :  { %12908 = vst [vmem:[#allocation89_spill] sm:$0xff] %v10684_v15  ;;  %vm2897_vm4 = vcmp.gt.f32.partialorder %v2463_v52, 0.0  ;;  %v2273_v27 = vadd.f32 %v10196_v31, %v9883_v62  ;;  %v3214_v34 = vmul.f32 %v10218_v38, %v2403_v25  ;;  %7801 = vmatmul.msk.bf16.gmra.mxu2 %vm1253_vm2, %v8154_v32  ;;  %vm2873_vm6 = vcmp.gt.f32.partialorder %v2403_v25, 0.0 }
 0x31d   :  { %v3523_v2 = vsel %vm2844_vm13, %v2330_v57, %v3185_v44  ;;  %7732 = vmatmul.msk.bf16.gmra.mxu0 %vm1253_vm2, %v8085_v4  ;;  %v12912_v57 = vld [vmem:[#allocation34_spill] sm:$0xff]  ;;  %v3046_v62 = vmul.f32 %v10218_v38, %v1983_v60  ;;  %vm2705_vm7 = vcmp.gt.f32.partialorder %v1983_v60, 0.0 }
 0x31e   :  { %v10700_v15 = vmax.f32 %v4589_v12, %v3523_v2  ;;  %v4771_v46 = vmax.f32 %v3523_v2, %v3549_v7  ;;  %v2270_v4 = vadd.f32 %v10196_v31, %v12912_v57  ;;  %vm2821_vm8 = vcmp.gt.f32.partialorder %v2273_v27, 0.0 }
 0x320   :  { %v5343_v44 = vmax.f32 %v12914_v47, %v10700_v15  ;;  %v2332_v12 = vpop.f32.mrf.mxu2  ;;  %v10716_v7 = vmax.f32 %v4771_v46, %v10694_v23  ;;  %v4590_v46 = vmax.f32 %v12915_v43, %v3498_v39  ;;  %v3161_v57 = vmul.f32 %v10218_v38, %v2270_v4  ;;  %v10740_v39 = vpop.f32.mrf.mxu1 }
 0x321   :  { %v2333_v56 = vadd.f32 %v10196_v31, %v2332_v12  ;;  %12918 = vst [vmem:[#allocation6_spill] sm:$0xff] %v10740_v39  ;;  %v10744_v43 = vsel %vm2897_vm4, %v2463_v52, %v3238_v3  ;;  %vm2820_vm5 = vcmp.gt.f32.partialorder %v2270_v4, 0.0  ;;  %v3162_v52 = vmul.f32 %v10218_v38, %v2273_v27 }
 0x322   :  { %v5355_v28 = vpack.c.bf16 %v5343_v44, %v5343_v44  ;;  %v1984_v55 = vpop.f32.mrf.mxu0  ;;  %v10731_v2 = vmax.f32 %v12916_v51, %v10716_v7  ;;  %v10742_v44 = vunpack.c.l.b16 %v5354_v0  ;;  %12920 = vst [vmem:[#allocation72_spill] sm:$0xff] %v10744_v43  ;;  %v10774_v0 = vsel %vm2873_vm6, %v2403_v25, %v3214_v34 }
 0x323   :  { %vm2845_vm1 = vcmp.gt.f32.partialorder %v2333_v56, 0.0  ;;  %v3186_v50 = vmul.f32 %v10218_v38, %v2333_v56  ;;  %v10748_v16 = vpop.f32.mrf.mxu3  ;;  %v3384_v3 = vsel %vm2705_vm7, %v1983_v60, %v3046_v62  ;;  %v3500_v23 = vsel %vm2821_vm8, %v2273_v27, %v3162_v52 }
 0x324   :  { %v10738_v47 = vunpack.c.l.b16 %v5355_v28  ;;  %12919 = vst [vmem:[#allocation91_spill] sm:$0xff] %v10742_v44  ;;  %v3551_v28 = vsel %vm2872_vm3, %v2400_v21, %v3213_v13  ;;  %v8183_v21 = vld [vmem:[%s12480_s0 + $0x498] sm:$0xff]  ;;  %v2468_v25 = vadd.f32 %v10196_v31, %v10698_v37 }
 0x325   :  { %v3524_v12 = vsel %vm2845_vm1, %v2333_v56, %v3186_v50  ;;  %v12921_v56 = vld [vmem:[#allocation28_spill] sm:$0xff] }
 0x326   :  { %12917 = vst [vmem:[#allocation87_spill] sm:$0xff] %v10738_v47  ;;  %v10751_v51 = vmax.f32 %v4590_v46, %v3524_v12  ;;  %v4772_v32 = vmax.f32 %v3524_v12, %v3550_v61  ;;  %v10759_v45 = vadd.f32 %v10196_v31, %v12921_v56  ;;  %v3499_v61 = vsel %vm2820_vm5, %v2270_v4, %v3161_v57  ;;  %v8086_v12 = vld [vmem:[%s12480_s0 + $0x190] sm:$0xff]  ;;  %v12922_v47 = vld [vmem:[#allocation43_spill] sm:$0xff] }
 0x327   :  { %v3239_v56 = vmul.f32 %v10218_v38, %v2465_v18  ;;  %v1985_v4 = vadd.f32 %v10196_v31, %v1984_v55  ;;  %vm2899_vm15 = vcmp.gt.f32.partialorder %v2468_v25, 0.0 }
 0x328   :  { %v2334_v50 = vpop.f32.mrf.mxu2  ;;  %v10764_v46 = vmax.f32 %v4772_v32, %v10744_v43  ;;  %7830 = vmatmul.msk.bf16.gmra.mxu3 %vm1253_vm2, %v8183_v21  ;;  %v4591_v43 = vmax.f32 %v12922_v47, %v3499_v61  ;;  %vm2874_vm12 = vcmp.gt.f32.partialorder %v10759_v45, 0.0  ;;  %v12924_v47 = vld [vmem:[#allocation32_spill] sm:$0xff]  ;;  %v3215_v37 = vmul.f32 %v10218_v38, %v10759_v45  ;;  %v10799_v61 = vpop.f32.mrf.mxu1  ;;  %v12930_v32 = vld [vmem:[#allocation29_spill] sm:$0xff] }
 0x329   :  { %v2335_v13 = vadd.f32 %v10196_v31, %v2334_v50  ;;  %v10788_v55 = vsel %vm2898_vm10, %v2465_v18, %v3239_v56  ;;  %v4216_v27 = vmax.f32 %v12924_v47, %v3384_v3  ;;  %12925 = vst [vmem:[#allocation2_spill] sm:$0xff] %v10799_v61  ;;  %vm2706_vm14 = vcmp.gt.f32.partialorder %v1985_v4, 0.0 }
 0x32a   :  { %v1987_v44 = vpop.f32.mrf.mxu0  ;;  %12923 = vst [vmem:[#allocation94_spill] sm:$0xff] %v10788_v55 }
 0x32b   :  { %vm2846_vm11 = vcmp.gt.f32.partialorder %v2335_v13, 0.0  ;;  %v3187_v57 = vmul.f32 %v10218_v38, %v2335_v13  ;;  %v1988_v50 = vadd.f32 %v10196_v31, %v1987_v44  ;;  %v10790_v62 = vpop.f32.mrf.mxu3  ;;  %v2275_v44 = vadd.f32 %v10196_v31, %v9896_v63 }
 0x32d   :  { %v3525_v60 = vsel %vm2846_vm11, %v2335_v13, %v3187_v57  ;;  %vm2707_vm13 = vcmp.gt.f32.partialorder %v1988_v50, 0.0  ;;  %v3048_v34 = vmul.f32 %v10218_v38, %v1988_v50  ;;  %7733 = vmatmul.msk.bf16.gmra.mxu0 %vm1253_vm2, %v8086_v12  ;;  %v3047_v13 = vmul.f32 %v10218_v38, %v1985_v4 }
 0x32e   :  { %v10795_v52 = vmax.f32 %v4591_v43, %v3525_v60  ;;  %v4773_v21 = vmax.f32 %v3525_v60, %v3551_v28  ;;  %v3240_v43 = vmul.f32 %v10218_v38, %v2468_v25  ;;  %v12926_v28 = vld [vmem:[#allocation46_spill] sm:$0xff]  ;;  %v10812_v60 = vadd.f32 %v10196_v31, %v9875_v11 }
 0x32f   :  { %v3386_v18 = vsel %vm2707_vm13, %v1988_v50, %v3048_v34  ;;  %v4592_v57 = vmax.f32 %v12926_v28, %v3500_v23  ;;  %v3163_v50 = vmul.f32 %v10218_v38, %v2275_v44  ;;  %v12927_v34 = vld [vmem:[#allocation54_spill] sm:$0xff]  ;;  %v3385_v23 = vsel %vm2706_vm14, %v1985_v4, %v3047_v13 }
 0x330   :  { %v4218_v56 = vmax.f32 %v9877_v17, %v3386_v18  ;;  %v2337_v63 = vpop.f32.mrf.mxu2  ;;  %v10806_v3 = vmax.f32 %v4773_v21, %v10788_v55  ;;  %v10817_v12 = vmax.f32 %v4216_v27, %v12927_v34  ;;  %v12928_v17 = vld [vmem:[#allocation57_spill] sm:$0xff]  ;;  %vm2822_vm3 = vcmp.gt.f32.partialorder %v2275_v44, 0.0 }
 0x331   :  { %v2338_v47 = vadd.f32 %v10196_v31, %v2337_v63  ;;  %v2278_v28 = vadd.f32 %v10196_v31, %v9921_v19  ;;  %v2470_v4 = vadd.f32 %v10196_v31, %v10748_v16  ;;  %v4217_v19 = vmax.f32 %v12930_v32, %v3385_v23 }
 0x332   :  { %v10820_v18 = vmax.f32 %v4218_v56, %v12928_v17  ;;  %v1989_v21 = vpop.f32.mrf.mxu0  ;;  %v10831_v56 = vsel %vm2899_vm15, %v2468_v25, %v3240_v43  ;;  %v3501_v43 = vsel %vm2822_vm3, %v2275_v44, %v3163_v50  ;;  %vm2875_vm1 = vcmp.gt.f32.partialorder %v10812_v60, 0.0 }
 0x333   :  { %vm2847_vm0 = vcmp.gt.f32.partialorder %v2338_v47, 0.0  ;;  %v3188_v11 = vmul.f32 %v10218_v38, %v2338_v47  ;;  %v1990_v63 = vadd.f32 %v10196_v31, %v1989_v21  ;;  %12929 = vst [vmem:[#allocation3_spill] sm:$0xff] %v10831_v56  ;;  %v10836_v13 = vpop.f32.mrf.mxu3  ;;  %v3553_v21 = vsel %vm2874_vm12, %v10759_v45, %v3215_v37 }
 0x334   :  { %v3164_v27 = vmul.f32 %v10218_v38, %v2278_v28  ;;  %v12932_v45 = vmax.f32 %v10660_v58, %v10751_v51  ;;  %vm2823_vm5 = vcmp.gt.f32.partialorder %v2278_v28, 0.0  ;;  %v10866_v50 = vadd.f32 %v10196_v31, %v9888_v10  ;;  %v8087_v58 = vld [vmem:[%s12480_s0 + $0x198] sm:$0xff] }
 0x335   :  { %v3526_v34 = vsel %vm2847_vm0, %v2338_v47, %v3188_v11  ;;  %vm2708_vm4 = vcmp.gt.f32.partialorder %v1990_v63, 0.0  ;;  %v3049_v17 = vmul.f32 %v10218_v38, %v1990_v63  ;;  %v3216_v47 = vmul.f32 %v10218_v38, %v10812_v60  ;;  %v10848_v11 = vpop.f32.mrf.mxu1 }
 0x336   :  { %v10842_v61 = vmax.f32 %v4592_v57, %v3526_v34  ;;  %v4774_v25 = vmax.f32 %v3526_v34, %v10774_v0  ;;  %12931 = vst [vmem:[#allocation38_spill] sm:$0xff] %v10848_v11  ;;  %v8184_v57 = vld [vmem:[%s12480_s0 + $0x4a0] sm:$0xff]  ;;  %v10874_v51 = vmax.f32 %v4217_v19, %v10703_v49  ;;  %v12933_v10 = vmax.f32 %v10668_v6, %v10764_v46 }
 0x337   :  { %v3387_v16 = vsel %vm2708_vm4, %v1990_v63, %v3049_v17  ;;  %vm2900_vm6 = vcmp.gt.f32.partialorder %v2470_v4, 0.0  ;;  %v10899_v46 = vld [vmem:[%s12478_s2] ss:$0 sm:$0xff]  ;;  %vm2876_vm10 = vcmp.gt.f32.partialorder %v10866_v50, 0.0 }
 0x338   :  { %v10855_v32 = vmax.f32 %v12932_v45, %v10842_v61  ;;  %v4219_v37 = vmax.f32 %v9890_v40, %v3387_v16  ;;  %v2339_v0 = vpop.f32.mrf.mxu2  ;;  %v10859_v44 = vmax.f32 %v4774_v25, %v10831_v56  ;;  %v3241_v40 = vmul.f32 %v10218_v38, %v2470_v4  ;;  %7831 = vmatmul.msk.bf16.gmra.mxu3 %vm1253_vm2, %v8184_v57  ;;  %v12934_v25 = vld [vmem:[#allocation49_spill] sm:$0xff] }
 0x339   :  { %v2340_v23 = vadd.f32 %v10196_v31, %v2339_v0  ;;  %v4593_v16 = vmax.f32 %v12934_v25, %v3501_v43  ;;  %v10892_v0 = vadd.f32 %v10196_v31, %v9913_v54  ;;  %v2473_v43 = vadd.f32 %v10899_v46, %v10790_v62  ;;  %v8219_v57 = vld [vmem:[%s12485_s10 + $0x38] sm:$0xff] }
 0x33a   :  { %v10877_v63 = vmax.f32 %v4219_v37, %v10705_v30  ;;  %v1992_v34 = vpop.f32.mrf.mxu0  ;;  %v10883_v17 = vmax.f32 %v12933_v10, %v10859_v44  ;;  %v3502_v37 = vsel %vm2823_vm5, %v2278_v28, %v3164_v27  ;;  %v3554_v62 = vsel %vm2875_vm1, %v10812_v60, %v3216_v47  ;;  %6684 = vmatpush.bf16.msrb.mxu3 %v8219_v57  ;;  %v12948_v56 = vld [vmem:[#allocation101_spill] sm:$0xff] }
 0x33b   :  { %vm2848_vm7 = vcmp.gt.f32.partialorder %v2340_v23, 0.0  ;;  %v3189_v45 = vmul.f32 %v10218_v38, %v2340_v23  ;;  %v1993_v19 = vadd.f32 %v10196_v31, %v1992_v34  ;;  %v10909_v31 = vsel %vm2900_vm6, %v2470_v4, %v3241_v40  ;;  %v10911_v27 = vpop.f32.mrf.mxu3  ;;  %v12936_v34 = vld [vmem:[#allocation102_spill] sm:$0xff] }
 0x33c   :  { %12935 = vst [vmem:[#allocation98_spill] sm:$0xff] %v10909_v31  ;;  %v2280_v10 = vadd.f32 %v10899_v46, %v12936_v34  ;;  %v10925_v4 = vld [vmem:[%s12479_s3] ss:$0 sm:$0xff]  ;;  %v12938_v60 = vmax.f32 %v10700_v15, %v10795_v52  ;;  %vm2877_vm11 = vcmp.gt.f32.partialorder %v10892_v0, 0.0  ;;  %vm2901_vm12 = vcmp.gt.f32.partialorder %v2473_v43, 0.0 }
 0x33d   :  { %v3527_v28 = vsel %vm2848_vm7, %v2340_v23, %v3189_v45  ;;  %vm2709_vm8 = vcmp.gt.f32.partialorder %v1993_v19, 0.0  ;;  %v3050_v54 = vmul.f32 %v10218_v38, %v1993_v19  ;;  %7734 = vmatmul.msk.bf16.gmra.mxu0 %vm1253_vm2, %v8087_v58  ;;  %v12937_v45 = vld [vmem:[#allocation52_spill] sm:$0xff]  ;;  %v3217_v58 = vmul.f32 %v10925_v4, %v10866_v50  ;;  %v10939_v34 = vpop.f32.mrf.mxu1 }
 0x33e   :  { %v10918_v25 = vmax.f32 %v4593_v16, %v3527_v28  ;;  %v4775_v23 = vmax.f32 %v3527_v28, %v3553_v21  ;;  %v4594_v38 = vmax.f32 %v12937_v45, %v3502_v37  ;;  %v12939_v21 = vld [vmem:[#allocation35_spill] sm:$0xff]  ;;  %v3242_v28 = vmul.f32 %v10925_v4, %v2473_v43  ;;  %12940 = vst [vmem:[#allocation42_spill] sm:$0xff] %v10939_v34  ;;  %v12941_v45 = vld [vmem:[#allocation62_spill] sm:$0xff] }
 0x33f   :  { %v3388_v40 = vsel %vm2709_vm8, %v1993_v19, %v3050_v54  ;;  %v5438_v19 = vpack.c.bf16 %v10855_v32, %v10855_v32  ;;  %vm2824_vm13 = vcmp.gt.f32.partialorder %v2280_v10, 0.0  ;;  %v3165_v15 = vmul.f32 %v10925_v4, %v2280_v10 }
 0x340   :  { %v5427_v47 = vmax.f32 %v12938_v60, %v10918_v25  ;;  %v4220_v16 = vmax.f32 %v12939_v21, %v3388_v40  ;;  %v2342_v57 = vpop.f32.mrf.mxu2  ;;  %v10935_v37 = vmax.f32 %v4775_v23, %v10909_v31  ;;  %v12942_v32 = vmax.f32 %v10716_v7, %v10806_v3 }
 0x341   :  { %v2343_v54 = vadd.f32 %v10899_v46, %v2342_v57  ;;  %v2475_v34 = vadd.f32 %v10899_v46, %v10836_v13  ;;  %v3503_v13 = vsel %vm2824_vm13, %v2280_v10, %v3165_v15  ;;  %v8185_v10 = vld [vmem:[%s12480_s0 + $0x4a8] sm:$0xff]  ;;  %v12950_v15 = vld [vmem:[#allocation56_spill] sm:$0xff] }
 0x342   :  { %v5439_v52 = vpack.c.bf16 %v5427_v47, %v5427_v47  ;;  %v10946_v40 = vmax.f32 %v4220_v16, %v12941_v45  ;;  %v1994_v23 = vpop.f32.mrf.mxu0  ;;  %v10954_v6 = vmax.f32 %v12942_v32, %v10935_v37  ;;  %v12944_v47 = vmax.f32 %v10817_v12, %v10820_v18  ;;  %v12947_v32 = vld [vmem:[#allocation100_spill] sm:$0xff] }
 0x343   :  { %vm2849_vm14 = vcmp.gt.f32.partialorder %v2343_v54, 0.0  ;;  %v3190_v60 = vmul.f32 %v10925_v4, %v2343_v54  ;;  %v1995_v21 = vadd.f32 %v10899_v46, %v1994_v23  ;;  %v10964_v45 = vsel %vm2901_vm12, %v2473_v43, %v3242_v28  ;;  %v10971_v3 = vpop.f32.mrf.mxu3 }
 0x344   :  { %v10956_v57 = vunpack.c.l.b16 %v5439_v52  ;;  %v10962_v16 = vmax.f32 %v12944_v47, %v10946_v40  ;;  %12945 = vst [vmem:[#allocation31_spill] sm:$0xff] %v10964_v45  ;;  %v10968_v23 = vunpack.c.l.b16 %v5438_v19  ;;  %v3218_v52 = vmul.f32 %v10925_v4, %v10892_v0 }
 0x345   :  { %v3528_v31 = vsel %vm2849_vm14, %v2343_v54, %v3190_v60  ;;  %vm2710_vm15 = vcmp.gt.f32.partialorder %v1995_v21, 0.0  ;;  %v3051_v7 = vmul.f32 %v10925_v4, %v1995_v21  ;;  %v10977_v18 = vadd.f32 %v10899_v46, %v12947_v32 }
 0x346   :  { %12943 = vst [vmem:[#allocation34_spill] sm:$0xff] %v10956_v57  ;;  %v10979_v43 = vmax.f32 %v4594_v38, %v3528_v31  ;;  %v4776_v28 = vmax.f32 %v3528_v31, %v3554_v62  ;;  %v2283_v19 = vadd.f32 %v10899_v46, %v9960_v59  ;;  %v3243_v31 = vmul.f32 %v10925_v4, %v2475_v34  ;;  %v10999_v62 = vpop.f32.mrf.mxu1 }
 0x347   :  { %12946 = vst [vmem:[#allocation39_spill] sm:$0xff] %v10968_v23  ;;  %v3389_v54 = vsel %vm2710_vm15, %v1995_v21, %v3051_v7  ;;  %v3555_v59 = vsel %vm2876_vm10, %v10866_v50, %v3217_v58  ;;  %vm2902_vm0 = vcmp.gt.f32.partialorder %v2475_v34, 0.0  ;;  %v4595_v21 = vmax.f32 %v12950_v15, %v3503_v13 }
 0x348   :  { %v4221_v55 = vmax.f32 %v12948_v56, %v3389_v54  ;;  %v2344_v11 = vpop.f32.mrf.mxu2  ;;  %v10990_v32 = vmax.f32 %v4776_v28, %v10964_v45  ;;  %12949 = vst [vmem:[#allocation28_spill] sm:$0xff] %v10999_v62  ;;  %v8088_v56 = vld [vmem:[%s12480_s0 + $0x1a0] sm:$0xff]  ;;  %v11009_v7 = vsel %vm2877_vm11, %v10892_v0, %v3218_v52  ;;  %7832 = vmatmul.msk.bf16.gmra.mxu3 %vm1253_vm2, %v8185_v10  ;;  %vm2825_vm4 = vcmp.gt.f32.partialorder %v2283_v19, 0.0  ;;  %v12969_v45 = vld [vmem:[#allocation105_spill] sm:$0xff] }
 0x349   :  { %v2345_v38 = vadd.f32 %v10899_v46, %v2344_v11  ;;  %v12951_v28 = vld [vmem:[#allocation74_spill] sm:$0xff]  ;;  %v3166_v11 = vmul.f32 %v10925_v4, %v2283_v19  ;;  %vm2878_vm1 = vcmp.gt.f32.partialorder %v10977_v18, 0.0  ;;  %v11025_v52 = vsel %vm2902_vm0, %v2475_v34, %v3243_v31 }
 0x34a   :  { %v11012_v54 = vmax.f32 %v4221_v55, %v12951_v28  ;;  %v1997_v50 = vpop.f32.mrf.mxu0  ;;  %v12952_v55 = vmax.f32 %v10874_v51, %v10877_v63  ;;  %12953 = vst [vmem:[#allocation43_spill] sm:$0xff] %v11025_v52  ;;  %v2478_v10 = vadd.f32 %v10899_v46, %v10911_v27  ;;  %v5266_v58 = vpack.c.bf16 %v10962_v16, %v10962_v16 }
 0x34b   :  { %vm2850_vm3 = vcmp.gt.f32.partialorder %v2345_v38, 0.0  ;;  %v3191_v60 = vmul.f32 %v10925_v4, %v2345_v38  ;;  %v1998_v13 = vadd.f32 %v10899_v46, %v1997_v50  ;;  %v11031_v50 = vpop.f32.mrf.mxu3  ;;  %v2285_v63 = vadd.f32 %v10899_v46, %v9973_v42 }
 0x34c   :  { %v5255_v0 = vmax.f32 %v12952_v55, %v11012_v54  ;;  %v3219_v34 = vmul.f32 %v10925_v4, %v10977_v18  ;;  %vm2903_vm6 = vcmp.gt.f32.partialorder %v2478_v10, 0.0 }
 0x34d   :  { %v3529_v15 = vsel %vm2850_vm3, %v2345_v38, %v3191_v60  ;;  %vm2711_vm5 = vcmp.gt.f32.partialorder %v1998_v13, 0.0  ;;  %v3052_v28 = vmul.f32 %v10925_v4, %v1998_v13  ;;  %7735 = vmatmul.msk.bf16.gmra.mxu0 %vm1253_vm2, %v8088_v56  ;;  %v3504_v60 = vsel %vm2825_vm4, %v2283_v19, %v3166_v11  ;;  %v12954_v11 = vld [vmem:[#allocation59_spill] sm:$0xff] }
 0x34e   :  { %v11039_v31 = vmax.f32 %v4595_v21, %v3529_v15  ;;  %v4777_v27 = vmax.f32 %v3529_v15, %v3555_v59  ;;  %v11043_v38 = vadd.f32 %v10899_v46, %v9952_v53  ;;  %v5267_v55 = vpack.c.bf16 %v5255_v0, %v5255_v0  ;;  %v12955_v15 = vld [vmem:[#allocation9_spill] sm:$0xff] }
 0x34f   :  { %v3390_v56 = vsel %vm2711_vm5, %v1998_v13, %v3052_v28  ;;  %v3244_v21 = vmul.f32 %v10925_v4, %v2478_v10  ;;  %v11053_v19 = vunpack.c.l.b16 %v5266_v58  ;;  %v4596_v13 = vmax.f32 %v12954_v11, %v3504_v60 }
 0x350   :  { %v4222_v16 = vmax.f32 %v9954_v9, %v3390_v56  ;;  %v2347_v23 = vpop.f32.mrf.mxu2  ;;  %v11049_v42 = vmax.f32 %v4777_v27, %v11025_v52  ;;  %v11055_v53 = vunpack.c.l.b16 %v5267_v55  ;;  %v3167_v0 = vmul.f32 %v10925_v4, %v2285_v63  ;;  %v11064_v56 = vpop.f32.mrf.mxu1 }
 0x351   :  { %v2348_v59 = vadd.f32 %v10899_v46, %v2347_v23  ;;  %12956 = vst [vmem:[#allocation32_spill] sm:$0xff] %v11064_v56  ;;  %vm2826_vm8 = vcmp.gt.f32.partialorder %v2285_v63, 0.0  ;;  %v2288_v60 = vadd.f32 %v10899_v46, %v10001_v48  ;;  %v11075_v11 = vsel %vm2903_vm6, %v2478_v10, %v3244_v21 }
 0x352   :  { %v11060_v28 = vmax.f32 %v4222_v16, %v12955_v15  ;;  %v1999_v9 = vpop.f32.mrf.mxu0  ;;  %12957 = vst [vmem:[#allocation46_spill] sm:$0xff] %v11075_v11  ;;  %v3505_v48 = vsel %vm2826_vm8, %v2285_v63, %v3167_v0  ;;  %v3557_v16 = vsel %vm2878_vm1, %v10977_v18, %v3219_v34  ;;  %vm2879_vm11 = vcmp.gt.f32.partialorder %v11043_v38, 0.0  ;;  %v8186_v18 = vld [vmem:[%s12480_s0 + $0x4b0] sm:$0xff] }
 0x353   :  { %vm2851_vm7 = vcmp.gt.f32.partialorder %v2348_v59, 0.0  ;;  %v3192_v23 = vmul.f32 %v10925_v4, %v2348_v59  ;;  %v2000_v58 = vadd.f32 %v10899_v46, %v1999_v9  ;;  %v2480_v9 = vadd.f32 %v10899_v46, %v10971_v3  ;;  %v11080_v47 = vpop.f32.mrf.mxu3 }
 0x354   :  { %v3168_v21 = vmul.f32 %v10925_v4, %v2288_v60  ;;  %v12958_v3 = vmax.f32 %v10842_v61, %v10979_v43  ;;  %vm2827_vm12 = vcmp.gt.f32.partialorder %v2288_v60, 0.0  ;;  %v3220_v63 = vmul.f32 %v10925_v4, %v11043_v38  ;;  %v8089_v61 = vld [vmem:[%s12480_s0 + $0x1a8] sm:$0xff] }
 0x355   :  { %v3530_v15 = vsel %vm2851_vm7, %v2348_v59, %v3192_v23  ;;  %vm2712_vm10 = vcmp.gt.f32.partialorder %v2000_v58, 0.0  ;;  %v3053_v27 = vmul.f32 %v10925_v4, %v2000_v58  ;;  %v12959_v43 = vld [vmem:[#allocation103_spill] sm:$0xff]  ;;  %vm2904_vm13 = vcmp.gt.f32.partialorder %v2480_v9, 0.0 }
 0x356   :  { %v11082_v55 = vmax.f32 %v4596_v13, %v3530_v15  ;;  %v4778_v56 = vmax.f32 %v3530_v15, %v11009_v7  ;;  %v2420_v0 = vadd.f32 %v10899_v46, %v12959_v43  ;;  %v12961_v15 = vmax.f32 %v10859_v44, %v10990_v32 }
 0x357   :  { %v3391_v10 = vsel %vm2712_vm10, %v2000_v58, %v3053_v27  ;;  %v12960_v27 = vld [vmem:[#allocation30_spill] sm:$0xff]  ;;  %v2483_v32 = vadd.f32 %v10899_v46, %v11031_v50 }
 0x358   :  { %v5510_v59 = vmax.f32 %v12958_v3, %v11082_v55  ;;  %v4223_v13 = vmax.f32 %v9967_v26, %v3391_v10  ;;  %v2349_v23 = vpop.f32.mrf.mxu2  ;;  %v11096_v7 = vmax.f32 %v4778_v56, %v11075_v11  ;;  %v3245_v26 = vmul.f32 %v10925_v4, %v2480_v9  ;;  %7833 = vmatmul.msk.bf16.gmra.mxu3 %vm1253_vm2, %v8186_v18  ;;  %v12962_v3 = vld [vmem:[#allocation63_spill] sm:$0xff]  ;;  %v11121_v57 = vpop.f32.mrf.mxu1  ;;  %v12964_v11 = vld [vmem:[#allocation104_spill] sm:$0xff] }
 0x359   :  { %v2350_v34 = vadd.f32 %v10899_v46, %v2349_v23  ;;  %v4597_v23 = vmax.f32 %v12962_v3, %v3505_v48  ;;  %12963 = vst [vmem:[#allocation54_spill] sm:$0xff] %v11121_v57  ;;  %v2423_v52 = vadd.f32 %v10899_v46, %v12964_v11  ;;  %v3558_v11 = vsel %vm2879_vm11, %v11043_v38, %v3220_v63 }
 0x35a   :  { %v11111_v56 = vmax.f32 %v4223_v13, %v12960_v27  ;;  %v2002_v58 = vpop.f32.mrf.mxu0  ;;  %v11117_v10 = vmax.f32 %v12961_v15, %v11096_v7  ;;  %v3506_v27 = vsel %vm2827_vm12, %v2288_v60, %v3168_v21  ;;  %v11134_v15 = vsel %vm2904_vm13, %v2480_v9, %v3245_v26  ;;  %v12966_v60 = vld [vmem:[#allocation67_spill] sm:$0xff] }
 0x35b   :  { %vm2852_vm14 = vcmp.gt.f32.partialorder %v2350_v34, 0.0  ;;  %v3193_v43 = vmul.f32 %v10925_v4, %v2350_v34  ;;  %v2003_v13 = vadd.f32 %v10899_v46, %v2002_v58  ;;  %12965 = vst [vmem:[#allocation57_spill] sm:$0xff] %v11134_v15  ;;  %v11136_v58 = vpop.f32.mrf.mxu3  ;;  %v2290_v21 = vadd.f32 %v10899_v46, %v12966_v60 }
 0x35c   :  { %vm2880_vm0 = vcmp.gt.f32.partialorder %v2420_v0, 0.0  ;;  %v3221_v44 = vmul.f32 %v10925_v4, %v2420_v0  ;;  %v12968_v9 = vmax.f32 %v10918_v25, %v11039_v31  ;;  %v3246_v38 = vmul.f32 %v10925_v4, %v2483_v32  ;;  %v12970_v25 = vld [vmem:[#allocation36_spill] sm:$0xff] }
 0x35d   :  { %v3531_v18 = vsel %vm2852_vm14, %v2350_v34, %v3193_v43  ;;  %vm2713_vm15 = vcmp.gt.f32.partialorder %v2003_v13, 0.0  ;;  %v3054_v48 = vmul.f32 %v10925_v4, %v2003_v13  ;;  %7736 = vmatmul.msk.bf16.gmra.mxu0 %vm1253_vm2, %v8089_v61  ;;  %v12967_v34 = vld [vmem:[#allocation65_spill] sm:$0xff]  ;;  %v5522_v63 = vpack.c.bf16 %v5510_v59, %v5510_v59 }
 0x35e   :  { %v11143_v3 = vmax.f32 %v4597_v23, %v3531_v18  ;;  %v4779_v50 = vmax.f32 %v3531_v18, %v3557_v16  ;;  %v4598_v43 = vmax.f32 %v12967_v34, %v3506_v27  ;;  %v3222_v16 = vmul.f32 %v10925_v4, %v2423_v52 }
 0x35f   :  { %v3392_v61 = vsel %vm2713_vm15, %v2003_v13, %v3054_v48  ;;  %vm2905_vm3 = vcmp.gt.f32.partialorder %v2483_v32, 0.0  ;;  %vm2828_vm4 = vcmp.gt.f32.partialorder %v2290_v21, 0.0  ;;  %v3169_v13 = vmul.f32 %v10925_v4, %v2290_v21 }
 0x360   :  { %v5511_v26 = vmax.f32 %v12968_v9, %v11143_v3  ;;  %v4224_v60 = vmax.f32 %v12969_v45, %v3392_v61  ;;  %v2352_v57 = vpop.f32.mrf.mxu2  ;;  %v11153_v62 = vmax.f32 %v4779_v50, %v11134_v15  ;;  %v12971_v59 = vmax.f32 %v10935_v37, %v11049_v42 }
 0x361   :  { %v2353_v23 = vadd.f32 %v10899_v46, %v2352_v57  ;;  %v12973_v34 = vmax.f32 %v10946_v40, %v11060_v28  ;;  %v11178_v9 = vsel %vm2905_vm3, %v2483_v32, %v3246_v38  ;;  %vm2881_vm6 = vcmp.gt.f32.partialorder %v2423_v52, 0.0  ;;  %v12977_v38 = vld [vmem:[#allocation109_spill] sm:$0xff] }
 0x362   :  { %v5523_v27 = vpack.c.bf16 %v5511_v26, %v5511_v26  ;;  %v11160_v31 = vmax.f32 %v4224_v60, %v12970_v25  ;;  %v2004_v45 = vpop.f32.mrf.mxu0  ;;  %v11168_v50 = vmax.f32 %v12971_v59, %v11153_v62  ;;  %12974 = vst [vmem:[#allocation49_spill] sm:$0xff] %v11178_v9  ;;  %v2485_v26 = vadd.f32 %v10899_v46, %v11080_v47  ;;  %v11182_v60 = vpop.f32.mrf.mxu1 }
 0x363   :  { %vm2853_vm1 = vcmp.gt.f32.partialorder %v2353_v23, 0.0  ;;  %v3194_v18 = vmul.f32 %v10925_v4, %v2353_v23  ;;  %v2005_v48 = vadd.f32 %v10899_v46, %v2004_v45  ;;  %12975 = vst [vmem:[#allocation102_spill] sm:$0xff] %v11182_v60  ;;  %v11184_v25 = vunpack.c.l.b16 %v5522_v63 }
 0x364   :  { %v11170_v57 = vunpack.c.l.b16 %v5523_v27  ;;  %v11176_v61 = vmax.f32 %v12973_v34, %v11160_v31  ;;  %v11187_v27 = vpop.f32.mrf.mxu3  ;;  %v3559_v45 = vsel %vm2880_vm0, %v2420_v0, %v3221_v44  ;;  %v3507_v32 = vsel %vm2828_vm4, %v2290_v21, %v3169_v13  ;;  %v8187_v21 = vld [vmem:[%s12480_s0 + $0x4b8] sm:$0xff] }
 0x365   :  { %12976 = vst [vmem:[#allocation52_spill] sm:$0xff] %v11184_v25  ;;  %v3532_v37 = vsel %vm2853_vm1, %v2353_v23, %v3194_v18  ;;  %vm2714_vm5 = vcmp.gt.f32.partialorder %v2005_v48, 0.0  ;;  %v3055_v42 = vmul.f32 %v10925_v4, %v2005_v48  ;;  %v2293_v47 = vadd.f32 %v10899_v46, %v12977_v38  ;;  %v12978_v18 = vld [vmem:[#allocation106_spill] sm:$0xff]  ;;  %v12981_v38 = vld [vmem:[#allocation107_spill] sm:$0xff]  ;;  %v12986_v25 = vld [vmem:[#allocation112_spill] sm:$0xff] }
 0x366   :  { %12972 = vst [vmem:[#allocation29_spill] sm:$0xff] %v11170_v57  ;;  %v11190_v40 = vmax.f32 %v4598_v43, %v3532_v37  ;;  %v4780_v28 = vmax.f32 %v3532_v37, %v3558_v11  ;;  %v3247_v44 = vmul.f32 %v10925_v4, %v2485_v26  ;;  %v11207_v11 = vsel %vm2881_vm6, %v2423_v52, %v3222_v16  ;;  %v12979_v43 = vld [vmem:[#allocation33_spill] sm:$0xff]  ;;  %v12980_v37 = vld [vmem:[#allocation22_spill] sm:$0xff] }
 0x367   :  { %v3393_v59 = vsel %vm2714_vm5, %v2005_v48, %v3055_v42  ;;  %v11211_v13 = vadd.f32 %v10899_v46, %v12979_v43  ;;  %vm2906_vm7 = vcmp.gt.f32.partialorder %v2485_v26, 0.0  ;;  %v4599_v42 = vmax.f32 %v12980_v37, %v3507_v32 }
 0x368   :  { %v4225_v34 = vmax.f32 %v12978_v18, %v3393_v59  ;;  %v2354_v60 = vpop.f32.mrf.mxu2  ;;  %v11201_v0 = vmax.f32 %v4780_v28, %v11178_v9  ;;  %v2428_v28 = vadd.f32 %v10899_v46, %v12981_v38  ;;  %v12982_v59 = vld [vmem:[#allocation40_spill] sm:$0xff]  ;;  %7834 = vmatmul.msk.bf16.gmra.mxu3 %vm1253_vm2, %v8187_v21  ;;  %v3170_v16 = vmul.f32 %v10925_v4, %v2293_v47 }
 0x369   :  { %v2355_v48 = vadd.f32 %v10899_v46, %v2354_v60  ;;  %vm2829_vm10 = vcmp.gt.f32.partialorder %v2293_v47, 0.0  ;;  %v12983_v32 = vmax.f32 %v11012_v54, %v11111_v56  ;;  %v11230_v37 = vsel %vm2906_vm7, %v2485_v26, %v3247_v44 }
 0x36a   :  { %v11218_v18 = vmax.f32 %v4225_v34, %v12982_v59  ;;  %v2007_v63 = vpop.f32.mrf.mxu0  ;;  %12984 = vst [vmem:[#allocation35_spill] sm:$0xff] %v11230_v37  ;;  %v2488_v38 = vadd.f32 %v10899_v46, %v11136_v58  ;;  %v11234_v59 = vpop.f32.mrf.mxu1  ;;  %v2295_v57 = vadd.f32 %v10899_v46, %v12986_v25  ;;  %vm2883_vm12 = vcmp.gt.f32.partialorder %v2428_v28, 0.0 }
 0x36b   :  { %vm2854_vm8 = vcmp.gt.f32.partialorder %v2355_v48, 0.0  ;;  %v3195_v60 = vmul.f32 %v10925_v4, %v2355_v48  ;;  %v2008_v43 = vadd.f32 %v10899_v46, %v2007_v63  ;;  %12985 = vst [vmem:[#allocation62_spill] sm:$0xff] %v11234_v59  ;;  %v5350_v63 = vpack.c.bf16 %v11176_v61, %v11176_v61 }
 0x36c   :  { %v5339_v34 = vmax.f32 %v12983_v32, %v11218_v18  ;;  %v2492_v23 = vpop.f32.mrf.mxu3  ;;  %v3508_v26 = vsel %vm2829_vm10, %v2293_v47, %v3170_v16  ;;  %v3224_v58 = vmul.f32 %v10925_v4, %v2428_v28  ;;  %vm2882_vm13 = vcmp.gt.f32.partialorder %v11211_v13, 0.0 }
 0x36d   :  { %v3533_v21 = vsel %vm2854_vm8, %v2355_v48, %v3195_v60  ;;  %vm2715_vm11 = vcmp.gt.f32.partialorder %v2008_v43, 0.0  ;;  %v3056_v52 = vmul.f32 %v10925_v4, %v2008_v43  ;;  %v12987_v60 = vld [vmem:[#allocation108_spill] sm:$0xff]  ;;  %v3248_v25 = vmul.f32 %v10925_v4, %v2488_v38 }
 0x36e   :  { %v11241_v54 = vmax.f32 %v4599_v42, %v3533_v21  ;;  %v4781_v56 = vmax.f32 %v3533_v21, %v3559_v45  ;;  %v5351_v32 = vpack.c.bf16 %v5339_v34, %v5339_v34  ;;  %vm2907_vm14 = vcmp.gt.f32.partialorder %v2488_v38, 0.0 }
 0x36f   :  { %v3394_v44 = vsel %vm2715_vm11, %v2008_v43, %v3056_v52  ;;  %v11253_v47 = vunpack.c.l.b16 %v5350_v63  ;;  %v12988_v52 = vld [vmem:[#allocation24_spill] sm:$0xff]  ;;  %vm2830_vm15 = vcmp.gt.f32.partialorder %v2295_v57, 0.0  ;;  %v12989_v43 = vld [vmem:[#allocation37_spill] sm:$0xff] }
 0x370   :  { %v4226_v9 = vmax.f32 %v12987_v60, %v3394_v44  ;;  %v2357_v61 = vpop.f32.mrf.mxu2  ;;  %v11249_v15 = vmax.f32 %v4781_v56, %v11230_v37  ;;  %v11255_v42 = vunpack.c.l.b16 %v5351_v32  ;;  %v4600_v16 = vmax.f32 %v12988_v52, %v3508_v26 }
 0x371   :  { %v2358_v45 = vadd.f32 %v10899_v46, %v2357_v61  ;;  %v3171_v32 = vmul.f32 %v10925_v4, %v2295_v57  ;;  %v11270_v61 = vsel %vm2907_vm14, %v2488_v38, %v3248_v25  ;;  %v2490_v56 = vadd.f32 %v10899_v46, %v11187_v27 }
 0x372   :  { %v11259_v34 = vmax.f32 %v4226_v9, %v12989_v43  ;;  %v2009_v21 = vpop.f32.mrf.mxu0  ;;  %12990 = vst [vmem:[#allocation100_spill] sm:$0xff] %v11270_v61  ;;  %v2493_v9 = vadd.f32 %v10899_v46, %v2492_v23  ;;  %v3223_v38 = vmul.f32 %v10925_v4, %v11211_v13  ;;  %v11281_v25 = vsel %vm2883_vm12, %v2428_v28, %v3224_v58  ;;  %v12991_v23 = vld [vmem:[#allocation110_spill] sm:$0xff] }
 0x373   :  { %vm2855_vm0 = vcmp.gt.f32.partialorder %v2358_v45, 0.0  ;;  %v3196_v44 = vmul.f32 %v10925_v4, %v2358_v45  ;;  %v2010_v60 = vadd.f32 %v10899_v46, %v2009_v21  ;;  %v12993_v27 = vmax.f32 %v11082_v55, %v11190_v40  ;;  %v8188_v28 = vld [vmem:[%s12480_s0 + $0x4c0] sm:$0xff]  ;;  %v12995_v40 = vld [vmem:[#allocation41_spill] sm:$0xff] }
 0x374   :  { %v2494_v21 = vpop.f32.mrf.mxu3  ;;  %vm2909_vm4 = vcmp.gt.f32.partialorder %v2493_v9, 0.0  ;;  %v3250_v37 = vmul.f32 %v10925_v4, %v2493_v9  ;;  %v3509_v58 = vsel %vm2830_vm15, %v2295_v57, %v3171_v32  ;;  %vm2908_vm1 = vcmp.gt.f32.partialorder %v2490_v56, 0.0 }
 0x375   :  { %v3534_v52 = vsel %vm2855_vm0, %v2358_v45, %v3196_v44  ;;  %vm2716_vm3 = vcmp.gt.f32.partialorder %v2010_v60, 0.0  ;;  %v3057_v43 = vmul.f32 %v10925_v4, %v2010_v60  ;;  %v2430_v45 = vadd.f32 %v10899_v46, %v12991_v23  ;;  %v11285_v44 = vpop.f32.mrf.mxu1 }
 0x376   :  { %v4704_v48 = vmax.f32 %v4600_v16, %v3534_v52  ;;  %v4782_v63 = vmax.f32 %v3534_v52, %v11207_v11  ;;  %12992 = vst [vmem:[#allocation101_spill] sm:$0xff] %v11285_v44  ;;  %v12994_v11 = vld [vmem:[#allocation111_spill] sm:$0xff]  ;;  %v11292_v30 = vsel %vm2909_vm4, %v2493_v9, %v3250_v37  ;;  %v12996_v37 = vmax.f32 %v11096_v7, %v11201_v0  ;;  %v12997_v9 = vld [vmem:[#allocation76_spill] sm:$0xff] }
 0x377   :  { %v3395_v26 = vsel %vm2716_vm3, %v2010_v60, %v3057_v43  ;;  %v3249_v60 = vmul.f32 %v10925_v4, %v2490_v56  ;;  %v3561_v57 = vsel %vm2882_vm13, %v11211_v13, %v3223_v38  ;;  %v4601_v43 = vmax.f32 %v12997_v9, %v3509_v58 }
 0x378   :  { %v5594_v16 = vmax.f32 %v12993_v27, %v4704_v48  ;;  %v4227_v52 = vmax.f32 %v12994_v11, %v3395_v26  ;;  %v2359_v59 = vpop.f32.mrf.mxu2  ;;  %v4886_v39 = vmax.f32 %v4782_v63, %v11270_v61  ;;  %7835 = vmatmul.msk.bf16.gmra.mxu3 %vm1253_vm2, %v8188_v28  ;;  %v3225_v27 = vmul.f32 %v10925_v4, %v2430_v45 }
 0x379   :  { %v2360_v23 = vadd.f32 %v10899_v46, %v2359_v59  ;;  %v2495_v7 = vadd.f32 %v10899_v46, %v2494_v21  ;;  %vm2884_vm7 = vcmp.gt.f32.partialorder %v2430_v45, 0.0  ;;  %v13000_v21 = vmax.f32 %v11143_v3, %v11241_v54 }
 0x37a   :  { %v11303_v48 = vmax.f32 %v4227_v52, %v12995_v40  ;;  %v2012_v26 = vpop.f32.mrf.mxu0  ;;  %v11308_v63 = vmax.f32 %v12996_v37, %v4886_v39  ;;  %v11322_v52 = vsel %vm2908_vm1, %v2490_v56, %v3249_v60  ;;  %v12999_v40 = vld [vmem:[#allocation113_spill] sm:$0xff]  ;;  %v11332_v9 = vsel %vm2884_vm7, %v2430_v45, %v3225_v27 }
 0x37b   :  { %vm2856_vm5 = vcmp.gt.f32.partialorder %v2360_v23, 0.0  ;;  %v3197_v59 = vmul.f32 %v10925_v4, %v2360_v23  ;;  %v2013_v32 = vadd.f32 %v10899_v46, %v2012_v26  ;;  %12998 = vst [vmem:[#allocation56_spill] sm:$0xff] %v11322_v52  ;;  %vm2910_vm8 = vcmp.gt.f32.partialorder %v2495_v7, 0.0 }
 0x37c   :  { %v5375_v39 = vmax.f32 %v11218_v18, %v11303_v48  ;;  %v2497_v13 = vpop.f32.mrf.mxu3  ;;  %v2433_v58 = vadd.f32 %v10899_v46, %v12999_v40  ;;  %v3251_v18 = vmul.f32 %v10925_v4, %v2495_v7  ;;  %v5606_v48 = vpack.c.bf16 %v5594_v16, %v5594_v16 }
 0x37d   :  { %v3535_v0 = vsel %vm2856_vm5, %v2360_v23, %v3197_v59  ;;  %vm2717_vm6 = vcmp.gt.f32.partialorder %v2013_v32, 0.0  ;;  %v3058_v11 = vmul.f32 %v10925_v4, %v2013_v32  ;;  %v13001_v59 = vld [vmem:[#allocation114_spill] sm:$0xff]  ;;  %v13003_v16 = vmax.f32 %v11153_v62, %v11249_v15 }
 0x37e   :  { %v4705_v38 = vmax.f32 %v4601_v43, %v3535_v0  ;;  %v4783_v28 = vmax.f32 %v3535_v0, %v3561_v57  ;;  %v11334_v57 = vsel %vm2910_vm8, %v2495_v7, %v3251_v18  ;;  %v13002_v0 = vld [vmem:[#allocation45_spill] sm:$0xff]  ;;  %v3226_v54 = vmul.f32 %v10925_v4, %v2433_v58 }
 0x37f   :  { %v3396_v26 = vsel %vm2717_vm6, %v2013_v32, %v3058_v11  ;;  %v11348_v27 = vunpack.c.l.b16 %v5606_v48  ;;  %v2498_v62 = vadd.f32 %v10899_v46, %v2497_v13  ;;  %vm2885_vm10 = vcmp.gt.f32.partialorder %v2433_v58, 0.0  ;;  %v13007_v48 = vld [vmem:[#allocation115_spill] sm:$0xff] }
 0x380   :  { %v5957_v37 = vpop.f32.mrf.mxu1  ;;  %v5595_v23 = vmax.f32 %v13000_v21, %v4705_v38  ;;  %v4228_v56 = vmax.f32 %v13001_v59, %v3396_v26  ;;  %v4887_v60 = vmax.f32 %v4783_v28, %v11322_v52  ;;  %v13006_v38 = vmax.f32 %v11160_v31, %v11259_v34  ;;  %v13008_v34 = vld [vmem:[#allocation7_spill] sm:$0xff] }
 0x381   :  { %13004 = vst [vmem:[#allocation74_spill] sm:$0xff] %v11348_v27  ;;  %vm2911_vm12 = vcmp.gt.f32.partialorder %v2498_v62, 0.0  ;;  %v3252_v37 = vmul.f32 %v10925_v4, %v2498_v62  ;;  %v2435_v21 = vadd.f32 %v10899_v46, %v13007_v48  ;;  %v11363_v31 = vsel %vm2885_vm10, %v2433_v58, %v3226_v54  ;;  %v13018_v27 = vld [vmem:[#allocation116_spill] sm:$0xff] }
 0x382   :  { %v5607_v43 = vpack.c.bf16 %v5595_v23, %v5595_v23  ;;  %v11337_v40 = vmax.f32 %v4228_v56, %v13002_v0  ;;  %v2014_v32 = vpop.f32.mrf.mxu0  ;;  %v11342_v11 = vmax.f32 %v13003_v16, %v4887_v60  ;;  %v8189_v60 = vld [vmem:[%s12480_s0 + $0x4c8] sm:$0xff]  ;;  %v13009_v0 = vld [vmem:[#allocation48_spill] sm:$0xff] }
 0x383   :  { %v2015_v45 = vadd.f32 %v10899_v46, %v2014_v32  ;;  %v11366_v56 = vsel %vm2911_vm12, %v2498_v62, %v3252_v37  ;;  %v3227_v58 = vmul.f32 %v10925_v4, %v2435_v21  ;;  %vm2886_vm13 = vcmp.gt.f32.partialorder %v2435_v21, 0.0 }
 0x384   :  { %v11350_v7 = vunpack.c.l.b16 %v5607_v43  ;;  %v5422_v28 = vmax.f32 %v13006_v38, %v11337_v40  ;;  %v2499_v26 = vpop.f32.mrf.mxu3 }
 0x385   :  { %vm2718_vm11 = vcmp.gt.f32.partialorder %v2015_v45, 0.0  ;;  %v3059_v15 = vmul.f32 %v10925_v4, %v2015_v45  ;;  %v2500_v38 = vadd.f32 %v10899_v46, %v2499_v26 }
 0x386   :  { %13005 = vst [vmem:[#allocation59_spill] sm:$0xff] %v11350_v7  ;;  %v5434_v62 = vpack.c.bf16 %v5422_v28, %v5422_v28  ;;  %v13012_v28 = vld [vmem:[#allocation58_spill] sm:$0xff]  ;;  %v13019_v7 = vld [vmem:[#allocation4_spill] sm:$0xff] }
 0x387   :  { %v3397_v23 = vsel %vm2718_vm11, %v2015_v45, %v3059_v15  ;;  %vm2912_vm15 = vcmp.gt.f32.partialorder %v2500_v38, 0.0  ;;  %v3253_v48 = vmul.f32 %v10925_v4, %v2500_v38 }
 0x388   :  { %v5958_v59 = vpop.f32.mrf.mxu1  ;;  %v4229_v13 = vmax.f32 %v13008_v34, %v3397_v23  ;;  %7836 = vmatmul.msk.bf16.gmra.mxu3 %vm1253_vm2, %v8189_v60 }
 0x389   :  { %v11385_v59 = vsel %vm2886_vm13, %v2435_v21, %v3227_v58  ;;  %v11388_v60 = vsel %vm2912_vm15, %v2500_v38, %v3253_v48 }
 0x38a   :  { %v11374_v32 = vmax.f32 %v4229_v13, %v13009_v0  ;;  %v2017_v16 = vpop.f32.mrf.mxu0  ;;  %v13010_v0 = vld [vmem:[#allocation51_spill] sm:$0xff] }
 0x38b   :  { %v2018_v54 = vadd.f32 %v10899_v46, %v2017_v16 }
 0x38c   :  { %v5423_v45 = vmax.f32 %v5375_v39, %v11374_v32  ;;  %v11382_v37 = vpop.f32.mrf.mxu3  ;;  %v11390_v39 = vunpack.c.l.b16 %v5434_v62 }
 0x38d   :  { %vm2719_vm14 = vcmp.gt.f32.partialorder %v2018_v54, 0.0  ;;  %v3060_v15 = vmul.f32 %v10925_v4, %v2018_v54 }
 0x38e   :  { %v5435_v23 = vpack.c.bf16 %v5423_v45, %v5423_v45 }
 0x38f   :  { %v3398_v34 = vsel %vm2719_vm14, %v2018_v54, %v3060_v15  ;;  %v2362_v15 = vpop.f32.mrf.mxu2 }
 0x390   :  { %v4230_v13 = vmax.f32 %v10131_v33, %v3398_v34  ;;  %v11392_v26 = vunpack.c.l.b16 %v5435_v23  ;;  %v8210_v33 = vld [vmem:[%s12484_s7 + $0x8] sm:$0xff] }
 0x391   :  { %6571 = vmatpush.bf16.msrb.mxu2 %v8210_v33  ;;  %v13011_v23 = vld [vmem:[#allocation55_spill] sm:$0xff] }
 0x392   :  { %v4334_v16 = vmax.f32 %v4230_v13, %v13010_v0  ;;  %v2019_v18 = vpop.f32.mrf.mxu0 }
 0x393   :  { %v2020_v21 = vadd.f32 %v10899_v46, %v2019_v18  ;;  %v8190_v18 = vld [vmem:[%s12480_s0 + $0x4d0] sm:$0xff] }
 0x394   :  { %v5458_v58 = vmax.f32 %v11337_v40, %v4334_v16  ;;  %v11405_v38 = vpop.f32.mrf.mxu3 }
 0x395   :  { %vm2720_vm0 = vcmp.gt.f32.partialorder %v2020_v21, 0.0  ;;  %v3061_v54 = vmul.f32 %v10925_v4, %v2020_v21 }
 0x397   :  { %v3399_v62 = vsel %vm2720_vm0, %v2020_v21, %v3061_v54 }
 0x398   :  { %v4231_v48 = vmax.f32 %v10177_v14, %v3399_v62  ;;  %7837 = vmatmul.msk.bf16.gmra.mxu3 %vm1253_vm2, %v8190_v18  ;;  %v2364_v14 = vpop.f32.mrf.mxu2  ;;  %v2363_v62 = vadd.f32 %v10899_v46, %v2362_v15 }
 0x39a   :  { %v4335_v40 = vmax.f32 %v4231_v48, %v13011_v23  ;;  %v2022_v34 = vpop.f32.mrf.mxu0  ;;  %vm2857_vm1 = vcmp.gt.f32.partialorder %v2363_v62, 0.0 }
 0x39b   :  { %v2023_v13 = vadd.f32 %v10899_v46, %v2022_v34 }
 0x39c   :  { %v5459_v0 = vmax.f32 %v11374_v32, %v4335_v40  ;;  %v11416_v21 = vpop.f32.mrf.mxu3  ;;  %v3198_v40 = vmul.f32 %v10925_v4, %v2363_v62 }
 0x39d   :  { %vm2721_vm3 = vcmp.gt.f32.partialorder %v2023_v13, 0.0  ;;  %v3062_v16 = vmul.f32 %v10925_v4, %v2023_v13 }
 0x39f   :  { %v3400_v33 = vsel %vm2721_vm3, %v2023_v13, %v3062_v16  ;;  %v2365_v13 = vadd.f32 %v10899_v46, %v2364_v14 }
 0x3a0   :  { %v4232_v54 = vmax.f32 %v10239_v8, %v3400_v33  ;;  %v2367_v15 = vpop.f32.mrf.mxu2  ;;  %v8191_v33 = vld [vmem:[%s12480_s0 + $0x4d8] sm:$0xff] }
 0x3a1   :  { %vm2858_vm5 = vcmp.gt.f32.partialorder %v2365_v13, 0.0 }
 0x3a2   :  { %v11421_v48 = vmax.f32 %v4232_v54, %v13012_v28  ;;  %v2024_v23 = vpop.f32.mrf.mxu0  ;;  %v3536_v54 = vsel %vm2857_vm1, %v2363_v62, %v3198_v40 }
 0x3a3   :  { %v2025_v18 = vadd.f32 %v10899_v46, %v2024_v23  ;;  %v13014_v23 = vld [vmem:[#allocation61_spill] sm:$0xff] }
 0x3a4   :  { %v5506_v34 = vmax.f32 %v5458_v58, %v11421_v48  ;;  %v11428_v16 = vpop.f32.mrf.mxu3  ;;  %v3199_v58 = vmul.f32 %v10925_v4, %v2365_v13 }
 0x3a5   :  { %vm2722_vm4 = vcmp.gt.f32.partialorder %v2025_v18, 0.0  ;;  %v3063_v32 = vmul.f32 %v10925_v4, %v2025_v18  ;;  %13013 = vst [vmem:[#allocation9_spill] sm:$0xff] %v11428_v16 }
 0x3a6   :  { %v3537_v40 = vsel %vm2858_vm5, %v2365_v13, %v3199_v58 }
 0x3a7   :  { %v3401_v8 = vsel %vm2722_vm4, %v2025_v18, %v3063_v32  ;;  %v13015_v32 = vld [vmem:[#allocation14_spill] sm:$0xff] }
 0x3a8   :  { %v4233_v28 = vmax.f32 %v10292_v41, %v3401_v8  ;;  %7838 = vmatmul.msk.bf16.gmra.mxu3 %vm1253_vm2, %v8191_v33  ;;  %v4758_v41 = vmax.f32 %v13015_v32, %v3536_v54  ;;  %v2368_v8 = vadd.f32 %v10899_v46, %v2367_v15  ;;  %v2369_v33 = vpop.f32.mrf.mxu2 }
 0x3a9   :  { %v2370_v15 = vadd.f32 %v10899_v46, %v2369_v33 }
 0x3aa   :  { %v11436_v43 = vmax.f32 %v4233_v28, %v13014_v23  ;;  %v2027_v3 = vpop.f32.mrf.mxu0  ;;  %v5518_v28 = vpack.c.bf16 %v5506_v34, %v5506_v34  ;;  %vm2859_vm7 = vcmp.gt.f32.partialorder %v2368_v8, 0.0  ;;  %v3200_v23 = vmul.f32 %v10925_v4, %v2368_v8 }
 0x3ab   :  { %v2028_v14 = vadd.f32 %v10899_v46, %v2027_v3  ;;  %v4862_v32 = vmax.f32 %v4758_v41, %v11281_v25  ;;  %vm2860_vm8 = vcmp.gt.f32.partialorder %v2370_v15, 0.0 }
 0x3ac   :  { %v5507_v18 = vmax.f32 %v5459_v0, %v11436_v43  ;;  %v11444_v55 = vpop.f32.mrf.mxu3  ;;  %v13017_v0 = vld [vmem:[#allocation119_spill] sm:$0xff]  ;;  %v3538_v54 = vsel %vm2859_vm7, %v2368_v8, %v3200_v23  ;;  %v11452_v58 = vunpack.c.l.b16 %v5518_v28  ;;  %v13040_v8 = vld [vmem:[#allocation89_spill] sm:$0xff] }
 0x3ad   :  { %vm2723_vm6 = vcmp.gt.f32.partialorder %v2028_v14, 0.0  ;;  %v3064_v62 = vmul.f32 %v10925_v4, %v2028_v14  ;;  %13016 = vst [vmem:[#allocation103_spill] sm:$0xff] %v11444_v55  ;;  %v4759_v52 = vmax.f32 %v13017_v0, %v3537_v40  ;;  %v4760_v13 = vmax.f32 %v13018_v27, %v3538_v54  ;;  %v13020_v40 = vld [vmem:[#allocation17_spill] sm:$0xff] }
 0x3ae   :  { %v5519_v44 = vpack.c.bf16 %v5507_v18, %v5507_v18  ;;  %v3201_v18 = vmul.f32 %v10925_v4, %v2370_v15 }
 0x3af   :  { %v3402_v45 = vsel %vm2723_vm6, %v2028_v14, %v3064_v62  ;;  %v4863_v27 = vmax.f32 %v4759_v52, %v11332_v9  ;;  %v13022_v52 = vld [vmem:[#allocation66_spill] sm:$0xff] }
 0x3b0   :  { %v4234_v3 = vmax.f32 %v10353_v1, %v3402_v45  ;;  %v11454_v34 = vunpack.c.l.b16 %v5519_v44  ;;  %v4864_v45 = vmax.f32 %v4760_v13, %v11363_v31  ;;  %v3539_v62 = vsel %vm2860_vm8, %v2370_v15, %v3201_v18 }
 0x3b1   :  { %v4761_v28 = vmax.f32 %v13020_v40, %v3539_v62  ;;  %v5272_v13 = vpack.c.bf16 %v10541_v24, %v10541_v24 }
 0x3b2   :  { %v4338_v61 = vmax.f32 %v4234_v3, %v13019_v7  ;;  %v2029_v14 = vpop.f32.mrf.mxu0  ;;  %v5128_v7 = vmax.f32 %v4862_v32, %v4864_v45 }
 0x3b3   :  { %v2030_v1 = vadd.f32 %v10899_v46, %v2029_v14  ;;  %v4865_v3 = vmax.f32 %v4761_v28, %v11385_v59  ;;  %v11486_v28 = vunpack.c.l.b16 %v5272_v13 }
 0x3b4   :  { %v5542_v41 = vmax.f32 %v11421_v48, %v4338_v61  ;;  %v11466_v23 = vpop.f32.mrf.mxu3  ;;  %v8192_v61 = vld [vmem:[%s12480_s0 + $0x4e0] sm:$0xff]  ;;  %v5176_v18 = vmax.f32 %v5128_v7, %v10395_v22  ;;  %v13027_v7 = vld [vmem:[#allocation69_spill] sm:$0xff] }
 0x3b5   :  { %vm2724_vm10 = vcmp.gt.f32.partialorder %v2030_v1, 0.0  ;;  %v3065_v44 = vmul.f32 %v10925_v4, %v2030_v1  ;;  %13021 = vst [vmem:[#allocation30_spill] sm:$0xff] %v11466_v23  ;;  %v5129_v48 = vmax.f32 %v4863_v27, %v4865_v3  ;;  %v5273_v27 = vpack.c.bf16 %v10577_v5, %v10577_v5 }
 0x3b6   :  { %v5188_v62 = vpack.c.bf16 %v5176_v18, %v5176_v18  ;;  %13024 = vst [vmem:[#allocation104_spill] sm:$0xff] %v11486_v28  ;;  %v8193_v18 = vld [vmem:[%s12480_s0 + $0x4e8] sm:$0xff]  ;;  %v5356_v28 = vpack.c.bf16 %v13040_v8, %v13040_v8  ;;  %v11561_v8 = vld [vmem:[%s12479_s3] ss:$0 sm:$0xff] }
 0x3b7   :  { %v3403_v33 = vsel %vm2724_vm10, %v2030_v1, %v3065_v44  ;;  %v5177_v45 = vmax.f32 %v5129_v48, %v10467_v29 }
 0x3b8   :  { %v4235_v0 = vmax.f32 %v10406_v20, %v3403_v33  ;;  %7839 = vmatmul.msk.bf16.gmra.mxu3 %vm1253_vm2, %v8192_v61 }
 0x3b9   :  { %v5189_v40 = vpack.c.bf16 %v5177_v45, %v5177_v45 }
 0x3ba   :  { %v4339_v54 = vmax.f32 %v4235_v0, %v13022_v52  ;;  %v2032_v15 = vpop.f32.mrf.mxu0  ;;  %v11494_v0 = vunpack.c.l.b16 %v5273_v27 }
 0x3bb   :  { %v2033_v32 = vadd.f32 %v10899_v46, %v2032_v15  ;;  %v11491_v22 = vunpack.c.l.b16 %v5189_v40 }
 0x3bc   :  { %v5543_v14 = vmax.f32 %v11436_v43, %v4339_v54  ;;  %v11481_v1 = vpop.f32.mrf.mxu3  ;;  %v11489_v43 = vunpack.c.l.b16 %v5188_v62  ;;  %13028 = vst [vmem:[#allocation105_spill] sm:$0xff] %v11494_v0  ;;  %v13030_v54 = vld [vmem:[#allocation44_spill] sm:$0xff] }
 0x3bd   :  { %vm2725_vm11 = vcmp.gt.f32.partialorder %v2033_v32, 0.0  ;;  %v3066_v20 = vmul.f32 %v10925_v4, %v2033_v32  ;;  %13023 = vst [vmem:[#allocation63_spill] sm:$0xff] %v11481_v1  ;;  %v2103_v15 = vadd.f32 %v10899_v46, %v13030_v54  ;;  %v13047_v1 = vld [vmem:[#allocation10_spill] sm:$0xff] }
 0x3be   :  { %13025 = vst [vmem:[#allocation67_spill] sm:$0xff] %v11489_v43  ;;  %v13041_v43 = vld [vmem:[#allocation53_spill] sm:$0xff] }
 0x3bf   :  { %v3404_v44 = vsel %vm2725_vm11, %v2033_v32, %v3066_v20  ;;  %13026 = vst [vmem:[#allocation65_spill] sm:$0xff] %v11491_v22  ;;  %v13031_v20 = vld [vmem:[#allocation71_spill] sm:$0xff]  ;;  %v3094_v27 = vmul.f32 %v10925_v4, %v2103_v15  ;;  %vm2753_vm13 = vcmp.gt.f32.partialorder %v2103_v15, 0.0 }
 0x3c0   :  { %v4236_v24 = vmax.f32 %v10473_v36, %v3404_v44 }
 0x3c2   :  { %v4340_v33 = vmax.f32 %v4236_v24, %v13027_v7  ;;  %v2034_v3 = vpop.f32.mrf.mxu0 }
 0x3c3   :  { %v2035_v29 = vadd.f32 %v10899_v46, %v2034_v3 }
 0x3c4   :  { %v5590_v61 = vmax.f32 %v5542_v41, %v4340_v33  ;;  %v11502_v52 = vpop.f32.mrf.mxu3  ;;  %v3432_v33 = vsel %vm2753_vm13, %v2103_v15, %v3094_v27 }
 0x3c5   :  { %vm2726_vm12 = vcmp.gt.f32.partialorder %v2035_v29, 0.0  ;;  %v3067_v36 = vmul.f32 %v10925_v4, %v2035_v29  ;;  %13029 = vst [vmem:[#allocation36_spill] sm:$0xff] %v11502_v52 }
 0x3c7   :  { %v3405_v32 = vsel %vm2726_vm12, %v2035_v29, %v3067_v36 }
 0x3c8   :  { %v4237_v13 = vmax.f32 %v10509_v35, %v3405_v32  ;;  %7840 = vmatmul.msk.bf16.gmra.mxu3 %vm1253_vm2, %v8193_v18  ;;  %v5602_v35 = vpack.c.bf16 %v5590_v61, %v5590_v61  ;;  %v13033_v32 = vld [vmem:[#allocation81_spill] sm:$0xff] }
 0x3ca   :  { %v4341_v41 = vmax.f32 %v4237_v13, %v13031_v20  ;;  %v2037_v45 = vpop.f32.mrf.mxu0  ;;  %v11517_v36 = vunpack.c.l.b16 %v5602_v35  ;;  %v1973_v13 = vadd.f32 %v10899_v46, %v13033_v32  ;;  %v13034_v20 = vld [vmem:[#allocation70_spill] sm:$0xff]  ;;  %v13037_v35 = vld [vmem:[#allocation47_spill] sm:$0xff] }
 0x3cb   :  { %v2038_v62 = vadd.f32 %v10899_v46, %v2037_v45  ;;  %v13035_v45 = vld [vmem:[#allocation50_spill] sm:$0xff] }
 0x3cc   :  { %v5591_v44 = vmax.f32 %v5543_v14, %v4341_v41  ;;  %v11515_v24 = vpop.f32.mrf.mxu3  ;;  %v1978_v14 = vadd.f32 %v10899_v46, %v13034_v20  ;;  %v2108_v61 = vadd.f32 %v10899_v46, %v13035_v45  ;;  %v3042_v27 = vmul.f32 %v10925_v4, %v1973_v13  ;;  %v13039_v45 = vld [vmem:[#allocation92_spill] sm:$0xff] }
 0x3cd   :  { %vm2727_vm14 = vcmp.gt.f32.partialorder %v2038_v62, 0.0  ;;  %v3068_v40 = vmul.f32 %v10925_v4, %v2038_v62  ;;  %13032 = vst [vmem:[#allocation109_spill] sm:$0xff] %v11515_v24  ;;  %vm2701_vm15 = vcmp.gt.f32.partialorder %v1973_v13, 0.0 }
 0x3ce   :  { %v5603_v7 = vpack.c.bf16 %v5591_v44, %v5591_v44  ;;  %v3044_v44 = vmul.f32 %v10925_v4, %v1978_v14  ;;  %v3096_v46 = vmul.f32 %v10925_v4, %v2108_v61  ;;  %vm2703_vm0 = vcmp.gt.f32.partialorder %v1978_v14, 0.0 }
 0x3cf   :  { %v3406_v3 = vsel %vm2727_vm14, %v2038_v62, %v3068_v40  ;;  %v8194_v62 = vld [vmem:[%s12480_s0 + $0x4f0] sm:$0xff]  ;;  %v11539_v40 = vld [vmem:[%s12478_s2] ss:$0 sm:$0xff]  ;;  %vm2755_vm3 = vcmp.gt.f32.partialorder %v2108_v61, 0.0  ;;  %v3380_v20 = vsel %vm2701_vm15, %v1973_v13, %v3042_v27 }
 0x3d0   :  { %v4394_v29 = vmax.f32 %v3406_v3, %v3432_v33  ;;  %v11519_v54 = vunpack.c.l.b16 %v5603_v7  ;;  %v2105_v7 = vadd.f32 %v11539_v40, %v13037_v35  ;;  %v13038_v33 = vld [vmem:[#allocation90_spill] sm:$0xff]  ;;  %v1980_v48 = vadd.f32 %v11539_v40, %v13039_v45  ;;  %v13042_v13 = vld [vmem:[#allocation60_spill] sm:$0xff]  ;;  %v13043_v45 = vld [vmem:[#allocation97_spill] sm:$0xff] }
 0x3d1   :  { %v1975_v32 = vadd.f32 %v11539_v40, %v13038_v33  ;;  %v3382_v41 = vsel %vm2703_vm0, %v1978_v14, %v3044_v44  ;;  %v3434_v0 = vsel %vm2755_vm3, %v2108_v61, %v3096_v46  ;;  %v2110_v33 = vadd.f32 %v11539_v40, %v13041_v43  ;;  %v13045_v61 = vld [vmem:[#allocation99_spill] sm:$0xff] }
 0x3d2   :  { %v2039_v18 = vpop.f32.mrf.mxu0  ;;  %vm2754_vm4 = vcmp.gt.f32.partialorder %v2105_v7, 0.0  ;;  %v2115_v27 = vadd.f32 %v11539_v40, %v13042_v13  ;;  %v4212_v22 = vmax.f32 %v13043_v45, %v3380_v20  ;;  %v4214_v43 = vmax.f32 %v13045_v61, %v3382_v41  ;;  %v13046_v61 = vld [vmem:[#allocation12_spill] sm:$0xff] }
 0x3d3   :  { %v2040_v35 = vadd.f32 %v11539_v40, %v2039_v18  ;;  %vm2702_vm1 = vcmp.gt.f32.partialorder %v1975_v32, 0.0  ;;  %v3043_v14 = vmul.f32 %v11561_v8, %v1975_v32  ;;  %vm2704_vm6 = vcmp.gt.f32.partialorder %v1980_v48, 0.0 }
 0x3d4   :  { %v11529_v15 = vpop.f32.mrf.mxu3  ;;  %v3045_v44 = vmul.f32 %v11561_v8, %v1980_v48  ;;  %v11571_v46 = vunpack.c.l.b16 %v5356_v28  ;;  %v4316_v45 = vmax.f32 %v4212_v22, %v3406_v3  ;;  %v3097_v52 = vmul.f32 %v11561_v8, %v2110_v33 }
 0x3d5   :  { %13036 = vst [vmem:[#allocation106_spill] sm:$0xff] %v11529_v15  ;;  %v3069_v20 = vmul.f32 %v11561_v8, %v2040_v35  ;;  %vm2728_vm7 = vcmp.gt.f32.partialorder %v2040_v35, 0.0  ;;  %vm2758_vm8 = vcmp.gt.f32.partialorder %v2115_v27, 0.0  ;;  %v3099_v41 = vmul.f32 %v11561_v8, %v2115_v27 }
 0x3d6   :  { %v3381_v22 = vsel %vm2702_vm1, %v1975_v32, %v3043_v14  ;;  %v3383_v3 = vsel %vm2704_vm6, %v1980_v48, %v3045_v44  ;;  %vm2756_vm10 = vcmp.gt.f32.partialorder %v2110_v33, 0.0  ;;  %v13048_v48 = vld [vmem:[#allocation25_spill] sm:$0xff]  ;;  %v13049_v14 = vld [vmem:[#allocation26_spill] sm:$0xff] }
 0x3d8   :  { %7841 = vmatmul.msk.bf16.gmra.mxu3 %vm1253_vm2, %v8194_v62  ;;  %v5357_v62 = vpack.c.bf16 %v10731_v2, %v10731_v2  ;;  %v4498_v2 = vmax.f32 %v4394_v29, %v13046_v61 }
 0x3da   :  { %v2042_v5 = vpop.f32.mrf.mxu0  ;;  %v11579_v16 = vunpack.c.l.b16 %v5357_v62 }
 0x3db   :  { %v2043_v4 = vadd.f32 %v11539_v40, %v2042_v5 }
 0x3dc   :  { %v11564_v5 = vpop.f32.mrf.mxu3 }
 0x3dd   :  { %vm2729_vm5 = vcmp.gt.f32.partialorder %v2043_v4, 0.0  ;;  %v3070_v18 = vmul.f32 %v11561_v8, %v2043_v4  ;;  %13044 = vst [vmem:[#allocation33_spill] sm:$0xff] %v11564_v5  ;;  %v3095_v5 = vmul.f32 %v11561_v8, %v2105_v7 }
 0x3df   :  { %v3408_v13 = vsel %vm2729_vm5, %v2043_v4, %v3070_v18 }
 0x3e0   :  { %v4318_v15 = vmax.f32 %v4214_v43, %v3408_v13  ;;  %v4396_v24 = vmax.f32 %v3408_v13, %v3434_v0  ;;  %v3407_v0 = vsel %vm2728_vm7, %v2040_v35, %v3069_v20  ;;  %v4213_v35 = vmax.f32 %v13048_v48, %v3381_v22 }
 0x3e1   :  { %v3435_v20 = vsel %vm2756_vm10, %v2110_v33, %v3097_v52 }
 0x3e2   :  { %v4500_v23 = vmax.f32 %v4396_v24, %v13047_v1  ;;  %v5122_v28 = vmax.f32 %v4316_v45, %v4318_v15  ;;  %v2044_v55 = vpop.f32.mrf.mxu0  ;;  %v3433_v1 = vsel %vm2754_vm4, %v2105_v7, %v3095_v5  ;;  %v3437_v24 = vsel %vm2758_vm8, %v2115_v27, %v3099_v41  ;;  %v13051_v41 = vld [vmem:[#allocation117_spill] sm:$0xff] }
 0x3e3   :  { %v2045_v4 = vadd.f32 %v11539_v40, %v2044_v55  ;;  %v4215_v55 = vmax.f32 %v13049_v14, %v3383_v3  ;;  %v4395_v62 = vmax.f32 %v3407_v0, %v3433_v1  ;;  %v4399_v27 = vmax.f32 %v10703_v49, %v3437_v24  ;;  %v13053_v3 = vld [vmem:[#allocation20_spill] sm:$0xff] }
 0x3e4   :  { %v5124_v18 = vmax.f32 %v4498_v2, %v4500_v23  ;;  %v5170_v43 = vmax.f32 %v5122_v28, %v10817_v12  ;;  %v11590_v32 = vpop.f32.mrf.mxu3  ;;  %v8195_v12 = vld [vmem:[%s12480_s0 + $0x4f8] sm:$0xff]  ;;  %v13050_v23 = vld [vmem:[#allocation68_spill] sm:$0xff]  ;;  %v4317_v5 = vmax.f32 %v4213_v35, %v3407_v0  ;;  %v13052_v2 = vld [vmem:[#allocation118_spill] sm:$0xff] }
 0x3e5   :  { %vm2730_vm11 = vcmp.gt.f32.partialorder %v2045_v4, 0.0  ;;  %v3071_v15 = vmul.f32 %v11561_v8, %v2045_v4  ;;  %v4499_v61 = vmax.f32 %v4395_v62, %v13051_v41  ;;  %v11603_v1 = vmax.f32 %v4399_v27, %v13053_v3 }
 0x3e6   :  { %v5172_v44 = vmax.f32 %v5124_v18, %v13050_v23  ;;  %v5182_v52 = vpack.c.bf16 %v5170_v43, %v5170_v43  ;;  %v8196_v23 = vld [vmem:[%s12480_s0 + $0x500] sm:$0xff] }
 0x3e7   :  { %v3409_v7 = vsel %vm2730_vm11, %v2045_v4, %v3071_v15 }
 0x3e8   :  { %v4319_v13 = vmax.f32 %v4215_v55, %v3409_v7  ;;  %v4397_v45 = vmax.f32 %v3409_v7, %v3435_v20  ;;  %7842 = vmatmul.msk.bf16.gmra.mxu3 %vm1253_vm2, %v8195_v12  ;;  %v5184_v4 = vpack.c.bf16 %v5172_v44, %v5172_v44  ;;  %v5704_v24 = vunpack.c.l.b16 %v5182_v52 }
 0x3e9   :  { %v5440_v44 = vpack.c.bf16 %v10883_v17, %v10883_v17  ;;  %v5441_v7 = vpack.c.bf16 %v10954_v6, %v10954_v6  ;;  %v8197_v17 = vld [vmem:[%s12480_s0 + $0x508] sm:$0xff]  ;;  %v13057_v52 = vpack.c.b16 %v11454_v34, %v11452_v58 }
 0x3ea   :  { %v4501_v28 = vmax.f32 %v4397_v45, %v13052_v2  ;;  %v5123_v22 = vmax.f32 %v4317_v5, %v4319_v13  ;;  %v11609_v55 = vunpack.c.l.b16 %v5184_v4  ;;  %v13054_v13 = vpack.c.b16 %v11055_v53, %v11053_v19  ;;  %v8198_v53 = vld [vmem:[%s12480_s0 + $0x510] sm:$0xff]  ;;  %v13058_v58 = vld [vmem:[#allocation27_spill] sm:$0xff] }
 0x3eb   :  { %v11631_v27 = vunpack.c.l.b16 %v5440_v44  ;;  %v11633_v5 = vunpack.c.l.b16 %v5441_v7  ;;  %v5524_v2 = vpack.c.bf16 %v11117_v10, %v11117_v10  ;;  %v8199_v10 = vld [vmem:[%s12480_s0 + $0x518] sm:$0xff]  ;;  %v5609_v4 = vpack.c.bf16 %v11342_v11, %v11342_v11 }
 0x3ec   :  { %v5125_v48 = vmax.f32 %v4499_v61, %v4501_v28  ;;  %v5171_v18 = vmax.f32 %v5123_v22, %v10874_v51  ;;  %v11606_v33 = vpop.f32.mrf.mxu3  ;;  %v8218_v51 = vld [vmem:[%s12485_s10 + $0x30] sm:$0xff]  ;;  %v13055_v61 = vpack.c.b16 %v11255_v42, %v11253_v47  ;;  %v5525_v22 = vpack.c.bf16 %v11168_v50, %v11168_v50 }
 0x3ed   :  { %6685 = vmatpush.bf16.msrb.mxu3 %v8218_v51  ;;  %v11665_v3 = vunpack.c.l.b16 %v5524_v2  ;;  %v13056_v42 = vpack.c.b16 %v11392_v26, %v11390_v39  ;;  %v8200_v26 = vld [vmem:[%s12480_s0 + $0x520] sm:$0xff]  ;;  %v2120_v34 = vadd.f32 %v11539_v40, %v13058_v58  ;;  %v11703_v51 = vunpack.c.l.b16 %v5609_v4 }
 0x3ee   :  { %v5183_v49 = vpack.c.bf16 %v5171_v18, %v5171_v18  ;;  %v5173_v0 = vmax.f32 %v5125_v48, %v11603_v1  ;;  %v11667_v47 = vunpack.c.l.b16 %v5525_v22  ;;  %v13060_v11 = vpack.c.b16 %v11519_v54, %v11517_v36  ;;  %v13103_v48 = vld [vmem:[#allocation72_spill] sm:$0xff] }
 0x3ef   :  { %vm2760_vm13 = vcmp.gt.f32.partialorder %v2120_v34, 0.0  ;;  %v13062_v36 = vmax.f32 %v11332_v9, %v11334_v57  ;;  %v2503_v9 = vadd.f32 %v11539_v40, %v11382_v37 }
 0x3f0   :  { %v5705_v15 = vunpack.c.l.b16 %v5183_v49  ;;  %v5185_v35 = vpack.c.bf16 %v5173_v0, %v5173_v0  ;;  %v5608_v49 = vpack.c.bf16 %v11308_v63, %v11308_v63  ;;  %v13059_v63 = vmax.f32 %v11281_v25, %v11292_v30  ;;  %v13061_v25 = vld [vmem:[#allocation96_spill] sm:$0xff] }
 0x3f1   :  { %vm2913_vm3 = vcmp.gt.f32.partialorder %v2503_v9, 0.0 }
 0x3f2   :  { %v5770_v14 = vpack.c.b16 %v5705_v15, %v5704_v24  ;;  %v11611_v62 = vunpack.c.l.b16 %v5185_v35  ;;  %v11700_v15 = vunpack.c.l.b16 %v5608_v49 }
 0x3f4   :  { %7866 = vmatmul.msk.bf16.gmra.mxu1 %vm5811_vm9, %v5770_v14  ;;  %v5776_v43 = vpack.c.b16 %v11611_v62, %v11609_v55  ;;  %v11619_v12 = vpop.f32.mrf.mxu3  ;;  %v13066_v55 = vld [vmem:[#allocation73_spill] sm:$0xff] }
 0x3f5   :  { %v5268_v62 = vpack.c.bf16 %v13066_v55, %v13066_v55  ;;  %v11785_v55 = vld [vmem:[%s12483_s6] ss:$0 sm:$0xff] }
 0x3f8   :  { %7843 = vmatmul.msk.bf16.gmra.mxu3 %vm1253_vm2, %v8196_v23  ;;  %v3101_v23 = vmul.f32 %v11561_v8, %v2120_v34 }
 0x3fc   :  { %v11627_v20 = vpop.f32.mrf.mxu3 }
 0x404   :  { %7867 = vmatmul.msk.bf16.gmra.mxu1 %vm5811_vm9, %v13054_v13  ;;  %v11641_v41 = vpop.f32.mrf.mxu3 }
 0x408   :  { %7844 = vmatmul.msk.bf16.gmra.mxu3 %vm1253_vm2, %v8197_v17 }
 0x40c   :  { %v11647_v6 = vpop.f32.mrf.mxu3 }
 0x414   :  { %7868 = vmatmul.msk.bf16.gmra.mxu1 %vm5811_vm9, %v13055_v61  ;;  %v11653_v19 = vpop.f32.mrf.mxu3  ;;  %v8201_v61 = vld [vmem:[%s12480_s0 + $0x528] sm:$0xff] }
 0x418   :  { %7845 = vmatmul.msk.bf16.gmra.mxu3 %vm1253_vm2, %v8198_v53  ;;  %v3439_v53 = vsel %vm2760_vm13, %v2120_v34, %v3101_v23  ;;  %v13065_v34 = vld [vmem:[#allocation8_spill] sm:$0xff] }
 0x419   :  { %v4401_v2 = vmax.f32 %v13061_v25, %v3439_v53 }
 0x41c   :  { %v11661_v28 = vpop.f32.mrf.mxu3 }
 0x424   :  { %7869 = vmatmul.msk.bf16.gmra.mxu1 %vm5811_vm9, %v13056_v42  ;;  %v11675_v18 = vpop.f32.mrf.mxu3 }
 0x428   :  { %7846 = vmatmul.msk.bf16.gmra.mxu3 %vm1253_vm2, %v8199_v10  ;;  %v13063_v10 = vld [vmem:[#allocation19_spill] sm:$0xff] }
 0x42c   :  { %v11681_v50 = vpop.f32.mrf.mxu3 }
 0x434   :  { %7870 = vmatmul.msk.bf16.gmra.mxu1 %vm5811_vm9, %v13057_v52  ;;  %v11687_v39 = vpop.f32.mrf.mxu3  ;;  %v4505_v52 = vmax.f32 %v4401_v2, %v13063_v10  ;;  %v13068_v2 = vld [vmem:[#allocation5_spill] sm:$0xff] }
 0x438   :  { %7847 = vmatmul.msk.bf16.gmra.mxu3 %vm1253_vm2, %v8200_v26 }
 0x43c   :  { %v2557_v0 = vpop.f32.mrf.mxu3 }
 0x43d   :  { %v2558_v24 = vadd.f32 %v11539_v40, %v2557_v0  ;;  %v5209_v0 = vmax.f32 %v11603_v1, %v4505_v52  ;;  %v3254_v1 = vmul.f32 %v11561_v8, %v2503_v9 }
 0x43f   :  { %vm2935_vm12 = vcmp.gt.f32.partialorder %v2558_v24, 0.0  ;;  %v3276_v35 = vmul.f32 %v11561_v8, %v2558_v24 }
 0x441   :  { %v3614_v14 = vsel %vm2935_vm12, %v2558_v24, %v3276_v35  ;;  %v13064_v24 = vmax.f32 %v11363_v31, %v11366_v56  ;;  %v5257_v35 = vmax.f32 %v5209_v0, %v13065_v34  ;;  %v8202_v56 = vld [vmem:[%s12480_s0 + $0x530] sm:$0xff] }
 0x442   :  { %v5044_v44 = vmax.f32 %v13059_v63, %v3614_v14  ;;  %v13067_v63 = vmax.f32 %v11385_v59, %v11388_v60  ;;  %v13069_v0 = vld [vmem:[#allocation64_spill] sm:$0xff] }
 0x443   :  { %v5269_v37 = vpack.c.bf16 %v5257_v35, %v5257_v35 }
 0x444   :  { %7871 = vmatmul.msk.bf16.gmra.mxu1 %vm5811_vm9, %v13060_v11  ;;  %v2559_v13 = vpop.f32.mrf.mxu3  ;;  %v3592_v11 = vsel %vm2913_vm3, %v2503_v9, %v3254_v1  ;;  %v8203_v9 = vld [vmem:[%s12480_s0 + $0x538] sm:$0xff] }
 0x445   :  { %v2560_v17 = vadd.f32 %v11539_v40, %v2559_v13  ;;  %v2505_v13 = vadd.f32 %v11539_v40, %v11405_v38 }
 0x447   :  { %vm2936_vm14 = vcmp.gt.f32.partialorder %v2560_v17, 0.0  ;;  %v3277_v30 = vmul.f32 %v11561_v8, %v2560_v17  ;;  %vm2914_vm1 = vcmp.gt.f32.partialorder %v2505_v13, 0.0 }
 0x448   :  { %7848 = vmatmul.msk.bf16.gmra.mxu3 %vm1253_vm2, %v8201_v61  ;;  %v5719_v61 = vunpack.c.l.b16 %v5269_v37 }
 0x449   :  { %v3615_v22 = vsel %vm2936_vm14, %v2560_v17, %v3277_v30  ;;  %v5718_v17 = vunpack.c.l.b16 %v5268_v62 }
 0x44a   :  { %v5045_v54 = vmax.f32 %v13062_v36, %v3615_v22  ;;  %v4944_v22 = vmax.f32 %v13068_v2, %v3592_v11  ;;  %v3255_v36 = vmul.f32 %v11561_v8, %v2505_v13 }
 0x44b   :  { %v5777_v59 = vpack.c.b16 %v5719_v61, %v5718_v17 }
 0x44c   :  { %v2562_v42 = vpop.f32.mrf.mxu3  ;;  %v3593_v38 = vsel %vm2914_vm1, %v2505_v13, %v3255_v36 }
 0x44d   :  { %v2563_v26 = vadd.f32 %v11539_v40, %v2562_v42 }
 0x44f   :  { %vm2937_vm15 = vcmp.gt.f32.partialorder %v2563_v26, 0.0  ;;  %v3278_v49 = vmul.f32 %v11561_v8, %v2563_v26 }
 0x451   :  { %v3616_v4 = vsel %vm2937_vm15, %v2563_v26, %v3278_v49 }
 0x452   :  { %v5046_v58 = vmax.f32 %v13064_v24, %v3616_v4  ;;  %v4945_v4 = vmax.f32 %v13069_v0, %v3593_v38 }
 0x454   :  { %7872 = vmatmul.msk.bf16.gmra.mxu1 %vm5811_vm9, %v5776_v43  ;;  %v5130_v57 = vmax.f32 %v5044_v44, %v5046_v58  ;;  %v2564_v14 = vpop.f32.mrf.mxu3 }
 0x455   :  { %v2565_v23 = vadd.f32 %v11539_v40, %v2564_v14 }
 0x457   :  { %vm2938_vm0 = vcmp.gt.f32.partialorder %v2565_v23, 0.0  ;;  %v3279_v31 = vmul.f32 %v11561_v8, %v2565_v23 }
 0x458   :  { %7849 = vmatmul.msk.bf16.gmra.mxu3 %vm1253_vm2, %v8202_v56 }
 0x459   :  { %v3617_v43 = vsel %vm2938_vm0, %v2565_v23, %v3279_v31  ;;  %v13070_v23 = vld [vmem:[#allocation9_spill] sm:$0xff]  ;;  %v13071_v31 = vld [vmem:[#allocation6_spill] sm:$0xff] }
 0x45a   :  { %v5047_v44 = vmax.f32 %v13067_v63, %v3617_v43  ;;  %v2510_v1 = vadd.f32 %v11539_v40, %v13070_v23  ;;  %v13072_v63 = vld [vmem:[#allocation83_spill] sm:$0xff] }
 0x45c   :  { %v5131_v53 = vmax.f32 %v5045_v54, %v5047_v44  ;;  %v2567_v30 = vpop.f32.mrf.mxu3  ;;  %v2508_v54 = vadd.f32 %v11539_v40, %v11416_v21  ;;  %v11773_v21 = vld [vmem:[%s12482_s5] ss:$0 sm:$0xff]  ;;  %v3257_v17 = vmul.f32 %v11561_v8, %v2510_v1  ;;  %vm2916_vm8 = vcmp.gt.f32.partialorder %v2510_v1, 0.0 }
 0x45d   :  { %v2568_v25 = vadd.f32 %v11539_v40, %v2567_v30  ;;  %v5933_v56 = vadd.f32 %v11773_v21, %v13071_v31 }
 0x45e   :  { %v3256_v24 = vmul.f32 %v11561_v8, %v2508_v54  ;;  %vm2915_vm6 = vcmp.gt.f32.partialorder %v2508_v54, 0.0 }
 0x45f   :  { %vm2939_vm4 = vcmp.gt.f32.partialorder %v2568_v25, 0.0  ;;  %v3280_v42 = vmul.f32 %v11561_v8, %v2568_v25  ;;  %vm6091_vm10 = vcmp.gt.f32.partialorder %v5933_v56, 0.0 }
 0x460   :  { %v3594_v14 = vsel %vm2915_vm6, %v2508_v54, %v3256_v24 }
 0x461   :  { %v3618_v60 = vsel %vm2939_vm4, %v2568_v25, %v3280_v42  ;;  %v4946_v44 = vmax.f32 %v13072_v63, %v3594_v14  ;;  %v6144_v25 = vmul.f32 %v11785_v55, %v5933_v56  ;;  %v13073_v42 = vld [vmem:[#allocation77_spill] sm:$0xff] }
 0x462   :  { %v11758_v10 = vmax.f32 %v4944_v22, %v3618_v60 }
 0x463   :  { %v11807_v0 = vsel %vm6091_vm10, %v5933_v56, %v6144_v25  ;;  %v8204_v56 = vld [vmem:[%s12480_s0 + $0x540] sm:$0xff] }
 0x464   :  { %7873 = vmatmul.msk.bf16.gmra.mxu1 %vm5811_vm9, %v5777_v59  ;;  %v5178_v52 = vmax.f32 %v5130_v57, %v11758_v10  ;;  %v2569_v26 = vpop.f32.mrf.mxu3  ;;  %v13074_v59 = vld [vmem:[#allocation11_spill] sm:$0xff]  ;;  %v13080_v25 = vld [vmem:[#allocation18_spill] sm:$0xff] }
 0x465   :  { %v2570_v49 = vadd.f32 %v11539_v40, %v2569_v26  ;;  %v13075_v60 = vpack.c.b16 %v13073_v42, %v13074_v59  ;;  %v13076_v26 = vld [vmem:[#allocation103_spill] sm:$0xff] }
 0x466   :  { %v5190_v34 = vpack.c.bf16 %v5178_v52, %v5178_v52  ;;  %v3595_v52 = vsel %vm2916_vm8, %v2510_v1, %v3257_v17 }
 0x467   :  { %vm2940_vm5 = vcmp.gt.f32.partialorder %v2570_v49, 0.0  ;;  %v3281_v58 = vmul.f32 %v11561_v8, %v2570_v49 }
 0x468   :  { %7850 = vmatmul.msk.bf16.gmra.mxu3 %vm1253_vm2, %v8203_v9  ;;  %v11790_v11 = vunpack.c.l.b16 %v5190_v34  ;;  %v13077_v34 = vld [vmem:[#allocation86_spill] sm:$0xff] }
 0x469   :  { %v3619_v57 = vsel %vm2940_vm5, %v2570_v49, %v3281_v58  ;;  %v2513_v49 = vadd.f32 %v11539_v40, %v13076_v26  ;;  %v4947_v14 = vmax.f32 %v13077_v34, %v3595_v52  ;;  %v13081_v52 = vld [vmem:[#allocation15_spill] sm:$0xff]  ;;  %v13082_v26 = vld [vmem:[#allocation13_spill] sm:$0xff] }
 0x46a   :  { %v11776_v35 = vmax.f32 %v4945_v4, %v3619_v57  ;;  %v13084_v34 = vld [vmem:[#allocation63_spill] sm:$0xff] }
 0x46b   :  { %v3258_v23 = vmul.f32 %v11561_v8, %v2513_v49  ;;  %vm2917_vm13 = vcmp.gt.f32.partialorder %v2513_v49, 0.0 }
 0x46c   :  { %v5179_v62 = vmax.f32 %v5131_v53, %v11776_v35  ;;  %v2572_v37 = vpop.f32.mrf.mxu3 }
 0x46d   :  { %v2573_v43 = vadd.f32 %v11539_v40, %v2572_v37  ;;  %v3596_v37 = vsel %vm2917_vm13, %v2513_v49, %v3258_v23  ;;  %v13083_v49 = vpack.c.b16 %v13081_v52, %v13082_v26  ;;  %v13088_v52 = vld [vmem:[#allocation80_spill] sm:$0xff] }
 0x46e   :  { %v5191_v13 = vpack.c.bf16 %v5179_v62, %v5179_v62 }
 0x46f   :  { %vm2941_vm7 = vcmp.gt.f32.partialorder %v2573_v43, 0.0  ;;  %v3282_v30 = vmul.f32 %v11561_v8, %v2573_v43 }
 0x470   :  { %v11796_v53 = vunpack.c.l.b16 %v5191_v13 }
 0x471   :  { %v5960_v61 = vpop.f32.mrf.mxu1  ;;  %v3620_v22 = vsel %vm2941_vm7, %v2573_v43, %v3282_v30  ;;  %v13078_v43 = vld [vmem:[#allocation30_spill] sm:$0xff] }
 0x472   :  { %v5961_v2 = vadd.f32 %v11773_v21, %v5960_v61  ;;  %v5050_v38 = vmax.f32 %v4946_v44, %v3620_v22  ;;  %v2515_v63 = vadd.f32 %v11539_v40, %v13078_v43  ;;  %v13079_v44 = vld [vmem:[#allocation38_spill] sm:$0xff]  ;;  %v13085_v43 = vld [vmem:[#allocation21_spill] sm:$0xff] }
 0x473   :  { %v5938_v13 = vadd.f32 %v11773_v21, %v13079_v44 }
 0x474   :  { %vm6101_vm11 = vcmp.gt.f32.partialorder %v5961_v2, 0.0  ;;  %v6154_v36 = vmul.f32 %v11785_v55, %v5961_v2  ;;  %7874 = vmatmul.msk.bf16.gmra.mxu1 %vm5811_vm9, %v13075_v60  ;;  %v5214_v24 = vmax.f32 %v11758_v10, %v5050_v38  ;;  %v2574_v58 = vpop.f32.mrf.mxu3  ;;  %v3259_v22 = vmul.f32 %v11561_v8, %v2515_v63 }
 0x475   :  { %v2575_v57 = vadd.f32 %v11539_v40, %v2574_v58  ;;  %v6146_v59 = vmul.f32 %v11785_v55, %v5938_v13  ;;  %vm6093_vm15 = vcmp.gt.f32.partialorder %v5938_v13, 0.0 }
 0x476   :  { %v11809_v4 = vsel %vm6101_vm11, %v5961_v2, %v6154_v36  ;;  %v4948_v2 = vmax.f32 %v13080_v25, %v3596_v37 }
 0x477   :  { %vm2942_vm12 = vcmp.gt.f32.partialorder %v2575_v57, 0.0  ;;  %v3283_v31 = vmul.f32 %v11561_v8, %v2575_v57  ;;  %v11844_v23 = vsel %vm6093_vm15, %v5938_v13, %v6146_v59 }
 0x478   :  { %7851 = vmatmul.msk.bf16.gmra.mxu3 %vm1253_vm2, %v8204_v56  ;;  %vm2918_vm2 = vcmp.gt.f32.partialorder %v2515_v63, 0.0 }
 0x479   :  { %v11817_v1 = vpop.f32.mrf.mxu1  ;;  %v3621_v10 = vsel %vm2942_vm12, %v2575_v57, %v3283_v31  ;;  %v3597_v57 = vsel %vm2918_vm2, %v2515_v63, %v3259_v22  ;;  %v13086_v22 = vld [vmem:[#allocation36_spill] sm:$0xff] }
 0x47a   :  { %v5051_v62 = vmax.f32 %v4947_v14, %v3621_v10  ;;  %v2518_v14 = vadd.f32 %v11539_v40, %v13084_v34  ;;  %v4949_v44 = vmax.f32 %v13085_v43, %v3597_v57 }
 0x47c   :  { %v5215_v17 = vmax.f32 %v11776_v35, %v5051_v62  ;;  %v2577_v61 = vpop.f32.mrf.mxu3  ;;  %vm2919_vm4 = vcmp.gt.f32.partialorder %v2518_v14, 0.0 }
 0x47d   :  { %v2578_v30 = vadd.f32 %v11539_v40, %v2577_v61  ;;  %v3260_v61 = vmul.f32 %v11561_v8, %v2518_v14 }
 0x47f   :  { %vm2943_vm14 = vcmp.gt.f32.partialorder %v2578_v30, 0.0  ;;  %v3284_v42 = vmul.f32 %v11561_v8, %v2578_v30 }
 0x481   :  { %v5965_v36 = vpop.f32.mrf.mxu1  ;;  %v3622_v38 = vsel %vm2943_vm14, %v2578_v30, %v3284_v42  ;;  %v13087_v42 = vld [vmem:[#allocation28_spill] sm:$0xff] }
 0x482   :  { %v5966_v60 = vadd.f32 %v11773_v21, %v5965_v36  ;;  %v11840_v58 = vmax.f32 %v4948_v2, %v3622_v38  ;;  %v2520_v36 = vadd.f32 %v11539_v40, %v13086_v22  ;;  %v5943_v59 = vadd.f32 %v11773_v21, %v13087_v42  ;;  %v13092_v42 = vld [vmem:[#allocation109_spill] sm:$0xff] }
 0x484   :  { %vm6103_vm0 = vcmp.gt.f32.partialorder %v5966_v60, 0.0  ;;  %v6156_v35 = vmul.f32 %v11785_v55, %v5966_v60  ;;  %7875 = vmatmul.msk.bf16.gmra.mxu1 %vm5811_vm9, %v13083_v49  ;;  %v5262_v56 = vmax.f32 %v5214_v24, %v11840_v58  ;;  %v2579_v10 = vpop.f32.mrf.mxu3  ;;  %v3598_v24 = vsel %vm2919_vm4, %v2518_v14, %v3260_v61  ;;  %v13089_v61 = vld [vmem:[#allocation82_spill] sm:$0xff] }
 0x485   :  { %v2580_v37 = vadd.f32 %v11539_v40, %v2579_v10  ;;  %v4950_v26 = vmax.f32 %v13088_v52, %v3598_v24  ;;  %v3261_v34 = vmul.f32 %v11561_v8, %v2520_v36  ;;  %v6148_v10 = vmul.f32 %v11785_v55, %v5943_v59 }
 0x486   :  { %v11846_v31 = vsel %vm6103_vm0, %v5966_v60, %v6156_v35  ;;  %v5274_v25 = vpack.c.bf16 %v5262_v56, %v5262_v56  ;;  %vm2920_vm5 = vcmp.gt.f32.partialorder %v2520_v36, 0.0  ;;  %vm6095_vm6 = vcmp.gt.f32.partialorder %v5943_v59, 0.0 }
 0x487   :  { %vm2944_vm3 = vcmp.gt.f32.partialorder %v2580_v37, 0.0  ;;  %v3285_v13 = vmul.f32 %v11561_v8, %v2580_v37  ;;  %v3599_v22 = vsel %vm2920_vm5, %v2520_v36, %v3261_v34  ;;  %v13093_v36 = vld [vmem:[#allocation84_spill] sm:$0xff] }
 0x488   :  { %v11866_v49 = vunpack.c.l.b16 %v5274_v25  ;;  %v4951_v34 = vmax.f32 %v13093_v36, %v3599_v22  ;;  %v13096_v36 = vld [vmem:[#allocation88_spill] sm:$0xff] }
 0x489   :  { %v11854_v63 = vpop.f32.mrf.mxu1  ;;  %v3623_v30 = vsel %vm2944_vm3, %v2580_v37, %v3285_v13  ;;  %v13090_v13 = vld [vmem:[#allocation79_spill] sm:$0xff] }
 0x48a   :  { %v11857_v2 = vmax.f32 %v4949_v44, %v3623_v30  ;;  %v13091_v30 = vpack.c.b16 %v13089_v61, %v13090_v13  ;;  %v13094_v61 = vld [vmem:[#allocation106_spill] sm:$0xff] }
 0x48b   :  { %v2525_v13 = vadd.f32 %v11539_v40, %v13094_v61 }
 0x48c   :  { %v5263_v60 = vmax.f32 %v5215_v17, %v11857_v2  ;;  %v2582_v38 = vpop.f32.mrf.mxu3 }
 0x48d   :  { %v2583_v35 = vadd.f32 %v11539_v40, %v2582_v38  ;;  %v11883_v38 = vsel %vm6095_vm6, %v5943_v59, %v6148_v10  ;;  %v3263_v24 = vmul.f32 %v11561_v8, %v2525_v13  ;;  %vm2922_vm12 = vcmp.gt.f32.partialorder %v2525_v13, 0.0 }
 0x48e   :  { %v5275_v57 = vpack.c.bf16 %v5263_v60, %v5263_v60  ;;  %v2523_v60 = vadd.f32 %v11539_v40, %v13092_v42 }
 0x48f   :  { %vm2945_vm1 = vcmp.gt.f32.partialorder %v2583_v35, 0.0  ;;  %v3286_v14 = vmul.f32 %v11561_v8, %v2583_v35  ;;  %v3601_v61 = vsel %vm2922_vm12, %v2525_v13, %v3263_v24 }
 0x490   :  { %v11872_v17 = vunpack.c.l.b16 %v5275_v57  ;;  %vm2921_vm10 = vcmp.gt.f32.partialorder %v2523_v60, 0.0 }
 0x491   :  { %v5970_v56 = vpop.f32.mrf.mxu1  ;;  %v3624_v43 = vsel %vm2945_vm1, %v2583_v35, %v3286_v14 }
 0x492   :  { %v5971_v37 = vadd.f32 %v11773_v21, %v5970_v56  ;;  %v5054_v25 = vmax.f32 %v4950_v26, %v3624_v43  ;;  %v8209_v26 = vld [vmem:[%s12484_s7] sm:$0xff]  ;;  %v3262_v43 = vmul.f32 %v11561_v8, %v2523_v60 }
 0x493   :  { %6572 = vmatpush.bf16.msrb.mxu2 %v8209_v26 }
 0x494   :  { %vm6105_vm7 = vcmp.gt.f32.partialorder %v5971_v37, 0.0  ;;  %v6158_v44 = vmul.f32 %v11785_v55, %v5971_v37  ;;  %7876 = vmatmul.msk.bf16.gmra.mxu1 %vm5811_vm9, %v13091_v30  ;;  %v5298_v35 = vmax.f32 %v11840_v58, %v5054_v25  ;;  %v2584_v57 = vpop.f32.mrf.mxu3  ;;  %v13095_v30 = vld [vmem:[#allocation54_spill] sm:$0xff] }
 0x495   :  { %v2585_v14 = vadd.f32 %v11539_v40, %v2584_v57  ;;  %v5948_v25 = vadd.f32 %v11773_v21, %v13095_v30  ;;  %v13100_v30 = vld [vmem:[#allocation33_spill] sm:$0xff] }
 0x496   :  { %v11885_v52 = vsel %vm6105_vm7, %v5971_v37, %v6158_v44  ;;  %v3600_v44 = vsel %vm2921_vm10, %v2523_v60, %v3262_v43 }
 0x497   :  { %vm2946_vm8 = vcmp.gt.f32.partialorder %v2585_v14, 0.0  ;;  %v3287_v58 = vmul.f32 %v11561_v8, %v2585_v14  ;;  %v4952_v26 = vmax.f32 %v13096_v36, %v3600_v44  ;;  %v6150_v60 = vmul.f32 %v11785_v55, %v5948_v25 }
 0x498   :  { %vm6097_vm13 = vcmp.gt.f32.partialorder %v5948_v25, 0.0 }
 0x499   :  { %v11896_v59 = vpop.f32.mrf.mxu1  ;;  %v3625_v10 = vsel %vm2946_vm8, %v2585_v14, %v3287_v58  ;;  %v13097_v58 = vld [vmem:[#allocation95_spill] sm:$0xff]  ;;  %v11919_v36 = vsel %vm6097_vm13, %v5948_v25, %v6150_v60 }
 0x49a   :  { %v5055_v37 = vmax.f32 %v4951_v34, %v3625_v10  ;;  %v13098_v10 = vld [vmem:[#allocation93_spill] sm:$0xff] }
 0x49c   :  { %v5299_v22 = vmax.f32 %v11857_v2, %v5055_v37  ;;  %v2587_v42 = vpop.f32.mrf.mxu3  ;;  %v13099_v37 = vpack.c.b16 %v13097_v58, %v13098_v10  ;;  %v13101_v10 = vld [vmem:[#allocation75_spill] sm:$0xff] }
 0x49d   :  { %v2588_v57 = vadd.f32 %v11539_v40, %v2587_v42  ;;  %v2528_v42 = vadd.f32 %v11539_v40, %v13100_v30 }
 0x49f   :  { %vm2947_vm11 = vcmp.gt.f32.partialorder %v2588_v57, 0.0  ;;  %v3288_v14 = vmul.f32 %v11561_v8, %v2588_v57  ;;  %vm2923_vm15 = vcmp.gt.f32.partialorder %v2528_v42, 0.0 }
 0x4a1   :  { %v5975_v54 = vpop.f32.mrf.mxu1  ;;  %v3626_v43 = vsel %vm2947_vm11, %v2588_v57, %v3288_v14 }
 0x4a2   :  { %v5976_v34 = vadd.f32 %v11773_v21, %v5975_v54  ;;  %v11915_v44 = vmax.f32 %v4952_v26, %v3626_v43  ;;  %v3264_v26 = vmul.f32 %v11561_v8, %v2528_v42  ;;  %v2530_v43 = vadd.f32 %v11539_v40, %v11590_v32 }
 0x4a4   :  { %vm6107_vm14 = vcmp.gt.f32.partialorder %v5976_v34, 0.0  ;;  %v6160_v2 = vmul.f32 %v11785_v55, %v5976_v34  ;;  %7877 = vmatmul.msk.bf16.gmra.mxu1 %vm5811_vm9, %v13099_v37  ;;  %v5346_v54 = vmax.f32 %v5298_v35, %v11915_v44  ;;  %v2589_v57 = vpop.f32.mrf.mxu3  ;;  %v4953_v37 = vmax.f32 %v13101_v10, %v3601_v61 }
 0x4a5   :  { %v2590_v58 = vadd.f32 %v11539_v40, %v2589_v57  ;;  %v3602_v35 = vsel %vm2923_vm15, %v2528_v42, %v3264_v26  ;;  %vm2924_vm3 = vcmp.gt.f32.partialorder %v2530_v43, 0.0 }
 0x4a6   :  { %v11921_v7 = vsel %vm6107_vm14, %v5976_v34, %v6160_v2  ;;  %v5358_v60 = vpack.c.bf16 %v5346_v54, %v5346_v54  ;;  %v13102_v2 = vld [vmem:[#allocation62_spill] sm:$0xff]  ;;  %v4954_v45 = vmax.f32 %v13103_v48, %v3602_v35  ;;  %v3265_v54 = vmul.f32 %v11561_v8, %v2530_v43 }
 0x4a7   :  { %vm2948_vm2 = vcmp.gt.f32.partialorder %v2590_v58, 0.0  ;;  %v3289_v13 = vmul.f32 %v11561_v8, %v2590_v58  ;;  %v5953_v30 = vadd.f32 %v11773_v21, %v13102_v2 }
 0x4a8   :  { %v11941_v29 = vunpack.c.l.b16 %v5358_v60  ;;  %v13107_v60 = vld [vmem:[#allocation16_spill] sm:$0xff] }
 0x4a9   :  { %v11929_v24 = vpop.f32.mrf.mxu1  ;;  %v3627_v25 = vsel %vm2948_vm2, %v2590_v58, %v3289_v13  ;;  %v6152_v32 = vmul.f32 %v11785_v55, %v5953_v30  ;;  %vm6099_vm4 = vcmp.gt.f32.partialorder %v5953_v30, 0.0 }
 0x4aa   :  { %v11932_v34 = vmax.f32 %v4953_v37, %v3627_v25  ;;  %13104 = vst [vmem:[#allocation22_spill] sm:$0xff] %v11941_v29  ;;  %v13106_v25 = vld [vmem:[#allocation78_spill] sm:$0xff] }
 0x4ab   :  { %v13108_v35 = vpack.c.b16 %v13106_v25, %v13107_v60 }
 0x4ac   :  { %v5347_v61 = vmax.f32 %v5299_v22, %v11932_v34  ;;  %v2592_v57 = vpop.f32.mrf.mxu3 }
 0x4ad   :  { %v2593_v10 = vadd.f32 %v11539_v40, %v2592_v57  ;;  %v3603_v57 = vsel %vm2924_vm3, %v2530_v43, %v3265_v54 }
 0x4ae   :  { %v5359_v58 = vpack.c.bf16 %v5347_v61, %v5347_v61 }
 0x4af   :  { %vm2949_vm0 = vcmp.gt.f32.partialorder %v2593_v10, 0.0  ;;  %v3290_v42 = vmul.f32 %v11561_v8, %v2593_v10 }
 0x4b0   :  { %v11947_v22 = vunpack.c.l.b16 %v5359_v58  ;;  %v11958_v58 = vsel %vm6099_vm4, %v5953_v30, %v6152_v32 }
 0x4b1   :  { %v5980_v37 = vpop.f32.mrf.mxu1  ;;  %v3628_v13 = vsel %vm2949_vm0, %v2593_v10, %v3290_v42 }
 0x4b2   :  { %v5981_v26 = vadd.f32 %v11773_v21, %v5980_v37  ;;  %13105 = vst [vmem:[#allocation107_spill] sm:$0xff] %v11947_v22  ;;  %v5058_v2 = vmax.f32 %v4954_v45, %v3628_v13  ;;  %v2533_v37 = vadd.f32 %v11539_v40, %v11606_v33  ;;  %v13109_v45 = vld [vmem:[#allocation94_spill] sm:$0xff] }
 0x4b3   :  { %v4955_v13 = vmax.f32 %v13109_v45, %v3603_v57  ;;  %v8217_v57 = vld [vmem:[%s12485_s10 + $0x28] sm:$0xff] }
 0x4b4   :  { %vm6109_vm1 = vcmp.gt.f32.partialorder %v5981_v26, 0.0  ;;  %v6162_v48 = vmul.f32 %v11785_v55, %v5981_v26  ;;  %7878 = vmatmul.msk.bf16.gmra.mxu1 %vm5811_vm9, %v13108_v35  ;;  %v5382_v10 = vmax.f32 %v11915_v44, %v5058_v2  ;;  %v2594_v42 = vpop.f32.mrf.mxu3  ;;  %v3266_v35 = vmul.f32 %v11561_v8, %v2533_v37  ;;  %6686 = vmatpush.bf16.msrb.mxu3 %v8217_v57 }
 0x4b5   :  { %v2595_v60 = vadd.f32 %v11539_v40, %v2594_v42  ;;  %vm2925_vm6 = vcmp.gt.f32.partialorder %v2533_v37, 0.0  ;;  %v2535_v44 = vadd.f32 %v11539_v40, %v11619_v12  ;;  %v13110_v42 = vld [vmem:[#allocation3_spill] sm:$0xff] }
 0x4b6   :  { %v11960_v14 = vsel %vm6109_vm1, %v5981_v26, %v6162_v48  ;;  %v3604_v32 = vsel %vm2925_vm6, %v2533_v37, %v3266_v35 }
 0x4b7   :  { %vm2950_vm5 = vcmp.gt.f32.partialorder %v2595_v60, 0.0  ;;  %v3291_v33 = vmul.f32 %v11561_v8, %v2595_v60  ;;  %v4956_v45 = vmax.f32 %v13110_v42, %v3604_v32  ;;  %v3267_v61 = vmul.f32 %v11561_v8, %v2535_v44 }
 0x4b8   :  { %vm2926_vm8 = vcmp.gt.f32.partialorder %v2535_v44, 0.0 }
 0x4b9   :  { %v11968_v43 = vpop.f32.mrf.mxu1  ;;  %v3629_v30 = vsel %vm2950_vm5, %v2595_v60, %v3291_v33  ;;  %v13111_v60 = vld [vmem:[#allocation23_spill] sm:$0xff]  ;;  %v3605_v33 = vsel %vm2926_vm8, %v2535_v44, %v3267_v61 }
 0x4ba   :  { %v5059_v54 = vmax.f32 %v4955_v13, %v3629_v30 }
 0x4bc   :  { %v5383_v26 = vmax.f32 %v11932_v34, %v5059_v54  ;;  %v2597_v48 = vpop.f32.mrf.mxu3  ;;  %v13112_v34 = vld [vmem:[#allocation85_spill] sm:$0xff] }
 0x4bd   :  { %v2598_v2 = vadd.f32 %v11539_v40, %v2597_v48  ;;  %v13113_v13 = vpack.c.b16 %v13111_v60, %v13112_v34  ;;  %v13114_v48 = vld [vmem:[#allocation98_spill] sm:$0xff] }
 0x4be   :  { %v4957_v57 = vmax.f32 %v13114_v48, %v3605_v33 }
 0x4bf   :  { %vm2951_vm7 = vcmp.gt.f32.partialorder %v2598_v2, 0.0  ;;  %v3292_v37 = vmul.f32 %v11561_v8, %v2598_v2 }
 0x4c1   :  { %v5985_v25 = vpop.f32.mrf.mxu1  ;;  %v3630_v12 = vsel %vm2951_vm7, %v2598_v2, %v3292_v37 }
 0x4c2   :  { %v11985_v35 = vmax.f32 %v4956_v45, %v3630_v12  ;;  %v2538_v25 = vadd.f32 %v11539_v40, %v11627_v20 }
 0x4c4   :  { %7879 = vmatmul.msk.bf16.gmra.mxu1 %vm5811_vm9, %v13113_v13  ;;  %v5430_v30 = vmax.f32 %v5382_v10, %v11985_v35  ;;  %v2599_v54 = vpop.f32.mrf.mxu3  ;;  %v3268_v37 = vmul.f32 %v11561_v8, %v2538_v25  ;;  %vm2927_vm11 = vcmp.gt.f32.partialorder %v2538_v25, 0.0 }
 0x4c5   :  { %v2600_v32 = vadd.f32 %v11539_v40, %v2599_v54  ;;  %v13116_v54 = vld [vmem:[#allocation31_spill] sm:$0xff] }
 0x4c6   :  { %v5442_v45 = vpack.c.bf16 %v5430_v30, %v5430_v30  ;;  %v3606_v12 = vsel %vm2927_vm11, %v2538_v25, %v3268_v37 }
 0x4c7   :  { %vm2952_vm10 = vcmp.gt.f32.partialorder %v2600_v32, 0.0  ;;  %v3293_v2 = vmul.f32 %v11561_v8, %v2600_v32  ;;  %v4958_v48 = vmax.f32 %v13116_v54, %v3606_v12  ;;  %v2545_v54 = vadd.f32 %v11539_v40, %v11653_v19 }
 0x4c8   :  { %v11997_v20 = vunpack.c.l.b16 %v5442_v45 }
 0x4c9   :  { %v5986_v42 = vpop.f32.mrf.mxu1  ;;  %v3631_v60 = vsel %vm2952_vm10, %v2600_v32, %v3293_v2  ;;  %v2540_v32 = vadd.f32 %v11539_v40, %v11641_v41  ;;  %v2543_v41 = vadd.f32 %v11539_v40, %v11647_v6  ;;  %vm2930_vm0 = vcmp.gt.f32.partialorder %v2545_v54, 0.0 }
 0x4ca   :  { %v11994_v61 = vmax.f32 %v4957_v57, %v3631_v60  ;;  %13115 = vst [vmem:[#allocation40_spill] sm:$0xff] %v11997_v20  ;;  %v13118_v57 = vld [vmem:[#allocation87_spill] sm:$0xff] }
 0x4cb   :  { %vm2928_vm13 = vcmp.gt.f32.partialorder %v2540_v32, 0.0  ;;  %vm2929_vm14 = vcmp.gt.f32.partialorder %v2543_v41, 0.0 }
 0x4cc   :  { %v5431_v10 = vmax.f32 %v5383_v26, %v11994_v61  ;;  %v2602_v44 = vpop.f32.mrf.mxu3  ;;  %v13119_v26 = vld [vmem:[#allocation91_spill] sm:$0xff] }
 0x4cd   :  { %v2603_v33 = vadd.f32 %v11539_v40, %v2602_v44  ;;  %v13120_v2 = vpack.c.b16 %v13118_v57, %v13119_v26 }
 0x4ce   :  { %v5443_v34 = vpack.c.bf16 %v5431_v10, %v5431_v10  ;;  %v3269_v10 = vmul.f32 %v11561_v8, %v2540_v32 }
 0x4cf   :  { %vm2953_vm12 = vcmp.gt.f32.partialorder %v2603_v33, 0.0  ;;  %v3294_v30 = vmul.f32 %v11561_v8, %v2603_v33 }
 0x4d0   :  { %v12001_v42 = vunpack.c.l.b16 %v5443_v34  ;;  %v3607_v34 = vsel %vm2928_vm13, %v2540_v32, %v3269_v10  ;;  %v3271_v32 = vmul.f32 %v11561_v8, %v2545_v54 }
 0x4d1   :  { %v5988_v13 = vpop.f32.mrf.mxu1  ;;  %v3632_v37 = vsel %vm2953_vm12, %v2603_v33, %v3294_v30  ;;  %v13121_v33 = vld [vmem:[#allocation2_spill] sm:$0xff]  ;;  %v3270_v30 = vmul.f32 %v11561_v8, %v2543_v41 }
 0x4d2   :  { %13117 = vst [vmem:[#allocation112_spill] sm:$0xff] %v12001_v42  ;;  %v12012_v60 = vmax.f32 %v4958_v48, %v3632_v37  ;;  %v5989_v57 = vadd.f32 %v11773_v21, %v5988_v13  ;;  %v5935_v48 = vadd.f32 %v11773_v21, %v13121_v33  ;;  %v13123_v37 = vld [vmem:[#allocation43_spill] sm:$0xff]  ;;  %v3609_v42 = vsel %vm2930_vm0, %v2545_v54, %v3271_v32 }
 0x4d3   :  { %v4959_v25 = vmax.f32 %v13123_v37, %v3607_v34  ;;  %v3608_v10 = vsel %vm2929_vm14, %v2543_v41, %v3270_v30  ;;  %v5968_v34 = vadd.f32 %v11773_v21, %v11854_v63  ;;  %v13124_v30 = vld [vmem:[#allocation46_spill] sm:$0xff] }
 0x4d4   :  { %7880 = vmatmul.msk.bf16.gmra.mxu1 %vm5811_vm9, %v13120_v2  ;;  %v2604_v45 = vpop.f32.mrf.mxu3  ;;  %v13122_v2 = vld [vmem:[#allocation42_spill] sm:$0xff]  ;;  %v6164_v19 = vmul.f32 %v11785_v55, %v5989_v57  ;;  %vm6092_vm15 = vcmp.gt.f32.partialorder %v5935_v48, 0.0  ;;  %vm6111_vm3 = vcmp.gt.f32.partialorder %v5989_v57, 0.0  ;;  %v6145_v33 = vmul.f32 %v11785_v55, %v5935_v48 }
 0x4d5   :  { %v2605_v26 = vadd.f32 %v11539_v40, %v2604_v45  ;;  %v5940_v6 = vadd.f32 %v11773_v21, %v13122_v2  ;;  %v5963_v45 = vadd.f32 %v11773_v21, %v11817_v1  ;;  %v4960_v20 = vmax.f32 %v13124_v30, %v3608_v10 }
 0x4d6   :  { %v12041_v29 = vsel %vm6111_vm3, %v5989_v57, %v6164_v19  ;;  %v2548_v1 = vadd.f32 %v11539_v40, %v11661_v28  ;;  %vm6104_vm6 = vcmp.gt.f32.partialorder %v5968_v34, 0.0  ;;  %v6157_v57 = vmul.f32 %v11785_v55, %v5968_v34 }
 0x4d7   :  { %vm2954_vm2 = vcmp.gt.f32.partialorder %v2605_v26, 0.0  ;;  %v3295_v13 = vmul.f32 %v11561_v8, %v2605_v26  ;;  %vm6094_vm4 = vcmp.gt.f32.partialorder %v5940_v6, 0.0  ;;  %v6147_v41 = vmul.f32 %v11785_v55, %v5940_v6 }
 0x4d8   :  { %vm6102_vm5 = vcmp.gt.f32.partialorder %v5963_v45, 0.0  ;;  %v13128_v28 = vmax.f32 %v11807_v0, %v11809_v4  ;;  %v6195_v0 = vsel %vm6092_vm15, %v5935_v48, %v6145_v33  ;;  %vm2931_vm11 = vcmp.gt.f32.partialorder %v2548_v1, 0.0 }
 0x4d9   :  { %v5990_v12 = vpop.f32.mrf.mxu1  ;;  %v3633_v37 = vsel %vm2954_vm2, %v2605_v26, %v3295_v13  ;;  %v13125_v26 = vld [vmem:[#allocation34_spill] sm:$0xff]  ;;  %v13126_v13 = vld [vmem:[#allocation39_spill] sm:$0xff]  ;;  %v6197_v4 = vsel %vm6094_vm4, %v5940_v6, %v6147_v41 }
 0x4da   :  { %v5991_v44 = vadd.f32 %v11773_v21, %v5990_v12  ;;  %v5063_v9 = vmax.f32 %v4959_v25, %v3633_v37  ;;  %v13127_v22 = vpack.c.b16 %v13125_v26, %v13126_v13  ;;  %v6155_v12 = vmul.f32 %v11785_v55, %v5963_v45  ;;  %v13130_v37 = vld [vmem:[#allocation57_spill] sm:$0xff] }
 0x4db   :  { %v12058_v32 = vmax.f32 %v13128_v28, %v12041_v29  ;;  %v4961_v30 = vmax.f32 %v13130_v37, %v3609_v42  ;;  %v6207_v13 = vsel %vm6104_vm6, %v5968_v34, %v6157_v57  ;;  %v3272_v42 = vmul.f32 %v11561_v8, %v2548_v1 }
 0x4dc   :  { %v2607_v56 = vpop.f32.mrf.mxu3  ;;  %v5467_v25 = vmax.f32 %v11994_v61, %v5063_v9  ;;  %v6165_v19 = vmul.f32 %v11785_v55, %v5991_v44  ;;  %v13129_v9 = vmax.f32 %v11844_v23, %v11846_v31  ;;  %vm6112_vm8 = vcmp.gt.f32.partialorder %v5991_v44, 0.0 }
 0x4dd   :  { %v2608_v54 = vadd.f32 %v11539_v40, %v2607_v56  ;;  %v6205_v31 = vsel %vm6102_vm5, %v5963_v45, %v6155_v12  ;;  %v6317_v57 = vmax.f32 %v6197_v4, %v6207_v13  ;;  %v13134_v13 = vld [vmem:[#allocation29_spill] sm:$0xff] }
 0x4de   :  { %v12083_v6 = vsel %vm6112_vm8, %v5991_v44, %v6165_v19  ;;  %v6315_v34 = vmax.f32 %v6195_v0, %v6205_v31  ;;  %v13132_v0 = vld [vmem:[#allocation49_spill] sm:$0xff] }
 0x4df   :  { %vm2955_vm7 = vcmp.gt.f32.partialorder %v2608_v54, 0.0  ;;  %v3296_v56 = vmul.f32 %v11561_v8, %v2608_v54 }
 0x4e0   :  { %v6355_v19 = vmax.f32 %v6315_v34, %v12083_v6 }
 0x4e1   :  { %v5993_v2 = vpop.f32.mrf.mxu1  ;;  %v3634_v26 = vsel %vm2955_vm7, %v2608_v54, %v3296_v56  ;;  %v13131_v54 = vmax.f32 %v11985_v35, %v12012_v60  ;;  %v12102_v56 = vld [vmem:[%s12478_s2] ss:$0 sm:$0xff] }
 0x4e2   :  { %v5994_v62 = vadd.f32 %v11773_v21, %v5993_v2  ;;  %v12080_v48 = vmax.f32 %v4960_v20, %v3634_v26  ;;  %v2550_v26 = vadd.f32 %v12102_v56, %v11675_v18 }
 0x4e4   :  { %vm6113_vm1 = vcmp.gt.f32.partialorder %v5994_v62, 0.0  ;;  %v6166_v63 = vmul.f32 %v11785_v55, %v5994_v62  ;;  %7881 = vmatmul.msk.bf16.gmra.mxu1 %vm5811_vm9, %v13127_v22  ;;  %v2609_v22 = vpop.f32.mrf.mxu3  ;;  %v5514_v45 = vmax.f32 %v13131_v54, %v12080_v48  ;;  %vm2932_vm0 = vcmp.gt.f32.partialorder %v2550_v26, 0.0 }
 0x4e5   :  { %v2610_v2 = vadd.f32 %v11539_v40, %v2609_v22 }
 0x4e6   :  { %v12061_v10 = vsel %vm6113_vm1, %v5994_v62, %v6166_v63  ;;  %v5526_v28 = vpack.c.bf16 %v5514_v45, %v5514_v45 }
 0x4e7   :  { %v12067_v61 = vmax.f32 %v13129_v9, %v12061_v10  ;;  %vm2956_vm10 = vcmp.gt.f32.partialorder %v2610_v2, 0.0  ;;  %v3297_v23 = vmul.f32 %v11561_v8, %v2610_v2 }
 0x4e8   :  { %v12097_v9 = vunpack.c.l.b16 %v5526_v28 }
 0x4e9   :  { %v6452_v62 = vmax.f32 %v12058_v32, %v12067_v61  ;;  %v5995_v63 = vpop.f32.mrf.mxu1  ;;  %v3635_v33 = vsel %vm2956_vm10, %v2610_v2, %v3297_v23  ;;  %v3610_v32 = vsel %vm2931_vm11, %v2548_v1, %v3272_v42  ;;  %v5973_v1 = vadd.f32 %v11773_v21, %v11896_v59  ;;  %v12118_v23 = vld [vmem:[%s12479_s3] ss:$0 sm:$0xff] }
 0x4ea   :  { %v5996_v40 = vadd.f32 %v11773_v21, %v5995_v63  ;;  %v12090_v12 = vmax.f32 %v4961_v30, %v3635_v33  ;;  %v13133_v30 = vld [vmem:[#allocation32_spill] sm:$0xff]  ;;  %v3273_v28 = vmul.f32 %v12118_v23, %v2550_v26  ;;  %vm6552_vm10 = vcmask 392192  }
 0x4eb   :  { %v5945_v63 = vadd.f32 %v11773_v21, %v13133_v30  ;;  %vm6106_vm2 = vcmp.gt.f32.partialorder %v5973_v1, 0.0 }
 0x4ec   :  { %vm6114_vm12 = vcmp.gt.f32.partialorder %v5996_v40, 0.0  ;;  %v6167_v41 = vmul.f32 %v11785_v55, %v5996_v40  ;;  %v5515_v8 = vmax.f32 %v5467_v25, %v12090_v12  ;;  %v2612_v44 = vpop.f32.mrf.mxu3  ;;  %v4962_v25 = vmax.f32 %v13132_v0, %v3610_v32 }
 0x4ed   :  { %v2613_v2 = vadd.f32 %v12102_v56, %v2612_v44  ;;  %vm6096_vm15 = vcmp.gt.f32.partialorder %v5945_v63, 0.0  ;;  %v2553_v32 = vadd.f32 %v12102_v56, %v11681_v50 }
 0x4ee   :  { %v12092_v20 = vsel %vm6114_vm12, %v5996_v40, %v6167_v41  ;;  %v5527_v61 = vpack.c.bf16 %v5515_v8, %v5515_v8  ;;  %v13135_v40 = vld [vmem:[#allocation52_spill] sm:$0xff]  ;;  %v6159_v41 = vmul.f32 %v11785_v55, %v5973_v1  ;;  %v13137_v8 = vmax.f32 %v11883_v38, %v11885_v52 }
 0x4ef   :  { %v6357_v22 = vmax.f32 %v6317_v57, %v12092_v20  ;;  %vm2957_vm13 = vcmp.gt.f32.partialorder %v2613_v2, 0.0  ;;  %v3298_v31 = vmul.f32 %v12118_v23, %v2613_v2  ;;  %v13136_v42 = vpack.c.b16 %v13134_v13, %v13135_v40  ;;  %v13139_v13 = vld [vmem:[#allocation102_spill] sm:$0xff] }
 0x4f0   :  { %v12109_v37 = vunpack.c.l.b16 %v5527_v61  ;;  %v6149_v57 = vmul.f32 %v11785_v55, %v5945_v63  ;;  %v3274_v38 = vmul.f32 %v12118_v23, %v2553_v32  ;;  %v2555_v52 = vadd.f32 %v12102_v56, %v11687_v39 }
 0x4f1   :  { %v6453_v35 = vmax.f32 %v6355_v19, %v6357_v22  ;;  %v5998_v60 = vpop.f32.mrf.mxu1  ;;  %v3636_v18 = vsel %vm2957_vm13, %v2613_v2, %v3298_v31  ;;  %vm2933_vm4 = vcmp.gt.f32.partialorder %v2553_v32, 0.0  ;;  %v13138_v31 = vld [vmem:[#allocation35_spill] sm:$0xff] }
 0x4f2   :  { %v5999_v4 = vadd.f32 %v11773_v21, %v5998_v60  ;;  %v5798_v33 = vpack.c.b16 %v12109_v37, %v12097_v9  ;;  %v12131_v45 = vmax.f32 %v4962_v25, %v3636_v18  ;;  %v6209_v60 = vsel %vm6106_vm2, %v5973_v1, %v6159_v41 }
 0x4f3   :  { %v6199_v0 = vsel %vm6096_vm15, %v5945_v63, %v6149_v57  ;;  %v3611_v25 = vsel %vm2932_vm0, %v2550_v26, %v3273_v28  ;;  %v5950_v63 = vadd.f32 %v11773_v21, %v13139_v13  ;;  %v3612_v40 = vsel %vm2933_vm4, %v2553_v32, %v3274_v38 }
 0x4f4   :  { %vm6115_vm14 = vcmp.gt.f32.partialorder %v5999_v4, 0.0  ;;  %v6168_v59 = vmul.f32 %v11785_v55, %v5999_v4  ;;  %7882 = vmatmul.msk.bf16.gmra.mxu1 %vm5811_vm9, %v13136_v42  ;;  %v2614_v34 = vpop.f32.mrf.mxu3  ;;  %v5550_v19 = vmax.f32 %v12080_v48, %v12131_v45  ;;  %v6319_v50 = vmax.f32 %v6199_v0, %v6209_v60 }
 0x4f5   :  { %v2615_v30 = vadd.f32 %v12102_v56, %v2614_v34  ;;  %v3275_v42 = vmul.f32 %v12118_v23, %v2555_v52  ;;  %vm2934_vm5 = vcmp.gt.f32.partialorder %v2555_v52, 0.0  ;;  %v5978_v28 = vadd.f32 %v11773_v21, %v11929_v24 }
 0x4f6   :  { %v12129_v54 = vsel %vm6115_vm14, %v5999_v4, %v6168_v59  ;;  %v6151_v60 = vmul.f32 %v11785_v55, %v5950_v63  ;;  %vm6098_vm11 = vcmp.gt.f32.partialorder %v5950_v63, 0.0  ;;  %v5983_v45 = vadd.f32 %v11773_v21, %v11968_v43 }
 0x4f7   :  { %v12139_v44 = vmax.f32 %v13137_v8, %v12129_v54  ;;  %vm2958_vm1 = vcmp.gt.f32.partialorder %v2615_v30, 0.0  ;;  %v3299_v39 = vmul.f32 %v12118_v23, %v2615_v30  ;;  %v3613_v38 = vsel %vm2934_vm5, %v2555_v52, %v3275_v42 }
 0x4f8   :  { %vm6108_vm8 = vcmp.gt.f32.partialorder %v5978_v28, 0.0  ;;  %v6161_v13 = vmul.f32 %v11785_v55, %v5978_v28  ;;  %v6163_v43 = vmul.f32 %v11785_v55, %v5983_v45  ;;  %vm6110_vm2 = vcmp.gt.f32.partialorder %v5983_v45, 0.0 }
 0x4f9   :  { %v6468_v22 = vmax.f32 %v6452_v62, %v12139_v44  ;;  %v6000_v61 = vpop.f32.mrf.mxu1  ;;  %v4963_v62 = vmax.f32 %v13138_v31, %v3611_v25  ;;  %v3637_v57 = vsel %vm2958_vm1, %v2615_v30, %v3299_v39  ;;  %v13144_v39 = vmax.f32 %v11919_v36, %v11921_v7 }
 0x4fa   :  { %v6001_v2 = vadd.f32 %v11773_v21, %v6000_v61 }
 0x4fb   :  { %v6472_v18 = vpack.c.bf16 %v6468_v22, %v6468_v22  ;;  %v5067_v61 = vmax.f32 %v4963_v62, %v3637_v57 }
 0x4fc   :  { %vm6116_vm3 = vcmp.gt.f32.partialorder %v6001_v2, 0.0  ;;  %v6169_v4 = vmul.f32 %v11785_v55, %v6001_v2  ;;  %v2617_v1 = vpop.f32.mrf.mxu3 }
 0x4fd   :  { %v2618_v32 = vadd.f32 %v12102_v56, %v2617_v1  ;;  %v5551_v24 = vmax.f32 %v12090_v12, %v5067_v61  ;;  %v6522_v30 = vunpack.c.l.b16 %v6472_v18  ;;  %v13145_v18 = vld [vmem:[#allocation56_spill] sm:$0xff] }
 0x4fe   :  { %v12153_v59 = vsel %vm6116_vm3, %v6001_v2, %v6169_v4  ;;  %v13140_v2 = vld [vmem:[#allocation100_spill] sm:$0xff]  ;;  %v13142_v4 = vld [vmem:[#allocation74_spill] sm:$0xff] }
 0x4ff   :  { %v12158_v26 = vmax.f32 %v6319_v50, %v12153_v59  ;;  %v4964_v0 = vmax.f32 %v13140_v2, %v3612_v40  ;;  %vm2959_vm7 = vcmp.gt.f32.partialorder %v2618_v32, 0.0  ;;  %v3300_v62 = vmul.f32 %v12118_v23, %v2618_v32 }
 0x501   :  { %v6469_v41 = vmax.f32 %v6453_v35, %v12158_v26  ;;  %v6003_v34 = vpop.f32.mrf.mxu1  ;;  %v13141_v35 = vld [vmem:[#allocation59_spill] sm:$0xff] }
 0x502   :  { %v6004_v8 = vadd.f32 %v11773_v21, %v6003_v34  ;;  %v13143_v50 = vpack.c.b16 %v13141_v35, %v13142_v4  ;;  %v4965_v34 = vmax.f32 %v13145_v18, %v3613_v38 }
 0x503   :  { %v6473_v25 = vpack.c.bf16 %v6469_v41, %v6469_v41  ;;  %v3638_v41 = vsel %vm2959_vm7, %v2618_v32, %v3300_v62  ;;  %v13147_v62 = vld [vmem:[#allocation65_spill] sm:$0xff] }
 0x504   :  { %vm6117_vm6 = vcmp.gt.f32.partialorder %v6004_v8, 0.0  ;;  %v6170_v22 = vmul.f32 %v11785_v55, %v6004_v8  ;;  %7883 = vmatmul.msk.bf16.gmra.mxu1 %vm5811_vm9, %v13143_v50  ;;  %v2619_v52 = vpop.f32.mrf.mxu3  ;;  %v5068_v57 = vmax.f32 %v4964_v0, %v3638_v41 }
 0x505   :  { %v6523_v31 = vunpack.c.l.b16 %v6473_v25  ;;  %v2620_v12 = vadd.f32 %v12102_v56, %v2619_v52  ;;  %v6211_v25 = vsel %vm6108_vm8, %v5978_v28, %v6161_v13  ;;  %v6201_v56 = vsel %vm6098_vm11, %v5950_v63, %v6151_v60  ;;  %v13146_v60 = vld [vmem:[#allocation101_spill] sm:$0xff]  ;;  %v13148_v13 = vld [vmem:[#allocation67_spill] sm:$0xff] }
 0x506   :  { %v12177_v1 = vsel %vm6117_vm6, %v6004_v8, %v6170_v22  ;;  %v5598_v36 = vmax.f32 %v5550_v19, %v5068_v57  ;;  %v6321_v22 = vmax.f32 %v6201_v56, %v6211_v25  ;;  %v13149_v52 = vpack.c.b16 %v13147_v62, %v13148_v13 }
 0x507   :  { %v6360_v40 = vmax.f32 %v13144_v39, %v12177_v1  ;;  %v6530_v42 = vpack.c.b16 %v6523_v31, %v6522_v30  ;;  %vm2960_vm12 = vcmp.gt.f32.partialorder %v2620_v12, 0.0  ;;  %v3301_v8 = vmul.f32 %v12118_v23, %v2620_v12 }
 0x508   :  { %v5955_v31 = vadd.f32 %v11773_v21, %v13146_v60  ;;  %v13156_v60 = vpack.c.b16 %v11667_v47, %v11665_v3  ;;  %v13159_v62 = vpack.c.b16 %v11872_v17, %v11866_v49  ;;  %v12280_v49 = vld [vmem:[%s12487_s9] ss:$0 sm:$0xff] }
 0x509   :  { %v6480_v61 = vmax.f32 %v12139_v44, %v6360_v40  ;;  %v6005_v2 = vpop.f32.mrf.mxu1  ;;  %7908 = vmatmul.msk.bf16.vlgmr.msrb.gmra.mxu2 %vm6552_vm10, %v6530_v42  ;;  %v3639_v32 = vsel %vm2960_vm12, %v2620_v12, %v3301_v8  ;;  %v5610_v44 = vpack.c.bf16 %v5598_v36, %v5598_v36  ;;  %v13150_v40 = vmax.f32 %v11958_v58, %v11960_v14 }
 0x50a   :  { %v6006_v7 = vadd.f32 %v11773_v21, %v6005_v2  ;;  %v5069_v38 = vmax.f32 %v4965_v34, %v3639_v32  ;;  %v6153_v41 = vmul.f32 %v11785_v55, %v5955_v31  ;;  %vm6100_vm15 = vcmp.gt.f32.partialorder %v5955_v31, 0.0 }
 0x50b   :  { %v12197_v28 = vunpack.c.l.b16 %v5610_v44  ;;  %v6213_v34 = vsel %vm6110_vm2, %v5983_v45, %v6163_v43  ;;  %v13152_v44 = vld [vmem:[#allocation104_spill] sm:$0xff]  ;;  %v13160_v43 = vld [vmem:[#allocation107_spill] sm:$0xff] }
 0x50c   :  { %vm6118_vm13 = vcmp.gt.f32.partialorder %v6006_v7, 0.0  ;;  %v6171_v0 = vmul.f32 %v11785_v55, %v6006_v7  ;;  %v5599_v4 = vmax.f32 %v5551_v24, %v5069_v38  ;;  %v6203_v2 = vsel %vm6100_vm15, %v5955_v31, %v6153_v41 }
 0x50d   :  { %v6323_v25 = vmax.f32 %v6203_v2, %v6213_v34  ;;  %v12292_v2 = vld [vmem:[%s12482_s5] ss:$0 sm:$0xff] }
 0x50e   :  { %v12194_v35 = vsel %vm6118_vm13, %v6006_v7, %v6171_v0  ;;  %v5611_v50 = vpack.c.bf16 %v5599_v4, %v5599_v4  ;;  %v13151_v0 = vld [vmem:[#allocation105_spill] sm:$0xff] }
 0x50f   :  { %v6361_v23 = vmax.f32 %v6321_v22, %v12194_v35 }
 0x510   :  { %v12203_v63 = vunpack.c.l.b16 %v5611_v50 }
 0x511   :  { %v6481_v30 = vmax.f32 %v12158_v26, %v6361_v23  ;;  %v6008_v48 = vpop.f32.mrf.mxu1  ;;  %v13154_v23 = vpack.c.b16 %v11579_v16, %v11571_v46  ;;  %v13157_v46 = vpack.c.b16 %v11703_v51, %v11700_v15  ;;  %v12271_v51 = vld [vmem:[%s12486_s8] ss:$0 sm:$0xff] }
 0x512   :  { %v6009_v19 = vadd.f32 %v11773_v21, %v6008_v48  ;;  %v5799_v26 = vpack.c.b16 %v12203_v63, %v12197_v28  ;;  %v13155_v48 = vpack.c.b16 %v11633_v5, %v11631_v27 }
 0x514   :  { %vm6119_vm14 = vcmp.gt.f32.partialorder %v6009_v19, 0.0  ;;  %v6172_v24 = vmul.f32 %v11785_v55, %v6009_v19  ;;  %7884 = vmatmul.msk.bf16.gmra.mxu1 %vm5811_vm9, %v13149_v52 }
 0x516   :  { %v12215_v39 = vsel %vm6119_vm14, %v6009_v19, %v6172_v24  ;;  %v13158_v24 = vpack.c.b16 %v11796_v53, %v11790_v11  ;;  %v8216_v11 = vld [vmem:[%s12485_s10 + $0x20] sm:$0xff] }
 0x517   :  { %v6362_v42 = vmax.f32 %v13150_v40, %v12215_v39  ;;  %6687 = vmatpush.bf16.msrb.mxu3 %v8216_v11  ;;  %v13161_v40 = vld [vmem:[#allocation22_spill] sm:$0xff] }
 0x519   :  { %v6496_v12 = vmax.f32 %v6480_v61, %v6362_v42  ;;  %v6010_v18 = vpop.f32.mrf.mxu1  ;;  %v13153_v61 = vpack.c.b16 %v13151_v0, %v13152_v44  ;;  %v13162_v42 = vpack.c.b16 %v13160_v43, %v13161_v40  ;;  %v12304_v44 = vld [vmem:[%s12483_s6] ss:$0 sm:$0xff] }
 0x51a   :  { %v6011_v57 = vadd.f32 %v11773_v21, %v6010_v18 }
 0x51b   :  { %v6500_v56 = vpack.c.bf16 %v6496_v12, %v6496_v12 }
 0x51c   :  { %vm6120_vm0 = vcmp.gt.f32.partialorder %v6011_v57, 0.0  ;;  %v6173_v8 = vmul.f32 %v11785_v55, %v6011_v57 }
 0x51d   :  { %v6524_v38 = vunpack.c.l.b16 %v6500_v56 }
 0x51e   :  { %v12224_v7 = vsel %vm6120_vm0, %v6011_v57, %v6173_v8 }
 0x51f   :  { %v6363_v36 = vmax.f32 %v6323_v25, %v12224_v7 }
 0x521   :  { %v6497_v14 = vmax.f32 %v6481_v30, %v6363_v36  ;;  %v6013_v58 = vpop.f32.mrf.mxu1 }
 0x523   :  { %v6501_v32 = vpack.c.bf16 %v6497_v14, %v6497_v14 }
 0x524   :  { %7885 = vmatmul.msk.bf16.gmra.mxu1 %vm5811_vm9, %v13153_v61 }
 0x525   :  { %v6525_v21 = vunpack.c.l.b16 %v6501_v32 }
 0x527   :  { %v6531_v22 = vpack.c.b16 %v6525_v21, %v6524_v38 }
 0x529   :  { %v6014_v4 = vpop.f32.mrf.mxu1  ;;  %7909 = vmatmul.msk.bf16.gmra.mxu2 %vm6552_vm10, %v6531_v22 }
 0x531   :  { %v6016_v55 = vpop.f32.mrf.mxu1 }
 0x532   :  { %v6017_v8 = vadd.f32 %v12292_v2, %v6016_v55 }
 0x534   :  { %7886 = vmatmul.msk.bf16.gmra.mxu1 %vm5811_vm9, %v13154_v23  ;;  %v6174_v61 = vmul.f32 %v12304_v44, %v6017_v8  ;;  %vm6121_vm1 = vcmp.gt.f32.partialorder %v6017_v8, 0.0 }
 0x536   :  { %v6224_v4 = vsel %vm6121_vm1, %v6017_v8, %v6174_v61  ;;  %vm6676_vm1 = vcmask 523264  }
 0x539   :  { %v6018_v50 = vpop.f32.mrf.mxu1 }
 0x53a   :  { %v6019_v23 = vadd.f32 %v12292_v2, %v6018_v50 }
 0x53c   :  { %vm6122_vm8 = vcmp.gt.f32.partialorder %v6019_v23, 0.0 }
 0x541   :  { %v6021_v30 = vpop.f32.mrf.mxu1 }
 0x542   :  { %v6022_v56 = vadd.f32 %v12292_v2, %v6021_v30 }
 0x544   :  { %7887 = vmatmul.msk.bf16.gmra.mxu1 %vm5811_vm9, %v13155_v48  ;;  %v6176_v38 = vmul.f32 %v12304_v44, %v6022_v56  ;;  %vm6123_vm5 = vcmp.gt.f32.partialorder %v6022_v56, 0.0 }
 0x546   :  { %v6226_v30 = vsel %vm6123_vm5, %v6022_v56, %v6176_v38 }
 0x547   :  { %v6386_v50 = vmax.f32 %v12061_v10, %v6226_v30 }
 0x549   :  { %v6023_v45 = vpop.f32.mrf.mxu1 }
 0x54a   :  { %v6024_v48 = vadd.f32 %v12292_v2, %v6023_v45 }
 0x54c   :  { %v6177_v45 = vmul.f32 %v12304_v44, %v6024_v48  ;;  %vm6124_vm11 = vcmp.gt.f32.partialorder %v6024_v48, 0.0 }
 0x551   :  { %v12240_v19 = vpop.f32.mrf.mxu1 }
 0x554   :  { %7888 = vmatmul.msk.bf16.gmra.mxu1 %vm5811_vm9, %v13156_v60 }
 0x559   :  { %v12246_v31 = vpop.f32.mrf.mxu1 }
 0x561   :  { %v12248_v16 = vpop.f32.mrf.mxu1 }
 0x564   :  { %7889 = vmatmul.msk.bf16.gmra.mxu1 %vm5811_vm9, %v13157_v46 }
 0x569   :  { %v12254_v27 = vpop.f32.mrf.mxu1 }
 0x571   :  { %v12256_v5 = vpop.f32.mrf.mxu1 }
 0x572   :  { %v6037_v28 = vadd.f32 %v12292_v2, %v12256_v5 }
 0x574   :  { %7890 = vmatmul.msk.bf16.gmra.mxu1 %vm5811_vm9, %v13158_v24 }
 0x579   :  { %v12262_v3 = vpop.f32.mrf.mxu1 }
 0x581   :  { %v6041_v47 = vpop.f32.mrf.mxu1 }
 0x584   :  { %7891 = vmatmul.msk.bf16.gmra.mxu1 %vm5811_vm9, %v13159_v62  ;;  %v13163_v62 = vld [vmem:[#allocation112_spill] sm:$0xff] }
 0x589   :  { %v6042_v15 = vpop.f32.mrf.mxu1 }
 0x58a   :  { %v13164_v15 = vld [vmem:[#allocation40_spill] sm:$0xff] }
 0x58b   :  { %v13165_v11 = vpack.c.b16 %v13163_v62, %v13164_v15 }
 0x58c   :  { %v6574_v53 = vpop.f32.mrf.mxu2 }
 0x58d   :  { %v6575_v13 = vadd.f32 %v12271_v51, %v6574_v53  ;;  %v6384_v53 = vmax.f32 %v12041_v29, %v6224_v4  ;;  %v6027_v29 = vadd.f32 %v12292_v2, %v12240_v19 }
 0x58f   :  { %v6606_v17 = vmul.f32 %v12280_v49, %v6575_v13  ;;  %vm6595_vm3 = vcmp.gt.f32.partialorder %v6575_v13, 0.0  ;;  %vm6125_vm14 = vcmp.gt.f32.partialorder %v6027_v29, 0.0 }
 0x591   :  { %v6044_v52 = vpop.f32.mrf.mxu1  ;;  %v6614_v12 = vsel %vm6595_vm3, %v6575_v13, %v6606_v17  ;;  %v6175_v13 = vmul.f32 %v12304_v44, %v6019_v23 }
 0x592   :  { %v6622_v57 = vpack.c.bf16 %v6614_v12, %v6614_v12  ;;  %v6045_v32 = vadd.f32 %v12292_v2, %v6044_v52 }
 0x593   :  { %v6225_v12 = vsel %vm6122_vm8, %v6019_v23, %v6175_v13  ;;  %v6029_v23 = vadd.f32 %v12292_v2, %v12246_v31  ;;  %vm6129_vm8 = vcmp.gt.f32.partialorder %v6037_v28, 0.0 }
 0x594   :  { %7892 = vmatmul.msk.bf16.gmra.mxu1 %vm5811_vm9, %v13162_v42  ;;  %v6576_v41 = vpop.f32.mrf.mxu2  ;;  %v12296_v58 = vunpack.c.l.b16 %v6622_v57  ;;  %v6184_v22 = vmul.f32 %v12304_v44, %v6045_v32  ;;  %vm6131_vm6 = vcmp.gt.f32.partialorder %v6045_v32, 0.0 }
 0x595   :  { %v6577_v18 = vadd.f32 %v12271_v51, %v6576_v41  ;;  %vm6126_vm0 = vcmp.gt.f32.partialorder %v6029_v23, 0.0 }
 0x596   :  { %v6234_v46 = vsel %vm6131_vm6, %v6045_v32, %v6184_v22 }
 0x597   :  { %vm6596_vm4 = vcmp.gt.f32.partialorder %v6577_v18, 0.0  ;;  %v6607_v34 = vmul.f32 %v12280_v49, %v6577_v18  ;;  %v6424_v52 = vmax.f32 %v6384_v53, %v6234_v46 }
 0x599   :  { %v6615_v25 = vsel %vm6596_vm4, %v6577_v18, %v6607_v34  ;;  %v6046_v36 = vpop.f32.mrf.mxu1  ;;  %v6227_v18 = vsel %vm6124_vm11, %v6024_v48, %v6177_v45 }
 0x59a   :  { %v6623_v14 = vpack.c.bf16 %v6615_v25, %v6615_v25  ;;  %v6047_v24 = vadd.f32 %v12292_v2, %v6046_v36  ;;  %v6385_v25 = vmax.f32 %v12083_v6, %v6225_v12  ;;  %v6387_v36 = vmax.f32 %v12092_v20, %v6227_v18 }
 0x59c   :  { %v12299_v0 = vunpack.c.l.b16 %v6623_v14  ;;  %v6185_v40 = vmul.f32 %v12304_v44, %v6047_v24  ;;  %vm6132_vm12 = vcmp.gt.f32.partialorder %v6047_v24, 0.0  ;;  %v6178_v14 = vmul.f32 %v12304_v44, %v6027_v29 }
 0x59e   :  { %v6762_v21 = vpack.c.b16 %v12299_v0, %v12296_v58  ;;  %v6235_v34 = vsel %vm6132_vm12, %v6047_v24, %v6185_v40  ;;  %v6179_v24 = vmul.f32 %v12304_v44, %v6029_v23  ;;  %v8232_v58 = vld [vmem:[%s12488_s13 + $0x20] sm:$0xff]  ;;  %v8231_v0 = vld [vmem:[%s12488_s13 + $0x18] sm:$0xff] }
 0x59f   :  { %v6425_v61 = vmax.f32 %v6385_v25, %v6235_v34 }
 0x5a1   :  { %v6049_v55 = vpop.f32.mrf.mxu1 }
 0x5a2   :  { %v6050_v60 = vadd.f32 %v12292_v2, %v6049_v55  ;;  %v6228_v55 = vsel %vm6125_vm14, %v6027_v29, %v6178_v14 }
 0x5a3   :  { %v6388_v48 = vmax.f32 %v12129_v54, %v6228_v55  ;;  %v6032_v54 = vadd.f32 %v12292_v2, %v12248_v16 }
 0x5a4   :  { %vm6133_vm7 = vcmp.gt.f32.partialorder %v6050_v60, 0.0  ;;  %v6186_v47 = vmul.f32 %v12304_v44, %v6050_v60  ;;  %7893 = vmatmul.msk.bf16.gmra.mxu1 %vm5811_vm9, %v13165_v11  ;;  %v6229_v11 = vsel %vm6126_vm0, %v6029_v23, %v6179_v24 }
 0x5a5   :  { %vm6127_vm5 = vcmp.gt.f32.partialorder %v6032_v54, 0.0 }
 0x5a6   :  { %v6236_v17 = vsel %vm6133_vm7, %v6050_v60, %v6186_v47 }
 0x5a7   :  { %v6426_v43 = vmax.f32 %v6386_v50, %v6236_v17 }
 0x5a9   :  { %v6454_v42 = vmax.f32 %v6424_v52, %v6426_v43  ;;  %v6051_v41 = vpop.f32.mrf.mxu1  ;;  %v6389_v52 = vmax.f32 %v12153_v59, %v6229_v11  ;;  %v6180_v43 = vmul.f32 %v12304_v44, %v6032_v54 }
 0x5aa   :  { %v6052_v10 = vadd.f32 %v12292_v2, %v6051_v41 }
 0x5ab   :  { %v6230_v29 = vsel %vm6127_vm5, %v6032_v54, %v6180_v43 }
 0x5ac   :  { %vm6134_vm13 = vcmp.gt.f32.partialorder %v6052_v10, 0.0  ;;  %v6187_v57 = vmul.f32 %v12304_v44, %v6052_v10  ;;  %v6579_v8 = vpop.f32.mrf.mxu2 }
 0x5ad   :  { %v6580_v56 = vadd.f32 %v12271_v51, %v6579_v8  ;;  %v6390_v8 = vmax.f32 %v12177_v1, %v6230_v29 }
 0x5ae   :  { %v6237_v32 = vsel %vm6134_vm13, %v6052_v10, %v6187_v57  ;;  %v6034_v10 = vadd.f32 %v12292_v2, %v12254_v27 }
 0x5af   :  { %v6427_v38 = vmax.f32 %v6387_v36, %v6237_v32  ;;  %v6608_v22 = vmul.f32 %v12280_v49, %v6580_v56  ;;  %vm6597_vm2 = vcmp.gt.f32.partialorder %v6580_v56, 0.0 }
 0x5b0   :  { %vm6128_vm7 = vcmp.gt.f32.partialorder %v6034_v10, 0.0 }
 0x5b1   :  { %v6455_v19 = vmax.f32 %v6425_v61, %v6427_v38  ;;  %v6054_v4 = vpop.f32.mrf.mxu1  ;;  %v6616_v60 = vsel %vm6597_vm2, %v6580_v56, %v6608_v22  ;;  %v6181_v56 = vmul.f32 %v12304_v44, %v6034_v10  ;;  %v6182_v22 = vmul.f32 %v12304_v44, %v6037_v28 }
 0x5b2   :  { %v6055_v6 = vadd.f32 %v12292_v2, %v6054_v4  ;;  %v6624_v15 = vpack.c.bf16 %v6616_v60, %v6616_v60 }
 0x5b4   :  { %vm6135_vm15 = vcmp.gt.f32.partialorder %v6055_v6, 0.0  ;;  %v6188_v20 = vmul.f32 %v12304_v44, %v6055_v6  ;;  %7894 = vmatmul.msk.bf16.gmra.mxu1 %vm5811_vm9, %v5798_v33  ;;  %v6581_v30 = vpop.f32.mrf.mxu2  ;;  %v6649_v13 = vunpack.c.l.b16 %v6624_v15 }
 0x5b5   :  { %v6582_v46 = vadd.f32 %v12271_v51, %v6581_v30  ;;  %v6039_v30 = vadd.f32 %v12292_v2, %v12262_v3 }
 0x5b6   :  { %v6238_v31 = vsel %vm6135_vm15, %v6055_v6, %v6188_v20  ;;  %v6232_v20 = vsel %vm6129_vm8, %v6037_v28, %v6182_v22 }
 0x5b7   :  { %v12345_v47 = vmax.f32 %v6388_v48, %v6238_v31  ;;  %vm6598_vm3 = vcmp.gt.f32.partialorder %v6582_v46, 0.0  ;;  %v6609_v62 = vmul.f32 %v12280_v49, %v6582_v46  ;;  %v6392_v60 = vmax.f32 %v12215_v39, %v6232_v20 }
 0x5b8   :  { %vm6130_vm12 = vcmp.gt.f32.partialorder %v6039_v30, 0.0 }
 0x5b9   :  { %v6470_v9 = vmax.f32 %v6454_v42, %v12345_v47  ;;  %v6617_v37 = vsel %vm6598_vm3, %v6582_v46, %v6609_v62  ;;  %v6056_v33 = vpop.f32.mrf.mxu1 }
 0x5ba   :  { %v6625_v53 = vpack.c.bf16 %v6617_v37, %v6617_v37  ;;  %v6057_v50 = vadd.f32 %v12292_v2, %v6056_v33 }
 0x5bb   :  { %v6474_v16 = vpack.c.bf16 %v6470_v9, %v6470_v9 }
 0x5bc   :  { %v6650_v45 = vunpack.c.l.b16 %v6625_v53  ;;  %vm6136_vm4 = vcmp.gt.f32.partialorder %v6057_v50, 0.0  ;;  %v6189_v17 = vmul.f32 %v12304_v44, %v6057_v50 }
 0x5bd   :  { %v6526_v25 = vunpack.c.l.b16 %v6474_v16 }
 0x5be   :  { %v6651_v40 = vpack.c.b16 %v6650_v45, %v6649_v13  ;;  %v6239_v42 = vsel %vm6136_vm4, %v6057_v50, %v6189_v17 }
 0x5bf   :  { %v6429_v41 = vmax.f32 %v6389_v52, %v6239_v42 }
 0x5c0   :  { %7936 = vmatmul.msk.bf16.vlgmr.msrb.gmra.mxu3 %vm6676_vm1, %v6651_v40 }
 0x5c1   :  { %v6471_v12 = vmax.f32 %v6455_v19, %v6429_v41  ;;  %v6059_v18 = vpop.f32.mrf.mxu1  ;;  %v6231_v19 = vsel %vm6128_vm7, %v6034_v10, %v6181_v56  ;;  %v8227_v10 = vld [vmem:[%s12485_s10 + $0x78] sm:$0xff] }
 0x5c2   :  { %v6060_v34 = vadd.f32 %v12292_v2, %v6059_v18  ;;  %6748 = vmatpush.bf16.msra.mxu3 %v8227_v10 }
 0x5c3   :  { %v6475_v57 = vpack.c.bf16 %v6471_v12, %v6471_v12 }
 0x5c4   :  { %vm6137_vm6 = vcmp.gt.f32.partialorder %v6060_v34, 0.0  ;;  %v6190_v59 = vmul.f32 %v12304_v44, %v6060_v34  ;;  %7895 = vmatmul.msk.bf16.gmra.mxu1 %vm5811_vm9, %v5799_v26  ;;  %v6391_v26 = vmax.f32 %v12194_v35, %v6231_v19  ;;  %v6183_v35 = vmul.f32 %v12304_v44, %v6039_v30 }
 0x5c5   :  { %v6527_v36 = vunpack.c.l.b16 %v6475_v57  ;;  %v8225_v57 = vld [vmem:[%s12485_s10 + $0x68] sm:$0xff] }
 0x5c6   :  { %v6240_v14 = vsel %vm6137_vm6, %v6060_v34, %v6190_v59  ;;  %v6233_v62 = vsel %vm6130_vm12, %v6039_v30, %v6183_v35  ;;  %v8226_v34 = vld [vmem:[%s12485_s10 + $0x70] sm:$0xff]  ;;  %v8235_v30 = vld [vmem:[%s12488_s13 + $0x38] sm:$0xff]  ;;  %v8220_v35 = vld [vmem:[%s12485_s10 + $0x40] sm:$0xff] }
 0x5c7   :  { %v6430_v27 = vmax.f32 %v6390_v8, %v6240_v14  ;;  %v6532_v32 = vpack.c.b16 %v6527_v36, %v6526_v25  ;;  %v6393_v9 = vmax.f32 %v12224_v7, %v6233_v62  ;;  %6749 = vmatpush.bf16.msra.mxu3 %v8226_v34  ;;  %v8224_v8 = vld [vmem:[%s12485_s10 + $0x60] sm:$0xff]  ;;  %v8215_v25 = vld [vmem:[%s12485_s10 + $0x18] sm:$0xff]  ;;  %v8214_v36 = vld [vmem:[%s12485_s10 + $0x10] sm:$0xff]  ;;  %6937 = vmatpush.bf16.msra.mxu2 %v8235_v30 }
 0x5c8   :  { %v8213_v14 = vld [vmem:[%s12485_s10 + $0x8] sm:$0xff] }
 0x5c9   :  { %v6482_v61 = vmax.f32 %v12345_v47, %v6430_v27  ;;  %v6061_v38 = vpop.f32.mrf.mxu1  ;;  %7910 = vmatmul.msk.bf16.gmra.mxu2 %vm6552_vm10, %v6532_v32  ;;  %v8212_v27 = vld [vmem:[%s12485_s10] sm:$0xff] }
 0x5ca   :  { %v6062_v63 = vadd.f32 %v12292_v2, %v6061_v38 }
 0x5cb   :  { %6750 = vmatpush.bf16.msra.mxu3 %v8225_v57 }
 0x5cc   :  { %vm6138_vm9 = vcmp.gt.f32.partialorder %v6062_v63, 0.0  ;;  %v6191_v1 = vmul.f32 %v12304_v44, %v6062_v63 }
 0x5ce   :  { %v6241_v4 = vsel %vm6138_vm9, %v6062_v63, %v6191_v1  ;;  %vm6992_vm9 = vcmask 64512  }
 0x5cf   :  { %v6431_v55 = vmax.f32 %v6391_v26, %v6241_v4  ;;  %6751 = vmatpush.bf16.msra.mxu3 %v8224_v8 }
 0x5d1   :  { %v6483_v23 = vmax.f32 %v6429_v41, %v6431_v55  ;;  %v6064_v6 = vpop.f32.mrf.mxu1 }
 0x5d2   :  { %v6065_v5 = vadd.f32 %v12292_v2, %v6064_v6  ;;  %v8223_v6 = vld [vmem:[%s12485_s10 + $0x58] sm:$0xff] }
 0x5d3   :  { %6794 = vmatpush.bf16.msrb.mxu3 %v8215_v25  ;;  %v8251_v25 = vld [vmem:[%s12491_s14] ss:$0 sm:$0xff] }
 0x5d4   :  { %vm6139_vm11 = vcmp.gt.f32.partialorder %v6065_v5, 0.0  ;;  %v6192_v48 = vmul.f32 %v12304_v44, %v6065_v5 }
 0x5d6   :  { %v6242_v46 = vsel %vm6139_vm11, %v6065_v5, %v6192_v48  ;;  %v8222_v5 = vld [vmem:[%s12485_s10 + $0x50] sm:$0xff] }
 0x5d7   :  { %v6432_v24 = vmax.f32 %v6392_v60, %v6242_v46  ;;  %6795 = vmatpush.bf16.msrb.mxu3 %v8214_v36  ;;  %v8234_v48 = vld [vmem:[%s12488_s13 + $0x30] sm:$0xff]  ;;  %v8221_v60 = vld [vmem:[%s12485_s10 + $0x48] sm:$0xff] }
 0x5d8   :  { %6938 = vmatpush.bf16.msra.mxu2 %v8234_v48 }
 0x5d9   :  { %v6498_v31 = vmax.f32 %v6482_v61, %v6432_v24  ;;  %v6066_v47 = vpop.f32.mrf.mxu1 }
 0x5da   :  { %v6067_v15 = vadd.f32 %v12292_v2, %v6066_v47 }
 0x5db   :  { %v6502_v11 = vpack.c.bf16 %v6498_v31, %v6498_v31  ;;  %6796 = vmatpush.bf16.msrb.mxu3 %v8213_v14 }
 0x5dc   :  { %vm6140_vm13 = vcmp.gt.f32.partialorder %v6067_v15, 0.0  ;;  %v6193_v3 = vmul.f32 %v12304_v44, %v6067_v15 }
 0x5dd   :  { %v6528_v50 = vunpack.c.l.b16 %v6502_v11 }
 0x5de   :  { %v6243_v37 = vsel %vm6140_vm13, %v6067_v15, %v6193_v3 }
 0x5df   :  { %v6433_v33 = vmax.f32 %v6393_v9, %v6243_v37  ;;  %6797 = vmatpush.bf16.msrb.mxu3 %v8212_v27 }
 0x5e1   :  { %v6499_v54 = vmax.f32 %v6483_v23, %v6433_v33  ;;  %v6069_v39 = vpop.f32.mrf.mxu1 }
 0x5e3   :  { %v6503_v53 = vpack.c.bf16 %v6499_v54, %v6499_v54  ;;  %v8230_v54 = vld [vmem:[%s12488_s13 + $0x10] sm:$0xff] }
 0x5e5   :  { %v6529_v13 = vunpack.c.l.b16 %v6503_v53 }
 0x5e7   :  { %v6533_v45 = vpack.c.b16 %v6529_v13, %v6528_v50  ;;  %v8229_v50 = vld [vmem:[%s12488_s13 + $0x8] sm:$0xff] }
 0x5e9   :  { %v6070_v17 = vpop.f32.mrf.mxu1  ;;  %7911 = vmatmul.msk.bf16.gmra.mxu2 %vm6552_vm10, %v6533_v45  ;;  %v8228_v45 = vld [vmem:[%s12488_s13] sm:$0xff] }
 0x5f1   :  { %v6072_v52 = vpop.f32.mrf.mxu1 }
 0x5f9   :  { %v6073_v43 = vpop.f32.mrf.mxu1 }
 0x601   :  { %v6075_v2 = vpop.f32.mrf.mxu1 }
 0x609   :  { %v6076_v40 = vpop.f32.mrf.mxu1 }
 0x611   :  { %v6078_v42 = vpop.f32.mrf.mxu1 }
 0x612   :  { %v8249_v42 = vld [vmem:[%s12489_s11] ss:$0 sm:$0xff] }
 0x619   :  { %v6079_v44 = vpop.f32.mrf.mxu1 }
 0x621   :  { %v6081_v41 = vpop.f32.mrf.mxu1 }
 0x629   :  { %v6082_v7 = vpop.f32.mrf.mxu1 }
 0x631   :  { %v6084_v16 = vpop.f32.mrf.mxu1 }
 0x632   :  { %v8250_v16 = vld [vmem:[%s12490_s12] ss:$0 sm:$0xff] }
 0x639   :  { %v6085_v12 = vpop.f32.mrf.mxu1 }
 0x641   :  { %v6087_v18 = vpop.f32.mrf.mxu1 }
 0x649   :  { %v6088_v29 = vpop.f32.mrf.mxu1 }
 0x64c   :  { %v6584_v59 = vpop.f32.mrf.mxu2 }
 0x64d   :  { %v6585_v24 = vadd.f32 %v12271_v51, %v6584_v59 }
 0x64f   :  { %v6610_v47 = vmul.f32 %v12280_v49, %v6585_v24  ;;  %vm6599_vm15 = vcmp.gt.f32.partialorder %v6585_v24, 0.0 }
 0x651   :  { %v6618_v15 = vsel %vm6599_vm15, %v6585_v24, %v6610_v47 }
 0x652   :  { %v6626_v9 = vpack.c.bf16 %v6618_v15, %v6618_v15 }
 0x654   :  { %v6586_v56 = vpop.f32.mrf.mxu2  ;;  %v6806_v33 = vunpack.c.l.b16 %v6626_v9 }
 0x655   :  { %v6587_v46 = vadd.f32 %v12271_v51, %v6586_v56 }
 0x657   :  { %v6611_v31 = vmul.f32 %v12280_v49, %v6587_v46  ;;  %vm6600_vm2 = vcmp.gt.f32.partialorder %v6587_v46, 0.0 }
 0x659   :  { %v6619_v62 = vsel %vm6600_vm2, %v6587_v46, %v6611_v31 }
 0x65a   :  { %v6627_v3 = vpack.c.bf16 %v6619_v62, %v6619_v62 }
 0x65c   :  { %v6807_v37 = vunpack.c.l.b16 %v6627_v3 }
 0x65e   :  { %v6808_v11 = vpack.c.b16 %v6807_v37, %v6806_v33 }
 0x66c   :  { %v6589_v32 = vpop.f32.mrf.mxu2 }
 0x66d   :  { %v6590_v61 = vadd.f32 %v12271_v51, %v6589_v32 }
 0x66f   :  { %v6612_v38 = vmul.f32 %v12280_v49, %v6590_v61  ;;  %vm6601_vm10 = vcmp.gt.f32.partialorder %v6590_v61, 0.0 }
 0x671   :  { %v6620_v28 = vsel %vm6601_vm10, %v6590_v61, %v6612_v38 }
 0x672   :  { %v6628_v26 = vpack.c.bf16 %v6620_v28, %v6620_v28 }
 0x674   :  { %v6591_v19 = vpop.f32.mrf.mxu2  ;;  %v6714_v55 = vunpack.c.l.b16 %v6628_v26 }
 0x675   :  { %v6592_v63 = vadd.f32 %v12271_v51, %v6591_v19  ;;  %v8233_v51 = vld [vmem:[%s12488_s13 + $0x28] sm:$0xff] }
 0x676   :  { %6939 = vmatpush.bf16.msra.mxu2 %v8233_v51 }
 0x677   :  { %vm6602_vm14 = vcmp.gt.f32.partialorder %v6592_v63, 0.0  ;;  %v6613_v1 = vmul.f32 %v12280_v49, %v6592_v63  ;;  %v6689_v49 = vpop.f32.mrf.mxu3 }
 0x679   :  { %v6621_v22 = vsel %vm6602_vm14, %v6592_v63, %v6613_v1 }
 0x67a   :  { %v6629_v4 = vpack.c.bf16 %v6621_v22, %v6621_v22  ;;  %6940 = vmatpush.bf16.msra.mxu2 %v8232_v58  ;;  %v6987_v22 = vlaneseq }
 0x67c   :  { %v6715_v23 = vunpack.c.l.b16 %v6629_v4 }
 0x67e   :  { %v6716_v20 = vpack.c.b16 %v6715_v23, %v6714_v55  ;;  %6941 = vmatpush.bf16.msra.mxu2 %v8231_v0 }
 0x680   :  { %7969 = vmatmul.msk.bf16.vlgmr.msra.gmra.mxu3 %vm6676_vm1, %v6716_v20  ;;  %v6988_v20 = vand.u32 127, %v6987_v22 }
 0x681   :  { %6840 = vmatpush.bf16.msra.mxu3 %v8223_v6 }
 0x682   :  { %6942 = vmatpush.bf16.msra.mxu2 %v8230_v54  ;;  %vm6989_vm6 = vcmp.eq.s32.totalorder %v6988_v20, 0 }
 0x685   :  { %6841 = vmatpush.bf16.msra.mxu3 %v8222_v5 }
 0x686   :  { %6943 = vmatpush.bf16.msra.mxu2 %v8229_v50 }
 0x689   :  { %6842 = vmatpush.bf16.msra.mxu3 %v8221_v60 }
 0x68a   :  { %6944 = vmatpush.bf16.msra.mxu2 %v8228_v45 }
 0x68d   :  { %6843 = vmatpush.bf16.msra.mxu3 %v8220_v35 }
 0x690   :  { %7986 = vmatmul.msk.bf16.vlgmr.msrb.gmra.mxu3 %vm6676_vm1, %v6762_v21  ;;  %v6691_v21 = vpop.f32.mrf.mxu3 }
 0x6a0   :  { %8003 = vmatmul.msk.bf16.vlgmr.msra.gmra.mxu3 %vm6676_vm1, %v6808_v11 }
 0x703   :  { %v6753_v39 = vpop.f32.mrf.mxu3 }
 0x70b   :  { %v6755_v53 = vpop.f32.mrf.mxu3 }
 0x713   :  { %v6799_v13 = vpop.f32.mrf.mxu3 }
 0x714   :  { %v6800_v2 = vadd.f32 %v6799_v13, %v6689_v49 }
 0x71b   :  { %v6801_v17 = vpop.f32.mrf.mxu3 }
 0x71c   :  { %v6802_v41 = vadd.f32 %v6801_v17, %v6691_v21 }
 0x723   :  { %v6845_v52 = vpop.f32.mrf.mxu3 }
 0x724   :  { %v6846_v43 = vadd.f32 %v6845_v52, %v6753_v39 }
 0x726   :  { %v6850_v40 = vadd.f32 %v6846_v43, %v6800_v2 }
 0x728   :  { %v6856_v7 = vadd.f32 %v8249_v42, %v6850_v40 }
 0x72a   :  { %v6864_v29 = vmul.f32 %v8250_v16, %v6856_v7  ;;  %vm6859_vm0 = vcmp.gt.f32.partialorder %v6856_v7, 0.0 }
 0x72b   :  { %v6847_v44 = vpop.f32.mrf.mxu3 }
 0x72c   :  { %v6848_v12 = vadd.f32 %v6847_v44, %v6755_v53  ;;  %v6866_v57 = vsel %vm6859_vm0, %v6856_v7, %v6864_v29 }
 0x72e   :  { %v6851_v18 = vadd.f32 %v6848_v12, %v6802_v41 }
 0x730   :  { %v6857_v10 = vadd.f32 %v8249_v42, %v6851_v18 }
 0x732   :  { %vm6860_vm3 = vcmp.gt.f32.partialorder %v6857_v10, 0.0  ;;  %v6865_v34 = vmul.f32 %v8250_v16, %v6857_v10 }
 0x734   :  { %v6867_v59 = vsel %vm6860_vm3, %v6857_v10, %v6865_v34 }
 0x735   :  { %v6868_v8 = vpack.c.bf16 %v6867_v59, %v6866_v57 }
 0x737   :  { %6945 = vmatmul.bf16.vlgmr.msra.gmra.mxu2 %v6868_v8 }
 0x7ba   :  { %v6946_v36 = vpop.f32.mrf.mxu2 }
 0x7bb   :  { %v6947_v56 = vadd.f32 %v8251_v25, %v6946_v36 }
 0x7bd   :  { %v6951_v14 = vsub.f32 0.0, %v6947_v56 }
 0x7bf   :  { %v6953_v27 = vmul.f32 1.442695, %v6951_v14 }
 0x7c1   :  { %8252 = vpow2.f32 %v6953_v27 }
 0x7c2   :  { %v6948_v32 = vpop.f32.mrf.mxu2 }
 0x7c3   :  { %v6949_v61 = vadd.f32 %v8251_v25, %v6948_v32 }
 0x7c5   :  { %v6952_v38 = vsub.f32 0.0, %v6949_v61 }
 0x7c7   :  { %v8253_v19 = vpop.eup %8252  ;;  %v6955_v28 = vmul.f32 1.442695, %v6952_v38 }
 0x7c8   :  { %v6957_v63 = vadd.f32 1.0, %v8253_v19 }
 0x7c9   :  { %8254 = vpow2.f32 %v6955_v28 }
 0x7ca   :  { %8256 = vrcp.f32 %v6957_v63  ;;  %v6970_v6 = vand.u32 2147483648, %v6957_v63  ;;  %v6968_v5 = vand.u32 2147483647, %v6957_v63  ;;  %vm6964_vm1 = vweird.f32 %v6957_v63 }
 0x7cc   :  { %v6971_v35 = vor.u32 1.1754944e-38, %v6970_v6  ;;  %vm6969_vm7 = vcmp.eq.f32.partialorder %v6968_v5, 8.507059e+37 }
 0x7cf   :  { %v8255_v1 = vpop.eup %8254 }
 0x7d0   :  { %v8257_v26 = vpop.eup %8256  ;;  %v6958_v4 = vadd.f32 1.0, %v8255_v1 }
 0x7d1   :  { %v6960_v55 = vmul.f32 %v8257_v26, %v6957_v63  ;;  %vm6965_vm4 = vweird.f32 %v8257_v26 }
 0x7d2   :  { %8258 = vrcp.f32 %v6958_v4  ;;  %vm6966_vm5 = vmor %vm6964_vm1, %vm6965_vm4  ;;  %v6984_v15 = vand.u32 2147483648, %v6958_v4  ;;  %v6982_v9 = vand.u32 2147483647, %v6958_v4  ;;  %vm6978_vm11 = vweird.f32 %v6958_v4 }
 0x7d3   :  { %v6961_v23 = vsub.f32 1.0, %v6960_v55 }
 0x7d4   :  { %v6985_v33 = vor.u32 1.1754944e-38, %v6984_v15  ;;  %vm6983_vm13 = vcmp.eq.f32.partialorder %v6982_v9, 8.507059e+37 }
 0x7d5   :  { %v6962_v30 = vmul.f32 %v8257_v26, %v6961_v23 }
 0x7d7   :  { %v6963_v48 = vadd.f32 %v8257_v26, %v6962_v30 }
 0x7d8   :  { %v8259_v60 = vpop.eup %8258 }
 0x7d9   :  { %v6967_v46 = vsel %vm6966_vm5, %v8257_v26, %v6963_v48  ;;  %v6974_v24 = vmul.f32 %v8259_v60, %v6958_v4  ;;  %vm6979_vm8 = vweird.f32 %v8259_v60 }
 0x7da   :  { %v6972_v31 = vsel %vm6969_vm7, %v6971_v35, %v6967_v46  ;;  %vm6980_vm12 = vmor %vm6978_vm11, %vm6979_vm8 }
 0x7db   :  { %v6990_v47 = vsel %vm6989_vm6, %v6972_v31, %v6947_v56  ;;  %v6975_v62 = vsub.f32 1.0, %v6974_v24 }
 0x7dc   :  { %6993 = vst.msk [vmem:[%s12492_s15] sm:$0xff] %vm6992_vm9, %v6990_v47 }
 0x7dd   :  { %v6976_v3 = vmul.f32 %v8259_v60, %v6975_v62 }
 0x7df   :  { %v6977_v37 = vadd.f32 %v8259_v60, %v6976_v3 }
 0x7e1   :  { %v6981_v11 = vsel %vm6980_vm12, %v8259_v60, %v6977_v37 }
 0x7e2   :  { %v6986_v51 = vsel %vm6983_vm13, %v6985_v33, %v6981_v11 }
 0x7e3   :  { %v6991_v58 = vsel %vm6989_vm6, %v6986_v51, %v6949_v61 }
 0x7e4   :  { %6994 = vst.msk [vmem:[%s12492_s15 + $0x8] sm:$0xff] %vm6992_vm9, %v6991_v58 }

</bundles_post_ra>
